<compile_context>
chip_gen: v7x
topology: tpu7x:2x2x1
jax: 0.10.0
libtpu: 0.0.40
codegen_flags: <defaults>
</compile_context>

<pallas_src>
import jax
import jax.numpy as jnp
import numpy as np
from jax import lax
from jax.experimental import pallas as pl
from jax.experimental.pallas import tpu as pltpu


# ----------------------------------------------------------------------------
# Helper: expand activation rows y (M, C), grouped per image row of length wrow,
# into the kw-concatenated form (M, 3*C):
#   out[k, kw*C:(kw+1)*C] = y[k + kw - 1] within the same image row, else 0.
# ----------------------------------------------------------------------------
def _build_q(y, wrow):
    m, c = y.shape
    col = lax.broadcasted_iota(jnp.int32, (m, c), 0) % wrow
    zrow = jnp.zeros((1, c), y.dtype)
    yd = jnp.concatenate([zrow, y[:m - 1]], axis=0)            # shift down (j-1)
    yd = jnp.where(col == 0, jnp.zeros_like(yd), yd)           # left zero pad
    yu = jnp.concatenate([y[1:], zrow], axis=0)                # shift up (j+1)
    yu = jnp.where(col == wrow - 1, jnp.zeros_like(yu), yu)    # right zero pad
    return jnp.concatenate([yd, y, yu], axis=1)                # (M, 3*C)


# ----------------------------------------------------------------------------
# Fused TinyVGG kernel factory (one image per grid step).
# ----------------------------------------------------------------------------
def _make_kernel(H, W, Cin, C, O, Wq):
    Hh, Wh = H // 2, W // 2
    M = 256                       # matmul M per row block
    R1 = M // W                   # image rows per block, layers 1-2 (4)
    R2 = M // Wh                  # image rows per block, layers 3-4 (8)

    def kernel(x_ref, w1_ref, b1_ref, w2_ref, b2_ref, w3_ref, b3_ref,
               w4_ref, b4_ref, wfc_ref, bfc_ref, out_ref,
               q1, q2, q3, q4, poolbuf, feat):
        f32 = jnp.float32
        bf16 = jnp.bfloat16

        # ---- zero ONLY the top/bottom padding rows of the q buffers --------
        q1[pl.ds(0, W), :] = jnp.zeros((W, 3 * Cin), bf16)
        q1[pl.ds((H + 1) * W, W), :] = jnp.zeros((W, 3 * Cin), bf16)
        q2[pl.ds(0, W), :] = jnp.zeros((W, 3 * C), bf16)
        q2[pl.ds((H + 1) * W, W), :] = jnp.zeros((W, 3 * C), bf16)
        q3[pl.ds(0, Wh), :] = jnp.zeros((Wh, 3 * C), bf16)
        q3[pl.ds((Hh + 1) * Wh, Wh), :] = jnp.zeros((Wh, 3 * C), bf16)
        q4[pl.ds(0, Wh), :] = jnp.zeros((Wh, 3 * C), bf16)
        q4[pl.ds((Hh + 1) * Wh, Wh), :] = jnp.zeros((Wh, 3 * C), bf16)

        # ---- stage the input into q1 (kw-concat form), M rows per step -----
        def stage(blk, carry):
            start = pl.multiple_of(blk * M, M)
            xs = x_ref[pl.ds(start, M), :]                     # (M, Cin) bf16
            q1[pl.ds(start + W, M), :] = _build_q(xs, W)
            return carry
        lax.fori_loop(0, (H * W) // M, stage, 0)

        # ---- one conv layer: 3 accumulating MXU matmuls per row block ------
        def conv_layer(q_ref, w_ref, b_ref, hl, wl, r, epilogue):
            def body(blk, carry):
                i0 = blk * r
                acc = None
                for kh in range(3):                            # static unroll
                    start = pl.multiple_of((i0 + kh) * wl, wl)
                    lhs = q_ref[pl.ds(start, r * wl), :]       # (M, 3*Cin) bf16
                    part = jnp.dot(lhs, w_ref[kh],
                                   preferred_element_type=f32)
                    acc = part if acc is None else acc + part
                y = jnp.maximum(acc + b_ref[...], 0.0)         # (M, Cout) f32
                epilogue(i0, y)
                return carry
            lax.fori_loop(0, hl // r, body, 0)

        # ---- fused 2x2 maxpool epilogue helper ------------------------------
        def pool2x2(y, wl, r):
            # height pool in registers (max over consecutive image-row pairs)
            hm = jnp.concatenate(
                [jnp.maximum(y[(2 * t) * wl:(2 * t + 1) * wl],
                             y[(2 * t + 1) * wl:(2 * t + 2) * wl])
                 for t in range(r // 2)], axis=0)              # ((r//2)*wl, C)
            rows = (r // 2) * wl
            poolbuf[pl.ds(0, rows), :] = hm
            even = poolbuf[pl.ds(0, rows // 2, 2), :]          # width pool
            odd = poolbuf[pl.ds(1, rows // 2, 2), :]
            return jnp.maximum(even, odd)                      # ((r//2)*(wl//2), C)

        # ---- layer epilogues -------------------------------------------------
        def ep1(i0, y):            # conv1 -> q2 (aligned bulk store)
            q2[pl.ds((i0 + 1) * W, M), :] = _build_q(y, W).astype(bf16)

        def ep2(i0, y):            # conv2 -> pool -> q3
            pooled = pool2x2(y, W, R1)                         # ((R1//2)*Wh, C)
            q3[pl.ds(i0 * (Wh // 2) + Wh, (R1 // 2) * Wh), :] = (
                _build_q(pooled, Wh).astype(bf16))

        def ep3(i0, y):            # conv3 -> q4
            q4[pl.ds((i0 + 1) * Wh, M), :] = _build_q(y, Wh).astype(bf16)

        def ep4(i0, y):            # conv4 -> pool -> feature scratch
            pooled = pool2x2(y, Wh, R2)                        # ((R2//2)*Wq, C)
            feat[pl.ds(i0 * (Wq // 2), (R2 // 2) * Wq), :] = pooled

        # ---- run the four conv layers ---------------------------------------
        conv_layer(q1, w1_ref, b1_ref, H, W, R1, ep1)
        conv_layer(q2, w2_ref, b2_ref, H, W, R1, ep2)
        conv_layer(q3, w3_ref, b3_ref, Hh, Wh, R2, ep3)
        conv_layer(q4, w4_ref, b4_ref, Hh, Wh, R2, ep4)

        # ---- fused classifier: logits[o] = sum(feat * wfc[o]) + b[o] ---------
        fv = feat[...]                                         # (P, C) f32
        cols = []
        for o in range(O):                                     # static, tiny O
            prod = fv * wfc_ref[o]                             # (P, C)
            s = jnp.sum(prod, axis=0, keepdims=True)           # (1, C)
            cols.append(jnp.sum(s, axis=1, keepdims=True))     # (1, 1)
        out_ref[...] = jnp.concatenate(cols, axis=1) + bfc_ref[...]

    return kernel


def _fused_forward(x, w1, b1, w2, b2, w3, b3, w4, b4, wfc, bfc,
                   *, H, W, Cin, C, O):
    B = x.shape[0]
    Hh, Wh = H // 2, W // 2
    Hq, Wq = H // 4, W // 4
    P = Hq * Wq
    kernel = _make_kernel(H, W, Cin, C, O, Wq)

    call = pl.pallas_call(
        kernel,
        out_shape=jax.ShapeDtypeStruct((B, 1, O), jnp.float32),
        grid=(B,),
        in_specs=[
            pl.BlockSpec((None, H * W, Cin), lambda b: (b, 0, 0)),   # x
            pl.BlockSpec((3, 3 * Cin, C), lambda b: (0, 0, 0)),      # w1
            pl.BlockSpec((1, C), lambda b: (0, 0)),                  # b1
            pl.BlockSpec((3, 3 * C, C), lambda b: (0, 0, 0)),        # w2
            pl.BlockSpec((1, C), lambda b: (0, 0)),                  # b2
            pl.BlockSpec((3, 3 * C, C), lambda b: (0, 0, 0)),        # w3
            pl.BlockSpec((1, C), lambda b: (0, 0)),                  # b3
            pl.BlockSpec((3, 3 * C, C), lambda b: (0, 0, 0)),        # w4
            pl.BlockSpec((1, C), lambda b: (0, 0)),                  # b4
            pl.BlockSpec((O, P, C), lambda b: (0, 0, 0)),            # wfc
            pl.BlockSpec((1, O), lambda b: (0, 0)),                  # bfc
        ],
        out_specs=pl.BlockSpec((None, 1, O), lambda b: (b, 0, 0)),
        scratch_shapes=[
            pltpu.VMEM(((H + 2) * W, 3 * Cin), jnp.bfloat16),        # q1
            pltpu.VMEM(((H + 2) * W, 3 * C), jnp.bfloat16),          # q2
            pltpu.VMEM(((Hh + 2) * Wh, 3 * C), jnp.bfloat16),        # q3
            pltpu.VMEM(((Hh + 2) * Wh, 3 * C), jnp.bfloat16),        # q4
            pltpu.VMEM((128, C), jnp.float32),                       # poolbuf
            pltpu.VMEM((P, C), jnp.float32),                         # feat
        ],
        compiler_params=pltpu.CompilerParams(
            dimension_semantics=("parallel",),
            vmem_limit_bytes=32 * 1024 * 1024),
    )
    return call(x, w1, b1, w2, b2, w3, b3, w4, b4, wfc, bfc)


# ----------------------------------------------------------------------------
# Parameters (deterministic synthetic init, HWIO conv weights) and forward.
# ----------------------------------------------------------------------------
def init_params(key, in_ch, hidden, n_classes, feat_hw=16):
    ks = jax.random.split(key, 10)

    def conv_w(k, cin, cout):
        fan_in = cin * 9
        return (jax.random.normal(k, (3, 3, cin, cout), jnp.float32)
                * (2.0 / fan_in) ** 0.5)

    def bias(k, c):
        return jax.random.normal(k, (c,), jnp.float32) * 0.01

    F = hidden * feat_hw * feat_hw
    return {
        "w1a": conv_w(ks[0], in_ch, hidden),  "b1a": bias(ks[1], hidden),
        "w1b": conv_w(ks[2], hidden, hidden), "b1b": bias(ks[3], hidden),
        "w2a": conv_w(ks[4], hidden, hidden), "b2a": bias(ks[5], hidden),
        "w2b": conv_w(ks[6], hidden, hidden), "b2b": bias(ks[7], hidden),
        # wfc rows are in torch (C, H, W) flatten order, like nn.Flatten.
        "wfc": jax.random.normal(ks[8], (F, n_classes), jnp.float32) / jnp.sqrt(F),
        "bfc": bias(ks[9], n_classes),
    }


def tiny_vgg_forward(params, x_nchw):
    B, Cin, H, W = x_nchw.shape
    C = params["w1a"].shape[-1]
    O = params["wfc"].shape[-1]
    # The torch classifier expects hidden*16*16 features -> spatial must be 64x64.
    assert H == 64 and W == 64, "TinyVGG classifier requires 64x64 input"
    Hq, Wq = H // 4, W // 4

    # Layout glue only (no compute hoisting): NCHW -> (B, H*W, Cin) bf16.
    x = jnp.transpose(x_nchw, (0, 2, 3, 1)).reshape(B, H * W, Cin)
    x = x.astype(jnp.bfloat16)

    def cw(w):   # (3,3,ci,co) HWIO -> (3, 3*ci, co); per-kh rows ordered (kw, ci)
        return w.reshape(3, 3 * w.shape[2], w.shape[3]).astype(jnp.bfloat16)

    def cb(b):
        return b.reshape(1, -1).astype(jnp.float32)

    # Classifier weight: torch (C, Hq, Wq) flatten order -> (O, Hq*Wq, C),
    # matching the kernel's (row, channel) feature scratch layout.
    wfc = (params["wfc"].reshape(C, Hq, Wq, O).transpose(3, 1, 2, 0)
           .reshape(O, Hq * Wq, C).astype(jnp.float32))
    bfc = params["bfc"].reshape(1, O).astype(jnp.float32)

    out = _fused_forward(
        x,
        cw(params["w1a"]), cb(params["b1a"]), cw(params["w1b"]), cb(params["b1b"]),
        cw(params["w2a"]), cb(params["b2a"]), cw(params["w2b"]), cb(params["b2b"]),
        wfc, bfc, H=H, W=W, Cin=Cin, C=C, O=O)
    return out[:, 0, :]


# Pure-JAX reference (for correctness check only).
def reference_forward(params, x_nchw):
    x = jnp.transpose(x_nchw, (0, 2, 3, 1))

    def conv(x, w, b):
        y = jax.lax.conv_general_dilated(
            x, w, window_strides=(1, 1), padding="SAME",
            dimension_numbers=("NHWC", "HWIO", "NHWC"),
            precision=jax.lax.Precision.HIGHEST)
        return jax.nn.relu(y + b)

    def pool(x):
        B, H, W, C = x.shape
        return jnp.max(x.reshape(B, H // 2, 2, W // 2, 2, C), axis=(2, 4))

    x = pool(conv(conv(x, params["w1a"], params["b1a"]),
                  params["w1b"], params["b1b"]))
    x = pool(conv(conv(x, params["w2a"], params["b2a"]),
                  params["w2b"], params["b2b"]))
    x = jnp.transpose(x, (0, 3, 1, 2)).reshape(x.shape[0], -1)   # torch flatten
    return x @ params["wfc"] + params["bfc"]


if __name__ == "__main__":
    key = jax.random.PRNGKey(0)
    kx, kp = jax.random.split(key)

    # Spatial must be 64x64: two 2x2 pools -> 16x16, matching the
    # hidden*16*16 features expected by the classifier's Linear layer.
    B, Cin, H, W = 2, 3, 64, 64
    hidden, n_classes = 32, 3

    x = jax.random.normal(kx, (B, Cin, H, W), jnp.float32)
    params = init_params(kp, Cin, hidden, n_classes)

    fwd = jax.jit(tiny_vgg_forward)
    out = jax.block_until_ready(fwd(params, x))
    assert out.shape == (B, n_classes), out.shape

    ref = jax.block_until_ready(reference_forward(params, x))
    np.testing.assert_allclose(np.asarray(out), np.asarray(ref),
                               rtol=5e-2, atol=5e-2)
    print("KERNEL_OK")
</pallas_src>

<mosaic_0001>
module attributes {stable_mosaic.version = 11 : i64} {
  func.func @kernel(%arg0: i32, %arg1: memref<1x4096x3xbf16, #tpu.memory_space<vmem>>, %arg2: memref<3x9x32xbf16, #tpu.memory_space<vmem>>, %arg3: memref<1x32xf32, #tpu.memory_space<vmem>>, %arg4: memref<3x96x32xbf16, #tpu.memory_space<vmem>>, %arg5: memref<1x32xf32, #tpu.memory_space<vmem>>, %arg6: memref<3x96x32xbf16, #tpu.memory_space<vmem>>, %arg7: memref<1x32xf32, #tpu.memory_space<vmem>>, %arg8: memref<3x96x32xbf16, #tpu.memory_space<vmem>>, %arg9: memref<1x32xf32, #tpu.memory_space<vmem>>, %arg10: memref<3x256x32xf32, #tpu.memory_space<vmem>>, %arg11: memref<1x3xf32, #tpu.memory_space<vmem>>, %arg12: memref<1x1x3xf32, #tpu.memory_space<vmem>>, %arg13: memref<4224x9xbf16, #tpu.memory_space<vmem>>, %arg14: memref<4224x96xbf16, #tpu.memory_space<vmem>>, %arg15: memref<1088x96xbf16, #tpu.memory_space<vmem>>, %arg16: memref<1088x96xbf16, #tpu.memory_space<vmem>>, %arg17: memref<128x32xf32, #tpu.memory_space<vmem>>, %arg18: memref<256x32xf32, #tpu.memory_space<vmem>>) attributes {dimension_semantics = [#tpu.dimension_semantics<parallel>], iteration_bounds = array<i64: 2>, scalar_prefetch = 0 : i64, scratch_operands = 6 : i64, tpu.core_type = #tpu.core_type<tc>, window_params = [{transform_indices = @transform_0, window_bounds = array<i64: 1, 4096, 3>}, {pipeline_mode = #tpu.pipeline_mode<synchronous>, transform_indices = @transform_1, window_bounds = array<i64: 3, 9, 32>}, {pipeline_mode = #tpu.pipeline_mode<synchronous>, transform_indices = @transform_2, window_bounds = array<i64: 1, 32>}, {pipeline_mode = #tpu.pipeline_mode<synchronous>, transform_indices = @transform_3, window_bounds = array<i64: 3, 96, 32>}, {pipeline_mode = #tpu.pipeline_mode<synchronous>, transform_indices = @transform_4, window_bounds = array<i64: 1, 32>}, {pipeline_mode = #tpu.pipeline_mode<synchronous>, transform_indices = @transform_5, window_bounds = array<i64: 3, 96, 32>}, {pipeline_mode = #tpu.pipeline_mode<synchronous>, transform_indices = @transform_6, window_bounds = array<i64: 1, 32>}, {pipeline_mode = #tpu.pipeline_mode<synchronous>, transform_indices = @transform_7, window_bounds = array<i64: 3, 96, 32>}, {pipeline_mode = #tpu.pipeline_mode<synchronous>, transform_indices = @transform_8, window_bounds = array<i64: 1, 32>}, {pipeline_mode = #tpu.pipeline_mode<synchronous>, transform_indices = @transform_9, window_bounds = array<i64: 3, 256, 32>}, {pipeline_mode = #tpu.pipeline_mode<synchronous>, transform_indices = @transform_10, window_bounds = array<i64: 1, 3>}, {transform_indices = @transform_11, window_bounds = array<i64: 1, 1, 3>}]} {
    %cst = arith.constant 0.000000e+00 : bf16
    %0 = vector.broadcast %cst : bf16 to vector<64x9xbf16>
    %c0 = arith.constant 0 : index
    %c0_0 = arith.constant 0 : index
    %1 = vector.load %arg13[%c0, %c0_0] : memref<4224x9xbf16, #tpu.memory_space<vmem>>, vector<64x9xbf16>
    tpu.vector_store %arg13[%c0, %c0_0], %0 {strides = array<i32>} : memref<4224x9xbf16, #tpu.memory_space<vmem>>, vector<64x9xbf16>,
    %cst_1 = arith.constant 0.000000e+00 : bf16
    %2 = vector.broadcast %cst_1 : bf16 to vector<64x9xbf16>
    %c4160 = arith.constant 4160 : index
    %c0_2 = arith.constant 0 : index
    %3 = vector.load %arg13[%c4160, %c0_2] : memref<4224x9xbf16, #tpu.memory_space<vmem>>, vector<64x9xbf16>
    tpu.vector_store %arg13[%c4160, %c0_2], %2 {strides = array<i32>} : memref<4224x9xbf16, #tpu.memory_space<vmem>>, vector<64x9xbf16>,
    %cst_3 = arith.constant 0.000000e+00 : bf16
    %4 = vector.broadcast %cst_3 : bf16 to vector<64x96xbf16>
    %c0_4 = arith.constant 0 : index
    %c0_5 = arith.constant 0 : index
    %5 = vector.load %arg14[%c0_4, %c0_5] : memref<4224x96xbf16, #tpu.memory_space<vmem>>, vector<64x96xbf16>
    tpu.vector_store %arg14[%c0_4, %c0_5], %4 {strides = array<i32>} : memref<4224x96xbf16, #tpu.memory_space<vmem>>, vector<64x96xbf16>,
    %cst_6 = arith.constant 0.000000e+00 : bf16
    %6 = vector.broadcast %cst_6 : bf16 to vector<64x96xbf16>
    %c4160_7 = arith.constant 4160 : index
    %c0_8 = arith.constant 0 : index
    %7 = vector.load %arg14[%c4160_7, %c0_8] : memref<4224x96xbf16, #tpu.memory_space<vmem>>, vector<64x96xbf16>
    tpu.vector_store %arg14[%c4160_7, %c0_8], %6 {strides = array<i32>} : memref<4224x96xbf16, #tpu.memory_space<vmem>>, vector<64x96xbf16>,
    %cst_9 = arith.constant 0.000000e+00 : bf16
    %8 = vector.broadcast %cst_9 : bf16 to vector<32x96xbf16>
    %c0_10 = arith.constant 0 : index
    %c0_11 = arith.constant 0 : index
    %9 = vector.load %arg15[%c0_10, %c0_11] : memref<1088x96xbf16, #tpu.memory_space<vmem>>, vector<32x96xbf16>
    tpu.vector_store %arg15[%c0_10, %c0_11], %8 {strides = array<i32>} : memref<1088x96xbf16, #tpu.memory_space<vmem>>, vector<32x96xbf16>,
    %cst_12 = arith.constant 0.000000e+00 : bf16
    %10 = vector.broadcast %cst_12 : bf16 to vector<32x96xbf16>
    %c1056 = arith.constant 1056 : index
    %c0_13 = arith.constant 0 : index
    %11 = vector.load %arg15[%c1056, %c0_13] : memref<1088x96xbf16, #tpu.memory_space<vmem>>, vector<32x96xbf16>
    tpu.vector_store %arg15[%c1056, %c0_13], %10 {strides = array<i32>} : memref<1088x96xbf16, #tpu.memory_space<vmem>>, vector<32x96xbf16>,
    %cst_14 = arith.constant 0.000000e+00 : bf16
    %12 = vector.broadcast %cst_14 : bf16 to vector<32x96xbf16>
    %c0_15 = arith.constant 0 : index
    %c0_16 = arith.constant 0 : index
    %13 = vector.load %arg16[%c0_15, %c0_16] : memref<1088x96xbf16, #tpu.memory_space<vmem>>, vector<32x96xbf16>
    tpu.vector_store %arg16[%c0_15, %c0_16], %12 {strides = array<i32>} : memref<1088x96xbf16, #tpu.memory_space<vmem>>, vector<32x96xbf16>,
    %cst_17 = arith.constant 0.000000e+00 : bf16
    %14 = vector.broadcast %cst_17 : bf16 to vector<32x96xbf16>
    %c1056_18 = arith.constant 1056 : index
    %c0_19 = arith.constant 0 : index
    %15 = vector.load %arg16[%c1056_18, %c0_19] : memref<1088x96xbf16, #tpu.memory_space<vmem>>, vector<32x96xbf16>
    tpu.vector_store %arg16[%c1056_18, %c0_19], %14 {strides = array<i32>} : memref<1088x96xbf16, #tpu.memory_space<vmem>>, vector<32x96xbf16>,
    %c0_i32 = arith.constant 0 : i32
    %c16_i32 = arith.constant 16 : i32
    %16 = arith.addi %c0_i32, %c16_i32 : i32
    %c1_i32 = arith.constant 1 : i32
    scf.for %arg19 = %c0_i32 to %16 step %c1_i32  : i32 {
      %c256_i32 = arith.constant 256 : i32
      %49 = arith.muli %arg19, %c256_i32 : i32
      %50 = tpu.assume_multiple %49, 256 : i32
      %c0_56 = arith.constant 0 : index
      %51 = arith.index_cast %50 : i32 to index
      %c0_57 = arith.constant 0 : index
      %52 = vector.load %arg1[%c0_56, %51, %c0_57] : memref<1x4096x3xbf16, #tpu.memory_space<vmem>>, vector<1x256x3xbf16>
      %53 = vector.shape_cast %52 : vector<1x256x3xbf16> to vector<256x3xbf16>
      %54 = tpu.iota {dimensions = array<i32: 0>} : vector<256x3xi32>
      %c64_i32 = arith.constant 64 : i32
      %c0_i32_58 = arith.constant 0 : i32
      %55 = arith.cmpi eq, %c64_i32, %c0_i32_58 : i32
      %c1_i32_59 = arith.constant 1 : i32
      %56 = arith.select %55, %c1_i32_59, %c64_i32 : i32
      %57 = vector.broadcast %56 : i32 to vector<256x3xi32>
      %58 = arith.remsi %54, %57 : vector<256x3xi32>
      %c0_i32_60 = arith.constant 0 : i32
      %59 = vector.broadcast %c0_i32_60 : i32 to vector<256x3xi32>
      %60 = arith.cmpi ne, %58, %59 : vector<256x3xi32>
      %c0_i32_61 = arith.constant 0 : i32
      %61 = vector.broadcast %c0_i32_61 : i32 to vector<256x3xi32>
      %62 = arith.cmpi slt, %58, %61 : vector<256x3xi32>
      %c0_i32_62 = arith.constant 0 : i32
      %63 = arith.cmpi slt, %56, %c0_i32_62 : i32
      %64 = vector.broadcast %63 : i1 to vector<256x3xi1>
      %65 = vector.broadcast %64 : vector<256x3xi1> to vector<256x3xi1>
      %66 = arith.xori %62, %65 : vector<256x3xi1>
      %67 = arith.andi %66, %60 : vector<256x3xi1>
      %68 = vector.broadcast %56 : i32 to vector<256x3xi32>
      %69 = arith.addi %58, %68 : vector<256x3xi32>
      %70 = arith.select %67, %69, %58 : vector<256x3xi1>, vector<256x3xi32>
      %cst_63 = arith.constant 0.000000e+00 : bf16
      %71 = vector.broadcast %cst_63 : bf16 to vector<1x3xbf16>
      %72 = vector.extract_strided_slice %53 {offsets = [0, 0], sizes = [255, 3], strides = [1, 1]} : vector<256x3xbf16> to vector<255x3xbf16>
      %73 = tpu.concatenate %71, %72 in 0 : vector<1x3xbf16>, vector<255x3xbf16> -> vector<256x3xbf16>
      %c0_i32_64 = arith.constant 0 : i32
      %74 = vector.broadcast %c0_i32_64 : i32 to vector<256x3xi32>
      %75 = arith.cmpi eq, %70, %74 : vector<256x3xi32>
      %cst_65 = arith.constant 0.000000e+00 : bf16
      %76 = vector.broadcast %cst_65 : bf16 to vector<256x3xbf16>
      %77 = arith.select %75, %76, %73 : vector<256x3xi1>, vector<256x3xbf16>
      %78 = vector.extract_strided_slice %53 {offsets = [1, 0], sizes = [255, 3], strides = [1, 1]} : vector<256x3xbf16> to vector<255x3xbf16>
      %79 = tpu.concatenate %78, %71 in 0 : vector<255x3xbf16>, vector<1x3xbf16> -> vector<256x3xbf16>
      %c63_i32 = arith.constant 63 : i32
      %80 = vector.broadcast %c63_i32 : i32 to vector<256x3xi32>
      %81 = arith.cmpi eq, %70, %80 : vector<256x3xi32>
      %cst_66 = arith.constant 0.000000e+00 : bf16
      %82 = vector.broadcast %cst_66 : bf16 to vector<256x3xbf16>
      %83 = arith.select %81, %82, %79 : vector<256x3xi1>, vector<256x3xbf16>
      %84 = tpu.concatenate %77, %53, %83 in 1 : vector<256x3xbf16>, vector<256x3xbf16>, vector<256x3xbf16> -> vector<256x9xbf16>
      %c64_i32_67 = arith.constant 64 : i32
      %85 = arith.addi %50, %c64_i32_67 : i32
      %86 = arith.index_cast %85 : i32 to index
      %c0_68 = arith.constant 0 : index
      %87 = vector.load %arg13[%86, %c0_68] : memref<4224x9xbf16, #tpu.memory_space<vmem>>, vector<256x9xbf16>
      tpu.vector_store %arg13[%86, %c0_68], %84 {strides = array<i32>} : memref<4224x9xbf16, #tpu.memory_space<vmem>>, vector<256x9xbf16>,
    }
    %c16_i32_20 = arith.constant 16 : i32
    %c0_i32_21 = arith.constant 0 : i32
    %c16_i32_22 = arith.constant 16 : i32
    %17 = arith.addi %c0_i32_21, %c16_i32_22 : i32
    %c1_i32_23 = arith.constant 1 : i32
    scf.for %arg19 = %c0_i32_21 to %17 step %c1_i32_23  : i32 {
      %c4_i32_56 = arith.constant 4 : i32
      %49 = arith.muli %arg19, %c4_i32_56 : i32
      %c0_i32_57 = arith.constant 0 : i32
      %50 = arith.addi %49, %c0_i32_57 : i32
      %c64_i32 = arith.constant 64 : i32
      %51 = arith.muli %50, %c64_i32 : i32
      %52 = tpu.assume_multiple %51, 64 : i32
      %53 = arith.index_cast %52 : i32 to index
      %c0_58 = arith.constant 0 : index
      %54 = vector.load %arg13[%53, %c0_58] : memref<4224x9xbf16, #tpu.memory_space<vmem>>, vector<256x9xbf16>
      %c0_59 = arith.constant 0 : index
      %c0_60 = arith.constant 0 : index
      %c0_61 = arith.constant 0 : index
      %55 = vector.load %arg2[%c0_59, %c0_60, %c0_61] : memref<3x9x32xbf16, #tpu.memory_space<vmem>>, vector<1x9x32xbf16>
      %56 = vector.shape_cast %55 : vector<1x9x32xbf16> to vector<9x32xbf16>
      %cst_62 = arith.constant dense<0.000000e+00> : vector<256x32xf32>
      %57 = tpu.matmul %54, %56, %cst_62 {dimension_numbers = #tpu.dot_dimension_numbers<[1], [0], [0], [1], [0, 0, 1, 1], [], []>} : vector<256x9xbf16>, vector<9x32xbf16>, vector<256x32xf32> -> vector<256x32xf32>
      %c1_i32_63 = arith.constant 1 : i32
      %58 = arith.addi %49, %c1_i32_63 : i32
      %c64_i32_64 = arith.constant 64 : i32
      %59 = arith.muli %58, %c64_i32_64 : i32
      %60 = tpu.assume_multiple %59, 64 : i32
      %61 = arith.index_cast %60 : i32 to index
      %c0_65 = arith.constant 0 : index
      %62 = vector.load %arg13[%61, %c0_65] : memref<4224x9xbf16, #tpu.memory_space<vmem>>, vector<256x9xbf16>
      %c1_66 = arith.constant 1 : index
      %c0_67 = arith.constant 0 : index
      %c0_68 = arith.constant 0 : index
      %63 = vector.load %arg2[%c1_66, %c0_67, %c0_68] : memref<3x9x32xbf16, #tpu.memory_space<vmem>>, vector<1x9x32xbf16>
      %64 = vector.shape_cast %63 : vector<1x9x32xbf16> to vector<9x32xbf16>
      %cst_69 = arith.constant dense<0.000000e+00> : vector<256x32xf32>
      %65 = tpu.matmul %62, %64, %cst_69 {dimension_numbers = #tpu.dot_dimension_numbers<[1], [0], [0], [1], [0, 0, 1, 1], [], []>} : vector<256x9xbf16>, vector<9x32xbf16>, vector<256x32xf32> -> vector<256x32xf32>
      %66 = arith.addf %57, %65 : vector<256x32xf32>
      %c2_i32 = arith.constant 2 : i32
      %67 = arith.addi %49, %c2_i32 : i32
      %c64_i32_70 = arith.constant 64 : i32
      %68 = arith.muli %67, %c64_i32_70 : i32
      %69 = tpu.assume_multiple %68, 64 : i32
      %70 = arith.index_cast %69 : i32 to index
      %c0_71 = arith.constant 0 : index
      %71 = vector.load %arg13[%70, %c0_71] : memref<4224x9xbf16, #tpu.memory_space<vmem>>, vector<256x9xbf16>
      %c2_72 = arith.constant 2 : index
      %c0_73 = arith.constant 0 : index
      %c0_74 = arith.constant 0 : index
      %72 = vector.load %arg2[%c2_72, %c0_73, %c0_74] : memref<3x9x32xbf16, #tpu.memory_space<vmem>>, vector<1x9x32xbf16>
      %73 = vector.shape_cast %72 : vector<1x9x32xbf16> to vector<9x32xbf16>
      %cst_75 = arith.constant dense<0.000000e+00> : vector<256x32xf32>
      %74 = tpu.matmul %71, %73, %cst_75 {dimension_numbers = #tpu.dot_dimension_numbers<[1], [0], [0], [1], [0, 0, 1, 1], [], []>} : vector<256x9xbf16>, vector<9x32xbf16>, vector<256x32xf32> -> vector<256x32xf32>
      %75 = arith.addf %66, %74 : vector<256x32xf32>
      %c0_76 = arith.constant 0 : index
      %c0_77 = arith.constant 0 : index
      %76 = vector.load %arg3[%c0_76, %c0_77] : memref<1x32xf32, #tpu.memory_space<vmem>>, vector<1x32xf32>
      %77 = vector.broadcast %76 : vector<1x32xf32> to vector<256x32xf32>
      %78 = arith.addf %75, %77 : vector<256x32xf32>
      %cst_78 = arith.constant 0.000000e+00 : f32
      %79 = vector.broadcast %cst_78 : f32 to vector<256x32xf32>
      %80 = arith.maximumf %78, %79 : vector<256x32xf32>
      %81 = tpu.iota {dimensions = array<i32: 0>} : vector<256x32xi32>
      %c64_i32_79 = arith.constant 64 : i32
      %c0_i32_80 = arith.constant 0 : i32
      %82 = arith.cmpi eq, %c64_i32_79, %c0_i32_80 : i32
      %c1_i32_81 = arith.constant 1 : i32
      %83 = arith.select %82, %c1_i32_81, %c64_i32_79 : i32
      %84 = vector.broadcast %83 : i32 to vector<256x32xi32>
      %85 = arith.remsi %81, %84 : vector<256x32xi32>
      %c0_i32_82 = arith.constant 0 : i32
      %86 = vector.broadcast %c0_i32_82 : i32 to vector<256x32xi32>
      %87 = arith.cmpi ne, %85, %86 : vector<256x32xi32>
      %c0_i32_83 = arith.constant 0 : i32
      %88 = vector.broadcast %c0_i32_83 : i32 to vector<256x32xi32>
      %89 = arith.cmpi slt, %85, %88 : vector<256x32xi32>
      %c0_i32_84 = arith.constant 0 : i32
      %90 = arith.cmpi slt, %83, %c0_i32_84 : i32
      %91 = vector.broadcast %90 : i1 to vector<256x32xi1>
      %92 = vector.broadcast %91 : vector<256x32xi1> to vector<256x32xi1>
      %93 = arith.xori %89, %92 : vector<256x32xi1>
      %94 = arith.andi %93, %87 : vector<256x32xi1>
      %95 = vector.broadcast %83 : i32 to vector<256x32xi32>
      %96 = arith.addi %85, %95 : vector<256x32xi32>
      %97 = arith.select %94, %96, %85 : vector<256x32xi1>, vector<256x32xi32>
      %cst_85 = arith.constant 0.000000e+00 : f32
      %98 = vector.broadcast %cst_85 : f32 to vector<1x32xf32>
      %99 = vector.extract_strided_slice %80 {offsets = [0, 0], sizes = [255, 32], strides = [1, 1]} : vector<256x32xf32> to vector<255x32xf32>
      %100 = tpu.concatenate %98, %99 in 0 : vector<1x32xf32>, vector<255x32xf32> -> vector<256x32xf32>
      %c0_i32_86 = arith.constant 0 : i32
      %101 = vector.broadcast %c0_i32_86 : i32 to vector<256x32xi32>
      %102 = arith.cmpi eq, %97, %101 : vector<256x32xi32>
      %cst_87 = arith.constant 0.000000e+00 : f32
      %103 = vector.broadcast %cst_87 : f32 to vector<256x32xf32>
      %104 = arith.select %102, %103, %100 : vector<256x32xi1>, vector<256x32xf32>
      %105 = vector.extract_strided_slice %80 {offsets = [1, 0], sizes = [255, 32], strides = [1, 1]} : vector<256x32xf32> to vector<255x32xf32>
      %106 = tpu.concatenate %105, %98 in 0 : vector<255x32xf32>, vector<1x32xf32> -> vector<256x32xf32>
      %c63_i32 = arith.constant 63 : i32
      %107 = vector.broadcast %c63_i32 : i32 to vector<256x32xi32>
      %108 = arith.cmpi eq, %97, %107 : vector<256x32xi32>
      %cst_88 = arith.constant 0.000000e+00 : f32
      %109 = vector.broadcast %cst_88 : f32 to vector<256x32xf32>
      %110 = arith.select %108, %109, %106 : vector<256x32xi1>, vector<256x32xf32>
      %111 = tpu.concatenate %104, %80, %110 in 1 : vector<256x32xf32>, vector<256x32xf32>, vector<256x32xf32> -> vector<256x96xf32>
      %112 = arith.truncf %111 : vector<256x96xf32> to vector<256x96xbf16>
      %c1_i32_89 = arith.constant 1 : i32
      %113 = arith.addi %49, %c1_i32_89 : i32
      %c64_i32_90 = arith.constant 64 : i32
      %114 = arith.muli %113, %c64_i32_90 : i32
      %115 = arith.index_cast %114 : i32 to index
      %c0_91 = arith.constant 0 : index
      %116 = vector.load %arg14[%115, %c0_91] : memref<4224x96xbf16, #tpu.memory_space<vmem>>, vector<256x96xbf16>
      tpu.vector_store %arg14[%115, %c0_91], %112 {strides = array<i32>} : memref<4224x96xbf16, #tpu.memory_space<vmem>>, vector<256x96xbf16>,
    }
    %c16_i32_24 = arith.constant 16 : i32
    %c0_i32_25 = arith.constant 0 : i32
    %c16_i32_26 = arith.constant 16 : i32
    %18 = arith.addi %c0_i32_25, %c16_i32_26 : i32
    %c1_i32_27 = arith.constant 1 : i32
    scf.for %arg19 = %c0_i32_25 to %18 step %c1_i32_27  : i32 {
      %c4_i32_56 = arith.constant 4 : i32
      %49 = arith.muli %arg19, %c4_i32_56 : i32
      %c0_i32_57 = arith.constant 0 : i32
      %50 = arith.addi %49, %c0_i32_57 : i32
      %c64_i32 = arith.constant 64 : i32
      %51 = arith.muli %50, %c64_i32 : i32
      %52 = tpu.assume_multiple %51, 64 : i32
      %53 = arith.index_cast %52 : i32 to index
      %c0_58 = arith.constant 0 : index
      %54 = vector.load %arg14[%53, %c0_58] : memref<4224x96xbf16, #tpu.memory_space<vmem>>, vector<256x96xbf16>
      %c0_59 = arith.constant 0 : index
      %c0_60 = arith.constant 0 : index
      %c0_61 = arith.constant 0 : index
      %55 = vector.load %arg4[%c0_59, %c0_60, %c0_61] : memref<3x96x32xbf16, #tpu.memory_space<vmem>>, vector<1x96x32xbf16>
      %56 = vector.shape_cast %55 : vector<1x96x32xbf16> to vector<96x32xbf16>
      %cst_62 = arith.constant dense<0.000000e+00> : vector<256x32xf32>
      %57 = tpu.matmul %54, %56, %cst_62 {dimension_numbers = #tpu.dot_dimension_numbers<[1], [0], [0], [1], [0, 0, 1, 1], [], []>} : vector<256x96xbf16>, vector<96x32xbf16>, vector<256x32xf32> -> vector<256x32xf32>
      %c1_i32_63 = arith.constant 1 : i32
      %58 = arith.addi %49, %c1_i32_63 : i32
      %c64_i32_64 = arith.constant 64 : i32
      %59 = arith.muli %58, %c64_i32_64 : i32
      %60 = tpu.assume_multiple %59, 64 : i32
      %61 = arith.index_cast %60 : i32 to index
      %c0_65 = arith.constant 0 : index
      %62 = vector.load %arg14[%61, %c0_65] : memref<4224x96xbf16, #tpu.memory_space<vmem>>, vector<256x96xbf16>
      %c1_66 = arith.constant 1 : index
      %c0_67 = arith.constant 0 : index
      %c0_68 = arith.constant 0 : index
      %63 = vector.load %arg4[%c1_66, %c0_67, %c0_68] : memref<3x96x32xbf16, #tpu.memory_space<vmem>>, vector<1x96x32xbf16>
      %64 = vector.shape_cast %63 : vector<1x96x32xbf16> to vector<96x32xbf16>
      %cst_69 = arith.constant dense<0.000000e+00> : vector<256x32xf32>
      %65 = tpu.matmul %62, %64, %cst_69 {dimension_numbers = #tpu.dot_dimension_numbers<[1], [0], [0], [1], [0, 0, 1, 1], [], []>} : vector<256x96xbf16>, vector<96x32xbf16>, vector<256x32xf32> -> vector<256x32xf32>
      %66 = arith.addf %57, %65 : vector<256x32xf32>
      %c2_i32 = arith.constant 2 : i32
      %67 = arith.addi %49, %c2_i32 : i32
      %c64_i32_70 = arith.constant 64 : i32
      %68 = arith.muli %67, %c64_i32_70 : i32
      %69 = tpu.assume_multiple %68, 64 : i32
      %70 = arith.index_cast %69 : i32 to index
      %c0_71 = arith.constant 0 : index
      %71 = vector.load %arg14[%70, %c0_71] : memref<4224x96xbf16, #tpu.memory_space<vmem>>, vector<256x96xbf16>
      %c2_72 = arith.constant 2 : index
      %c0_73 = arith.constant 0 : index
      %c0_74 = arith.constant 0 : index
      %72 = vector.load %arg4[%c2_72, %c0_73, %c0_74] : memref<3x96x32xbf16, #tpu.memory_space<vmem>>, vector<1x96x32xbf16>
      %73 = vector.shape_cast %72 : vector<1x96x32xbf16> to vector<96x32xbf16>
      %cst_75 = arith.constant dense<0.000000e+00> : vector<256x32xf32>
      %74 = tpu.matmul %71, %73, %cst_75 {dimension_numbers = #tpu.dot_dimension_numbers<[1], [0], [0], [1], [0, 0, 1, 1], [], []>} : vector<256x96xbf16>, vector<96x32xbf16>, vector<256x32xf32> -> vector<256x32xf32>
      %75 = arith.addf %66, %74 : vector<256x32xf32>
      %c0_76 = arith.constant 0 : index
      %c0_77 = arith.constant 0 : index
      %76 = vector.load %arg5[%c0_76, %c0_77] : memref<1x32xf32, #tpu.memory_space<vmem>>, vector<1x32xf32>
      %77 = vector.broadcast %76 : vector<1x32xf32> to vector<256x32xf32>
      %78 = arith.addf %75, %77 : vector<256x32xf32>
      %cst_78 = arith.constant 0.000000e+00 : f32
      %79 = vector.broadcast %cst_78 : f32 to vector<256x32xf32>
      %80 = arith.maximumf %78, %79 : vector<256x32xf32>
      %81 = vector.extract_strided_slice %80 {offsets = [0, 0], sizes = [64, 32], strides = [1, 1]} : vector<256x32xf32> to vector<64x32xf32>
      %82 = vector.extract_strided_slice %80 {offsets = [64, 0], sizes = [64, 32], strides = [1, 1]} : vector<256x32xf32> to vector<64x32xf32>
      %83 = arith.maximumf %81, %82 : vector<64x32xf32>
      %84 = vector.extract_strided_slice %80 {offsets = [128, 0], sizes = [64, 32], strides = [1, 1]} : vector<256x32xf32> to vector<64x32xf32>
      %85 = vector.extract_strided_slice %80 {offsets = [192, 0], sizes = [64, 32], strides = [1, 1]} : vector<256x32xf32> to vector<64x32xf32>
      %86 = arith.maximumf %84, %85 : vector<64x32xf32>
      %87 = tpu.concatenate %83, %86 in 0 : vector<64x32xf32>, vector<64x32xf32> -> vector<128x32xf32>
      %c0_79 = arith.constant 0 : index
      %c0_80 = arith.constant 0 : index
      %88 = vector.load %arg17[%c0_79, %c0_80] : memref<128x32xf32, #tpu.memory_space<vmem>>, vector<128x32xf32>
      tpu.vector_store %arg17[%c0_79, %c0_80], %87 {strides = array<i32>} : memref<128x32xf32, #tpu.memory_space<vmem>>, vector<128x32xf32>,
      %c0_81 = arith.constant 0 : index
      %c0_82 = arith.constant 0 : index
      %89 = tpu.strided_load %arg17[%c0_81, %c0_82] {strides = array<i32: 2, 1>} : memref<128x32xf32, #tpu.memory_space<vmem>>, vector<64x32xf32>
      %c1_83 = arith.constant 1 : index
      %c0_84 = arith.constant 0 : index
      %90 = tpu.strided_load %arg17[%c1_83, %c0_84] {strides = array<i32: 2, 1>} : memref<128x32xf32, #tpu.memory_space<vmem>>, vector<64x32xf32>
      %91 = arith.maximumf %89, %90 : vector<64x32xf32>
      %92 = tpu.iota {dimensions = array<i32: 0>} : vector<64x32xi32>
      %c32_i32 = arith.constant 32 : i32
      %c0_i32_85 = arith.constant 0 : i32
      %93 = arith.cmpi eq, %c32_i32, %c0_i32_85 : i32
      %c1_i32_86 = arith.constant 1 : i32
      %94 = arith.select %93, %c1_i32_86, %c32_i32 : i32
      %95 = vector.broadcast %94 : i32 to vector<64x32xi32>
      %96 = arith.remsi %92, %95 : vector<64x32xi32>
      %c0_i32_87 = arith.constant 0 : i32
      %97 = vector.broadcast %c0_i32_87 : i32 to vector<64x32xi32>
      %98 = arith.cmpi ne, %96, %97 : vector<64x32xi32>
      %c0_i32_88 = arith.constant 0 : i32
      %99 = vector.broadcast %c0_i32_88 : i32 to vector<64x32xi32>
      %100 = arith.cmpi slt, %96, %99 : vector<64x32xi32>
      %c0_i32_89 = arith.constant 0 : i32
      %101 = arith.cmpi slt, %94, %c0_i32_89 : i32
      %102 = vector.broadcast %101 : i1 to vector<64x32xi1>
      %103 = vector.broadcast %102 : vector<64x32xi1> to vector<64x32xi1>
      %104 = arith.xori %100, %103 : vector<64x32xi1>
      %105 = arith.andi %104, %98 : vector<64x32xi1>
      %106 = vector.broadcast %94 : i32 to vector<64x32xi32>
      %107 = arith.addi %96, %106 : vector<64x32xi32>
      %108 = arith.select %105, %107, %96 : vector<64x32xi1>, vector<64x32xi32>
      %cst_90 = arith.constant 0.000000e+00 : f32
      %109 = vector.broadcast %cst_90 : f32 to vector<1x32xf32>
      %110 = vector.extract_strided_slice %91 {offsets = [0, 0], sizes = [63, 32], strides = [1, 1]} : vector<64x32xf32> to vector<63x32xf32>
      %111 = tpu.concatenate %109, %110 in 0 : vector<1x32xf32>, vector<63x32xf32> -> vector<64x32xf32>
      %c0_i32_91 = arith.constant 0 : i32
      %112 = vector.broadcast %c0_i32_91 : i32 to vector<64x32xi32>
      %113 = arith.cmpi eq, %108, %112 : vector<64x32xi32>
      %cst_92 = arith.constant 0.000000e+00 : f32
      %114 = vector.broadcast %cst_92 : f32 to vector<64x32xf32>
      %115 = arith.select %113, %114, %111 : vector<64x32xi1>, vector<64x32xf32>
      %116 = vector.extract_strided_slice %91 {offsets = [1, 0], sizes = [63, 32], strides = [1, 1]} : vector<64x32xf32> to vector<63x32xf32>
      %117 = tpu.concatenate %116, %109 in 0 : vector<63x32xf32>, vector<1x32xf32> -> vector<64x32xf32>
      %c31_i32 = arith.constant 31 : i32
      %118 = vector.broadcast %c31_i32 : i32 to vector<64x32xi32>
      %119 = arith.cmpi eq, %108, %118 : vector<64x32xi32>
      %cst_93 = arith.constant 0.000000e+00 : f32
      %120 = vector.broadcast %cst_93 : f32 to vector<64x32xf32>
      %121 = arith.select %119, %120, %117 : vector<64x32xi1>, vector<64x32xf32>
      %122 = tpu.concatenate %115, %91, %121 in 1 : vector<64x32xf32>, vector<64x32xf32>, vector<64x32xf32> -> vector<64x96xf32>
      %123 = arith.truncf %122 : vector<64x96xf32> to vector<64x96xbf16>
      %c16_i32_94 = arith.constant 16 : i32
      %124 = arith.muli %49, %c16_i32_94 : i32
      %c32_i32_95 = arith.constant 32 : i32
      %125 = arith.addi %124, %c32_i32_95 : i32
      %126 = arith.index_cast %125 : i32 to index
      %c0_96 = arith.constant 0 : index
      %127 = vector.load %arg15[%126, %c0_96] : memref<1088x96xbf16, #tpu.memory_space<vmem>>, vector<64x96xbf16>
      tpu.vector_store %arg15[%126, %c0_96], %123 {strides = array<i32>} : memref<1088x96xbf16, #tpu.memory_space<vmem>>, vector<64x96xbf16>,
    }
    %c16_i32_28 = arith.constant 16 : i32
    %c0_i32_29 = arith.constant 0 : i32
    %c4_i32 = arith.constant 4 : i32
    %19 = arith.addi %c0_i32_29, %c4_i32 : i32
    %c1_i32_30 = arith.constant 1 : i32
    scf.for %arg19 = %c0_i32_29 to %19 step %c1_i32_30  : i32 {
      %c8_i32 = arith.constant 8 : i32
      %49 = arith.muli %arg19, %c8_i32 : i32
      %c0_i32_56 = arith.constant 0 : i32
      %50 = arith.addi %49, %c0_i32_56 : i32
      %c32_i32 = arith.constant 32 : i32
      %51 = arith.muli %50, %c32_i32 : i32
      %52 = tpu.assume_multiple %51, 32 : i32
      %53 = arith.index_cast %52 : i32 to index
      %c0_57 = arith.constant 0 : index
      %54 = vector.load %arg15[%53, %c0_57] : memref<1088x96xbf16, #tpu.memory_space<vmem>>, vector<256x96xbf16>
      %c0_58 = arith.constant 0 : index
      %c0_59 = arith.constant 0 : index
      %c0_60 = arith.constant 0 : index
      %55 = vector.load %arg6[%c0_58, %c0_59, %c0_60] : memref<3x96x32xbf16, #tpu.memory_space<vmem>>, vector<1x96x32xbf16>
      %56 = vector.shape_cast %55 : vector<1x96x32xbf16> to vector<96x32xbf16>
      %cst_61 = arith.constant dense<0.000000e+00> : vector<256x32xf32>
      %57 = tpu.matmul %54, %56, %cst_61 {dimension_numbers = #tpu.dot_dimension_numbers<[1], [0], [0], [1], [0, 0, 1, 1], [], []>} : vector<256x96xbf16>, vector<96x32xbf16>, vector<256x32xf32> -> vector<256x32xf32>
      %c1_i32_62 = arith.constant 1 : i32
      %58 = arith.addi %49, %c1_i32_62 : i32
      %c32_i32_63 = arith.constant 32 : i32
      %59 = arith.muli %58, %c32_i32_63 : i32
      %60 = tpu.assume_multiple %59, 32 : i32
      %61 = arith.index_cast %60 : i32 to index
      %c0_64 = arith.constant 0 : index
      %62 = vector.load %arg15[%61, %c0_64] : memref<1088x96xbf16, #tpu.memory_space<vmem>>, vector<256x96xbf16>
      %c1_65 = arith.constant 1 : index
      %c0_66 = arith.constant 0 : index
      %c0_67 = arith.constant 0 : index
      %63 = vector.load %arg6[%c1_65, %c0_66, %c0_67] : memref<3x96x32xbf16, #tpu.memory_space<vmem>>, vector<1x96x32xbf16>
      %64 = vector.shape_cast %63 : vector<1x96x32xbf16> to vector<96x32xbf16>
      %cst_68 = arith.constant dense<0.000000e+00> : vector<256x32xf32>
      %65 = tpu.matmul %62, %64, %cst_68 {dimension_numbers = #tpu.dot_dimension_numbers<[1], [0], [0], [1], [0, 0, 1, 1], [], []>} : vector<256x96xbf16>, vector<96x32xbf16>, vector<256x32xf32> -> vector<256x32xf32>
      %66 = arith.addf %57, %65 : vector<256x32xf32>
      %c2_i32 = arith.constant 2 : i32
      %67 = arith.addi %49, %c2_i32 : i32
      %c32_i32_69 = arith.constant 32 : i32
      %68 = arith.muli %67, %c32_i32_69 : i32
      %69 = tpu.assume_multiple %68, 32 : i32
      %70 = arith.index_cast %69 : i32 to index
      %c0_70 = arith.constant 0 : index
      %71 = vector.load %arg15[%70, %c0_70] : memref<1088x96xbf16, #tpu.memory_space<vmem>>, vector<256x96xbf16>
      %c2_71 = arith.constant 2 : index
      %c0_72 = arith.constant 0 : index
      %c0_73 = arith.constant 0 : index
      %72 = vector.load %arg6[%c2_71, %c0_72, %c0_73] : memref<3x96x32xbf16, #tpu.memory_space<vmem>>, vector<1x96x32xbf16>
      %73 = vector.shape_cast %72 : vector<1x96x32xbf16> to vector<96x32xbf16>
      %cst_74 = arith.constant dense<0.000000e+00> : vector<256x32xf32>
      %74 = tpu.matmul %71, %73, %cst_74 {dimension_numbers = #tpu.dot_dimension_numbers<[1], [0], [0], [1], [0, 0, 1, 1], [], []>} : vector<256x96xbf16>, vector<96x32xbf16>, vector<256x32xf32> -> vector<256x32xf32>
      %75 = arith.addf %66, %74 : vector<256x32xf32>
      %c0_75 = arith.constant 0 : index
      %c0_76 = arith.constant 0 : index
      %76 = vector.load %arg7[%c0_75, %c0_76] : memref<1x32xf32, #tpu.memory_space<vmem>>, vector<1x32xf32>
      %77 = vector.broadcast %76 : vector<1x32xf32> to vector<256x32xf32>
      %78 = arith.addf %75, %77 : vector<256x32xf32>
      %cst_77 = arith.constant 0.000000e+00 : f32
      %79 = vector.broadcast %cst_77 : f32 to vector<256x32xf32>
      %80 = arith.maximumf %78, %79 : vector<256x32xf32>
      %81 = tpu.iota {dimensions = array<i32: 0>} : vector<256x32xi32>
      %c32_i32_78 = arith.constant 32 : i32
      %c0_i32_79 = arith.constant 0 : i32
      %82 = arith.cmpi eq, %c32_i32_78, %c0_i32_79 : i32
      %c1_i32_80 = arith.constant 1 : i32
      %83 = arith.select %82, %c1_i32_80, %c32_i32_78 : i32
      %84 = vector.broadcast %83 : i32 to vector<256x32xi32>
      %85 = arith.remsi %81, %84 : vector<256x32xi32>
      %c0_i32_81 = arith.constant 0 : i32
      %86 = vector.broadcast %c0_i32_81 : i32 to vector<256x32xi32>
      %87 = arith.cmpi ne, %85, %86 : vector<256x32xi32>
      %c0_i32_82 = arith.constant 0 : i32
      %88 = vector.broadcast %c0_i32_82 : i32 to vector<256x32xi32>
      %89 = arith.cmpi slt, %85, %88 : vector<256x32xi32>
      %c0_i32_83 = arith.constant 0 : i32
      %90 = arith.cmpi slt, %83, %c0_i32_83 : i32
      %91 = vector.broadcast %90 : i1 to vector<256x32xi1>
      %92 = vector.broadcast %91 : vector<256x32xi1> to vector<256x32xi1>
      %93 = arith.xori %89, %92 : vector<256x32xi1>
      %94 = arith.andi %93, %87 : vector<256x32xi1>
      %95 = vector.broadcast %83 : i32 to vector<256x32xi32>
      %96 = arith.addi %85, %95 : vector<256x32xi32>
      %97 = arith.select %94, %96, %85 : vector<256x32xi1>, vector<256x32xi32>
      %cst_84 = arith.constant 0.000000e+00 : f32
      %98 = vector.broadcast %cst_84 : f32 to vector<1x32xf32>
      %99 = vector.extract_strided_slice %80 {offsets = [0, 0], sizes = [255, 32], strides = [1, 1]} : vector<256x32xf32> to vector<255x32xf32>
      %100 = tpu.concatenate %98, %99 in 0 : vector<1x32xf32>, vector<255x32xf32> -> vector<256x32xf32>
      %c0_i32_85 = arith.constant 0 : i32
      %101 = vector.broadcast %c0_i32_85 : i32 to vector<256x32xi32>
      %102 = arith.cmpi eq, %97, %101 : vector<256x32xi32>
      %cst_86 = arith.constant 0.000000e+00 : f32
      %103 = vector.broadcast %cst_86 : f32 to vector<256x32xf32>
      %104 = arith.select %102, %103, %100 : vector<256x32xi1>, vector<256x32xf32>
      %105 = vector.extract_strided_slice %80 {offsets = [1, 0], sizes = [255, 32], strides = [1, 1]} : vector<256x32xf32> to vector<255x32xf32>
      %106 = tpu.concatenate %105, %98 in 0 : vector<255x32xf32>, vector<1x32xf32> -> vector<256x32xf32>
      %c31_i32 = arith.constant 31 : i32
      %107 = vector.broadcast %c31_i32 : i32 to vector<256x32xi32>
      %108 = arith.cmpi eq, %97, %107 : vector<256x32xi32>
      %cst_87 = arith.constant 0.000000e+00 : f32
      %109 = vector.broadcast %cst_87 : f32 to vector<256x32xf32>
      %110 = arith.select %108, %109, %106 : vector<256x32xi1>, vector<256x32xf32>
      %111 = tpu.concatenate %104, %80, %110 in 1 : vector<256x32xf32>, vector<256x32xf32>, vector<256x32xf32> -> vector<256x96xf32>
      %112 = arith.truncf %111 : vector<256x96xf32> to vector<256x96xbf16>
      %c1_i32_88 = arith.constant 1 : i32
      %113 = arith.addi %49, %c1_i32_88 : i32
      %c32_i32_89 = arith.constant 32 : i32
      %114 = arith.muli %113, %c32_i32_89 : i32
      %115 = arith.index_cast %114 : i32 to index
      %c0_90 = arith.constant 0 : index
      %116 = vector.load %arg16[%115, %c0_90] : memref<1088x96xbf16, #tpu.memory_space<vmem>>, vector<256x96xbf16>
      tpu.vector_store %arg16[%115, %c0_90], %112 {strides = array<i32>} : memref<1088x96xbf16, #tpu.memory_space<vmem>>, vector<256x96xbf16>,
    }
    %c4_i32_31 = arith.constant 4 : i32
    %c0_i32_32 = arith.constant 0 : i32
    %c4_i32_33 = arith.constant 4 : i32
    %20 = arith.addi %c0_i32_32, %c4_i32_33 : i32
    %c1_i32_34 = arith.constant 1 : i32
    scf.for %arg19 = %c0_i32_32 to %20 step %c1_i32_34  : i32 {
      %c8_i32 = arith.constant 8 : i32
      %49 = arith.muli %arg19, %c8_i32 : i32
      %c0_i32_56 = arith.constant 0 : i32
      %50 = arith.addi %49, %c0_i32_56 : i32
      %c32_i32 = arith.constant 32 : i32
      %51 = arith.muli %50, %c32_i32 : i32
      %52 = tpu.assume_multiple %51, 32 : i32
      %53 = arith.index_cast %52 : i32 to index
      %c0_57 = arith.constant 0 : index
      %54 = vector.load %arg16[%53, %c0_57] : memref<1088x96xbf16, #tpu.memory_space<vmem>>, vector<256x96xbf16>
      %c0_58 = arith.constant 0 : index
      %c0_59 = arith.constant 0 : index
      %c0_60 = arith.constant 0 : index
      %55 = vector.load %arg8[%c0_58, %c0_59, %c0_60] : memref<3x96x32xbf16, #tpu.memory_space<vmem>>, vector<1x96x32xbf16>
      %56 = vector.shape_cast %55 : vector<1x96x32xbf16> to vector<96x32xbf16>
      %cst_61 = arith.constant dense<0.000000e+00> : vector<256x32xf32>
      %57 = tpu.matmul %54, %56, %cst_61 {dimension_numbers = #tpu.dot_dimension_numbers<[1], [0], [0], [1], [0, 0, 1, 1], [], []>} : vector<256x96xbf16>, vector<96x32xbf16>, vector<256x32xf32> -> vector<256x32xf32>
      %c1_i32_62 = arith.constant 1 : i32
      %58 = arith.addi %49, %c1_i32_62 : i32
      %c32_i32_63 = arith.constant 32 : i32
      %59 = arith.muli %58, %c32_i32_63 : i32
      %60 = tpu.assume_multiple %59, 32 : i32
      %61 = arith.index_cast %60 : i32 to index
      %c0_64 = arith.constant 0 : index
      %62 = vector.load %arg16[%61, %c0_64] : memref<1088x96xbf16, #tpu.memory_space<vmem>>, vector<256x96xbf16>
      %c1_65 = arith.constant 1 : index
      %c0_66 = arith.constant 0 : index
      %c0_67 = arith.constant 0 : index
      %63 = vector.load %arg8[%c1_65, %c0_66, %c0_67] : memref<3x96x32xbf16, #tpu.memory_space<vmem>>, vector<1x96x32xbf16>
      %64 = vector.shape_cast %63 : vector<1x96x32xbf16> to vector<96x32xbf16>
      %cst_68 = arith.constant dense<0.000000e+00> : vector<256x32xf32>
      %65 = tpu.matmul %62, %64, %cst_68 {dimension_numbers = #tpu.dot_dimension_numbers<[1], [0], [0], [1], [0, 0, 1, 1], [], []>} : vector<256x96xbf16>, vector<96x32xbf16>, vector<256x32xf32> -> vector<256x32xf32>
      %66 = arith.addf %57, %65 : vector<256x32xf32>
      %c2_i32 = arith.constant 2 : i32
      %67 = arith.addi %49, %c2_i32 : i32
      %c32_i32_69 = arith.constant 32 : i32
      %68 = arith.muli %67, %c32_i32_69 : i32
      %69 = tpu.assume_multiple %68, 32 : i32
      %70 = arith.index_cast %69 : i32 to index
      %c0_70 = arith.constant 0 : index
      %71 = vector.load %arg16[%70, %c0_70] : memref<1088x96xbf16, #tpu.memory_space<vmem>>, vector<256x96xbf16>
      %c2_71 = arith.constant 2 : index
      %c0_72 = arith.constant 0 : index
      %c0_73 = arith.constant 0 : index
      %72 = vector.load %arg8[%c2_71, %c0_72, %c0_73] : memref<3x96x32xbf16, #tpu.memory_space<vmem>>, vector<1x96x32xbf16>
      %73 = vector.shape_cast %72 : vector<1x96x32xbf16> to vector<96x32xbf16>
      %cst_74 = arith.constant dense<0.000000e+00> : vector<256x32xf32>
      %74 = tpu.matmul %71, %73, %cst_74 {dimension_numbers = #tpu.dot_dimension_numbers<[1], [0], [0], [1], [0, 0, 1, 1], [], []>} : vector<256x96xbf16>, vector<96x32xbf16>, vector<256x32xf32> -> vector<256x32xf32>
      %75 = arith.addf %66, %74 : vector<256x32xf32>
      %c0_75 = arith.constant 0 : index
      %c0_76 = arith.constant 0 : index
      %76 = vector.load %arg9[%c0_75, %c0_76] : memref<1x32xf32, #tpu.memory_space<vmem>>, vector<1x32xf32>
      %77 = vector.broadcast %76 : vector<1x32xf32> to vector<256x32xf32>
      %78 = arith.addf %75, %77 : vector<256x32xf32>
      %cst_77 = arith.constant 0.000000e+00 : f32
      %79 = vector.broadcast %cst_77 : f32 to vector<256x32xf32>
      %80 = arith.maximumf %78, %79 : vector<256x32xf32>
      %81 = vector.extract_strided_slice %80 {offsets = [0, 0], sizes = [32, 32], strides = [1, 1]} : vector<256x32xf32> to vector<32x32xf32>
      %82 = vector.extract_strided_slice %80 {offsets = [32, 0], sizes = [32, 32], strides = [1, 1]} : vector<256x32xf32> to vector<32x32xf32>
      %83 = arith.maximumf %81, %82 : vector<32x32xf32>
      %84 = vector.extract_strided_slice %80 {offsets = [64, 0], sizes = [32, 32], strides = [1, 1]} : vector<256x32xf32> to vector<32x32xf32>
      %85 = vector.extract_strided_slice %80 {offsets = [96, 0], sizes = [32, 32], strides = [1, 1]} : vector<256x32xf32> to vector<32x32xf32>
      %86 = arith.maximumf %84, %85 : vector<32x32xf32>
      %87 = vector.extract_strided_slice %80 {offsets = [128, 0], sizes = [32, 32], strides = [1, 1]} : vector<256x32xf32> to vector<32x32xf32>
      %88 = vector.extract_strided_slice %80 {offsets = [160, 0], sizes = [32, 32], strides = [1, 1]} : vector<256x32xf32> to vector<32x32xf32>
      %89 = arith.maximumf %87, %88 : vector<32x32xf32>
      %90 = vector.extract_strided_slice %80 {offsets = [192, 0], sizes = [32, 32], strides = [1, 1]} : vector<256x32xf32> to vector<32x32xf32>
      %91 = vector.extract_strided_slice %80 {offsets = [224, 0], sizes = [32, 32], strides = [1, 1]} : vector<256x32xf32> to vector<32x32xf32>
      %92 = arith.maximumf %90, %91 : vector<32x32xf32>
      %93 = tpu.concatenate %83, %86, %89, %92 in 0 : vector<32x32xf32>, vector<32x32xf32>, vector<32x32xf32>, vector<32x32xf32> -> vector<128x32xf32>
      %c0_78 = arith.constant 0 : index
      %c0_79 = arith.constant 0 : index
      %94 = vector.load %arg17[%c0_78, %c0_79] : memref<128x32xf32, #tpu.memory_space<vmem>>, vector<128x32xf32>
      tpu.vector_store %arg17[%c0_78, %c0_79], %93 {strides = array<i32>} : memref<128x32xf32, #tpu.memory_space<vmem>>, vector<128x32xf32>,
      %c0_80 = arith.constant 0 : index
      %c0_81 = arith.constant 0 : index
      %95 = tpu.strided_load %arg17[%c0_80, %c0_81] {strides = array<i32: 2, 1>} : memref<128x32xf32, #tpu.memory_space<vmem>>, vector<64x32xf32>
      %c1_82 = arith.constant 1 : index
      %c0_83 = arith.constant 0 : index
      %96 = tpu.strided_load %arg17[%c1_82, %c0_83] {strides = array<i32: 2, 1>} : memref<128x32xf32, #tpu.memory_space<vmem>>, vector<64x32xf32>
      %97 = arith.maximumf %95, %96 : vector<64x32xf32>
      %c8_i32_84 = arith.constant 8 : i32
      %98 = arith.muli %49, %c8_i32_84 : i32
      %99 = arith.index_cast %98 : i32 to index
      %c0_85 = arith.constant 0 : index
      %100 = vector.load %arg18[%99, %c0_85] : memref<256x32xf32, #tpu.memory_space<vmem>>, vector<64x32xf32>
      tpu.vector_store %arg18[%99, %c0_85], %97 {strides = array<i32>} : memref<256x32xf32, #tpu.memory_space<vmem>>, vector<64x32xf32>,
    }
    %c4_i32_35 = arith.constant 4 : i32
    %c0_36 = arith.constant 0 : index
    %c0_37 = arith.constant 0 : index
    %21 = vector.load %arg18[%c0_36, %c0_37] : memref<256x32xf32, #tpu.memory_space<vmem>>, vector<256x32xf32>
    %c0_38 = arith.constant 0 : index
    %c0_39 = arith.constant 0 : index
    %c0_40 = arith.constant 0 : index
    %22 = vector.load %arg10[%c0_38, %c0_39, %c0_40] : memref<3x256x32xf32, #tpu.memory_space<vmem>>, vector<1x256x32xf32>
    %23 = vector.shape_cast %22 : vector<1x256x32xf32> to vector<256x32xf32>
    %24 = arith.mulf %21, %23 : vector<256x32xf32>
    %cst_41 = arith.constant dense<0.000000e+00> : vector<32xf32>
    %25 = vector.multi_reduction <add>, %24, %cst_41 [0] : vector<256x32xf32> to vector<32xf32>
    %26 = vector.shape_cast %25 : vector<32xf32> to vector<1x32xf32>
    %cst_42 = arith.constant dense<0.000000e+00> : vector<1xf32>
    %27 = vector.multi_reduction <add>, %26, %cst_42 [1] : vector<1x32xf32> to vector<1xf32>
    %28 = vector.shape_cast %27 : vector<1xf32> to vector<1x1xf32>
    %c1 = arith.constant 1 : index
    %c0_43 = arith.constant 0 : index
    %c0_44 = arith.constant 0 : index
    %29 = vector.load %arg10[%c1, %c0_43, %c0_44] : memref<3x256x32xf32, #tpu.memory_space<vmem>>, vector<1x256x32xf32>
    %30 = vector.shape_cast %29 : vector<1x256x32xf32> to vector<256x32xf32>
    %31 = arith.mulf %21, %30 : vector<256x32xf32>
    %cst_45 = arith.constant dense<0.000000e+00> : vector<32xf32>
    %32 = vector.multi_reduction <add>, %31, %cst_45 [0] : vector<256x32xf32> to vector<32xf32>
    %33 = vector.shape_cast %32 : vector<32xf32> to vector<1x32xf32>
    %cst_46 = arith.constant dense<0.000000e+00> : vector<1xf32>
    %34 = vector.multi_reduction <add>, %33, %cst_46 [1] : vector<1x32xf32> to vector<1xf32>
    %35 = vector.shape_cast %34 : vector<1xf32> to vector<1x1xf32>
    %c2 = arith.constant 2 : index
    %c0_47 = arith.constant 0 : index
    %c0_48 = arith.constant 0 : index
    %36 = vector.load %arg10[%c2, %c0_47, %c0_48] : memref<3x256x32xf32, #tpu.memory_space<vmem>>, vector<1x256x32xf32>
    %37 = vector.shape_cast %36 : vector<1x256x32xf32> to vector<256x32xf32>
    %38 = arith.mulf %21, %37 : vector<256x32xf32>
    %cst_49 = arith.constant dense<0.000000e+00> : vector<32xf32>
    %39 = vector.multi_reduction <add>, %38, %cst_49 [0] : vector<256x32xf32> to vector<32xf32>
    %40 = vector.shape_cast %39 : vector<32xf32> to vector<1x32xf32>
    %cst_50 = arith.constant dense<0.000000e+00> : vector<1xf32>
    %41 = vector.multi_reduction <add>, %40, %cst_50 [1] : vector<1x32xf32> to vector<1xf32>
    %42 = vector.shape_cast %41 : vector<1xf32> to vector<1x1xf32>
    %43 = tpu.concatenate %28, %35, %42 in 1 : vector<1x1xf32>, vector<1x1xf32>, vector<1x1xf32> -> vector<1x3xf32>
    %c0_51 = arith.constant 0 : index
    %c0_52 = arith.constant 0 : index
    %44 = vector.load %arg11[%c0_51, %c0_52] : memref<1x3xf32, #tpu.memory_space<vmem>>, vector<1x3xf32>
    %45 = arith.addf %43, %44 : vector<1x3xf32>
    %c0_53 = arith.constant 0 : index
    %c0_54 = arith.constant 0 : index
    %c0_55 = arith.constant 0 : index
    %46 = vector.load %arg12[%c0_53, %c0_54, %c0_55] : memref<1x1x3xf32, #tpu.memory_space<vmem>>, vector<1x1x3xf32>
    %47 = vector.shape_cast %46 : vector<1x1x3xf32> to vector<1x3xf32>
    %48 = vector.shape_cast %45 : vector<1x3xf32> to vector<1x1x3xf32>
    tpu.vector_store %arg12[%c0_53, %c0_54, %c0_55], %48 {strides = array<i32>} : memref<1x1x3xf32, #tpu.memory_space<vmem>>, vector<1x1x3xf32>,
    return
  }
  func.func @transform_0(%arg0: i32) -> (i32, i32, i32) {
    %c0_i32 = arith.constant 0 : i32
    %c0_i32_0 = arith.constant 0 : i32
    %c0_i32_1 = arith.constant 0 : i32
    return %arg0, %c0_i32, %c0_i32_0 : i32, i32, i32
  }
  func.func @transform_1(%arg0: i32) -> (i32, i32, i32) {
    %c0_i32 = arith.constant 0 : i32
    %c0_i32_0 = arith.constant 0 : i32
    %c0_i32_1 = arith.constant 0 : i32
    %c0_i32_2 = arith.constant 0 : i32
    return %c0_i32, %c0_i32_0, %c0_i32_1 : i32, i32, i32
  }
  func.func @transform_2(%arg0: i32) -> (i32, i32) {
    %c0_i32 = arith.constant 0 : i32
    %c0_i32_0 = arith.constant 0 : i32
    %c0_i32_1 = arith.constant 0 : i32
    return %c0_i32, %c0_i32_0 : i32, i32
  }
  func.func @transform_3(%arg0: i32) -> (i32, i32, i32) {
    %c0_i32 = arith.constant 0 : i32
    %c0_i32_0 = arith.constant 0 : i32
    %c0_i32_1 = arith.constant 0 : i32
    %c0_i32_2 = arith.constant 0 : i32
    return %c0_i32, %c0_i32_0, %c0_i32_1 : i32, i32, i32
  }
  func.func @transform_4(%arg0: i32) -> (i32, i32) {
    %c0_i32 = arith.constant 0 : i32
    %c0_i32_0 = arith.constant 0 : i32
    %c0_i32_1 = arith.constant 0 : i32
    return %c0_i32, %c0_i32_0 : i32, i32
  }
  func.func @transform_5(%arg0: i32) -> (i32, i32, i32) {
    %c0_i32 = arith.constant 0 : i32
    %c0_i32_0 = arith.constant 0 : i32
    %c0_i32_1 = arith.constant 0 : i32
    %c0_i32_2 = arith.constant 0 : i32
    return %c0_i32, %c0_i32_0, %c0_i32_1 : i32, i32, i32
  }
  func.func @transform_6(%arg0: i32) -> (i32, i32) {
    %c0_i32 = arith.constant 0 : i32
    %c0_i32_0 = arith.constant 0 : i32
    %c0_i32_1 = arith.constant 0 : i32
    return %c0_i32, %c0_i32_0 : i32, i32
  }
  func.func @transform_7(%arg0: i32) -> (i32, i32, i32) {
    %c0_i32 = arith.constant 0 : i32
    %c0_i32_0 = arith.constant 0 : i32
    %c0_i32_1 = arith.constant 0 : i32
    %c0_i32_2 = arith.constant 0 : i32
    return %c0_i32, %c0_i32_0, %c0_i32_1 : i32, i32, i32
  }
  func.func @transform_8(%arg0: i32) -> (i32, i32) {
    %c0_i32 = arith.constant 0 : i32
    %c0_i32_0 = arith.constant 0 : i32
    %c0_i32_1 = arith.constant 0 : i32
    return %c0_i32, %c0_i32_0 : i32, i32
  }
  func.func @transform_9(%arg0: i32) -> (i32, i32, i32) {
    %c0_i32 = arith.constant 0 : i32
    %c0_i32_0 = arith.constant 0 : i32
    %c0_i32_1 = arith.constant 0 : i32
    %c0_i32_2 = arith.constant 0 : i32
    return %c0_i32, %c0_i32_0, %c0_i32_1 : i32, i32, i32
  }
  func.func @transform_10(%arg0: i32) -> (i32, i32) {
    %c0_i32 = arith.constant 0 : i32
    %c0_i32_0 = arith.constant 0 : i32
    %c0_i32_1 = arith.constant 0 : i32
    return %c0_i32, %c0_i32_0 : i32, i32
  }
  func.func @transform_11(%arg0: i32) -> (i32, i32, i32) {
    %c0_i32 = arith.constant 0 : i32
    %c0_i32_0 = arith.constant 0 : i32
    %c0_i32_1 = arith.constant 0 : i32
    return %arg0, %c0_i32, %c0_i32_0 : i32, i32, i32
  }
}

</mosaic_0001>

<bundles_post_ra>
// kernel: tiny_vgg_forward.1
= control target key start
LH: loop header
LB: loop body
LE: loop exit
PB: predicated region body
PF: predicated region fallthrough
CT: control target
= control target key end

     0   :  { %s14486_s0 = inlined_call_operand.vmem [shape: bf16[2,4096,3], index: 0, kind: input, shape index: {}]   ;;  %s14487_s1 = inlined_call_operand.vmem [shape: bf16[3,9,32], index: 1, kind: input, shape index: {}]   ;;  %s14488_s2 = inlined_call_operand.vmem [shape: f32[1,32], index: 2, kind: input, shape index: {}]   ;;  %s14489_s3 = inlined_call_operand.vmem [shape: bf16[3,96,32], index: 3, kind: input, shape index: {}]   ;;  %s14490_s4 = inlined_call_operand.vmem [shape: f32[1,32], index: 4, kind: input, shape index: {}]   ;;  %s14491_s5 = inlined_call_operand.vmem [shape: bf16[3,96,32], index: 5, kind: input, shape index: {}]   ;;  %s14492_s6 = inlined_call_operand.vmem [shape: f32[1,32], index: 6, kind: input, shape index: {}]   ;;  %s14493_s7 = inlined_call_operand.vmem [shape: bf16[3,96,32], index: 7, kind: input, shape index: {}]   ;;  %s14494_s8 = inlined_call_operand.vmem [shape: f32[1,32], index: 8, kind: input, shape index: {}]   ;;  %s14495_s9 = inlined_call_operand.vmem [shape: f32[3,256,32], index: 9, kind: input, shape index: {}]   ;;  %s14496_s10 = inlined_call_operand.vmem [shape: f32[1,3], index: 10, kind: input, shape index: {}]   ;;  %s14497_s11 = inlined_call_operand.hbm [shape: f32[2,1,3], index: 11, kind: output, shape index: {}]  }
   0x1   :  { %14533 = sst [smem:[#allocation19_spill]] %s14486_s0 }
   0x2   :  { %14534 = sst [smem:[#allocation20_spill]] %s14487_s1 }
   0x3   :  { %14535 = sst [smem:[#allocation21_spill]] %s14488_s2 }
   0x4   :  { %16 = vsyncpa [#allocation9], 0 }
   0x5   :  { %18 = vsyncpa [#allocation9 + $0x1], 0  ;;  %s10863_s17 = smov 0   ;;  %s10865_s18 = smov 0  }
   0x6   :  { %s10867_s19 = smov 0   ;;  %s10869_s20 = smov 0  }
   0x7 LB: > { %s10884_s21 = sadd.s32 4294967295, %s10768_s20   ;;  %s8610_s22 = sadd.s32 4294967294, %s10768_s20   ;;  %s10768_s20 = sphi %s10869_s20, %s14920_s20   ;;  %s10764_s19 = sphi %s10867_s19, %s14919_s19   ;;  %s10760_s18 = sphi %s10865_s18, %s14918_s18   ;;  %s10756_s17 = sphi %s10863_s17, %s14917_s17  }
   0x8   : > { %s10888_s23 = sadd.s32 1, %s10768_s20   ;;  %s267_s24 = sadd.s32 1, %s10764_s19 }
   0x9   : > { %s264_s25 = ssub.s32 %s10768_s20, %s10888_s23  ;;  %p277_p0 = scmp.ne.s32.totalorder %s10764_s19, %s10760_s18 }
   0xa   : > { %p265_p1 = scmp.eq.s32.totalorder %s264_s25, 0  ;;  %p278_p2 = scmp.eq.s32.totalorder %s10884_s21, 1 }
   0xb   : > { %p283_p3 = scmp.ne.s32.totalorder %s10760_s18, %s10756_s17  ;;  %p284_p4 = scmp.eq.s32.totalorder %s8610_s22, 1 }
   0xc   : > { %s10899_s26 = scalar_select %p265_p1, %s10764_s19, %s267_s24  }
   0xd   : > { %p10901_p5 = por %p278_p2, %p277_p0  ;;  %p10905_p6 = por %p284_p4, %p283_p3 }
   0xe   : > { %14536 = sst [smem:[#allocation11_spill]] %s10899_s26  ;;  %p8613_p7 = scmp.ge.s32.totalorder %s10768_s20, 1 }
   0xf   : > { %p340_p8 = scmp.lt.s32.totalorder %s10768_s20, 3 }
  0x11   : > { %p341_p9 = pnand %p8613_p7, %p340_p8 }
  0x13   : > { %344 = sbr.rel (%p341_p9) target bundleno = 2256 (0x8d0), region = 64 }
  0x1a   : > { %s14522_s29 = sand.u32 1, %s10760_s18   ;;  %p379_p10 = scmp.lt.s32.totalorder %s10884_s21, 1  ;;  %vm387_vm0 = vcmask 72704   ;;  %vm14520_vm1 = vcmask 785408   ;;  %v10790_v0 = vmov 0  }
  0x1b   : > { %388 = vst.msk [vmem:[#allocation2] sm:$0xff] %vm387_vm0, %v10790_v0  ;;  %389 = vst.msk [vmem:[#allocation2 + $0x8] sm:$0xff] %vm387_vm0, %v10790_v0  ;;  %s14539_s0 = sld [smem:[#allocation19_spill]]  ;;  %s10947_s16 = scalar_lea.vmem [#allocation8], %s14522_s29 }
  0x1c   : > { %390 = vst.msk [vmem:[#allocation2 + $0x10] sm:$0xff] %vm387_vm0, %v10790_v0  ;;  %391 = vst.msk [vmem:[#allocation2 + $0x18] sm:$0xff] %vm387_vm0, %v10790_v0  ;;  %s380_s30 = scalar_select %p379_p10, %s10884_s21, 1 }
  0x1d   : > { %392 = vst.msk [vmem:[#allocation2 + $0x820] sm:$0xff] %vm387_vm0, %v10790_v0  ;;  %393 = vst.msk [vmem:[#allocation2 + $0x828] sm:$0xff] %vm387_vm0, %v10790_v0  ;;  %s10949_s22 = smov 0  }
  0x1e   : > { %394 = vst.msk [vmem:[#allocation2 + $0x830] sm:$0xff] %vm387_vm0, %v10790_v0  ;;  %395 = vst.msk [vmem:[#allocation2 + $0x838] sm:$0xff] %vm387_vm0, %v10790_v0  ;;  %s9096_s12 = sshll.u32 %s380_s30, 11 }
  0x1f   : > { %397 = vst.msk [vmem:[#allocation3] sm:$0xff] %vm14520_vm1, %v10790_v0  ;;  %398 = vst.msk [vmem:[#allocation3 + $0x8] sm:$0xff] %vm14520_vm1, %v10790_v0 }
  0x20   : > { %399 = vst.msk [vmem:[#allocation3 + $0x10] sm:$0xff] %vm14520_vm1, %v10790_v0  ;;  %400 = vst.msk [vmem:[#allocation3 + $0x18] sm:$0xff] %vm14520_vm1, %v10790_v0 }
  0x21   : > { %401 = vst.msk [vmem:[#allocation3 + $0x820] sm:$0xff] %vm14520_vm1, %v10790_v0  ;;  %402 = vst.msk [vmem:[#allocation3 + $0x828] sm:$0xff] %vm14520_vm1, %v10790_v0  ;;  %s10943_s15 = scalar_lea.vmem %s14539_s0, %s9096_s12 }
  0x22   : > { %403 = vst.msk [vmem:[#allocation3 + $0x830] sm:$0xff] %vm14520_vm1, %v10790_v0  ;;  %404 = vst.msk [vmem:[#allocation3 + $0x838] sm:$0xff] %vm14520_vm1, %v10790_v0 }
  0x23   : > { %405 = vst.msk [vmem:[#allocation4] sm:$0xff] %vm14520_vm1, %v10790_v0  ;;  %406 = vst.msk [vmem:[#allocation4 + $0x8] sm:$0xff] %vm14520_vm1, %v10790_v0 }
  0x24   : > { %407 = vst.msk [vmem:[#allocation4 + $0x210] sm:$0xff] %vm14520_vm1, %v10790_v0  ;;  %408 = vst.msk [vmem:[#allocation4 + $0x218] sm:$0xff] %vm14520_vm1, %v10790_v0 }
  0x25   : > { %409 = vst.msk [vmem:[#allocation5] sm:$0xff] %vm14520_vm1, %v10790_v0  ;;  %410 = vst.msk [vmem:[#allocation5 + $0x8] sm:$0xff] %vm14520_vm1, %v10790_v0 }
  0x26   : > { %411 = vst.msk [vmem:[#allocation5 + $0x210] sm:$0xff] %vm14520_vm1, %v10790_v0  ;;  %412 = vst.msk [vmem:[#allocation5 + $0x218] sm:$0xff] %vm14520_vm1, %v10790_v0 }
  0x27 LB: >> { %v456_v1 = vlaneseq  ;;  %s8616_s24 = sshll.u32 %s10772_s22, 8  ;;  %vm10791_vm2 = vmmov 0   ;;  %v14516_v3 = vmov 0   ;;  %s10793_s13 = smov 3   ;;  %vm953_vm4 = vsmask.f32 256  ;;  %s10772_s22 = sphi %s10949_s22, %s418_s22  }
  0x28   : >> { %vm1133_vm3 = vmpackc.low %vm10791_vm2, %vm10791_vm2  ;;  %s420_s25 = sshra.s32 %s8616_s24, 3  ;;  %vm1276_vm5 = vsmask.f32 7424  ;;  %vm14521_vm12 = vcmask 1040384   ;;  %s10794_s14 = smov 6  }
  0x29   : >> { %v10955_v2 = vshrl.u32 %v456_v1, 7  ;;  %s8617_s30 = sshll.u32 %s420_s25, 2  ;;  %v10963_v4 = vsel %vm1133_vm3, 65537, %v14516_v3  ;;  %s1697_s25 = sadd.s32 64, %s8616_s24 }
  0x2a   : >> { %s10960_s12 = scalar_lea.vmem %s10943_s15, %s8617_s30  ;;  %v8635_v35 = vcombine.low %v10963_v4, %v10963_v4  ;;  %s1698_s30 = sshra.s32 %s1697_s25, 4 }
  0x2b   : >> { %v10966_v5 = vld [vmem:[%s10960_s12 + $0x10] sm:$0xff]   ;;  %v10969_v6 = vadd.s32 56, %v10955_v2  ;;  %v10972_v7 = vld [vmem:[%s10960_s12] sm:$0xff]   ;;  %v10975_v8 = vadd.s32 120, %v10955_v2  ;;  %v10981_v10 = vadd.s32 184, %v10955_v2  ;;  %v10987_v12 = vld [vmem:[%s10960_s12 + $0x18] sm:$0xff]  }
  0x2c   : >> { %1523 = vrot.lane.b32.xlu1 %v10966_v5, %s10793_s13  ;;  %v970_v9 = vshrl.u32 %v10966_v5, 16  ;;  %v973_v11 = vshll.u32 %v10966_v5, 16  ;;  %1519 = vrot.lane.b32.xlu0 %v10972_v7, %s10793_s13  ;;  %v10990_v13 = vld [vmem:[%s10960_s12 + $0x8] sm:$0xff]   ;;  %v10993_v14 = vadd.s32 248, %v10955_v2  ;;  %v978_v17 = vshrl.u32 %v10987_v12, 16  ;;  %v11021_v25 = vld [vmem:[%s10960_s12 + $0x20] sm:$0xff]  }
  0x2d   : >> { %14540 = vst [vmem:[#allocation12_spill] sm:$0xff] %v10981_v10  ;;  %v10998_v16 = vld [vmem:[%s10960_s12 + $0x28] sm:$0xff]   ;;  %v981_v18 = vshll.u32 %v10987_v12, 16  ;;  %v11004_v20 = vadd.s32 64, %v10955_v2  ;;  %v11028_v27 = vld [vmem:[%s10960_s12 + $0x38] sm:$0xff]   ;;  %v542_v29 = vand.u32 63, %v10969_v6 }
  0x2e   : >> { %14541 = vst [vmem:[#allocation13_spill] sm:$0xff] %v10993_v14  ;;  %v972_v15 = vrot.slane %v970_v9, 7  ;;  %v994_v21 = vshrl.u32 %v10998_v16, 16  ;;  %v997_v22 = vshll.u32 %v10998_v16, 16  ;;  %v11016_v24 = vrot.slane %v978_v17, 7  ;;  %v11031_v28 = vld [vmem:[%s10960_s12 + $0x48] sm:$0xff]  }
  0x2f   : >> { %14542 = vst [vmem:[#allocation14_spill] sm:$0xff] %v11004_v20  ;;  %v598_v30 = vand.u32 63, %v10975_v8  ;;  %v11037_v32 = vadd.s32 128, %v10955_v2  ;;  %v14504_v33 = vshrl.u32 %v10972_v7, 16  ;;  %v1010_v34 = vshrl.u32 %v11028_v27, 16  ;;  %v11055_v39 = vld [vmem:[%s10960_s12 + $0x30] sm:$0xff]  }
  0x30   : >> { %1525 = vrot.lane.b32.xlu1 %v10987_v12, %s10793_s13  ;;  %v11012_v23 = vor.u32 %v973_v11, %v972_v15  ;;  %1521 = vrot.lane.b32.xlu0 %v10990_v13, %s10793_s13  ;;  %v11025_v26 = vrot.slane %v994_v21, 7  ;;  %v983_v31 = vor.u32 %v981_v18, %v11016_v24  ;;  %v14500_v37 = vshll.u32 %v10972_v7, 16  ;;  %v11077_v49 = vld [vmem:[%s10960_s12 + $0x40] sm:$0xff]   ;;  %v11092_v53 = vld [vmem:[%s10960_s12 + $0x58] sm:$0xff]   ;;  %s418_s22 = sadd.s32 1, %s10772_s22  }
  0x31   : >> { %14543 = vst [vmem:[#allocation15_spill] sm:$0xff] %v11037_v32  ;;  %v14503_v38 = vshrl.u32 %v10990_v13, 16  ;;  %v14505_v40 = vshrl.u32 %v11031_v28, 16  ;;  %v11060_v41 = vrot.slane %v1010_v34, 7  ;;  %v1013_v42 = vshll.u32 %v11028_v27, 16  ;;  %v11103_v58 = vld [vmem:[%s10960_s12 + $0x50] sm:$0xff]  }
  0x32   : >> { %v11048_v36 = vor.u32 %v997_v22, %v11025_v26  ;;  %v11064_v43 = vsel %vm953_vm4, %v972_v15, %v983_v31  ;;  %v1029_v45 = vshll.u32 %v11031_v28, 16  ;;  %v14498_v46 = vshll.u32 %v10990_v13, 16  ;;  %v11107_v60 = vld [vmem:[%s10960_s12 + $0x68] sm:$0xff]   ;;  %v11133_v63 = vld [vmem:[%s10960_s12 + $0x60] sm:$0xff]   ;;  %p415_p11 = scmp.ge.s32.totalorder %s418_s22, 16  }
  0x33   : >> { %v11068_v44 = vrot.slane %v14505_v40, 7  ;;  %v14506_v47 = vshrl.u32 %v11021_v25, 16  ;;  %v14502_v48 = vshll.u32 %v11021_v25, 16  ;;  %vm11079_vm6 = vcmp.ne.s16.totalorder %v8635_v35, 0  ;;  %v11163_v35 = vld [vmem:[%s10960_s12 + $0x70] sm:$0xff]  }
  0x34   : >> { %1529 = vrot.lane.b32.xlu1 %v10998_v16, %s10793_s13  ;;  %1527 = vrot.lane.b32.xlu0 %v11021_v25, %s10793_s13  ;;  %v11086_v51 = vor.u32 %v1013_v42, %v11060_v41  ;;  %v14513_v52 = vshrl.u32 %v11055_v39, 16  ;;  %v14507_v55 = vshll.u32 %v11055_v39, 16  ;;  %v14511_v56 = vshrl.u32 %v11077_v49, 16 }
  0x35   : >> { %v11097_v54 = vor.u32 %v1029_v45, %v11068_v44  ;;  %v14508_v57 = vshll.u32 %v11077_v49, 16  ;;  %v14499_v59 = vshrl.u32 %v11092_v53, 16  ;;  %v14501_v0 = vshrl.u32 %v11107_v60, 16 }
  0x36   : >> { %v1279_v1 = vrot.slane %v14498_v46, 1  ;;  %v1282_v15 = vrot.slane %v973_v11, 1  ;;  %v1277_v19 = vrot.slane %v14500_v37, 1  ;;  %v1285_v62 = vrot.slane %v981_v18, 1  ;;  %v11146_v18 = vld [vmem:[%s10960_s12 + $0x78] sm:$0xff]   ;;  %s8666_s12 = sshll.u32 %s1698_s30, 3 }
  0x37   : >> { %v11123_v31 = vrot.slane %v14499_v59, 7  ;;  %v11130_v61 = vrot.slane %v14501_v0, 7  ;;  %v1288_v46 = vrot.slane %v14502_v48, 1  ;;  %vm11139_vm7 = vcmp.eq.s32.totalorder %v542_v29, 63  ;;  %s11617_s24 = scalar_lea.vmem [#allocation2], %s8666_s12 }
  0x38   : >> { %1533 = vrot.lane.b32.xlu1 %v11028_v27, %s10793_s13  ;;  %1531 = vrot.lane.b32.xlu0 %v11055_v39, %s10793_s13  ;;  %v1281_v11 = vor.u32 %v1279_v1, %v14503_v38  ;;  %v14546_v59 = vmov 0  ;;  %v1278_v37 = vor.u32 %v1277_v19, %v14504_v33  ;;  %v1287_v0 = vor.u32 %v1285_v62, %v978_v17  ;;  %vm1382_vm8 = vmpackc.low %vm11139_vm7, %vm11139_vm7 }
  0x39   : >> { %v14547_v59 = vsel %vm11139_vm7, 4294967295, %v14546_v59  ;;  %v1284_v29 = vor.u32 %v1282_v15, %v970_v9  ;;  %v1291_v48 = vrot.slane %v997_v22, 1  ;;  %v1414_v17 = vsel %vm1382_vm8, 65537, %v14516_v3 }
  0x3a   : >> { %14548 = vst [vmem:[#allocation16_spill] sm:$0xff] %v14547_v59  ;;  %v1283_v12 = vsel %vm1276_vm5, %v1281_v11, %v1282_v15  ;;  %v1290_v19 = vor.u32 %v1288_v46, %v14506_v47  ;;  %v14509_v5 = vshll.u32 %v11133_v63, 16  ;;  %v8653_v22 = vcombine.low %v10963_v4, %v1414_v17 }
  0x3b   : >> { %v1294_v33 = vrot.slane %v14507_v55, 1  ;;  %v14512_v38 = vshrl.u32 %v11163_v35, 16  ;;  %v14510_v40 = vshll.u32 %v11163_v35, 16  ;;  %v1504_v15 = vsel %vm11079_vm6, 0, %v1283_v12 }
  0x3c   : >> { %1537 = vrot.lane.b32.xlu1 %v11031_v28, %s10793_s13  ;;  %1535 = vrot.lane.b32.xlu0 %v11077_v49, %s10793_s13  ;;  %v1293_v11 = vor.u32 %v1291_v48, %v994_v21  ;;  %v1280_v47 = vsel %vm1276_vm5, %v1278_v37, %v1279_v1  ;;  %v1289_v17 = vsel %vm1276_vm5, %v1287_v0, %v1288_v46  ;;  %v1297_v55 = vrot.slane %v1013_v42, 1 }
  0x3d   : >> { %v1286_v9 = vsel %vm1276_vm5, %v1284_v29, %v1285_v62  ;;  %vm11189_vm9 = vcmp.ne.s16.totalorder %v8653_v22, 0  ;;  %v11194_v16 = vsel %vm1276_vm5, %v1290_v19, %v1291_v48  ;;  %v1300_v21 = vrot.slane %v14508_v57, 1 }
  0x3e   : >> { %vm11200_vm10 = vcmp.eq.s32.totalorder %v598_v30, 63  ;;  %v14551_v37 = vmov 0  ;;  %v11205_v42 = vsel %vm1276_vm5, %v1293_v11, %v1294_v33  ;;  %v1299_v46 = vor.u32 %v1297_v55, %v1010_v34 }
  0x3f   : >> { %v14552_v37 = vsel %vm11200_vm10, 4294967295, %v14551_v37  ;;  %vm1390_vm11 = vmpackc.low %vm11200_vm10, %vm11200_vm10  ;;  %v1296_v48 = vor.u32 %v1294_v33, %v14513_v52  ;;  %v1303_v62 = vrot.slane %v1029_v45, 1  ;;  %v1503_v30 = vsel %vm11079_vm6, 0, %v1280_v47 }
  0x40   : >> { %1541 = vrot.lane.b32.xlu1 %v11092_v53, %s10793_s13  ;;  %1539 = vrot.lane.b32.xlu0 %v11103_v58, %s10793_s13  ;;  %14553 = vst [vmem:[#allocation17_spill] sm:$0xff] %v14552_v37  ;;  %v1422_v0 = vsel %vm1390_vm11, 65537, %v14516_v3  ;;  %v1302_v1 = vor.u32 %v1300_v21, %v14511_v56  ;;  %v654_v27 = vand.u32 63, %v10981_v10  ;;  %v1506_v33 = vsel %vm11189_vm9, 0, %v1289_v17  ;;  %vm11345_vm9 = vmand %vm14521_vm12, %vm953_vm4 }
  0x41   : >> { %v1505_v34 = vsel %vm11079_vm6, 0, %v1286_v9  ;;  %v1507_v45 = vsel %vm11079_vm6, 0, %v11194_v16  ;;  %v8657_v47 = vcombine.low %v10963_v4, %v1422_v0  ;;  %v1508_v29 = vsel %vm11079_vm6, 0, %v11205_v42 }
  0x42   : >> { %v14554_v19 = vshrl.u32 %v11031_v28, 16  ;;  %v14555_v11 = vshll.u32 %v11103_v58, 16  ;;  %v14556_v9 = vshll.u32 %v11092_v53, 16  ;;  %v11244_v16 = vsel %vm1276_vm5, %v1299_v46, %v1300_v21 }
  0x43   : >> { %v11247_v0 = vsel %vm1276_vm5, %v1296_v48, %v1297_v55  ;;  %v1312_v57 = vrot.slane %v14509_v5, 1  ;;  %vm11251_vm13 = vcmp.eq.s32.totalorder %v654_v27, 63  ;;  %vm11255_vm14 = vcmp.ne.s16.totalorder %v8657_v47, 0 }
  0x44   : >> { %1545 = vrot.lane.b32.xlu1 %v11107_v60, %s10793_s13  ;;  %1543 = vrot.lane.b32.xlu0 %v11133_v63, %s10793_s13  ;;  %v1305_v22 = vor.u32 %v1303_v62, %v14554_v19  ;;  %v1306_v17 = vrot.slane %v14555_v11, 1  ;;  %v1309_v12 = vrot.slane %v14556_v9, 1  ;;  %v11260_v19 = vsel %vm1276_vm5, %v1302_v1, %v1303_v62  ;;  %vm1398_vm15 = vmpackc.low %vm11251_vm13, %vm11251_vm13 }
  0x45   : >> { %v14561_v21 = vshrl.u32 %v11092_v53, 16  ;;  %v14562_v55 = vshrl.u32 %v11103_v58, 16  ;;  %v1430_v27 = vsel %vm1398_vm15, 65537, %v14516_v3  ;;  %v14563_v47 = vshll.u32 %v11107_v60, 16 }
  0x46   : >> { %v1318_v62 = vrot.slane %v14510_v40, 1  ;;  %v14564_v1 = vshrl.u32 %v11133_v63, 16  ;;  %v710_v5 = vand.u32 63, %v10993_v14  ;;  %v1074_v28 = vshrl.u32 %v11146_v18, 16 }
  0x47   : >> { %v1311_v46 = vor.u32 %v1309_v12, %v14561_v21  ;;  %v1308_v48 = vor.u32 %v1306_v17, %v14562_v55  ;;  %v1315_v11 = vrot.slane %v14563_v47, 1  ;;  %v1509_v21 = vsel %vm11079_vm6, 0, %v11247_v0 }
  0x48   : >> { %1549 = vrot.lane.b32.xlu1 %v11146_v18, %s10793_s13  ;;  %1547 = vrot.lane.b32.xlu0 %v11163_v35, %s10793_s13  ;;  %v1314_v9 = vor.u32 %v1312_v57, %v14564_v1  ;;  %v11282_v55 = vsel %vm1276_vm5, %v1305_v22, %v1306_v17  ;;  %v14565_v1 = vshrl.u32 %v11107_v60, 16  ;;  %v1510_v22 = vsel %vm11255_vm14, 0, %v11244_v16  ;;  %s11741_s13 = smov (%p415_p11), 0  }
  0x49   : >> { %v11287_v47 = vsel %vm1276_vm5, %v1311_v46, %v1312_v57  ;;  %v11290_v40 = vsel %vm1276_vm5, %v1308_v48, %v1309_v12  ;;  %vm11307_vm3 = vcmp.eq.s32.totalorder %v710_v5, 63  ;;  %v1512_v0 = vsel %vm11079_vm6, 0, %v11282_v55 }
  0x4a   : >> { %v11295_v56 = vsel %vm1276_vm5, %v1314_v9, %v1315_v11  ;;  %v14570_v46 = vshll.u32 %v11146_v18, 16  ;;  %vm1406_vm8 = vmpackc.low %vm11307_vm3, %vm11307_vm3  ;;  %v11338_v55 = vrot.slane %v1074_v28, 7  ;;  %vm1340_vm14 = vcmask 1047552  }
  0x4b   : >> { %v14580_v52 = vshrl.u32 %v11021_v25, 16  ;;  %vm11492_vm12 = vmand %vm1340_vm14, %vm1276_vm5  ;;  %v14604_v57 = vsel %vm11079_vm6, 0, %v11290_v40 }
  0x4c   : >> { %1569 = vrot.lane.b32.xlu1 %v1504_v15, %s10794_s14  ;;  %1567 = vrot.lane.b32.xlu0 %v1503_v30, %s10794_s14  ;;  %v8661_v15 = vcombine.low %v10963_v4, %v1430_v27  ;;  %v1317_v30 = vor.u32 %v1315_v11, %v14565_v1  ;;  %v11321_v48 = vrot.slane %v14570_v46, 1  ;;  %v14571_v11 = vshrl.u32 %v10990_v13, 16 }
  0x4d   : >> { %v14574_v1 = vand.u32 63, %v10955_v2  ;;  %v14577_v46 = vshrl.u32 %v10972_v7, 16  ;;  %v14578_v27 = vshll.u32 %v10972_v7, 16  ;;  %v988_v14 = vrot.slane %v14580_v52, 7 }
  0x4e   : >> { %vm11303_vm2 = vcmp.ne.s16.totalorder %v8661_v15, 0  ;;  %v11316_v16 = vsel %vm1276_vm5, %v1317_v30, %v1318_v62  ;;  %v964_v9 = vrot.slane %v14571_v11, 7  ;;  %v11341_v15 = vsel %vm1406_vm8, 65537, %v14516_v3 }
  0x4f   : >> { %vm11351_vm11 = vcmp.eq.s32.totalorder %v14574_v1, 0  ;;  %v957_v11 = vrot.slane %v14577_v46, 7  ;;  %v11376_v46 = vor.u32 %v11321_v48, %v1074_v28  ;;  %v8665_v17 = vcombine.low %v10963_v4, %v11341_v15 }
  0x50   : >> { %1573 = vrot.lane.b32.xlu1 %v1506_v33, %s10794_s14  ;;  %1571 = vrot.lane.b32.xlu0 %v1505_v34, %s10794_s14  ;;  %v11362_v33 = vor.u32 %v1318_v62, %v14512_v38  ;;  %v11366_v5 = vsel %vm953_vm4, %v964_v9, %v11012_v23  ;;  %vm1132_vm15 = vmpackc.low %vm11351_vm11, %vm11351_vm11  ;;  %v14581_v7 = vshrl.u32 %v11055_v39, 16  ;;  %v14583_v52 = vshll.u32 %v11021_v25, 16 }
  0x51   : >> { %v1164_v23 = vsel %vm1132_vm15, 65537, %v14516_v3  ;;  %v960_v38 = vor.u32 %v14578_v27, %v957_v11  ;;  %v549_v3 = vand.u32 63, %v11004_v20 }
  0x52   : >> { %v8634_v1 = vcombine.low %v1164_v23, %v10963_v4  ;;  %v1004_v27 = vrot.slane %v14581_v7, 7  ;;  %v14589_v7 = vshrl.u32 %v11103_v58, 16 }
  0x53   : >> { %v1099_v62 = vsel %vm11345_vm9, 0, %v960_v38  ;;  %vm11417_vm9 = vcmp.eq.s32.totalorder %v549_v3, 0 }
  0x54   : >> { %1577 = vrot.lane.b32.xlu1 %v1508_v29, %s10794_s14  ;;  %1575 = vrot.lane.b32.xlu0 %v1507_v45, %s10794_s14  ;;  %v14579_v29 = vshll.u32 %v10990_v13, 16  ;;  %v14582_v45 = vshrl.u32 %v11077_v49, 16  ;;  %vm1244_vm8 = vcmp.ne.s16.totalorder %v8634_v1, 0  ;;  %v11404_v13 = vsel %vm953_vm4, %v988_v14, %v11048_v36  ;;  %vm1140_vm15 = vmpackc.low %vm11417_vm9, %vm11417_vm9 }
  0x55   : >> { %v11409_v38 = vsel %vm1244_vm8, 0, %v1099_v62  ;;  %v11431_v25 = vsel %vm953_vm4, %v1004_v27, %v11086_v51  ;;  %v14586_v36 = vshll.u32 %v11055_v39, 16  ;;  %v605_v51 = vand.u32 63, %v11037_v32 }
  0x56   : >> { %v967_v28 = vor.u32 %v14579_v29, %v964_v9  ;;  %v1020_v10 = vrot.slane %v14582_v45, 7  ;;  %v991_v9 = vor.u32 %v14583_v52, %v988_v14 }
  0x57   : >> { %v1007_v3 = vor.u32 %v14586_v36, %v1004_v27  ;;  %v1036_v27 = vrot.slane %v14589_v7, 7  ;;  %vm11460_vm8 = vcmp.eq.s32.totalorder %v605_v51, 0  ;;  %v14598_v51 = vshll.u32 %v11107_v60, 16 }
  0x58   : >> { %v11400_v15 = vsel %vm953_vm4, %v957_v11, %v967_v28  ;;  %1581 = vrot.lane.b32.xlu1 %v1510_v22, %s10794_s14  ;;  %v1265_v11 = vsel %vm11079_vm6, 0, %v11404_v13  ;;  %1579 = vrot.lane.b32.xlu0 %v1509_v21, %s10794_s14  ;;  %v11424_v14 = vsel %vm953_vm4, %v11016_v24, %v991_v9  ;;  %v11437_v22 = vsel %vm953_vm4, %v1020_v10, %v11097_v54  ;;  %vm1148_vm1 = vmpackc.low %vm11460_vm8, %vm11460_vm8 }
  0x59   : >> { %v1261_v34 = vsel %vm11079_vm6, 0, %v11400_v15  ;;  %v14587_v21 = vmov 0   ;;  %v1267_v24 = vsel %vm11079_vm6, 0, %v11431_v25  ;;  %v1269_v23 = vsel %vm11079_vm6, 0, %v11437_v22 }
  0x5a   : >> { %v1172_v62 = vsel %vm1140_vm15, 65537, %v14587_v21  ;;  %v11450_v39 = vsel %vm953_vm4, %v11025_v26, %v1007_v3  ;;  %v14588_v54 = vshll.u32 %v11077_v49, 16  ;;  %v14592_v26 = vshll.u32 %v11092_v53, 16 }
  0x5b   : >> { %v8638_v29 = vcombine.low %v1172_v62, %v10963_v4  ;;  %v1266_v45 = vsel %vm11079_vm6, 0, %v11450_v39  ;;  %v14593_v49 = vshrl.u32 %v11133_v63, 16  ;;  %v14597_v53 = vshll.u32 %v11103_v58, 16 }
  0x5c   : >> { %v1023_v28 = vor.u32 %v14588_v54, %v1020_v10  ;;  %1585 = vrot.lane.b32.xlu1 %v1512_v0, %s10794_s14  ;;  %v1047_v9 = vor.u32 %v14592_v26, %v11123_v31  ;;  %v14594_v0 = vsel %vm11079_vm6, 0, %v11260_v19  ;;  %v1063_v19 = vor.u32 %v14598_v51, %v11130_v61 }
  0x5d   : >> { %v1052_v10 = vrot.slane %v14593_v49, 7  ;;  %1583 = vrot.lane.b32.xlu0 %v14594_v0, %s10794_s14  ;;  %vm11474_vm15 = vcmp.ne.s16.totalorder %v8638_v29, 0  ;;  %v1039_v62 = vor.u32 %v14597_v53, %v1036_v27  ;;  %v1180_v54 = vsel %vm1148_vm1, 65537, %v14587_v21 }
  0x5e   : >> { %v11480_v3 = vsel %vm953_vm4, %v11060_v41, %v1023_v28  ;;  %v1264_v41 = vsel %vm11474_vm15, 0, %v11424_v14  ;;  %v11501_v28 = vsel %vm953_vm4, %v1036_v27, %v1047_v9  ;;  %v11504_v58 = vadd.s32 192, %v10955_v2 }
  0x5f   : >> { %v8642_v60 = vcombine.low %v1180_v54, %v10963_v4  ;;  %v1271_v7 = vsel %vm11079_vm6, 0, %v11501_v28  ;;  %v11512_v26 = vsel %vm953_vm4, %v11068_v44, %v1039_v62  ;;  %v11515_v49 = vsel %vm953_vm4, %v1052_v10, %v1063_v19 }
  0x60   : >> { %14601 = vst [vmem:[#allocation18_spill] sm:$0xff] %v11504_v58  ;;  %v14602_v27 = vsel %vm11303_vm2, 0, %v11287_v47  ;;  %v1270_v9 = vsel %vm11079_vm6, 0, %v11512_v26  ;;  %v661_v44 = vand.u32 63, %v11504_v58  ;;  %v14603_v53 = vshll.u32 %v11133_v63, 16 }
  0x61   : >> { %1589 = vrot.lane.b32.xlu1 %v14602_v27, %s10794_s14  ;;  %1587 = vrot.lane.b32.xlu0 %v14604_v57, %s10794_s14  ;;  %v1342_v47 = vsel %vm11492_vm12, %v11376_v46, 0  ;;  %vm11539_vm1 = vcmp.ne.s16.totalorder %v8642_v60, 0  ;;  %v14607_v19 = vshrl.u32 %v11163_v35, 16  ;;  %v14608_v63 = vshll.u32 %v11146_v18, 16 }
  0x62   : >> { %v1055_v62 = vor.u32 %v14603_v53, %v1052_v10  ;;  %vm1502_vm2 = vcmp.ne.s16.totalorder %v8665_v17, 0  ;;  %v1268_v40 = vsel %vm11539_vm1, 0, %v11480_v3  ;;  %vm11555_vm12 = vcmp.eq.s32.totalorder %v661_v44, 0 }
  0x63   : >> { %v1068_v54 = vrot.slane %v14607_v19, 7  ;;  %v1079_v10 = vor.u32 %v14608_v63, %v11338_v55  ;;  %v1322_v60 = vsel %vm1276_vm5, %v11362_v33, %v11321_v48  ;;  %vm1156_vm14 = vmpackc.low %vm11555_vm12, %vm11555_vm12  ;;  %v14611_v17 = vshll.u32 %v11163_v35, 16 }
  0x64   : >> { %v11553_v29 = vsel %vm953_vm4, %v11123_v31, %v1055_v62  ;;  %v14612_v31 = vsel %vm11079_vm6, 0, %v11316_v16  ;;  %v1188_v27 = vsel %vm1156_vm14, 65537, %v14587_v21  ;;  %v14613_v33 = vsel %vm11079_vm6, 0, %v11295_v56 }
  0x65   : >> { %v11566_v18 = vsel %vm953_vm4, %v1068_v54, %v1079_v10  ;;  %v1071_v55 = vor.u32 %v14611_v17, %v1068_v54  ;;  %1593 = vrot.lane.b32.xlu1 %v14612_v31, %s10794_s14  ;;  %1591 = vrot.lane.b32.xlu0 %v14613_v33, %s10794_s14  ;;  %v1518_v35 = vsel %vm1502_vm2, 0, %v1342_v47  ;;  %v8646_v44 = vcombine.low %v1188_v27, %v10963_v4 }
  0x66   : >> { %v1517_v16 = vsel %vm11079_vm6, 0, %v1322_v60  ;;  %vm1648_vm2 = vcmask 48128   ;;  %v14618_v28 = vsel %vm11079_vm6, 0, %v11515_v49  ;;  %v14620_v49 = vsel %vm11079_vm6, 0, %v11566_v18 }
  0x67   : >> { %v11587_v53 = vsel %vm953_vm4, %v11130_v61, %v1071_v55  ;;  %vm11594_vm5 = vcmp.ne.s16.totalorder %v8646_v44, 0  ;;  %vm1599_vm4 = vcmask 23552  }
  0x69   : >> { %1597 = vrot.lane.b32.xlu1 %v1518_v35, %s10794_s14  ;;  %1595 = vrot.lane.b32.xlu0 %v1517_v16, %s10794_s14 }
  0x9e   : >> { %v1524_v56 = vpop.permute.xlu1 %1523  ;;  %v1520_v61 = vpop.permute.xlu0 %1519 }
  0x9f   : >> { %v1602_v48 = vsel %vm1599_vm4, %v11409_v38, %v1520_v61  ;;  %v14616_v38 = vsel %vm11079_vm6, 0, %v11064_v43  ;;  %v14617_v61 = vsel %vm11079_vm6, 0, %v11366_v5 }
  0xa2   : >> { %v1526_v57 = vpop.permute.xlu1 %1525  ;;  %v1522_v47 = vpop.permute.xlu0 %1521 }
  0xa3   : >> { %v1605_v16 = vsel %vm1599_vm4, %v1261_v34, %v1522_v47  ;;  %v1611_v34 = vsel %vm1599_vm4, %v14616_v38, %v1526_v57  ;;  %v1608_v47 = vsel %vm1599_vm4, %v14617_v61, %v1524_v56 }
  0xa6   : >> { %v1530_v19 = vpop.permute.xlu1 %1529  ;;  %v1528_v54 = vpop.permute.xlu0 %1527 }
  0xa7   : >> { %v1617_v43 = vsel %vm1599_vm4, %v1265_v11, %v1530_v19 }
  0xaa   : >> { %v1534_v63 = vpop.permute.xlu1 %1533  ;;  %v1532_v10 = vpop.permute.xlu0 %1531 }
  0xab   : >> { %v1623_v13 = vsel %vm1599_vm4, %v1267_v24, %v1534_v63  ;;  %v1620_v14 = vsel %vm1599_vm4, %v1266_v45, %v1532_v10 }
  0xae   : >> { %v1538_v60 = vpop.permute.xlu1 %1537  ;;  %v1536_v17 = vpop.permute.xlu0 %1535 }
  0xaf   : >> { %v1629_v25 = vsel %vm1599_vm4, %v1269_v23, %v1538_v60  ;;  %v1626_v39 = vsel %vm1599_vm4, %v1268_v40, %v1536_v17 }
  0xb2   : >> { %v1542_v55 = vpop.permute.xlu1 %1541  ;;  %v1540_v31 = vpop.permute.xlu0 %1539 }
  0xb3   : >> { %v1635_v22 = vsel %vm1599_vm4, %v1271_v7, %v1542_v55  ;;  %v1632_v3 = vsel %vm1599_vm4, %v1270_v9, %v1540_v31  ;;  %v14619_v9 = vsel %vm11594_vm5, 0, %v11553_v29  ;;  %v14621_v29 = vsel %vm11079_vm6, 0, %v11587_v53 }
  0xb6   : >> { %v1546_v27 = vpop.permute.xlu1 %1545  ;;  %v1544_v33 = vpop.permute.xlu0 %1543 }
  0xb7   : >> { %v1641_v7 = vsel %vm1599_vm4, %v14618_v28, %v1546_v27  ;;  %v1638_v60 = vsel %vm1599_vm4, %v14619_v9, %v1544_v33 }
  0xba   : >> { %v11605_v35 = vpop.permute.xlu1 %1549  ;;  %v11607_v44 = vpop.permute.xlu0 %1547 }
  0xbb   : >> { %v1647_v62 = vsel %vm1599_vm4, %v14620_v49, %v11605_v35  ;;  %v1644_v33 = vsel %vm1599_vm4, %v14621_v29, %v11607_v44 }
  0xbe   : >> { %v1570_v21 = vpop.permute.xlu1 %1569  ;;  %v1568_v0 = vpop.permute.xlu0 %1567 }
  0xbf   : >> { %v1653_v4 = vsel %vm1648_vm2, %v1605_v16, %v1570_v21  ;;  %v1650_v15 = vsel %vm1648_vm2, %v1602_v48, %v1568_v0  ;;  %v1614_v48 = vsel %vm1599_vm4, %v1264_v41, %v1528_v54 }
  0xc0   : >> { %1703 = vst.msk [vmem:[%s11617_s24 + $0x8] sm:$0xff] %vm387_vm0, %v1653_v4  ;;  %1702 = vst.msk [vmem:[%s11617_s24] sm:$0xff] %vm387_vm0, %v1650_v15 }
  0xc2   : >> { %v1574_v21 = vpop.permute.xlu1 %1573  ;;  %v1572_v16 = vpop.permute.xlu0 %1571 }
  0xc3   : >> { %v1659_v4 = vsel %vm1648_vm2, %v1611_v34, %v1574_v21  ;;  %v1656_v0 = vsel %vm1648_vm2, %v1608_v47, %v1572_v16 }
  0xc4   : >> { %1705 = vst.msk [vmem:[%s11617_s24 + $0x18] sm:$0xff] %vm387_vm0, %v1659_v4  ;;  %1704 = vst.msk [vmem:[%s11617_s24 + $0x10] sm:$0xff] %vm387_vm0, %v1656_v0 }
  0xc6   : >> { %v1578_v5 = vpop.permute.xlu1 %1577  ;;  %v1576_v57 = vpop.permute.xlu0 %1575 }
  0xc7   : >> { %v1665_v56 = vsel %vm1648_vm2, %v1617_v43, %v1578_v5  ;;  %v1662_v15 = vsel %vm1648_vm2, %v1614_v48, %v1576_v57 }
  0xc8   : >> { %1707 = vst.msk [vmem:[%s11617_s24 + $0x28] sm:$0xff] %vm387_vm0, %v1665_v56  ;;  %1706 = vst.msk [vmem:[%s11617_s24 + $0x20] sm:$0xff] %vm387_vm0, %v1662_v15 }
  0xca   : >> { %v1582_v11 = vpop.permute.xlu1 %1581  ;;  %v1580_v41 = vpop.permute.xlu0 %1579 }
  0xcb   : >> { %v1671_v36 = vsel %vm1648_vm2, %v1623_v13, %v1582_v11  ;;  %v1668_v19 = vsel %vm1648_vm2, %v1620_v14, %v1580_v41 }
  0xcc   : >> { %1709 = vst.msk [vmem:[%s11617_s24 + $0x38] sm:$0xff] %vm387_vm0, %v1671_v36  ;;  %1708 = vst.msk [vmem:[%s11617_s24 + $0x30] sm:$0xff] %vm387_vm0, %v1668_v19 }
  0xce   : >> { %v1586_v24 = vpop.permute.xlu1 %1585 }
  0xcf   : >> { %v1677_v45 = vsel %vm1648_vm2, %v1629_v25, %v1586_v24  ;;  %v1584_v54 = vpop.permute.xlu0 %1583 }
  0xd0   : >> { %1711 = vst.msk [vmem:[%s11617_s24 + $0x48] sm:$0xff] %vm387_vm0, %v1677_v45  ;;  %v1674_v63 = vsel %vm1648_vm2, %v1626_v39, %v1584_v54 }
  0xd1   : >> { %1710 = vst.msk [vmem:[%s11617_s24 + $0x40] sm:$0xff] %vm387_vm0, %v1674_v63 }
  0xd3   : >> { %v1590_v23 = vpop.permute.xlu1 %1589  ;;  %v1588_v40 = vpop.permute.xlu0 %1587 }
  0xd4   : >> { %v1683_v51 = vsel %vm1648_vm2, %v1635_v22, %v1590_v23  ;;  %v1680_v10 = vsel %vm1648_vm2, %v1632_v3, %v1588_v40 }
  0xd5   : >> { %1713 = vst.msk [vmem:[%s11617_s24 + $0x58] sm:$0xff] %vm387_vm0, %v1683_v51  ;;  %1712 = vst.msk [vmem:[%s11617_s24 + $0x50] sm:$0xff] %vm387_vm0, %v1680_v10 }
  0xd7   : >> { %v1594_v26 = vpop.permute.xlu1 %1593  ;;  %v1592_v55 = vpop.permute.xlu0 %1591  ;;  %417 = sbr.rel (!%p415_p11) target bundleno = 39 (0x27), region = 192 }
  0xd8   : >> { %v1689_v17 = vsel %vm1648_vm2, %v1641_v7, %v1594_v26  ;;  %v1686_v31 = vsel %vm1648_vm2, %v1638_v60, %v1592_v55 }
  0xd9   : >> { %1715 = vst.msk [vmem:[%s11617_s24 + $0x68] sm:$0xff] %vm387_vm0, %v1689_v17  ;;  %1714 = vst.msk [vmem:[%s11617_s24 + $0x60] sm:$0xff] %vm387_vm0, %v1686_v31 }
  0xdb   : >> { %v1598_v27 = vpop.permute.xlu1 %1597  ;;  %v1596_v34 = vpop.permute.xlu0 %1595 }
  0xdc   : >> { %v1695_v38 = vsel %vm1648_vm2, %v1647_v62, %v1598_v27  ;;  %v1692_v21 = vsel %vm1648_vm2, %v1644_v33, %v1596_v34 }
  0xdd   : >> { %1717 = vst.msk [vmem:[%s11617_s24 + $0x78] sm:$0xff] %vm387_vm0, %v1695_v38  ;;  %1716 = vst.msk [vmem:[%s11617_s24 + $0x70] sm:$0xff] %vm387_vm0, %v1692_v21 }
  0xde LB: >> { %s14622_s1 = sld [smem:[#allocation20_spill]]  ;;  %vm1826_vm6 = vcmask 1043456   ;;  %vm1827_vm15 = vcmask 1044480   ;;  %s11753_s22 = sshll.u32 %s10776_s13, 8  ;;  %v10795_v53 = vmov 65535   ;;  %vm3166_vm1 = vcmask 1046528   ;;  %s10776_s13 = sphi %s11741_s13, %s1723_s13  }
  0xdf   : >> { %v1828_v35 = vsel %vm1826_vm6, 4294967295, %v10795_v53  ;;  %s9098_s15 = sadd.s32 64, %s11753_s22  ;;  %s1726_s24 = sshra.s32 %s11753_s22, 4  ;;  %vm14624_vm14 = vcmask 1040384  }
  0xe0   : >> { %v1829_v44 = vsel %vm1827_vm15, %v1828_v35, 0  ;;  %s11757_s29 = sshra.s32 %s9098_s15, 4  ;;  %s8669_s14 = sshll.u32 %s1726_s24, 3  ;;  %vm14625_vm5 = vmmov %vm14624_vm14 }
  0xe1   : >> { %s8671_s30 = sshll.u32 %s11757_s29, 3  ;;  %s11763_s12 = scalar_lea.vmem [#allocation2], %s8669_s14  ;;  %vm14626_vm4 = vmmov %vm14625_vm5 }
  0xe2   : >> { %s11768_s15 = scalar_lea.vmem [#allocation2], %s8671_s30  ;;  %s9100_s0 = sadd.s32 128, %s11753_s22  ;;  %vm14627_vm2 = vmmov %vm14626_vm4 }
  0xe3   : >> { %s2213_s24 = sshra.s32 %s9100_s0, 4  ;;  %s14623_s2 = sld [smem:[#allocation21_spill]]  ;;  %vm14628_vm6 = vmmov %vm14627_vm2 }
  0xe4   : >> { %v10429_v50 = vld [vmem:[%s14622_s1 + $0x8] sm:$0x1f]   ;;  %v10430_v18 = vld [vmem:[%s14622_s1] sm:$0x1f]   ;;  %v10431_v61 = vld [vmem:[%s14622_s1 + $0x10] sm:$0x1f]  }
  0xe5   : >> { %v1831_v47 = vand.u32 %v10429_v50, %v1829_v44  ;;  %v2048_v4 = vand.u32 %v10430_v18, %v1829_v44  ;;  %v1730_v16 = vld [vmem:[%s11763_s12] sm:$0xff]  ;;  %v2290_v0 = vand.u32 %v10431_v61, %v1829_v44  ;;  %v1755_v5 = vld [vmem:[%s11768_s15 + $0x8] sm:$0xff]  ;;  %v1756_v56 = vld [vmem:[%s11768_s15 + $0x10] sm:$0xff]  ;;  %s8709_s14 = sshll.u32 %s2213_s24, 3  ;;  %s10797_s0 = smov 64  }
  0xe6   : >> { %v1754_v43 = vld [vmem:[%s11768_s15] sm:$0xff]  ;;  %v1731_v48 = vld [vmem:[%s11763_s12 + $0x8] sm:$0xff]  ;;  %9406 = vmatprep.mubr.msk.bf16.mxu0 %vm387_vm0, %v1730_v16  ;;  %v1732_v57 = vld [vmem:[%s11763_s12 + $0x10] sm:$0xff]  ;;  %s11801_s22 = scalar_lea.vmem [#allocation2], %s8709_s14  ;;  %s12298_s24 = scalar_lea.vmem [#allocation3], %s8671_s30 }
  0xe7   : >> { %9370 = vmatprep.subr.bf16.mxu1 %v1831_v47  ;;  %9404 = vmatprep.subr.bf16.mxu0 %v2048_v4  ;;  %v1757_v15 = vld [vmem:[%s11768_s15 + $0x18] sm:$0xff]  ;;  %v1758_v11 = vld [vmem:[%s11768_s15 + $0x20] sm:$0xff]  ;;  %v1759_v36 = vld [vmem:[%s11768_s15 + $0x28] sm:$0xff]  ;;  %s1723_s13 = sadd.s32 1, %s10776_s13  }
  0xe8   : >> { %9371 = vmatpush3.bf16.msra.mxu1 %v1831_v47  ;;  %9405 = vmatpush3.bf16.msra.mxu0 %v2048_v4  ;;  %v1733_v13 = vld [vmem:[%s11763_s12 + $0x18] sm:$0xff]  ;;  %v1734_v14 = vld [vmem:[%s11763_s12 + $0x20] sm:$0xff]  ;;  %v1735_v41 = vld [vmem:[%s11763_s12 + $0x28] sm:$0xff]  ;;  %p1720_p12 = scmp.ge.s32.totalorder %s1723_s13, 16  }
  0xe9   : >> { %9372 = vmatprep.mubr.msk.bf16.mxu1 %vm387_vm0, %v1754_v43  ;;  %9438 = vmatprep.subr.bf16.mxu0 %v2290_v0  ;;  %v1760_v19 = vld [vmem:[%s11768_s15 + $0x30] sm:$0xff]  ;;  %v1761_v24 = vld [vmem:[%s11768_s15 + $0x38] sm:$0xff]  ;;  %v1762_v45 = vld [vmem:[%s11768_s15 + $0x40] sm:$0xff]  ;;  %s12431_s29 = smov (%p1720_p12), 0  }
  0xea   : >> { %9868 = vmatprep.subr.bf16.mxu1 %v2048_v4  ;;  %v1736_v25 = vld [vmem:[%s11763_s12 + $0x30] sm:$0xff]  ;;  %v1737_v39 = vld [vmem:[%s11763_s12 + $0x38] sm:$0xff]  ;;  %v2217_v54 = vld [vmem:[%s11801_s22] sm:$0xff] }
  0xeb   : >> { %9373 = vmatmul.mubr.msk.bf16.vlgmr.msra.gmra.mrb[0].mxu1 %vm387_vm0, %v1755_v5  ;;  %9407 = vmatmul.mubr.msk.bf16.vlgmr.msra.gmra.mrb[0].mxu0 %vm387_vm0, %v1731_v48  ;;  %v1763_v63 = vld [vmem:[%s11768_s15 + $0x48] sm:$0xff]  ;;  %v1764_v23 = vld [vmem:[%s11768_s15 + $0x50] sm:$0xff]  ;;  %v1765_v51 = vld [vmem:[%s11768_s15 + $0x58] sm:$0xff] }
  0xec   : >> { %9439 = vmatpush3.bf16.msra.mxu0 %v2290_v0  ;;  %9869 = vmatpush3.bf16.msra.mxu1 %v2048_v4  ;;  %v2218_v22 = vld [vmem:[%s11801_s22 + $0x8] sm:$0xff]  ;;  %v2219_v3 = vld [vmem:[%s11801_s22 + $0x10] sm:$0xff]  ;;  %v2220_v40 = vld [vmem:[%s11801_s22 + $0x18] sm:$0xff] }
  0xed   : >> { %9376 = vmatprep.mubr.msk.bf16.mxu1 %vm387_vm0, %v1756_v56  ;;  %9410 = vmatprep.mubr.msk.bf16.mxu0 %vm387_vm0, %v1732_v57  ;;  %v1766_v10 = vld [vmem:[%s11768_s15 + $0x60] sm:$0xff]  ;;  %v1767_v7 = vld [vmem:[%s11768_s15 + $0x68] sm:$0xff]  ;;  %v1768_v9 = vld [vmem:[%s11768_s15 + $0x70] sm:$0xff] }
  0xee   : >> { %v2221_v28 = vld [vmem:[%s11801_s22 + $0x20] sm:$0xff]  ;;  %v2222_v26 = vld [vmem:[%s11801_s22 + $0x28] sm:$0xff]  ;;  %v2223_v60 = vld [vmem:[%s11801_s22 + $0x30] sm:$0xff] }
  0xef   : >> { %v1769_v17 = vld [vmem:[%s11768_s15 + $0x78] sm:$0xff]  ;;  %v1738_v31 = vld [vmem:[%s11763_s12 + $0x40] sm:$0xff]  ;;  %v1739_v62 = vld [vmem:[%s11763_s12 + $0x48] sm:$0xff]  ;;  %s10796_s15 = smov 32  }
  0xf0   : >> { %v2224_v55 = vld [vmem:[%s11801_s22 + $0x38] sm:$0xff]  ;;  %v2225_v49 = vld [vmem:[%s11801_s22 + $0x40] sm:$0xff]  ;;  %v2226_v27 = vld [vmem:[%s11801_s22 + $0x48] sm:$0xff] }
  0xf1   : >> { %v1740_v29 = vld [vmem:[%s11763_s12 + $0x50] sm:$0xff]  ;;  %v1741_v38 = vld [vmem:[%s11763_s12 + $0x58] sm:$0xff]  ;;  %v1742_v21 = vld [vmem:[%s11763_s12 + $0x60] sm:$0xff] }
  0xf2   : >> { %v2227_v33 = vld [vmem:[%s11801_s22 + $0x50] sm:$0xff]  ;;  %v2228_v34 = vld [vmem:[%s11801_s22 + $0x58] sm:$0xff]  ;;  %v2229_v50 = vld [vmem:[%s11801_s22 + $0x60] sm:$0xff] }
  0xf3   : >> { %9377 = vmatmul.mubr.msk.bf16.gmra.mrb[4].mxu1 %vm387_vm0, %v1757_v15  ;;  %9411 = vmatmul.mubr.msk.bf16.gmra.mrb[4].mxu0 %vm387_vm0, %v1733_v13  ;;  %v1743_v18 = vld [vmem:[%s11763_s12 + $0x68] sm:$0xff]  ;;  %v1744_v35 = vld [vmem:[%s11763_s12 + $0x70] sm:$0xff]  ;;  %v1745_v61 = vld [vmem:[%s11763_s12 + $0x78] sm:$0xff] }
  0xf4   : >> { %9380 = vmatprep.mubr.msk.bf16.mxu1 %vm387_vm0, %v1758_v11  ;;  %9414 = vmatprep.mubr.msk.bf16.mxu0 %vm387_vm0, %v1734_v14  ;;  %v2230_v53 = vld [vmem:[%s11801_s22 + $0x68] sm:$0xff]  ;;  %v2231_v44 = vld [vmem:[%s11801_s22 + $0x70] sm:$0xff]  ;;  %v2232_v47 = vld [vmem:[%s11801_s22 + $0x78] sm:$0xff] }
  0xf5   : >> { %vm14629_vm15 = vmmov %vm14627_vm2 }
  0xfb   : >> { %9381 = vmatmul.mubr.msk.bf16.gmra.mrb[8].mxu1 %vm387_vm0, %v1759_v36  ;;  %9415 = vmatmul.mubr.msk.bf16.gmra.mrb[8].mxu0 %vm387_vm0, %v1735_v41 }
  0xfc   : >> { %9384 = vmatprep.mubr.msk.bf16.mxu1 %vm387_vm0, %v1760_v19  ;;  %9418 = vmatprep.mubr.msk.bf16.mxu0 %vm387_vm0, %v1736_v25 }
 0x103   : >> { %9385 = vmatmul.mubr.msk.bf16.gmra.mrb[12].mxu1 %vm387_vm0, %v1761_v24  ;;  %9419 = vmatmul.mubr.msk.bf16.gmra.mrb[12].mxu0 %vm387_vm0, %v1737_v39  ;;  %v11887_v39 = vld [vmem:[%s14623_s2] ss:$0 sm:$0xff] }
 0x104   : >> { %9388 = vmatprep.mubr.msk.bf16.mxu1 %vm387_vm0, %v1762_v45  ;;  %9440 = vmatprep.mubr.msk.bf16.mxu0 %vm387_vm0, %v2217_v54 }
 0x10b   : >> { %9389 = vmatmul.mubr.msk.bf16.gmra.mrb[16].mxu1 %vm387_vm0, %v1763_v63  ;;  %9441 = vmatmul.mubr.msk.bf16.vlgmr.msra.gmra.mrb[0].mxu0 %vm387_vm0, %v2218_v22 }
 0x10c   : >> { %9392 = vmatprep.mubr.msk.bf16.mxu1 %vm387_vm0, %v1764_v23  ;;  %9444 = vmatprep.mubr.msk.bf16.mxu0 %vm387_vm0, %v2219_v3 }
 0x113   : >> { %9393 = vmatmul.mubr.msk.bf16.gmra.mrb[20].mxu1 %vm387_vm0, %v1765_v51  ;;  %9445 = vmatmul.mubr.msk.bf16.gmra.mrb[4].mxu0 %vm387_vm0, %v2220_v40 }
 0x114   : >> { %9396 = vmatprep.mubr.msk.bf16.mxu1 %vm387_vm0, %v1766_v10  ;;  %9448 = vmatprep.mubr.msk.bf16.mxu0 %vm387_vm0, %v2221_v28 }
 0x11b   : >> { %9397 = vmatmul.mubr.msk.bf16.gmra.mrb[24].mxu1 %vm387_vm0, %v1767_v7  ;;  %9449 = vmatmul.mubr.msk.bf16.gmra.mrb[8].mxu0 %vm387_vm0, %v2222_v26 }
 0x11c   : >> { %9400 = vmatprep.mubr.msk.bf16.mxu1 %vm387_vm0, %v1768_v9  ;;  %9452 = vmatprep.mubr.msk.bf16.mxu0 %vm387_vm0, %v2223_v60 }
 0x123   : >> { %9401 = vmatmul.mubr.msk.bf16.gmra.mrb[28].mxu1 %vm387_vm0, %v1769_v17  ;;  %9453 = vmatmul.mubr.msk.bf16.gmra.mrb[12].mxu0 %vm387_vm0, %v2224_v55 }
 0x124   : >> { %9422 = vmatprep.mubr.msk.bf16.mxu1 %vm387_vm0, %v1738_v31  ;;  %9456 = vmatprep.mubr.msk.bf16.mxu0 %vm387_vm0, %v2225_v49 }
 0x12b   : >> { %9423 = vmatmul.mubr.msk.bf16.vlgmr.msra.gmra.mrb[16].mxu1 %vm387_vm0, %v1739_v62  ;;  %9457 = vmatmul.mubr.msk.bf16.gmra.mrb[16].mxu0 %vm387_vm0, %v2226_v27 }
 0x12c   : >> { %9426 = vmatprep.mubr.msk.bf16.mxu1 %vm387_vm0, %v1740_v29  ;;  %9460 = vmatprep.mubr.msk.bf16.mxu0 %vm387_vm0, %v2227_v33 }
 0x133   : >> { %9427 = vmatmul.mubr.msk.bf16.gmra.mrb[20].mxu1 %vm387_vm0, %v1741_v38  ;;  %9461 = vmatmul.mubr.msk.bf16.gmra.mrb[20].mxu0 %vm387_vm0, %v2228_v34 }
 0x134   : >> { %9430 = vmatprep.mubr.msk.bf16.mxu1 %vm387_vm0, %v1742_v21  ;;  %9464 = vmatprep.mubr.msk.bf16.mxu0 %vm387_vm0, %v2229_v50 }
 0x13b   : >> { %9431 = vmatmul.mubr.msk.bf16.gmra.mrb[24].mxu1 %vm387_vm0, %v1743_v18  ;;  %9465 = vmatmul.mubr.msk.bf16.gmra.mrb[24].mxu0 %vm387_vm0, %v2230_v53 }
 0x13c   : >> { %9434 = vmatprep.mubr.msk.bf16.mxu1 %vm387_vm0, %v1744_v35  ;;  %9468 = vmatprep.mubr.msk.bf16.mxu0 %vm387_vm0, %v2231_v44 }
 0x143   : >> { %9435 = vmatmul.mubr.msk.bf16.gmra.mrb[28].mxu1 %vm387_vm0, %v1745_v61  ;;  %9469 = vmatmul.mubr.msk.bf16.gmra.mrb[28].mxu0 %vm387_vm0, %v2232_v47 }
 0x1be   : >> { %v9374_v4 = vpop.f32.mrb[0].mxu1 }
 0x1bf   : >> { %v1867_v16 = vpop.f32.mrb[1].mxu1 }
 0x1c0   : >> { %v9375_v0 = vpop.f32.mrb[2].mxu1 }
 0x1c1   : >> { %v1870_v43 = vpop.f32.mrb[3].mxu1 }
 0x1c6   : >> { %v9378_v5 = vpop.f32.mrb[4].mxu1 }
 0x1c7   : >> { %v1883_v48 = vpop.f32.mrb[5].mxu1 }
 0x1c8   : >> { %v9379_v56 = vpop.f32.mrb[6].mxu1 }
 0x1c9   : >> { %v1886_v57 = vpop.f32.mrb[7].mxu1 }
 0x1ce   : >> { %v11868_v15 = vpop.f32.mrb[8].mxu1 }
 0x1cf   : >> { %v11870_v13 = vpop.f32.mrb[9].mxu1 }
 0x1d0   : >> { %v11872_v11 = vpop.f32.mrb[10].mxu1 }
 0x1d1   : >> { %v11874_v14 = vpop.f32.mrb[11].mxu1 }
 0x1d6   : >> { %v11876_v36 = vpop.f32.mrb[12].mxu1 }
 0x1d7   : >> { %v11878_v41 = vpop.f32.mrb[13].mxu1 }
 0x1d8   : >> { %v11880_v19 = vpop.f32.mrb[14].mxu1 }
 0x1d9   : >> { %v11882_v25 = vpop.f32.mrb[15].mxu1 }
 0x1de   : >> { %v9442_v24 = vpop.f32.mrb[0].mxu0 }
 0x1df   : >> { %v9870_v45 = vadd.f32 %v9442_v24, %v9374_v4  ;;  %v2326_v54 = vpop.f32.mrb[1].mxu0 }
 0x1e0   : >> { %v9871_v63 = vadd.f32 %v2326_v54, %v1867_v16  ;;  %v9443_v22 = vpop.f32.mrb[2].mxu0 }
 0x1e1   : >> { %v2494_v23 = vadd.f32 %v9870_v45, %v11887_v39  ;;  %v9872_v3 = vadd.f32 %v9443_v22, %v9375_v0  ;;  %v2329_v51 = vpop.f32.mrb[3].mxu0 }
 0x1e2   : >> { %v2492_v40 = vadd.f32 %v9871_v63, %v11887_v39  ;;  %v9873_v10 = vadd.f32 %v2329_v51, %v1870_v43 }
 0x1e3   : >> { %v2526_v28 = vmax.f32 %v2494_v23, 0.0  ;;  %v2495_v7 = vadd.f32 %v9872_v3, %v11887_v39 }
 0x1e4   : >> { %v11892_v26 = vmax.f32 %v2492_v40, 0.0  ;;  %v2493_v9 = vadd.f32 %v9873_v10, %v11887_v39 }
 0x1e5   : >> { %v3009_v60 = vrot.slane %v2526_v28, 7  ;;  %v11895_v17 = vmax.f32 %v2495_v7, 0.0  ;;  %v3170_v55 = vrot.slane %v2526_v28, 1 }
 0x1e6   : >> { %v14523_v31 = vrot.slane %v11892_v26, 7  ;;  %v3167_v49 = vrot.slane %v11892_v26, 1  ;;  %v2525_v62 = vmax.f32 %v2493_v9, 0.0  ;;  %v9446_v27 = vpop.f32.mrb[4].mxu0 }
 0x1e7   : >> { %v3011_v29 = vrot.slane %v11895_v17, 7  ;;  %v3172_v33 = vrot.slane %v11895_v17, 1  ;;  %v9874_v38 = vadd.f32 %v9446_v27, %v9378_v5  ;;  %v2342_v34 = vpop.f32.mrb[5].mxu0  ;;  %v10269_v21 = vpack.i.bf16 %v11895_v17, %v2526_v28 }
 0x1e8   : >> { %v3007_v50 = vrot.slane %v2525_v62, 7  ;;  %v3168_v18 = vrot.slane %v2525_v62, 1  ;;  %v9875_v53 = vadd.f32 %v2342_v34, %v1883_v48  ;;  %v9447_v35 = vpop.f32.mrb[6].mxu0  ;;  %v10274_v44 = vpack.i.bf16 %v2525_v62, %v11892_v26 }
 0x1e9   : >> { %v2498_v61 = vadd.f32 %v9874_v38, %v11887_v39  ;;  %v9876_v47 = vadd.f32 %v9447_v35, %v9379_v56  ;;  %10270 = vrot.lane.b32.xlu0 %v10269_v21, %s10796_s15  ;;  %v2345_v4 = vpop.f32.mrb[7].mxu0  ;;  %v11906_v16 = vsel %vm3166_vm1, %v3170_v55, %v3172_v33  ;;  %v11911_v0 = vsel %vm14624_vm14, %v3009_v60, %v3011_v29  ;;  %vm14631_vm14 = vmmov %vm14627_vm2 }
 0x1ea   : >> { %v2496_v43 = vadd.f32 %v9875_v53, %v11887_v39  ;;  %v9877_v5 = vadd.f32 %v2345_v4, %v1886_v57  ;;  %v3169_v48 = vsel %vm3166_vm1, %v3167_v49, %v3168_v18  ;;  %v3171_v24 = vsel %vm3166_vm1, %v3168_v18, %v3170_v55 }
 0x1eb   : >> { %v2530_v56 = vmax.f32 %v2498_v61, 0.0  ;;  %v2499_v45 = vadd.f32 %v9876_v47, %v11887_v39  ;;  %v10279_v54 = vpack.i.bf16 %v3171_v24, %v3169_v48  ;;  %v11918_v63 = vsel %vm14625_vm5, %v3007_v50, %v3009_v60  ;;  %vm14632_vm5 = vmmov %vm14627_vm2 }
 0x1ec   : >> { %v11920_v22 = vmax.f32 %v2496_v43, 0.0  ;;  %v2497_v23 = vadd.f32 %v9877_v5, %v11887_v39  ;;  %v11926_v3 = vsel %vm14626_vm4, %v14523_v31, %v3007_v50  ;;  %vm14633_vm4 = vmmov %vm14627_vm2 }
 0x1ed   : >> { %v11928_v57 = vmax.f32 %v2499_v45, 0.0  ;;  %10275 = vrot.lane.b32.xlu0 %v10274_v44, %s10796_s15  ;;  %v3017_v51 = vrot.slane %v2530_v56, 7  ;;  %v3178_v40 = vrot.slane %v2530_v56, 1 }
 0x1ee   : >> { %v3174_v10 = vrot.slane %v11920_v22, 1  ;;  %v11932_v28 = vmax.f32 %v2497_v23, 0.0  ;;  %v9450_v7 = vpop.f32.mrb[8].mxu0  ;;  %v3013_v9 = vrot.slane %v11920_v22, 7 }
 0x1ef   : >> { %v3180_v60 = vrot.slane %v11928_v57, 1  ;;  %v9878_v55 = vadd.f32 %v9450_v7, %v11868_v15  ;;  %v2358_v49 = vpop.f32.mrb[9].mxu0  ;;  %v10284_v62 = vpack.i.bf16 %v11928_v57, %v2530_v56  ;;  %v3019_v18 = vrot.slane %v11928_v57, 7 }
 0x1f0   : >> { %v3015_v27 = vrot.slane %v11932_v28, 7  ;;  %v3176_v38 = vrot.slane %v11932_v28, 1  ;;  %v9879_v34 = vadd.f32 %v2358_v49, %v11870_v13  ;;  %v9451_v21 = vpop.f32.mrb[10].mxu0  ;;  %v10289_v50 = vpack.i.bf16 %v11932_v28, %v11920_v22 }
 0x1f1   : >> { %v2502_v53 = vadd.f32 %v9878_v55, %v11887_v39  ;;  %v9880_v35 = vadd.f32 %v9451_v21, %v11872_v11  ;;  %10280 = vrot.lane.b32.xlu0 %v10279_v54, %s10797_s0  ;;  %10285 = vrot.lane.b32.xlu1 %v10284_v62, %s10796_s15  ;;  %v2361_v15 = vpop.f32.mrb[11].mxu0  ;;  %v3175_v44 = vsel %vm3166_vm1, %v3172_v33, %v3174_v10 }
 0x1f2   : >> { %v2500_v13 = vadd.f32 %v9879_v34, %v11887_v39  ;;  %v9881_v61 = vadd.f32 %v2361_v15, %v11874_v14  ;;  %v3177_v47 = vsel %vm3166_vm1, %v3174_v10, %v3176_v38  ;;  %v3179_v4 = vsel %vm3166_vm1, %v3176_v38, %v3178_v40 }
 0x1f3   : >> { %v11953_v43 = vmax.f32 %v2502_v53, 0.0  ;;  %v2503_v11 = vadd.f32 %v9880_v35, %v11887_v39  ;;  %v10299_v5 = vpack.i.bf16 %v3179_v4, %v3177_v47  ;;  %v10294_v48 = vpack.i.bf16 %v3175_v44, %v11906_v16 }
 0x1f4   : >> { %v11957_v24 = vmax.f32 %v2500_v13, 0.0  ;;  %v2501_v56 = vadd.f32 %v9881_v61, %v11887_v39  ;;  %v3181_v33 = vsel %vm3166_vm1, %v3178_v40, %v3180_v60  ;;  %v11962_v45 = vsel %vm14627_vm2, %v3015_v27, %v3017_v51 }
 0x1f5   : >> { %v11964_v14 = vmax.f32 %v2503_v11, 0.0  ;;  %10290 = vrot.lane.b32.xlu1 %v10289_v50, %s10796_s15  ;;  %10300 = vrot.lane.b32.xlu0 %v10299_v5, %s10797_s0  ;;  %v11969_v54 = vsel %vm14628_vm6, %v3017_v51, %v3019_v18  ;;  %v11979_v40 = vsel %vm14629_vm15, %v3011_v29, %v3013_v9  ;;  %v3186_v10 = vrot.slane %v11953_v43, 1  ;;  %vm14634_vm6 = vmmov %vm14627_vm2 }
 0x1f6   : >> { %v3182_v16 = vrot.slane %v11957_v24, 1  ;;  %v11972_v23 = vmax.f32 %v2501_v56, 0.0  ;;  %v9454_v57 = vpop.f32.mrb[12].mxu0  ;;  %v3021_v49 = vrot.slane %v11957_v24, 7  ;;  %v3025_v5 = vrot.slane %v11953_v43, 7  ;;  %vm14635_vm15 = vmmov %vm14627_vm2 }
 0x1f7   : >> { %v3188_v28 = vrot.slane %v11964_v14, 1  ;;  %v9882_v7 = vadd.f32 %v9454_v57, %v11876_v36  ;;  %v2374_v51 = vpop.f32.mrb[13].mxu0  ;;  %v10304_v55 = vpack.i.bf16 %v11964_v14, %v11953_v43 }
 0x1f8   : >> { %v3184_v62 = vrot.slane %v11972_v23, 1  ;;  %v9883_v38 = vadd.f32 %v2374_v51, %v11878_v41  ;;  %v9455_v17 = vpop.f32.mrb[14].mxu0  ;;  %v10309_v29 = vpack.i.bf16 %v11972_v23, %v11957_v24  ;;  %v3183_v50 = vsel %vm3166_vm1, %v3180_v60, %v3182_v16 }
 0x1f9   : >> { %v2506_v34 = vadd.f32 %v9882_v7, %v11887_v39  ;;  %v9884_v21 = vadd.f32 %v9455_v17, %v11880_v19  ;;  %10295 = vrot.lane.b32.xlu1 %v10294_v48, %s10797_s0  ;;  %v2377_v36 = vpop.f32.mrb[15].mxu0  ;;  %v11996_v53 = vsel %vm3166_vm1, %v3186_v10, %v3188_v28  ;;  %v3302_v60 = vsel %vm11139_vm7, 0.0, %v3183_v50 }
 0x1fa   : >> { %v2504_v35 = vadd.f32 %v9883_v38, %v11887_v39  ;;  %v9885_v41 = vadd.f32 %v2377_v36, %v11882_v25  ;;  %10310 = vrot.lane.b32.xlu0 %v10309_v29, %s10796_s15  ;;  %v3185_v15 = vsel %vm3166_vm1, %v3182_v16, %v3184_v62  ;;  %v3187_v44 = vsel %vm3166_vm1, %v3184_v62, %v3186_v10 }
 0x1fb   : >> { %v12003_v13 = vmax.f32 %v2506_v34, 0.0  ;;  %v2507_v19 = vadd.f32 %v9884_v21, %v11887_v39  ;;  %v10319_v61 = vpack.i.bf16 %v3187_v44, %v3185_v15  ;;  %v10314_v11 = vpack.i.bf16 %v3302_v60, %v3181_v33 }
 0x1fc   : >> { %v12008_v47 = vmax.f32 %v2504_v35, 0.0  ;;  %v2505_v4 = vadd.f32 %v9885_v41, %v11887_v39  ;;  %v12014_v25 = vsel %vm14631_vm14, %v3013_v9, %v3015_v27  ;;  %v3027_v48 = vrot.slane %v11964_v14, 7  ;;  %vm14637_vm14 = vmmov %vm14627_vm2 }
 0x1fd   : >> { %v12018_v56 = vmax.f32 %v2507_v19, 0.0  ;;  %10305 = vrot.lane.b32.xlu1 %v10304_v55, %s10796_s15  ;;  %v12024_v16 = vsel %vm14632_vm5, %v3019_v18, %v3021_v49  ;;  %v3023_v33 = vrot.slane %v11972_v23, 7  ;;  %v3033_v22 = vrot.slane %v12003_v13, 7  ;;  %vm14638_vm5 = vmmov %vm14627_vm2 }
 0x1fe   : >> { %v3190_v9 = vrot.slane %v12008_v47, 1  ;;  %v12029_v27 = vmax.f32 %v2505_v4, 0.0  ;;  %v9424_v43 = vpop.f32.mrb[16].mxu1  ;;  %10320 = vrot.lane.b32.xlu0 %v10319_v61, %s10797_s0  ;;  %v9458_v14 = vpop.f32.mrb[16].mxu0  ;;  %v3194_v57 = vrot.slane %v12003_v13, 1  ;;  %v3029_v55 = vrot.slane %v12008_v47, 7 }
 0x1ff   : >> { %v3196_v10 = vrot.slane %v12018_v56, 1  ;;  %v9886_v7 = vadd.f32 %v9458_v14, %v9424_v43  ;;  %v2148_v51 = vpop.f32.mrb[17].mxu1  ;;  %v2390_v18 = vpop.f32.mrb[17].mxu0  ;;  %v10324_v23 = vpack.i.bf16 %v12018_v56, %v12003_v13 }
 0x200   : >> { %v3192_v62 = vrot.slane %v12029_v27, 1  ;;  %v9887_v38 = vadd.f32 %v2390_v18, %v2148_v51  ;;  %v9425_v17 = vpop.f32.mrb[18].mxu1  ;;  %v9459_v29 = vpop.f32.mrb[18].mxu0  ;;  %v10329_v34 = vpack.i.bf16 %v12029_v27, %v12008_v47  ;;  %v3191_v41 = vsel %vm3166_vm1, %v3188_v28, %v3190_v9 }
 0x201   : >> { %v2510_v21 = vadd.f32 %v9886_v7, %v11887_v39  ;;  %v9888_v36 = vadd.f32 %v9459_v29, %v9425_v17  ;;  %v2151_v50 = vpop.f32.mrb[19].mxu1  ;;  %10315 = vrot.lane.b32.xlu1 %v10314_v11, %s10797_s0  ;;  %v2393_v35 = vpop.f32.mrb[19].mxu0  ;;  %v3197_v15 = vsel %vm3166_vm1, %v3194_v57, %v3196_v10  ;;  %v10334_v11 = vpack.i.bf16 %v3191_v41, %v11996_v53 }
 0x202   : >> { %v2508_v44 = vadd.f32 %v9887_v38, %v11887_v39  ;;  %v9889_v19 = vadd.f32 %v2393_v35, %v2151_v50  ;;  %10330 = vrot.lane.b32.xlu0 %v10329_v34, %s10796_s15  ;;  %v3193_v61 = vsel %vm3166_vm1, %v3190_v9, %v3192_v62  ;;  %v3195_v60 = vsel %vm3166_vm1, %v3192_v62, %v3194_v57 }
 0x203   : >> { %v12048_v4 = vmax.f32 %v2510_v21, 0.0  ;;  %v2511_v43 = vadd.f32 %v9888_v36, %v11887_v39  ;;  %v10339_v14 = vpack.i.bf16 %v3195_v60, %v3193_v61  ;;  %v12058_v51 = vsel %vm14633_vm4, %v3021_v49, %v3023_v33  ;;  %vm14639_vm4 = vmmov %vm14627_vm2 }
 0x204   : >> { %v12052_v7 = vmax.f32 %v2508_v44, 0.0  ;;  %v2509_v28 = vadd.f32 %v9889_v19, %v11887_v39  ;;  %v12061_v9 = vsel %vm14627_vm2, %v3023_v33, %v3025_v5  ;;  %v14524_v57 = vrot.slane %v12018_v56, 7 }
 0x205   : >> { %v3031_v18 = vrot.slane %v12029_v27, 7  ;;  %v12065_v62 = vmax.f32 %v2511_v43, 0.0  ;;  %10325 = vrot.lane.b32.xlu1 %v10324_v23, %s10796_s15  ;;  %v12069_v53 = vsel %vm14634_vm6, %v3025_v5, %v3027_v48  ;;  %v12079_v27 = vsel %vm14635_vm15, %v3027_v48, %v3029_v55  ;;  %vm14643_vm6 = vmmov %vm14627_vm2 }
 0x206   : >> { %v3198_v24 = vrot.slane %v12052_v7, 1  ;;  %v12073_v49 = vmax.f32 %v2509_v28, 0.0  ;;  %v9428_v17 = vpop.f32.mrb[20].mxu1  ;;  %10340 = vrot.lane.b32.xlu0 %v10339_v14, %s10797_s0  ;;  %v9462_v33 = vpop.f32.mrb[20].mxu0  ;;  %v3202_v23 = vrot.slane %v12048_v4, 1  ;;  %vm14645_vm15 = vmmov %vm14627_vm2 }
 0x207   : >> { %v3204_v5 = vrot.slane %v12065_v62, 1  ;;  %v9890_v29 = vadd.f32 %v9462_v33, %v9428_v17  ;;  %v2164_v34 = vpop.f32.mrb[21].mxu1  ;;  %v2406_v21 = vpop.f32.mrb[21].mxu0  ;;  %v10344_v36 = vpack.i.bf16 %v12065_v62, %v12048_v4 }
 0x208   : >> { %v3200_v35 = vrot.slane %v12073_v49, 1  ;;  %v9891_v41 = vadd.f32 %v2406_v21, %v2164_v34  ;;  %v9429_v44 = vpop.f32.mrb[22].mxu1  ;;  %v9463_v19 = vpop.f32.mrb[22].mxu0  ;;  %v10349_v48 = vpack.i.bf16 %v12073_v49, %v12052_v7  ;;  %v3199_v28 = vsel %vm3166_vm1, %v3196_v10, %v3198_v24 }
 0x209   : >> { %v2514_v61 = vadd.f32 %v9890_v29, %v11887_v39  ;;  %v9892_v60 = vadd.f32 %v9463_v19, %v9429_v44  ;;  %v2167_v43 = vpop.f32.mrb[23].mxu1  ;;  %10335 = vrot.lane.b32.xlu1 %v10334_v11, %s10797_s0  ;;  %v2409_v14 = vpop.f32.mrb[23].mxu0  ;;  %v12093_v17 = vsel %vm3166_vm1, %v3202_v23, %v3204_v5  ;;  %v3310_v10 = vsel %vm11200_vm10, 0.0, %v3199_v28 }
 0x20a   : >> { %v2512_v33 = vadd.f32 %v9891_v41, %v11887_v39  ;;  %v9893_v34 = vadd.f32 %v2409_v14, %v2167_v43  ;;  %10350 = vrot.lane.b32.xlu0 %v10349_v48, %s10796_s15  ;;  %v3201_v21 = vsel %vm3166_vm1, %v3198_v24, %v3200_v35  ;;  %v3203_v31 = vsel %vm3166_vm1, %v3200_v35, %v3202_v23 }
 0x20b   : >> { %v12099_v29 = vmax.f32 %v2514_v61, 0.0  ;;  %v2515_v44 = vadd.f32 %v9892_v60, %v11887_v39  ;;  %v10359_v11 = vpack.i.bf16 %v3203_v31, %v3201_v21  ;;  %v10354_v41 = vpack.i.bf16 %v3310_v10, %v3197_v15 }
 0x20c   : >> { %v12104_v19 = vmax.f32 %v2512_v33, 0.0  ;;  %v2513_v38 = vadd.f32 %v9893_v34, %v11887_v39  ;;  %v12110_v48 = vsel %vm14637_vm14, %v3029_v55, %v3031_v18  ;;  %v3039_v23 = vrot.slane %v12073_v49, 7  ;;  %vm14648_vm14 = vmmov %vm14627_vm2 }
 0x20d   : >> { %v12114_v35 = vmax.f32 %v2515_v44, 0.0  ;;  %10345 = vrot.lane.b32.xlu1 %v10344_v36, %s10796_s15  ;;  %v12120_v31 = vsel %vm14638_vm5, %v3031_v18, %v3033_v22  ;;  %v12132_v49 = vsel %vm14639_vm4, %v3033_v22, %v14524_v57  ;;  %v3210_v18 = vrot.slane %v12099_v29, 1  ;;  %vm14651_vm5 = vmmov %vm14627_vm2 }
 0x20e   : >> { %v3206_v47 = vrot.slane %v12104_v19, 1  ;;  %v12124_v61 = vmax.f32 %v2513_v38, 0.0  ;;  %v9432_v55 = vpop.f32.mrb[24].mxu1  ;;  %10360 = vrot.lane.b32.xlu0 %v10359_v11, %s10797_s0  ;;  %v9466_v60 = vpop.f32.mrb[24].mxu0  ;;  %vm14653_vm4 = vmmov %vm14627_vm2 }
 0x20f   : >> { %v3212_v36 = vrot.slane %v12114_v35, 1  ;;  %v9894_v43 = vadd.f32 %v9466_v60, %v9432_v55  ;;  %v2180_v14 = vpop.f32.mrb[25].mxu1  ;;  %v2422_v28 = vpop.f32.mrb[25].mxu0  ;;  %v10364_v38 = vpack.i.bf16 %v12114_v35, %v12099_v29 }
 0x210   : >> { %v3208_v34 = vrot.slane %v12124_v61, 1  ;;  %v9895_v21 = vadd.f32 %v2422_v28, %v2180_v14  ;;  %v9433_v44 = vpop.f32.mrb[26].mxu1  ;;  %v9467_v13 = vpop.f32.mrb[26].mxu0  ;;  %v10369_v22 = vpack.i.bf16 %v12124_v61, %v12104_v19  ;;  %v3207_v60 = vsel %vm3166_vm1, %v3204_v5, %v3206_v47 }
 0x211   : >> { %v2518_v11 = vadd.f32 %v9894_v43, %v11887_v39  ;;  %v9896_v10 = vadd.f32 %v9467_v13, %v9433_v44  ;;  %v2183_v15 = vpop.f32.mrb[27].mxu1  ;;  %10355 = vrot.lane.b32.xlu1 %v10354_v41, %s10797_s0  ;;  %v2425_v55 = vpop.f32.mrb[27].mxu0  ;;  %v3213_v24 = vsel %vm3166_vm1, %v3210_v18, %v3212_v36  ;;  %v10374_v41 = vpack.i.bf16 %v3207_v60, %v12093_v17 }
 0x212   : >> { %v2516_v33 = vadd.f32 %v9895_v21, %v11887_v39  ;;  %v9897_v57 = vadd.f32 %v2425_v55, %v2183_v15  ;;  %10370 = vrot.lane.b32.xlu0 %v10369_v22, %s10796_s15  ;;  %v3209_v14 = vsel %vm3166_vm1, %v3206_v47, %v3208_v34  ;;  %v3211_v28 = vsel %vm3166_vm1, %v3208_v34, %v3210_v18 }
 0x213   : >> { %v12150_v50 = vmax.f32 %v2518_v11, 0.0  ;;  %v2519_v43 = vadd.f32 %v9896_v10, %v11887_v39  ;;  %v10379_v44 = vpack.i.bf16 %v3211_v28, %v3209_v14  ;;  %v14640_v21 = vrot.slane %v12052_v7, 7 }
 0x214   : >> { %v12154_v13 = vmax.f32 %v2516_v33, 0.0  ;;  %v2517_v5 = vadd.f32 %v9897_v57, %v11887_v39  ;;  %v14641_v15 = vrot.slane %v12018_v56, 7  ;;  %v3047_v17 = vrot.slane %v12124_v61, 7 }
 0x215   : >> { %v14642_v47 = vmov %v14640_v21  ;;  %v12172_v11 = vmax.f32 %v2519_v43, 0.0  ;;  %10365 = vrot.lane.b32.xlu1 %v10364_v38, %s10796_s15  ;;  %v3218_v56 = vrot.slane %v12150_v50, 1  ;;  %v14644_v60 = vrot.slane %v12048_v4, 7 }
 0x216   : >> { %v12162_v22 = vsel %vm14627_vm2, %v14641_v15, %v14640_v21  ;;  %v12167_v18 = vsel %vm14643_vm6, %v14642_v47, %v3039_v23  ;;  %v3214_v57 = vrot.slane %v12154_v13, 1  ;;  %v12177_v10 = vmax.f32 %v2517_v5, 0.0  ;;  %v9436_v7 = vpop.f32.mrb[28].mxu1  ;;  %10380 = vrot.lane.b32.xlu0 %v10379_v44, %s10797_s0  ;;  %v9470_v55 = vpop.f32.mrb[28].mxu0  ;;  %vm14657_vm6 = vmmov %vm14627_vm2 }
 0x217   : >> { %v12183_v61 = vsel %vm14645_vm15, %v3039_v23, %v14644_v60  ;;  %v3220_v28 = vrot.slane %v12172_v11, 1  ;;  %v9898_v38 = vadd.f32 %v9470_v55, %v9436_v7  ;;  %v2196_v43 = vpop.f32.mrb[29].mxu1  ;;  %v2438_v21 = vpop.f32.mrb[29].mxu0  ;;  %v10384_v5 = vpack.i.bf16 %v12172_v11, %v12150_v50  ;;  %vm14660_vm15 = vmmov %vm14627_vm2 }
 0x218   : >> { %v3059_v15 = vrot.slane %v12172_v11, 7  ;;  %v3216_v44 = vrot.slane %v12177_v10, 1  ;;  %v9899_v47 = vadd.f32 %v2438_v21, %v2196_v43  ;;  %v9437_v33 = vpop.f32.mrb[30].mxu1  ;;  %v9471_v34 = vpop.f32.mrb[30].mxu0  ;;  %v10389_v23 = vpack.i.bf16 %v12177_v10, %v12154_v13 }
 0x219   : >> { %v2522_v60 = vadd.f32 %v9898_v38, %v11887_v39  ;;  %v9900_v14 = vadd.f32 %v9471_v34, %v9437_v33  ;;  %v2199_v37 = vpop.f32.mrb[31].mxu1  ;;  %10375 = vrot.lane.b32.xlu1 %v10374_v41, %s10797_s0  ;;  %v2441_v7 = vpop.f32.mrb[31].mxu0  ;;  %v3215_v55 = vsel %vm3166_vm1, %v3212_v36, %v3214_v57  ;;  %v3221_v59 = vsel %vm3166_vm1, %v3218_v56, %v3220_v28 }
 0x21a   : >> { %v2520_v11 = vadd.f32 %v9899_v47, %v11887_v39  ;;  %v9901_v58 = vadd.f32 %v2441_v7, %v2199_v37  ;;  %10390 = vrot.lane.b32.xlu0 %v10389_v23, %s10796_s15  ;;  %v3217_v43 = vsel %vm3166_vm1, %v3214_v57, %v3216_v44  ;;  %v3219_v21 = vsel %vm3166_vm1, %v3216_v44, %v3218_v56 }
 0x21b   : >> { %v2554_v32 = vmax.f32 %v2522_v60, 0.0  ;;  %v2523_v34 = vadd.f32 %v9900_v14, %v11887_v39  ;;  %v10399_v33 = vpack.i.bf16 %v3219_v21, %v3217_v43  ;;  %v3318_v41 = vsel %vm11251_vm13, 0.0, %v3215_v55 }
 0x21c   : >> { %v2552_v38 = vmax.f32 %v2520_v11, 0.0  ;;  %v2521_v36 = vadd.f32 %v9901_v58, %v11887_v39  ;;  %v10394_v20 = vpack.i.bf16 %v3318_v41, %v3213_v24  ;;  %v14646_v47 = vrot.slane %v12065_v62, 7 }
 0x21d   : >> { %v14647_v37 = vrot.slane %v12048_v4, 7  ;;  %v3055_v56 = vrot.slane %v12177_v10, 7  ;;  %v3226_v57 = vrot.slane %v2554_v32, 1  ;;  %v2555_v44 = vmax.f32 %v2523_v34, 0.0  ;;  %10385 = vrot.lane.b32.xlu1 %v10384_v5, %s10796_s15 }
 0x21e   : >> { %v14649_v14 = vrot.slane %v12104_v19, 7  ;;  %v14650_v60 = vmov %v14646_v47  ;;  %v3061_v39 = vrot.slane %v2552_v38, 7  ;;  %v3222_v24 = vrot.slane %v2552_v38, 1  ;;  %10400 = vrot.lane.b32.xlu0 %v10399_v33, %s10797_s0 }
 0x21f   : >> { %v12210_v23 = vsel %vm14648_vm14, %v14647_v37, %v14646_v47  ;;  %v2553_v7 = vmax.f32 %v2521_v36, 0.0  ;;  %v3067_v55 = vrot.slane %v2555_v44, 7  ;;  %v10404_v11 = vpack.i.bf16 %v2555_v44, %v2554_v32  ;;  %vm14662_vm14 = vmmov %vm14627_vm2 }
 0x220   : >> { %v12219_v58 = vsel %vm14651_vm5, %v14650_v60, %v14649_v14  ;;  %v14652_v4 = vmov %v14649_v14  ;;  %v3228_v5 = vrot.slane %v2555_v44, 1  ;;  %v14654_v43 = vrot.slane %v12099_v29, 7  ;;  %vm14664_vm5 = vmmov %vm14627_vm2 }
 0x221   : >> { %v12225_v10 = vsel %vm14653_vm4, %v14652_v4, %v3047_v17  ;;  %v3063_v21 = vrot.slane %v2553_v7, 7  ;;  %v3224_v34 = vrot.slane %v2553_v7, 1  ;;  %v10409_v41 = vpack.i.bf16 %v2553_v7, %v2552_v38  ;;  %10395 = vrot.lane.b32.xlu1 %v10394_v20, %s10797_s0  ;;  %vm14666_vm4 = vmmov %vm14627_vm2 }
 0x222   : >> { %v12230_v62 = vsel %vm14627_vm2, %v3047_v17, %v14654_v43  ;;  %v3223_v36 = vsel %vm3166_vm1, %v3220_v28, %v3222_v24  ;;  %v3229_v19 = vsel %vm3166_vm1, %v3226_v57, %v3228_v5  ;;  %v3262_v47 = vsel %vm3166_vm1, %v3228_v5, 0.0 }
 0x223   : >> { %v10414_v33 = vpack.i.bf16 %v3223_v36, %v3221_v59  ;;  %v14655_v37 = vrot.slane %v12114_v35, 7  ;;  %v14656_v44 = vmov %v14654_v43  ;;  %10410 = vrot.lane.b32.xlu0 %v10409_v41, %s10796_s15  ;;  %v3225_v17 = vsel %vm3166_vm1, %v3222_v24, %v3224_v34 }
 0x224   : >> { %v3227_v28 = vsel %vm3166_vm1, %v3224_v34, %v3226_v57  ;;  %v3326_v20 = vsel %vm11307_vm3, 0.0, %v3262_v47  ;;  %v14658_v59 = vrot.slane %v12154_v13, 7  ;;  %v3065_v29 = vrot.slane %v2554_v32, 7 }
 0x225   : >> { %v12241_v14 = vsel %vm14657_vm6, %v14656_v44, %v14655_v37  ;;  %v14659_v38 = vmov %v14655_v37  ;;  %v10419_v7 = vpack.i.bf16 %v3227_v28, %v3225_v17  ;;  %v10424_v4 = vpack.i.bf16 %v3326_v20, %v3229_v19  ;;  %vm14667_vm6 = vmmov %vm14627_vm2  ;;  %10405 = vrot.lane.b32.xlu1 %v10404_v11, %s10796_s15 }
 0x226   : >> { %v12253_v60 = vsel %vm14660_vm15, %v14659_v38, %v14658_v59  ;;  %v14661_v5 = vmov %v14658_v59  ;;  %v14663_v57 = vrot.slane %v12150_v50, 7  ;;  %v12271_v41 = vsel %vm14627_vm2, %v3059_v15, %v3061_v39  ;;  %vm14668_vm15 = vmmov %vm14627_vm2 }
 0x227   : >> { %v12258_v43 = vsel %vm14662_vm14, %v14661_v5, %v3055_v56  ;;  %v12274_v32 = vsel %vm14667_vm6, %v3061_v39, %v3063_v21  ;;  %v12278_v13 = vsel %vm14668_vm15, %v3063_v21, %v3065_v29  ;;  %vm14669_vm14 = vmmov %vm14627_vm2  ;;  %10420 = vrot.lane.b32.xlu0 %v10419_v7, %s10797_s0  ;;  %vm14672_vm6 = vcmask 785408  }
 0x228   : >> { %v12263_v24 = vsel %vm14664_vm5, %v3055_v56, %v14663_v57  ;;  %v14665_v34 = vmov %v14663_v57  ;;  %v12281_v36 = vsel %vm14669_vm14, %v3065_v29, %v3067_v55  ;;  %v14670_v56 = vrot.slane %v11892_v26, 7  ;;  %vm14671_vm5 = vmmov %vm14627_vm2 }
 0x229   : >> { %v12268_v35 = vsel %vm14666_vm4, %v14665_v34, %v3059_v15  ;;  %10415 = vrot.lane.b32.xlu1 %v10414_v33, %s10797_s0  ;;  %vm3584_vm4 = vcmask 523264   ;;  %vm3551_vm2 = vcmask 261120   ;;  %vm14673_vm15 = vmmov %vm14672_vm6 }
 0x22a   : >> { %v3101_v39 = vsel %vm14671_vm5, 0.0, %v14670_v56  ;;  %vm14674_vm14 = vmmov %vm14672_vm6 }
 0x22b   : >> { %v3134_v55 = vsel %vm11351_vm11, 0.0, %v3101_v39  ;;  %vm14675_vm5 = vmmov %vm14672_vm6 }
 0x22d   : >> { %10425 = vrot.lane.b32.xlu1 %v10424_v4, %s10797_s0 }
 0x25b   : >> { %v10271_v50 = vpop.permute.xlu0 %10270 }
 0x25c   : >> { %v10273_v57 = vunpack.i.h.bf16 %v10271_v50  ;;  %v10272_v34 = vunpack.i.l.bf16 %v10271_v50 }
 0x25f   : >> { %v10276_v15 = vpop.permute.xlu0 %10275 }
 0x260   : >> { %v10278_v19 = vunpack.i.h.bf16 %v10276_v15  ;;  %v10277_v11 = vunpack.i.l.bf16 %v10276_v15 }
 0x262   : >> { %v3552_v44 = vsel %vm3551_vm2, %v3134_v55, %v10277_v11  ;;  %v3553_v17 = vsel %vm3551_vm2, %v11926_v3, %v10278_v19 }
 0x263   : >> { %v10281_v21 = vpop.permute.xlu0 %10280  ;;  %v10286_v47 = vpop.permute.xlu1 %10285 }
 0x264   : >> { %v10283_v37 = vunpack.i.h.bf16 %v10281_v21  ;;  %v10282_v33 = vunpack.i.l.bf16 %v10281_v21 }
 0x266   : >> { %v3585_v26 = vsel %vm3584_vm4, %v3552_v44, %v10282_v33  ;;  %v3586_v28 = vsel %vm3584_vm4, %v3553_v17, %v10283_v37  ;;  %v3554_v37 = vsel %vm3551_vm2, %v11918_v63, %v10272_v34  ;;  %v3555_v33 = vsel %vm3551_vm2, %v11911_v0, %v10273_v57 }
 0x267   : >> { %v3617_v20 = vpack.c.bf16 %v3586_v28, %v3585_v26  ;;  %v10291_v59 = vpop.permute.xlu1 %10290  ;;  %v10301_v38 = vpop.permute.xlu0 %10300  ;;  %v10287_v63 = vunpack.i.l.bf16 %v10286_v47 }
 0x268   : >> { %v10293_v29 = vunpack.i.h.bf16 %v10291_v59  ;;  %v10292_v7 = vunpack.i.l.bf16 %v10291_v59  ;;  %v10303_v4 = vunpack.i.h.bf16 %v10301_v38  ;;  %v10302_v5 = vunpack.i.l.bf16 %v10301_v38 }
 0x269   : >> { %3637 = vst.msk [vmem:[%s12298_s24] sm:$0xff] %vm14672_vm6, %v3617_v20  ;;  %v3142_v20 = vsel %vm11417_vm9, 0.0, %v12024_v16  ;;  %v10288_v38 = vunpack.i.h.bf16 %v10286_v47  ;;  %v3558_v47 = vsel %vm3551_vm2, %v11962_v45, %v10287_v63  ;;  %vm14676_vm6 = vmmov %vm14675_vm5 }
 0x26a   : >> { %v3556_v3 = vsel %vm3551_vm2, %v11979_v40, %v10292_v7  ;;  %v3557_v15 = vsel %vm3551_vm2, %v12014_v25, %v10293_v29 }
 0x26b   : >> { %v3589_v56 = vsel %vm3584_vm4, %v3556_v3, %v10302_v5  ;;  %v3590_v39 = vsel %vm3584_vm4, %v3557_v15, %v10303_v4  ;;  %v10296_v19 = vpop.permute.xlu1 %10295 }
 0x26c   : >> { %v3619_v11 = vpack.c.bf16 %v3590_v39, %v3589_v56  ;;  %v10298_v50 = vunpack.i.h.bf16 %v10296_v19  ;;  %v10297_v21 = vunpack.i.l.bf16 %v10296_v19  ;;  %v10311_v55 = vpop.permute.xlu0 %10310  ;;  %v3559_v39 = vsel %vm3551_vm2, %v11969_v54, %v10288_v38 }
 0x26d   : >> { %v10313_v44 = vunpack.i.h.bf16 %v10311_v55  ;;  %v10312_v17 = vunpack.i.l.bf16 %v10311_v55 }
 0x26e   : >> { %3639 = vst.msk [vmem:[%s12298_s24 + $0x10] sm:$0xff] %vm14673_vm15, %v3619_v11  ;;  %v3588_v40 = vsel %vm3584_vm4, %v3555_v33, %v10298_v50  ;;  %v3587_v25 = vsel %vm3584_vm4, %v3554_v37, %v10297_v21  ;;  %vm14677_vm15 = vmmov %vm14675_vm5 }
 0x26f   : >> { %v3618_v26 = vpack.c.bf16 %v3588_v40, %v3587_v25  ;;  %v10306_v28 = vpop.permute.xlu1 %10305  ;;  %v3560_v7 = vsel %vm3551_vm2, %v3142_v20, %v10312_v17  ;;  %v3561_v4 = vsel %vm3551_vm2, %v12058_v51, %v10313_v44 }
 0x270   : >> { %v10321_v59 = vpop.permute.xlu0 %10320  ;;  %v10308_v33 = vunpack.i.h.bf16 %v10306_v28  ;;  %v10307_v40 = vunpack.i.l.bf16 %v10306_v28 }
 0x271   : >> { %3638 = vst.msk [vmem:[%s12298_s24 + $0x8] sm:$0xff] %vm14674_vm14, %v3618_v26  ;;  %v10323_v0 = vunpack.i.h.bf16 %v10321_v59  ;;  %v10322_v29 = vunpack.i.l.bf16 %v10321_v59  ;;  %vm14678_vm14 = vmmov %vm14675_vm5 }
 0x273   : >> { %v3593_v5 = vsel %vm3584_vm4, %v3560_v7, %v10322_v29  ;;  %v3594_v57 = vsel %vm3584_vm4, %v3561_v4, %v10323_v0  ;;  %v10316_v34 = vpop.permute.xlu1 %10315  ;;  %v3562_v0 = vsel %vm3551_vm2, %v12061_v9, %v10307_v40  ;;  %v3563_v29 = vsel %vm3551_vm2, %v12069_v53, %v10308_v33 }
 0x274   : >> { %v3621_v3 = vpack.c.bf16 %v3594_v57, %v3593_v5  ;;  %v10318_v16 = vunpack.i.h.bf16 %v10316_v34  ;;  %v10317_v15 = vunpack.i.l.bf16 %v10316_v34  ;;  %v10331_v56 = vpop.permute.xlu0 %10330  ;;  %v3150_v34 = vsel %vm11460_vm8, 0.0, %v12162_v22 }
 0x275   : >> { %v10333_v11 = vunpack.i.h.bf16 %v10331_v56  ;;  %v10332_v50 = vunpack.i.l.bf16 %v10331_v56 }
 0x276   : >> { %3641 = vst.msk [vmem:[%s12298_s24 + $0x20] sm:$0xff] %vm14675_vm5, %v3621_v3  ;;  %v3592_v51 = vsel %vm3584_vm4, %v3559_v39, %v10318_v16  ;;  %v3591_v19 = vsel %vm3584_vm4, %v3558_v47, %v10317_v15 }
 0x277   : >> { %v3620_v21 = vpack.c.bf16 %v3592_v51, %v3591_v19  ;;  %v10326_v55 = vpop.permute.xlu1 %10325  ;;  %v3564_v54 = vsel %vm3551_vm2, %v12079_v27, %v10332_v50  ;;  %v3565_v44 = vsel %vm3551_vm2, %v12110_v48, %v10333_v11 }
 0x278   : >> { %v10341_v37 = vpop.permute.xlu0 %10340  ;;  %v10328_v16 = vunpack.i.h.bf16 %v10326_v55  ;;  %v10327_v9 = vunpack.i.l.bf16 %v10326_v55 }
 0x279   : >> { %3640 = vst.msk [vmem:[%s12298_s24 + $0x18] sm:$0xff] %vm14676_vm6, %v3620_v21  ;;  %v10343_v45 = vunpack.i.h.bf16 %v10341_v37  ;;  %v10342_v25 = vunpack.i.l.bf16 %v10341_v37  ;;  %vm14679_vm6 = vmmov %vm14675_vm5 }
 0x27a   : >> { %v3566_v55 = vsel %vm3551_vm2, %v12120_v31, %v10327_v9  ;;  %v3567_v37 = vsel %vm3551_vm2, %v12132_v49, %v10328_v16  ;;  %v3158_v16 = vsel %vm11555_vm12, 0.0, %v12253_v60 }
 0x27b   : >> { %v3597_v17 = vsel %vm3584_vm4, %v3564_v54, %v10342_v25  ;;  %v3598_v26 = vsel %vm3584_vm4, %v3565_v44, %v10343_v45  ;;  %v10336_v20 = vpop.permute.xlu1 %10335 }
 0x27c   : >> { %v3623_v59 = vpack.c.bf16 %v3598_v26, %v3597_v17  ;;  %v10338_v38 = vunpack.i.h.bf16 %v10336_v20  ;;  %v10337_v63 = vunpack.i.l.bf16 %v10336_v20  ;;  %v10351_v28 = vpop.permute.xlu0 %10350 }
 0x27d   : >> { %v10353_v7 = vunpack.i.h.bf16 %v10351_v28  ;;  %v10352_v4 = vunpack.i.l.bf16 %v10351_v28 }
 0x27e   : >> { %3643 = vst.msk [vmem:[%s12298_s24 + $0x30] sm:$0xff] %vm14677_vm15, %v3623_v59  ;;  %v3596_v27 = vsel %vm3584_vm4, %v3563_v29, %v10338_v38  ;;  %v3595_v48 = vsel %vm3584_vm4, %v3562_v0, %v10337_v63  ;;  %vm14680_vm15 = vmmov %vm14675_vm5 }
 0x27f   : >> { %v3622_v5 = vpack.c.bf16 %v3596_v27, %v3595_v48  ;;  %v10346_v57 = vpop.permute.xlu1 %10345  ;;  %v3568_v56 = vsel %vm3551_vm2, %v3150_v34, %v10352_v4  ;;  %v3569_v47 = vsel %vm3551_vm2, %v12167_v18, %v10353_v7 }
 0x280   : >> { %v10361_v3 = vpop.permute.xlu0 %10360  ;;  %v10348_v17 = vunpack.i.h.bf16 %v10346_v57  ;;  %v10347_v26 = vunpack.i.l.bf16 %v10346_v57 }
 0x281   : >> { %3642 = vst.msk [vmem:[%s12298_s24 + $0x28] sm:$0xff] %vm14678_vm14, %v3622_v5  ;;  %v10363_v53 = vunpack.i.h.bf16 %v10361_v3  ;;  %v10362_v15 = vunpack.i.l.bf16 %v10361_v3  ;;  %vm14681_vm14 = vmmov %vm14675_vm5 }
 0x282   : >> { %v3570_v7 = vsel %vm3551_vm2, %v12183_v61, %v10347_v26  ;;  %v3571_v4 = vsel %vm3551_vm2, %v12210_v23, %v10348_v17 }
 0x283   : >> { %v3601_v39 = vsel %vm3584_vm4, %v3568_v56, %v10362_v15  ;;  %v3602_v51 = vsel %vm3584_vm4, %v3569_v47, %v10363_v53  ;;  %v10356_v19 = vpop.permute.xlu1 %10355 }
 0x284   : >> { %v3625_v11 = vpack.c.bf16 %v3602_v51, %v3601_v39  ;;  %v10358_v22 = vunpack.i.h.bf16 %v10356_v19  ;;  %v10357_v50 = vunpack.i.l.bf16 %v10356_v19  ;;  %v10371_v21 = vpop.permute.xlu0 %10370 }
 0x285   : >> { %v10373_v40 = vunpack.i.h.bf16 %v10371_v21  ;;  %v10372_v45 = vunpack.i.l.bf16 %v10371_v21 }
 0x286   : >> { %3645 = vst.msk [vmem:[%s12298_s24 + $0x40] sm:$0xff] %vm14675_vm5, %v3625_v11  ;;  %v3600_v18 = vsel %vm3584_vm4, %v3567_v37, %v10358_v22  ;;  %v3599_v33 = vsel %vm3584_vm4, %v3566_v55, %v10357_v50 }
 0x287   : >> { %v3624_v25 = vpack.c.bf16 %v3600_v18, %v3599_v33  ;;  %v10366_v54 = vpop.permute.xlu1 %10365  ;;  %v3572_v49 = vsel %vm3551_vm2, %v12219_v58, %v10372_v45  ;;  %v3573_v59 = vsel %vm3551_vm2, %v12225_v10, %v10373_v40 }
 0x288   : >> { %v10381_v44 = vpop.permute.xlu0 %10380  ;;  %v10368_v53 = vunpack.i.h.bf16 %v10366_v54  ;;  %v10367_v61 = vunpack.i.l.bf16 %v10366_v54 }
 0x289   : >> { %3644 = vst.msk [vmem:[%s12298_s24 + $0x38] sm:$0xff] %vm14679_vm6, %v3624_v25  ;;  %v10383_v31 = vunpack.i.h.bf16 %v10381_v44  ;;  %v10382_v20 = vunpack.i.l.bf16 %v10381_v44  ;;  %vm14682_vm6 = vmmov %vm14675_vm5 }
 0x28a   : >> { %v3574_v21 = vsel %vm3551_vm2, %v12230_v62, %v10367_v61  ;;  %v3575_v55 = vsel %vm3551_vm2, %v12241_v14, %v10368_v53 }
 0x28b   : >> { %v3605_v38 = vsel %vm3584_vm4, %v3572_v49, %v10382_v20  ;;  %v3606_v63 = vsel %vm3584_vm4, %v3573_v59, %v10383_v31  ;;  %v10376_v28 = vpop.permute.xlu1 %10375 }
 0x28c   : >> { %v3627_v0 = vpack.c.bf16 %v3606_v63, %v3605_v38  ;;  %v10378_v29 = vunpack.i.h.bf16 %v10376_v28  ;;  %v10377_v27 = vunpack.i.l.bf16 %v10376_v28  ;;  %v10391_v48 = vpop.permute.xlu0 %10390 }
 0x28d   : >> { %v10393_v5 = vunpack.i.h.bf16 %v10391_v48  ;;  %v10392_v57 = vunpack.i.l.bf16 %v10391_v48 }
 0x28e   : >> { %3647 = vst.msk [vmem:[%s12298_s24 + $0x50] sm:$0xff] %vm14680_vm15, %v3627_v0  ;;  %v3604_v58 = vsel %vm3584_vm4, %v3571_v4, %v10378_v29  ;;  %v3603_v10 = vsel %vm3584_vm4, %v3570_v7, %v10377_v27  ;;  %vm14683_vm15 = vmmov %vm14675_vm5 }
 0x28f   : >> { %v3626_v34 = vpack.c.bf16 %v3604_v58, %v3603_v10  ;;  %v10386_v3 = vpop.permute.xlu1 %10385  ;;  %v3576_v56 = vsel %vm3551_vm2, %v3158_v16, %v10392_v57  ;;  %v3577_v47 = vsel %vm3551_vm2, %v12258_v43, %v10393_v5 }
 0x290   : >> { %v10401_v9 = vpop.permute.xlu0 %10400  ;;  %v10388_v54 = vunpack.i.h.bf16 %v10386_v3  ;;  %v10387_v44 = vunpack.i.l.bf16 %v10386_v3 }
 0x291   : >> { %3646 = vst.msk [vmem:[%s12298_s24 + $0x48] sm:$0xff] %vm14681_vm14, %v3626_v34  ;;  %v10403_v23 = vunpack.i.h.bf16 %v10401_v9  ;;  %v10402_v15 = vunpack.i.l.bf16 %v10401_v9  ;;  %vm14684_vm14 = vmmov %vm14675_vm5 }
 0x292   : >> { %v3578_v28 = vsel %vm3551_vm2, %v12263_v24, %v10387_v44  ;;  %v3579_v0 = vsel %vm3551_vm2, %v12268_v35, %v10388_v54 }
 0x293   : >> { %v3609_v39 = vsel %vm3584_vm4, %v3576_v56, %v10402_v15  ;;  %v3610_v51 = vsel %vm3584_vm4, %v3577_v47, %v10403_v23  ;;  %v10396_v19 = vpop.permute.xlu1 %10395 }
 0x294   : >> { %v3629_v11 = vpack.c.bf16 %v3610_v51, %v3609_v39  ;;  %v10398_v60 = vunpack.i.h.bf16 %v10396_v19  ;;  %v10397_v22 = vunpack.i.l.bf16 %v10396_v19 }
 0x295   : >> { %v10411_v50 = vpop.permute.xlu0 %10410 }
 0x296   : >> { %3649 = vst.msk [vmem:[%s12298_s24 + $0x60] sm:$0xff] %vm14675_vm5, %v3629_v11  ;;  %v3608_v43 = vsel %vm3584_vm4, %v3575_v55, %v10398_v60  ;;  %v3607_v37 = vsel %vm3584_vm4, %v3574_v21, %v10397_v22  ;;  %v10413_v18 = vunpack.i.h.bf16 %v10411_v50  ;;  %v10412_v33 = vunpack.i.l.bf16 %v10411_v50 }
 0x297   : >> { %v3628_v40 = vpack.c.bf16 %v3608_v43, %v3607_v37  ;;  %v10406_v45 = vpop.permute.xlu1 %10405 }
 0x298   : >> { %v3580_v14 = vsel %vm3551_vm2, %v12271_v41, %v10412_v33  ;;  %v3581_v26 = vsel %vm3551_vm2, %v12274_v32, %v10413_v18  ;;  %v10408_v41 = vunpack.i.h.bf16 %v10406_v45  ;;  %v10407_v29 = vunpack.i.l.bf16 %v10406_v45 }
 0x299   : >> { %v10421_v25 = vpop.permute.xlu0 %10420  ;;  %3648 = vst.msk [vmem:[%s12298_s24 + $0x58] sm:$0xff] %vm14682_vm6, %v3628_v40 }
 0x29a   : >> { %v10423_v62 = vunpack.i.h.bf16 %v10421_v25  ;;  %v10422_v17 = vunpack.i.l.bf16 %v10421_v25  ;;  %v3582_v10 = vsel %vm3551_vm2, %v12278_v13, %v10407_v29  ;;  %v3583_v24 = vsel %vm3551_vm2, %v12281_v36, %v10408_v41 }
 0x29b   : >> { %v10416_v49 = vpop.permute.xlu1 %10415 }
 0x29c   : >> { %v3613_v31 = vsel %vm3584_vm4, %v3580_v14, %v10422_v17  ;;  %v3614_v20 = vsel %vm3584_vm4, %v3581_v26, %v10423_v62  ;;  %v10418_v38 = vunpack.i.h.bf16 %v10416_v49  ;;  %v10417_v63 = vunpack.i.l.bf16 %v10416_v49 }
 0x29d   : >> { %v3631_v59 = vpack.c.bf16 %v3614_v20, %v3613_v31 }
 0x29e   : >> { %v3612_v32 = vsel %vm3584_vm4, %v3579_v0, %v10418_v38  ;;  %v3611_v27 = vsel %vm3584_vm4, %v3578_v28, %v10417_v63 }
 0x29f   : >> { %3651 = vst.msk [vmem:[%s12298_s24 + $0x70] sm:$0xff] %vm14683_vm15, %v3631_v59  ;;  %v3630_v48 = vpack.c.bf16 %v3612_v32, %v3611_v27  ;;  %v10426_v7 = vpop.permute.xlu1 %10425  ;;  %1722 = sbr.rel (!%p1720_p12) target bundleno = 222 (0xde), region = 203 }
 0x2a0   : >> { %v10428_v4 = vunpack.i.h.bf16 %v10426_v7  ;;  %v10427_v58 = vunpack.i.l.bf16 %v10426_v7 }
 0x2a1   : >> { %3650 = vst.msk [vmem:[%s12298_s24 + $0x68] sm:$0xff] %vm14684_vm14, %v3630_v48 }
 0x2a2   : >> { %v3615_v35 = vsel %vm3584_vm4, %v3582_v10, %v10427_v58  ;;  %v3616_v5 = vsel %vm3584_vm4, %v3583_v24, %v10428_v4 }
 0x2a3   : >> { %v3632_v57 = vpack.c.bf16 %v3616_v5, %v3615_v35 }
 0x2a5   : >> { %3652 = vst.msk [vmem:[%s12298_s24 + $0x78] sm:$0xff] %vm14675_vm5, %v3632_v57 }
 0x2a6 LB: >> { %v10472_v13 = vld [vmem:[%s14489_s3 + $0x30] sm:$0xff]   ;;  %v10473_v36 = vld [vmem:[%s14489_s3] sm:$0xff]   ;;  %v10474_v42 = vld [vmem:[%s14489_s3 + $0x38] sm:$0xff]   ;;  %s12446_s15 = sshll.u32 %s10780_s29, 8  ;;  %vm14685_vm0 = vcmask 785408   ;;  %s8829_s14 = sshll.u32 %s10780_s29, 6  ;;  %s10780_s29 = sphi %s12431_s29, %s3658_s29  }
 0x2a7   : >> { %9472 = vmatprep.subr.bf16.mxu1 %v10472_v13  ;;  %9516 = vmatprep.subr.bf16.mxu0 %v10473_v36  ;;  %v10475_v12 = vld [vmem:[%s14489_s3 + $0x8] sm:$0xff]   ;;  %s9102_s30 = sadd.s32 64, %s12446_s15  ;;  %v10476_v30 = vld [vmem:[%s14489_s3 + $0x40] sm:$0xff]   ;;  %v12458_v1 = vld [vmem:[%s14489_s3 + $0x10] sm:$0xff]   ;;  %s3661_s0 = sshra.s32 %s12446_s15, 4 }
 0x2a8   : >> { %9473 = vmatpush3.bf16.msra.mxu1 %v10472_v13  ;;  %9517 = vmatpush3.bf16.msra.mxu0 %v10473_v36  ;;  %s3695_s25 = sshra.s32 %s9102_s30, 4  ;;  %v10478_v52 = vld [vmem:[%s14489_s3 + $0x48] sm:$0xff]   ;;  %s8733_s24 = sshll.u32 %s3661_s0, 3  ;;  %v12468_v46 = vld [vmem:[%s14489_s3 + $0x18] sm:$0xff]   ;;  %v10480_v34 = vld [vmem:[%s14489_s3 + $0x50] sm:$0xff]  }
 0x2a9   : >> { %9474 = vmatprep.subr.bf16.mxu1 %v10474_v42  ;;  %9518 = vmatprep.subr.bf16.mxu0 %v10475_v12  ;;  %s8735_s1 = sshll.u32 %s3695_s25, 3  ;;  %s12477_s26 = scalar_lea.vmem [#allocation3], %s8733_s24  ;;  %v12484_v9 = vld [vmem:[%s14489_s3 + $0x20] sm:$0xff]   ;;  %vm14686_vm7 = vmmov %vm14685_vm0  ;;  %v10482_v53 = vld [vmem:[%s14489_s3 + $0x58] sm:$0xff]  }
 0x2aa   : >> { %s12474_s2 = scalar_lea.vmem [#allocation3], %s8735_s1  ;;  %v12496_v61 = vld [vmem:[%s14489_s3 + $0x28] sm:$0xff]   ;;  %v10484_v23 = vld [vmem:[%s14489_s3 + $0x60] sm:$0xff]   ;;  %vm14687_vm10 = vmmov %vm14685_vm0  ;;  %s9104_s22 = sadd.s32 128, %s12446_s15 }
 0x2ab   : >> { %v10485_v47 = vld [vmem:[%s14489_s3 + $0x68] sm:$0xff]   ;;  %vm14688_vm13 = vmmov %vm14685_vm0  ;;  %v10486_v19 = vld [vmem:[%s14489_s3 + $0x70] sm:$0xff]   ;;  %s4220_s25 = sshra.s32 %s9104_s22, 4  ;;  %s10798_s0 = smov 32  }
 0x2ac   : >> { %9475 = vmatpush3.bf16.msra.mxu1 %v10474_v42  ;;  %9519 = vmatpush3.bf16.msra.mxu0 %v10475_v12  ;;  %v3699_v3 = vld [vmem:[%s12474_s2] sm:$0xff]  ;;  %v3700_v15 = vld [vmem:[%s12474_s2 + $0x8] sm:$0xff]  ;;  %v3701_v39 = vld [vmem:[%s12474_s2 + $0x10] sm:$0xff]  ;;  %s8793_s15 = sshll.u32 %s4220_s25, 3  ;;  %s10799_s24 = smov 64  }
 0x2ad   : >> { %9476 = vmatprep.subr.bf16.mxu1 %v10476_v30  ;;  %9520 = vmatprep.subr.bf16.mxu0 %v12458_v1  ;;  %v3665_v16 = vld [vmem:[%s12477_s26] sm:$0xff]  ;;  %v3666_v56 = vld [vmem:[%s12477_s26 + $0x8] sm:$0xff]  ;;  %v3667_v51 = vld [vmem:[%s12477_s26 + $0x10] sm:$0xff]  ;;  %s12554_s1 = scalar_lea.vmem [#allocation3], %s8793_s15  ;;  %s4946_s30 = sadd.s32 32, %s8829_s14 }
 0x2ae   : >> { %9484 = vmatprep.mubr.msk.bf16.mxu1 %vm14685_vm0, %v3699_v3  ;;  %9528 = vmatprep.mubr.msk.bf16.mxu0 %vm14686_vm7, %v3665_v16  ;;  %vm14689_vm3 = vmmov %vm14685_vm0  ;;  %v3702_v11 = vld [vmem:[%s12474_s2 + $0x18] sm:$0xff]  ;;  %v3703_v22 = vld [vmem:[%s12474_s2 + $0x20] sm:$0xff]  ;;  %s4947_s22 = sshra.s32 %s4946_s30, 4  ;;  %s3658_s29 = sadd.s32 1, %s10780_s29  }
 0x2af   : >> { %vm14690_vm11 = vmmov %vm14685_vm0  ;;  %v3668_v60 = vld [vmem:[%s12477_s26 + $0x18] sm:$0xff]  ;;  %v3669_v50 = vld [vmem:[%s12477_s26 + $0x20] sm:$0xff]  ;;  %s8830_s25 = sshll.u32 %s4947_s22, 3  ;;  %p3655_p13 = scmp.ge.s32.totalorder %s3658_s29, 16  }
 0x2b0   : >> { %9477 = vmatpush3.bf16.msra.mxu1 %v10476_v30  ;;  %9521 = vmatpush3.bf16.msra.mxu0 %v12458_v1  ;;  %v10487_v21 = vld [vmem:[%s14489_s3 + $0x78] sm:$0xff]   ;;  %vm14691_vm9 = vmmov %vm14685_vm0  ;;  %v10488_v55 = vld [vmem:[%s14489_s3 + $0x80] sm:$0xff]   ;;  %s12778_s12 = scalar_lea.vmem [#allocation4], %s8830_s25  ;;  %s12814_s13 = smov (%p3655_p13), 0  }
 0x2b1   : >> { %9478 = vmatprep.subr.bf16.mxu1 %v10478_v52  ;;  %9522 = vmatprep.subr.bf16.mxu0 %v12468_v46  ;;  %vm14692_vm8 = vmmov %vm14685_vm0  ;;  %v3704_v43 = vld [vmem:[%s12474_s2 + $0x28] sm:$0xff]  ;;  %v3705_v18 = vld [vmem:[%s12474_s2 + $0x30] sm:$0xff] }
 0x2b2   : >> { %vm14693_vm12 = vmmov %vm14685_vm0  ;;  %v3670_v37 = vld [vmem:[%s12477_s26 + $0x28] sm:$0xff]  ;;  %v3671_v33 = vld [vmem:[%s12477_s26 + $0x30] sm:$0xff] }
 0x2b3   : >> { %vm14694_vm6 = vmmov %vm14685_vm0  ;;  %v10489_v40 = vld [vmem:[%s14489_s3 + $0x88] sm:$0xff]   ;;  %v3706_v45 = vld [vmem:[%s12474_s2 + $0x38] sm:$0xff] }
 0x2b4   : >> { %9479 = vmatpush3.bf16.msra.mxu1 %v10478_v52  ;;  %9523 = vmatpush3.bf16.msra.mxu0 %v12468_v46  ;;  %vm14695_vm15 = vmmov %vm14685_vm0  ;;  %v3672_v25 = vld [vmem:[%s12477_s26 + $0x38] sm:$0xff]  ;;  %v3707_v54 = vld [vmem:[%s12474_s2 + $0x40] sm:$0xff] }
 0x2b5   : >> { %9480 = vmatprep.subr.bf16.mxu1 %v10480_v34  ;;  %9524 = vmatprep.subr.bf16.mxu0 %v12484_v9  ;;  %vm14696_vm14 = vmmov %vm14685_vm0  ;;  %v4224_v44 = vld [vmem:[%s12554_s1] sm:$0xff]  ;;  %v3708_v62 = vld [vmem:[%s12474_s2 + $0x48] sm:$0xff] }
 0x2b6   : >> { %vm14697_vm5 = vmmov %vm14685_vm0  ;;  %v4225_v17 = vld [vmem:[%s12554_s1 + $0x8] sm:$0xff]  ;;  %v3709_v14 = vld [vmem:[%s12474_s2 + $0x50] sm:$0xff] }
 0x2b7   : >> { %vm14698_vm7 = vmmov %vm14685_vm0  ;;  %v4226_v26 = vld [vmem:[%s12554_s1 + $0x10] sm:$0xff]  ;;  %v3710_v31 = vld [vmem:[%s12474_s2 + $0x58] sm:$0xff] }
 0x2b8   : >> { %9481 = vmatpush3.bf16.msra.mxu1 %v10480_v34  ;;  %9525 = vmatpush3.bf16.msra.mxu0 %v12484_v9  ;;  %v4227_v20 = vld [vmem:[%s12554_s1 + $0x18] sm:$0xff]  ;;  %v3711_v49 = vld [vmem:[%s12474_s2 + $0x60] sm:$0xff]  ;;  %v3712_v38 = vld [vmem:[%s12474_s2 + $0x68] sm:$0xff] }
 0x2b9   : >> { %9482 = vmatprep.subr.bf16.mxu1 %v10482_v53  ;;  %9526 = vmatprep.subr.bf16.mxu0 %v12496_v61  ;;  %v4228_v59 = vld [vmem:[%s12554_s1 + $0x20] sm:$0xff]  ;;  %v4229_v63 = vld [vmem:[%s12554_s1 + $0x28] sm:$0xff]  ;;  %v3713_v28 = vld [vmem:[%s12474_s2 + $0x70] sm:$0xff] }
 0x2ba   : >> { %v4230_v0 = vld [vmem:[%s12554_s1 + $0x30] sm:$0xff]  ;;  %v3714_v41 = vld [vmem:[%s12474_s2 + $0x78] sm:$0xff]  ;;  %v3673_v32 = vld [vmem:[%s12477_s26 + $0x40] sm:$0xff] }
 0x2bb   : >> { %v4231_v29 = vld [vmem:[%s12554_s1 + $0x38] sm:$0xff]  ;;  %v4232_v27 = vld [vmem:[%s12554_s1 + $0x40] sm:$0xff]  ;;  %v3674_v48 = vld [vmem:[%s12477_s26 + $0x48] sm:$0xff] }
 0x2bc   : >> { %9483 = vmatpush3.bf16.msra.mxu1 %v10482_v53  ;;  %9527 = vmatpush3.bf16.msra.mxu0 %v12496_v61  ;;  %v4233_v7 = vld [vmem:[%s12554_s1 + $0x48] sm:$0xff]  ;;  %v3675_v4 = vld [vmem:[%s12477_s26 + $0x50] sm:$0xff]  ;;  %v3676_v10 = vld [vmem:[%s12477_s26 + $0x58] sm:$0xff] }
 0x2bd   : >> { %9934 = vmatprep.subr.bf16.mxu1 %v10473_v36  ;;  %9560 = vmatprep.subr.bf16.mxu0 %v10484_v23  ;;  %v4234_v58 = vld [vmem:[%s12554_s1 + $0x50] sm:$0xff]  ;;  %v4235_v24 = vld [vmem:[%s12554_s1 + $0x58] sm:$0xff]  ;;  %v3677_v35 = vld [vmem:[%s12477_s26 + $0x60] sm:$0xff] }
 0x2be   : >> { %v4236_v5 = vld [vmem:[%s12554_s1 + $0x60] sm:$0xff]  ;;  %v3678_v57 = vld [vmem:[%s12477_s26 + $0x68] sm:$0xff]  ;;  %v4238_v42 = vld [vmem:[%s12554_s1 + $0x70] sm:$0xff] }
 0x2bf   : >> { %9485 = vmatmul.mubr.msk.bf16.vlgmr.msra.gmra.mrb[0].mxu1 %vm14687_vm10, %v3700_v15  ;;  %9529 = vmatmul.mubr.msk.bf16.vlgmr.msra.gmra.mrb[0].mxu0 %vm14688_vm13, %v3666_v56  ;;  %vm14699_vm10 = vmmov %vm14685_vm0  ;;  %v4237_v13 = vld [vmem:[%s12554_s1 + $0x68] sm:$0xff]  ;;  %v4239_v30 = vld [vmem:[%s12554_s1 + $0x78] sm:$0xff] }
 0x2c0   : >> { %9940 = vmatpush3.bf16.msra.mxu1 %v10473_v36  ;;  %9561 = vmatpush3.bf16.msra.mxu0 %v10484_v23  ;;  %vm14700_vm13 = vmmov %vm14685_vm0  ;;  %v3679_v36 = vld [vmem:[%s12477_s26 + $0x70] sm:$0xff] }
 0x2c1   : >> { %9488 = vmatprep.mubr.msk.bf16.mxu1 %vm14689_vm3, %v3701_v39  ;;  %9562 = vmatprep.subr.bf16.mxu0 %v10485_v47  ;;  %vm14701_vm3 = vmmov %vm14685_vm0 }
 0x2c2   : >> { %9532 = vmatprep.mubr.msk.bf16.mxu0 %vm14690_vm11, %v3667_v51  ;;  %9935 = vmatprep.subr.bf16.mxu1 %v10475_v12  ;;  %vm14702_vm11 = vmmov %vm14685_vm0 }
 0x2c4   : >> { %9941 = vmatpush3.bf16.msra.mxu1 %v10475_v12  ;;  %9563 = vmatpush3.bf16.msra.mxu0 %v10485_v47  ;;  %v3680_v12 = vld [vmem:[%s12477_s26 + $0x78] sm:$0xff] }
 0x2c5   : >> { %9936 = vmatprep.subr.bf16.mxu1 %v12458_v1  ;;  %9564 = vmatprep.subr.bf16.mxu0 %v10486_v19 }
 0x2c7   : >> { %9489 = vmatmul.mubr.msk.bf16.gmra.mrb[4].mxu1 %vm14691_vm9, %v3702_v11  ;;  %9533 = vmatmul.mubr.msk.bf16.gmra.mrb[4].mxu0 %vm14692_vm8, %v3668_v60  ;;  %vm14703_vm9 = vmmov %vm14685_vm0 }
 0x2c8   : >> { %9492 = vmatprep.mubr.msk.bf16.mxu1 %vm14693_vm12, %v3703_v22  ;;  %9565 = vmatpush3.bf16.msra.mxu0 %v10486_v19  ;;  %vm14704_vm8 = vmmov %vm14685_vm0 }
 0x2c9   : >> { %9536 = vmatprep.mubr.msk.bf16.mxu0 %vm14694_vm6, %v3669_v50  ;;  %9566 = vmatprep.subr.bf16.mxu0 %v10487_v21  ;;  %vm14705_vm12 = vmmov %vm14685_vm0 }
 0x2ca   : >> { %9942 = vmatpush3.bf16.msra.mxu1 %v12458_v1  ;;  %vm14706_vm6 = vmmov %vm14685_vm0 }
 0x2cb   : >> { %9937 = vmatprep.subr.bf16.mxu1 %v12468_v46 }
 0x2cc   : >> { %9567 = vmatpush3.bf16.msra.mxu0 %v10487_v21 }
 0x2cd   : >> { %9568 = vmatprep.subr.bf16.mxu0 %v10488_v55 }
 0x2ce   : >> { %9943 = vmatpush3.bf16.msra.mxu1 %v12468_v46 }
 0x2cf   : >> { %9493 = vmatmul.mubr.msk.bf16.gmra.mrb[8].mxu1 %vm14695_vm15, %v3704_v43  ;;  %9938 = vmatprep.subr.bf16.mxu1 %v12484_v9  ;;  %vm14707_vm15 = vmmov %vm14685_vm0 }
 0x2d0   : >> { %9537 = vmatmul.mubr.msk.bf16.gmra.mrb[8].mxu0 %vm14696_vm14, %v3670_v37  ;;  %9496 = vmatprep.mubr.msk.bf16.mxu1 %vm14697_vm5, %v3705_v18  ;;  %vm14708_vm14 = vmmov %vm14685_vm0 }
 0x2d1   : >> { %9540 = vmatprep.mubr.msk.bf16.mxu0 %vm14685_vm0, %v3671_v33  ;;  %9569 = vmatpush3.bf16.msra.mxu0 %v10488_v55  ;;  %vm14709_vm5 = vmmov %vm14685_vm0 }
 0x2d2   : >> { %9570 = vmatprep.subr.bf16.mxu0 %v10489_v40  ;;  %9944 = vmatpush3.bf16.msra.mxu1 %v12484_v9 }
 0x2d3   : >> { %9939 = vmatprep.subr.bf16.mxu1 %v12496_v61 }
 0x2d5   : >> { %9571 = vmatpush3.bf16.msra.mxu0 %v10489_v40 }
 0x2d6   : >> { %9945 = vmatpush3.bf16.msra.mxu1 %v12496_v61 }
 0x2d7   : >> { %9497 = vmatmul.mubr.msk.bf16.gmra.mrb[12].mxu1 %vm14698_vm7, %v3706_v45  ;;  %vm14710_vm7 = vmmov %vm14685_vm0 }
 0x2d8   : >> { %9541 = vmatmul.mubr.msk.bf16.gmra.mrb[12].mxu0 %vm14699_vm10, %v3672_v25  ;;  %9500 = vmatprep.mubr.msk.bf16.mxu1 %vm14700_vm13, %v3707_v54  ;;  %vm14711_vm10 = vmmov %vm14685_vm0 }
 0x2d9   : >> { %9572 = vmatprep.mubr.msk.bf16.mxu0 %vm14701_vm3, %v4224_v44  ;;  %vm14712_vm13 = vmmov %vm14685_vm0 }
 0x2da   : >> { %vm14713_vm3 = vmmov %vm14685_vm0 }
 0x2df   : >> { %9501 = vmatmul.mubr.msk.bf16.gmra.mrb[16].mxu1 %vm14702_vm11, %v3708_v62  ;;  %vm14714_vm11 = vmmov %vm14685_vm0 }
 0x2e0   : >> { %9573 = vmatmul.mubr.msk.bf16.vlgmr.msra.gmra.mrb[0].mxu0 %vm14703_vm9, %v4225_v17  ;;  %9504 = vmatprep.mubr.msk.bf16.mxu1 %vm14704_vm8, %v3709_v14  ;;  %vm14715_vm9 = vmmov %vm14685_vm0  ;;  %v12627_v17 = vld [vmem:[%s14490_s4] ss:$0 sm:$0xff] }
 0x2e1   : >> { %9576 = vmatprep.mubr.msk.bf16.mxu0 %vm14705_vm12, %v4226_v26  ;;  %vm14716_vm8 = vmmov %vm14685_vm0 }
 0x2e2   : >> { %vm14717_vm12 = vmmov %vm14685_vm0 }
 0x2e7   : >> { %9505 = vmatmul.mubr.msk.bf16.gmra.mrb[20].mxu1 %vm14706_vm6, %v3710_v31  ;;  %vm14718_vm6 = vmmov %vm14685_vm0 }
 0x2e8   : >> { %9577 = vmatmul.mubr.msk.bf16.gmra.mrb[4].mxu0 %vm14707_vm15, %v4227_v20  ;;  %9508 = vmatprep.mubr.msk.bf16.mxu1 %vm14708_vm14, %v3711_v49  ;;  %vm14719_vm15 = vmmov %vm14685_vm0 }
 0x2e9   : >> { %9580 = vmatprep.mubr.msk.bf16.mxu0 %vm14709_vm5, %v4228_v59  ;;  %vm14720_vm14 = vmmov %vm14685_vm0 }
 0x2ea   : >> { %vm14721_vm5 = vmmov %vm14685_vm0 }
 0x2ef   : >> { %9509 = vmatmul.mubr.msk.bf16.gmra.mrb[24].mxu1 %vm14685_vm0, %v3712_v38 }
 0x2f0   : >> { %9581 = vmatmul.mubr.msk.bf16.gmra.mrb[8].mxu0 %vm14710_vm7, %v4229_v63  ;;  %9512 = vmatprep.mubr.msk.bf16.mxu1 %vm14711_vm10, %v3713_v28  ;;  %vm14722_vm7 = vmmov %vm14685_vm0 }
 0x2f1   : >> { %9584 = vmatprep.mubr.msk.bf16.mxu0 %vm14712_vm13, %v4230_v0  ;;  %vm14723_vm10 = vmmov %vm14685_vm0 }
 0x2f2   : >> { %vm14724_vm13 = vmmov %vm14685_vm0 }
 0x2f7   : >> { %9513 = vmatmul.mubr.msk.bf16.gmra.mrb[28].mxu1 %vm14713_vm3, %v3714_v41  ;;  %vm14725_vm3 = vmmov %vm14685_vm0 }
 0x2f8   : >> { %9585 = vmatmul.mubr.msk.bf16.gmra.mrb[12].mxu0 %vm14714_vm11, %v4231_v29  ;;  %9544 = vmatprep.mubr.msk.bf16.mxu1 %vm14715_vm9, %v3673_v32  ;;  %vm14726_vm11 = vmmov %vm14685_vm0 }
 0x2f9   : >> { %9588 = vmatprep.mubr.msk.bf16.mxu0 %vm14716_vm8, %v4232_v27  ;;  %vm14727_vm9 = vmmov %vm14685_vm0 }
 0x2fa   : >> { %vm14728_vm8 = vmmov %vm14685_vm0 }
 0x2ff   : >> { %9545 = vmatmul.mubr.msk.bf16.vlgmr.msra.gmra.mrb[16].mxu1 %vm14717_vm12, %v3674_v48  ;;  %vm14729_vm12 = vmmov %vm14685_vm0 }
 0x300   : >> { %9589 = vmatmul.mubr.msk.bf16.gmra.mrb[16].mxu0 %vm14718_vm6, %v4233_v7  ;;  %9548 = vmatprep.mubr.msk.bf16.mxu1 %vm14719_vm15, %v3675_v4  ;;  %vm14730_vm6 = vcmask 1040384  }
 0x301   : >> { %9592 = vmatprep.mubr.msk.bf16.mxu0 %vm14720_vm14, %v4234_v58  ;;  %vm14731_vm15 = vmmov %vm14730_vm6 }
 0x302   : >> { %vm14732_vm14 = vmmov %vm14730_vm6 }
 0x307   : >> { %9549 = vmatmul.mubr.msk.bf16.gmra.mrb[20].mxu1 %vm14721_vm5, %v3676_v10 }
 0x308   : >> { %9593 = vmatmul.mubr.msk.bf16.gmra.mrb[20].mxu0 %vm14685_vm0, %v4235_v24  ;;  %9552 = vmatprep.mubr.msk.bf16.mxu1 %vm14722_vm7, %v3677_v35  ;;  %vm14735_vm0 = vmmov %vm14730_vm6 }
 0x309   : >> { %9596 = vmatprep.mubr.msk.bf16.mxu0 %vm14723_vm10, %v4236_v5  ;;  %vm14736_vm7 = vmmov %vm14735_vm0 }
 0x30f   : >> { %9553 = vmatmul.mubr.msk.bf16.gmra.mrb[24].mxu1 %vm14724_vm13, %v3678_v57  ;;  %vm14739_vm13 = vmmov %vm14735_vm0 }
 0x310   : >> { %9597 = vmatmul.mubr.msk.bf16.gmra.mrb[24].mxu0 %vm14725_vm3, %v4237_v13  ;;  %9556 = vmatprep.mubr.msk.bf16.mxu1 %vm14726_vm11, %v3679_v36  ;;  %vm14740_vm3 = vmmov %vm14735_vm0 }
 0x311   : >> { %9600 = vmatprep.mubr.msk.bf16.mxu0 %vm14727_vm9, %v4238_v42  ;;  %vm14743_vm9 = vmmov %vm14735_vm0 }
 0x317   : >> { %9557 = vmatmul.mubr.msk.bf16.gmra.mrb[28].mxu1 %vm14728_vm8, %v3680_v12 }
 0x318   : >> { %9601 = vmatmul.mubr.msk.bf16.gmra.mrb[28].mxu0 %vm14729_vm12, %v4239_v30 }
 0x392   : >> { %v9486_v1 = vpop.f32.mrb[0].mxu1 }
 0x393   : >> { %v3846_v52 = vpop.f32.mrb[1].mxu1 }
 0x394   : >> { %v9487_v46 = vpop.f32.mrb[2].mxu1 }
 0x395   : >> { %v3849_v34 = vpop.f32.mrb[3].mxu1 }
 0x39a   : >> { %v9490_v3 = vpop.f32.mrb[4].mxu1 }
 0x39b   : >> { %v3862_v16 = vpop.f32.mrb[5].mxu1 }
 0x39c   : >> { %v9491_v9 = vpop.f32.mrb[6].mxu1 }
 0x39d   : >> { %v3865_v53 = vpop.f32.mrb[7].mxu1 }
 0x3a2   : >> { %v9494_v61 = vpop.f32.mrb[8].mxu1 }
 0x3a3   : >> { %v3878_v23 = vpop.f32.mrb[9].mxu1 }
 0x3a4   : >> { %v9495_v15 = vpop.f32.mrb[10].mxu1 }
 0x3a5   : >> { %v3881_v56 = vpop.f32.mrb[11].mxu1 }
 0x3aa   : >> { %v9498_v47 = vpop.f32.mrb[12].mxu1 }
 0x3ab   : >> { %v3894_v39 = vpop.f32.mrb[13].mxu1 }
 0x3ac   : >> { %v9499_v51 = vpop.f32.mrb[14].mxu1 }
 0x3ad   : >> { %v12622_v19 = vpop.f32.mrb[15].mxu1 }
 0x3b3   : >> { %v9574_v11 = vpop.f32.mrb[0].mxu0 }
 0x3b4   : >> { %v9946_v60 = vadd.f32 %v9574_v11, %v9486_v1  ;;  %v4371_v22 = vpop.f32.mrb[1].mxu0 }
 0x3b5   : >> { %v9947_v50 = vadd.f32 %v4371_v22, %v3846_v52  ;;  %v9575_v21 = vpop.f32.mrb[2].mxu0 }
 0x3b6   : >> { %v9948_v55 = vadd.f32 %v9575_v21, %v9487_v46  ;;  %v4374_v43 = vpop.f32.mrb[3].mxu0  ;;  %v4539_v26 = vadd.f32 %v9946_v60, %v12627_v17 }
 0x3b7   : >> { %v9949_v37 = vadd.f32 %v4374_v43, %v3849_v34  ;;  %v4537_v49 = vadd.f32 %v9947_v50, %v12627_v17 }
 0x3b8   : >> { %v4540_v63 = vadd.f32 %v9948_v55, %v12627_v17  ;;  %v4571_v48 = vmax.f32 %v4539_v26, 0.0 }
 0x3b9   : >> { %v4538_v29 = vadd.f32 %v9949_v37, %v12627_v17  ;;  %v4569_v58 = vmax.f32 %v4537_v49, 0.0 }
 0x3ba   : >> { %v4572_v35 = vmax.f32 %v4540_v63, 0.0 }
 0x3bb   : >> { %v9578_v18 = vpop.f32.mrb[4].mxu0  ;;  %v4570_v13 = vmax.f32 %v4538_v29, 0.0 }
 0x3bc   : >> { %v9950_v33 = vadd.f32 %v9578_v18, %v9490_v3  ;;  %v4387_v40 = vpop.f32.mrb[5].mxu0 }
 0x3bd   : >> { %v9951_v45 = vadd.f32 %v4387_v40, %v3862_v16  ;;  %v9579_v25 = vpop.f32.mrb[6].mxu0 }
 0x3be   : >> { %v9952_v54 = vadd.f32 %v9579_v25, %v9491_v9  ;;  %v4390_v44 = vpop.f32.mrb[7].mxu0  ;;  %v4543_v30 = vadd.f32 %v9950_v33, %v12627_v17 }
 0x3bf   : >> { %v9953_v62 = vadd.f32 %v4390_v44, %v3865_v53  ;;  %v4541_v34 = vadd.f32 %v9951_v45, %v12627_v17 }
 0x3c0   : >> { %v4544_v53 = vadd.f32 %v9952_v54, %v12627_v17  ;;  %v4575_v60 = vmax.f32 %v4543_v30, 0.0 }
 0x3c1   : >> { %v4573_v50 = vmax.f32 %v4541_v34, 0.0 }
 0x3c2   : >> { %v4576_v43 = vmax.f32 %v4544_v53, 0.0 }
 0x3c3   : >> { %v9582_v14 = vpop.f32.mrb[8].mxu0 }
 0x3c4   : >> { %v9954_v31 = vadd.f32 %v9582_v14, %v9494_v61  ;;  %v4403_v20 = vpop.f32.mrb[9].mxu0 }
 0x3c5   : >> { %v9955_v59 = vadd.f32 %v4403_v20, %v3878_v23  ;;  %v9583_v38 = vpop.f32.mrb[10].mxu0 }
 0x3c6   : >> { %v4547_v28 = vadd.f32 %v9954_v31, %v12627_v17  ;;  %v9956_v0 = vadd.f32 %v9583_v38, %v9495_v15  ;;  %v4406_v41 = vpop.f32.mrb[11].mxu0 }
 0x3c7   : >> { %v4545_v32 = vadd.f32 %v9955_v59, %v12627_v17  ;;  %v9957_v27 = vadd.f32 %v4406_v41, %v3881_v56  ;;  %v4542_v56 = vadd.f32 %v9953_v62, %v12627_v17 }
 0x3c8   : >> { %v4579_v7 = vmax.f32 %v4547_v28, 0.0  ;;  %v4548_v4 = vadd.f32 %v9956_v0, %v12627_v17 }
 0x3c9   : >> { %v4577_v10 = vmax.f32 %v4545_v32, 0.0  ;;  %v4546_v24 = vadd.f32 %v9957_v27, %v12627_v17  ;;  %v4574_v33 = vmax.f32 %v4542_v56, 0.0 }
 0x3ca   : >> { %v4603_v5 = vmax.f32 %v4571_v48, %v4579_v7  ;;  %v4580_v57 = vmax.f32 %v4548_v4, 0.0 }
 0x3cb   : >> { %v4601_v36 = vmax.f32 %v4569_v58, %v4577_v10  ;;  %v4578_v42 = vmax.f32 %v4546_v24, 0.0  ;;  %v9586_v12 = vpop.f32.mrb[12].mxu0 }
 0x3cc   : >> { %4620 = vst.msk [vmem:[#allocation6 + $0x10] sm:$0xff] %vm3551_vm2, %v4603_v5  ;;  %v4604_v1 = vmax.f32 %v4572_v35, %v4580_v57  ;;  %v9958_v52 = vadd.f32 %v9586_v12, %v9498_v47  ;;  %v4419_v46 = vpop.f32.mrb[13].mxu0 }
 0x3cd   : >> { %4618 = vst.msk [vmem:[#allocation6] sm:$0xff] %vm3551_vm2, %v4601_v36  ;;  %v4602_v3 = vmax.f32 %v4570_v13, %v4578_v42  ;;  %v9959_v16 = vadd.f32 %v4419_v46, %v3894_v39  ;;  %v9587_v9 = vpop.f32.mrb[14].mxu0 }
 0x3ce   : >> { %4621 = vst.msk [vmem:[#allocation6 + $0x18] sm:$0xff] %vm3551_vm2, %v4604_v1  ;;  %v4551_v61 = vadd.f32 %v9958_v52, %v12627_v17  ;;  %v9960_v23 = vadd.f32 %v9587_v9, %v9499_v51  ;;  %v4422_v15 = vpop.f32.mrb[15].mxu0 }
 0x3cf   : >> { %4619 = vst.msk [vmem:[#allocation6 + $0x8] sm:$0xff] %vm3551_vm2, %v4602_v3  ;;  %v4549_v47 = vadd.f32 %v9959_v16, %v12627_v17  ;;  %v9961_v11 = vadd.f32 %v4422_v15, %v12622_v19 }
 0x3d0   : >> { %v4583_v22 = vmax.f32 %v4551_v61, 0.0  ;;  %v4552_v39 = vadd.f32 %v9960_v23, %v12627_v17 }
 0x3d1   : >> { %v4581_v21 = vmax.f32 %v4549_v47, 0.0  ;;  %v4550_v55 = vadd.f32 %v9961_v11, %v12627_v17 }
 0x3d2   : >> { %v4607_v37 = vmax.f32 %v4575_v60, %v4583_v22  ;;  %v4584_v51 = vmax.f32 %v4552_v39, 0.0  ;;  %v9546_v18 = vpop.f32.mrb[16].mxu1 }
 0x3d3   : >> { %v4605_v40 = vmax.f32 %v4573_v50, %v4581_v21  ;;  %v4582_v45 = vmax.f32 %v4550_v55, 0.0  ;;  %v9590_v25 = vpop.f32.mrb[16].mxu0  ;;  %v4155_v54 = vpop.f32.mrb[17].mxu1 }
 0x3d4   : >> { %4624 = vst.msk [vmem:[#allocation6 + $0x30] sm:$0xff] %vm3551_vm2, %v4607_v37  ;;  %v4608_v19 = vmax.f32 %v4576_v43, %v4584_v51  ;;  %v9962_v44 = vadd.f32 %v9590_v25, %v9546_v18  ;;  %v4435_v62 = vpop.f32.mrb[17].mxu0  ;;  %v9547_v14 = vpop.f32.mrb[18].mxu1 }
 0x3d5   : >> { %4622 = vst.msk [vmem:[#allocation6 + $0x20] sm:$0xff] %vm3551_vm2, %v4605_v40  ;;  %v4606_v26 = vmax.f32 %v4574_v33, %v4582_v45  ;;  %v9963_v31 = vadd.f32 %v4435_v62, %v4155_v54  ;;  %v9591_v20 = vpop.f32.mrb[18].mxu0  ;;  %v4158_v49 = vpop.f32.mrb[19].mxu1  ;;  %v4636_v59 = vld [vmem:[#allocation6 + $0x10] ss:$2 sm:$0xff] }
 0x3d6   : >> { %v4652_v38 = vld [vmem:[#allocation6 + $0x11] ss:$2 sm:$0xff]  ;;  %4625 = vst.msk [vmem:[#allocation6 + $0x38] sm:$0xff] %vm3551_vm2, %v4608_v19  ;;  %v9964_v63 = vadd.f32 %v9591_v20, %v9547_v14  ;;  %v4438_v28 = vpop.f32.mrb[19].mxu0  ;;  %v4634_v0 = vld [vmem:[#allocation6] ss:$2 sm:$0xff]  ;;  %v4555_v22 = vadd.f32 %v9962_v44, %v12627_v17 }
 0x3d7   : >> { %v4650_v41 = vld [vmem:[#allocation6 + $0x1] ss:$2 sm:$0xff]  ;;  %v4666_v29 = vmax.f32 %v4636_v59, %v4652_v38  ;;  %4623 = vst.msk [vmem:[#allocation6 + $0x28] sm:$0xff] %vm3551_vm2, %v4606_v26  ;;  %v9965_v32 = vadd.f32 %v4438_v28, %v4158_v49  ;;  %v4553_v45 = vadd.f32 %v9963_v31, %v12627_v17 }
 0x3d8   : >> { %v12654_v27 = vmax.f32 %v4634_v0, %v4650_v41  ;;  %v4556_v44 = vadd.f32 %v9964_v63, %v12627_v17  ;;  %v4587_v38 = vmax.f32 %v4555_v22, 0.0 }
 0x3d9   : >> { %v4788_v48 = vrot.slane %v4666_v29, 7  ;;  %v4829_v23 = vrot.slane %v4666_v29, 1  ;;  %v4554_v20 = vadd.f32 %v9965_v32, %v12627_v17  ;;  %v4585_v0 = vmax.f32 %v4553_v45, 0.0 }
 0x3da   : >> { %v10432_v7 = vpack.i.bf16 %v4666_v29, %v12654_v27  ;;  %v9550_v4 = vpop.f32.mrb[20].mxu1  ;;  %v4787_v58 = vrot.slane %v12654_v27, 7  ;;  %v4828_v61 = vrot.slane %v12654_v27, 1  ;;  %v4588_v29 = vmax.f32 %v4556_v44, 0.0 }
 0x3db   : >> { %v9594_v10 = vpop.f32.mrb[20].mxu0  ;;  %v4171_v24 = vpop.f32.mrb[21].mxu1 }
 0x3dc   : >> { %10433 = vrot.lane.b32.xlu0 %v10432_v7, %s10798_s0  ;;  %v12659_v35 = vadd.f32 %v9594_v10, %v9550_v4  ;;  %v4451_v5 = vpop.f32.mrb[21].mxu0  ;;  %v9551_v57 = vpop.f32.mrb[22].mxu1  ;;  %v12664_v13 = vsel %vm14730_vm6, %v4787_v58, %v4788_v48  ;;  %v4830_v21 = vsel %vm3166_vm1, %v4828_v61, %v4829_v23  ;;  %v4586_v10 = vmax.f32 %v4554_v20, 0.0  ;;  %vm14746_vm6 = vmmov %vm14728_vm8 }
 0x3dd   : >> { %v12666_v36 = vadd.f32 %v4451_v5, %v4171_v24  ;;  %v9595_v42 = vpop.f32.mrb[22].mxu0  ;;  %v4174_v12 = vpop.f32.mrb[23].mxu1  ;;  %v4640_v30 = vld [vmem:[#allocation6 + $0x30] ss:$2 sm:$0xff]  ;;  %v4656_v1 = vld [vmem:[#allocation6 + $0x31] ss:$2 sm:$0xff] }
 0x3de   : >> { %v12668_v52 = vadd.f32 %v9595_v42, %v9551_v57  ;;  %v4454_v46 = vpop.f32.mrb[23].mxu0  ;;  %v4638_v34 = vld [vmem:[#allocation6 + $0x20] ss:$2 sm:$0xff]  ;;  %v4654_v3 = vld [vmem:[#allocation6 + $0x21] ss:$2 sm:$0xff]  ;;  %v12670_v16 = vmax.f32 %v4640_v30, %v4656_v1  ;;  %v4559_v42 = vadd.f32 %v12659_v35, %v12627_v17 }
 0x3df   : >> { %v12672_v9 = vadd.f32 %v4454_v46, %v4174_v12  ;;  %v12674_v53 = vmax.f32 %v4638_v34, %v4654_v3  ;;  %v4557_v34 = vadd.f32 %v12666_v36, %v12627_v17 }
 0x3e0   : >> { %v4792_v15 = vrot.slane %v12670_v16, 7 }
 0x3e1   : >> { %v10437_v56 = vpack.i.bf16 %v12670_v16, %v12674_v53  ;;  %v4831_v47 = vrot.slane %v12674_v53, 1  ;;  %v4790_v60 = vrot.slane %v12674_v53, 7 }
 0x3e2   : >> { %v9554_v11 = vpop.f32.mrb[24].mxu1 }
 0x3e3   : >> { %10438 = vrot.lane.b32.xlu0 %v10437_v56, %s10798_s0  ;;  %v9598_v39 = vpop.f32.mrb[24].mxu0  ;;  %v4187_v50 = vpop.f32.mrb[25].mxu1  ;;  %v4832_v55 = vsel %vm3166_vm1, %v4829_v23, %v4831_v47  ;;  %v12689_v33 = vsel %vm14731_vm15, %v4788_v48, %v4790_v60  ;;  %v12694_v40 = vsel %vm14732_vm14, %v4790_v60, %v4792_v15  ;;  %vm14747_vm15 = vmmov %vm14746_vm6 }
 0x3e4   : >> { %v9970_v43 = vadd.f32 %v9598_v39, %v9554_v11  ;;  %v4467_v37 = vpop.f32.mrb[25].mxu0  ;;  %v9555_v51 = vpop.f32.mrb[26].mxu1  ;;  %v10442_v18 = vpack.i.bf16 %v4832_v55, %v4830_v21  ;;  %v4560_v11 = vadd.f32 %v12668_v52, %v12627_v17  ;;  %v4558_v39 = vadd.f32 %v12672_v9, %v12627_v17  ;;  %vm14748_vm14 = vmmov %vm14746_vm6 }
 0x3e5   : >> { %v9971_v25 = vadd.f32 %v4467_v37, %v4187_v50  ;;  %v9599_v54 = vpop.f32.mrb[26].mxu0  ;;  %v4190_v19 = vpop.f32.mrb[27].mxu1  ;;  %v4591_v21 = vmax.f32 %v4559_v42, 0.0  ;;  %v4589_v37 = vmax.f32 %v4557_v34, 0.0 }
 0x3e6   : >> { %v4563_v62 = vadd.f32 %v9970_v43, %v12627_v17  ;;  %v9972_v14 = vadd.f32 %v9599_v54, %v9555_v51  ;;  %v4470_v26 = vpop.f32.mrb[27].mxu0  ;;  %v4592_v45 = vmax.f32 %v4560_v11, 0.0 }
 0x3e7   : >> { %v4561_v49 = vadd.f32 %v9971_v25, %v12627_v17  ;;  %v9973_v59 = vadd.f32 %v4470_v26, %v4190_v19  ;;  %10443 = vrot.lane.b32.xlu0 %v10442_v18, %s10799_s24  ;;  %v4677_v18 = vadd.s32 24, %v10955_v2  ;;  %v4590_v19 = vmax.f32 %v4558_v39, 0.0 }
 0x3e8   : >> { %v4595_v28 = vmax.f32 %v4563_v62, 0.0  ;;  %v4564_v31 = vadd.f32 %v9972_v14, %v12627_v17 }
 0x3e9   : >> { %v4593_v41 = vmax.f32 %v4561_v49, 0.0  ;;  %v4562_v63 = vadd.f32 %v9973_v59, %v12627_v17  ;;  %v4707_v49 = vand.u32 31, %v4677_v18 }
 0x3ea   : >> { %v4611_v48 = vmax.f32 %v4587_v38, %v4595_v28  ;;  %v4596_v7 = vmax.f32 %v4564_v31, 0.0  ;;  %v9558_v4 = vpop.f32.mrb[28].mxu1  ;;  %v4833_v31 = vrot.slane %v12670_v16, 1 }
 0x3eb   : >> { %v4609_v32 = vmax.f32 %v4585_v0, %v4593_v41  ;;  %v4594_v24 = vmax.f32 %v4562_v63, 0.0  ;;  %v9602_v5 = vpop.f32.mrb[28].mxu0  ;;  %v4203_v57 = vpop.f32.mrb[29].mxu1  ;;  %vm12726_vm5 = vcmp.eq.s32.totalorder %v4707_v49, 31 }
 0x3ec   : >> { %4628 = vst.msk [vmem:[#allocation6 + $0x50] sm:$0xff] %vm3551_vm2, %v4611_v48  ;;  %v4612_v12 = vmax.f32 %v4588_v29, %v4596_v7  ;;  %v9974_v30 = vadd.f32 %v9602_v5, %v9558_v4  ;;  %v4483_v1 = vpop.f32.mrb[29].mxu0  ;;  %v9559_v46 = vpop.f32.mrb[30].mxu1  ;;  %v4735_v5 = vand.u32 31, %v10969_v6 }
 0x3ed   : >> { %4626 = vst.msk [vmem:[#allocation6 + $0x40] sm:$0xff] %vm3551_vm2, %v4609_v32  ;;  %v4610_v3 = vmax.f32 %v4586_v10, %v4594_v24  ;;  %v9975_v61 = vadd.f32 %v4483_v1, %v4203_v57  ;;  %v9603_v23 = vpop.f32.mrb[30].mxu0  ;;  %v4206_v56 = vpop.f32.mrb[31].mxu1  ;;  %v4834_v32 = vsel %vm3166_vm1, %v4831_v47, %v4833_v31 }
 0x3ee   : >> { %4629 = vst.msk [vmem:[#allocation6 + $0x58] sm:$0xff] %vm3551_vm2, %v4612_v12  ;;  %v4567_v35 = vadd.f32 %v9974_v30, %v12627_v17  ;;  %v9976_v60 = vadd.f32 %v9603_v23, %v9559_v46  ;;  %v4486_v22 = vpop.f32.mrb[31].mxu0  ;;  %vm12747_vm10 = vcmp.eq.s32.totalorder %v4735_v5, 31 }
 0x3ef   : >> { %4627 = vst.msk [vmem:[#allocation6 + $0x48] sm:$0xff] %vm3551_vm2, %v4610_v3  ;;  %v4565_v36 = vadd.f32 %v9975_v61, %v12627_v17  ;;  %v9977_v50 = vadd.f32 %v4486_v22, %v4206_v56 }
 0x3f0   : >> { %v4599_v55 = vmax.f32 %v4567_v35, 0.0  ;;  %v4568_v43 = vadd.f32 %v9976_v60, %v12627_v17 }
 0x3f1   : >> { %v4597_v52 = vmax.f32 %v4565_v36, 0.0  ;;  %v4566_v51 = vadd.f32 %v9977_v50, %v12627_v17 }
 0x3f2   : >> { %v4615_v25 = vmax.f32 %v4591_v21, %v4599_v55  ;;  %v4600_v54 = vmax.f32 %v4568_v43, 0.0  ;;  %v4686_v43 = vand.u32 31, %v10955_v2 }
 0x3f3   : >> { %v4613_v9 = vmax.f32 %v4589_v37, %v4597_v52  ;;  %v4598_v44 = vmax.f32 %v4566_v51, 0.0 }
 0x3f4   : >> { %4632 = vst.msk [vmem:[#allocation6 + $0x70] sm:$0xff] %vm3551_vm2, %v4615_v25  ;;  %v4616_v62 = vmax.f32 %v4592_v45, %v4600_v54  ;;  %vm12764_vm11 = vcmp.eq.s32.totalorder %v4686_v43, 0  ;;  %v4810_v45 = vsel %vm14743_vm9, 0.0, %v4787_v58  ;;  %v4678_v58 = vadd.s32 32, %v10955_v2 }
 0x3f5   : >> { %4630 = vst.msk [vmem:[#allocation6 + $0x60] sm:$0xff] %vm3551_vm2, %v4613_v9  ;;  %v4614_v14 = vmax.f32 %v4590_v19, %v4598_v44  ;;  %v4644_v26 = vld [vmem:[#allocation6 + $0x50] ss:$2 sm:$0xff]  ;;  %v4660_v20 = vld [vmem:[#allocation6 + $0x51] ss:$2 sm:$0xff]  ;;  %v4819_v54 = vsel %vm12764_vm11, 0.0, %v4810_v45 }
 0x3f6   : >> { %4633 = vst.msk [vmem:[#allocation6 + $0x78] sm:$0xff] %vm3551_vm2, %v4616_v62  ;;  %v4642_v17 = vld [vmem:[#allocation6 + $0x40] ss:$2 sm:$0xff]  ;;  %v4658_v59 = vld [vmem:[#allocation6 + $0x41] ss:$2 sm:$0xff]  ;;  %v4670_v38 = vmax.f32 %v4644_v26, %v4660_v20 }
 0x3f7   : >> { %4631 = vst.msk [vmem:[#allocation6 + $0x68] sm:$0xff] %vm3551_vm2, %v4614_v14  ;;  %v4669_v28 = vmax.f32 %v4642_v17, %v4658_v59 }
 0x3f8   : >> { %v4796_v0 = vrot.slane %v4670_v38, 7 }
 0x3f9   : >> { %v10447_v41 = vpack.i.bf16 %v4670_v38, %v4669_v28  ;;  %v4835_v63 = vrot.slane %v4669_v28, 1  ;;  %v4794_v48 = vrot.slane %v4669_v28, 7 }
 0x3fb   : >> { %10448 = vrot.lane.b32.xlu1 %v10447_v41, %s10798_s0  ;;  %v4836_v7 = vsel %vm3166_vm1, %v4833_v31, %v4835_v63  ;;  %v12735_v4 = vsel %vm14735_vm0, %v4792_v15, %v4794_v48  ;;  %v12738_v10 = vsel %vm14736_vm7, %v4794_v48, %v4796_v0  ;;  %v4837_v15 = vrot.slane %v4670_v38, 1 }
 0x3fc   : >> { %v4863_v24 = vsel %vm12726_vm5, 0.0, %v4836_v7 }
 0x3fd   : >> { %v10452_v57 = vpack.i.bf16 %v4863_v24, %v4834_v32  ;;  %v4648_v42 = vld [vmem:[#allocation6 + $0x70] ss:$2 sm:$0xff]  ;;  %v4664_v12 = vld [vmem:[#allocation6 + $0x71] ss:$2 sm:$0xff]  ;;  %v4838_v56 = vsel %vm3166_vm1, %v4835_v63, %v4837_v15 }
 0x3fe   : >> { %v4646_v30 = vld [vmem:[#allocation6 + $0x60] ss:$2 sm:$0xff]  ;;  %v4662_v16 = vld [vmem:[#allocation6 + $0x61] ss:$2 sm:$0xff]  ;;  %v4672_v1 = vmax.f32 %v4648_v42, %v4664_v12 }
 0x3ff   : >> { %10453 = vrot.lane.b32.xlu1 %v10452_v57, %s10799_s24  ;;  %v4671_v46 = vmax.f32 %v4646_v30, %v4662_v16 }
 0x400   : >> { %v4841_v34 = vrot.slane %v4672_v1, 1  ;;  %v4800_v47 = vrot.slane %v4672_v1, 7 }
 0x401   : >> { %v10457_v3 = vpack.i.bf16 %v4672_v1, %v4671_v46  ;;  %v4839_v61 = vrot.slane %v4671_v46, 1  ;;  %v4798_v23 = vrot.slane %v4671_v46, 7 }
 0x402   : >> { %v4851_v11 = vsel %vm3166_vm1, %v4841_v34, 0.0 }
 0x403   : >> { %10458 = vrot.lane.b32.xlu1 %v10457_v3, %s10798_s0  ;;  %v4840_v35 = vsel %vm3166_vm1, %v4837_v15, %v4839_v61  ;;  %v4842_v60 = vsel %vm3166_vm1, %v4839_v61, %v4841_v34  ;;  %v4867_v22 = vsel %vm12747_vm10, 0.0, %v4851_v11  ;;  %v4799_v39 = vsel %vm14739_vm13, %v4796_v0, %v4798_v23 }
 0x404   : >> { %v10462_v36 = vpack.i.bf16 %v4840_v35, %v4838_v56  ;;  %v10467_v50 = vpack.i.bf16 %v4867_v22, %v4842_v60  ;;  %v4801_v21 = vsel %vm14740_vm3, %v4798_v23, %v4800_v47 }
 0x406   : >> { %10463 = vrot.lane.b32.xlu0 %v10462_v36, %s10799_s24 }
 0x407   : >> { %10468 = vrot.lane.b32.xlu1 %v10467_v50, %s10799_s24 }
 0x44e   : >> { %v10434_v55 = vpop.permute.xlu0 %10433 }
 0x44f   : >> { %v10436_v51 = vunpack.i.h.bf16 %v10434_v55  ;;  %v10435_v18 = vunpack.i.l.bf16 %v10434_v55 }
 0x451   : >> { %v4924_v44 = vsel %vm3551_vm2, %v4819_v54, %v10435_v18  ;;  %v4925_v62 = vsel %vm3551_vm2, %v12664_v13, %v10436_v51  ;;  %v4714_v13 = vand.u32 31, %v4678_v58 }
 0x453   : >> { %vm12789_vm12 = vcmp.eq.s32.totalorder %v4714_v13, 0 }
 0x455   : >> { %v10439_v37 = vpop.permute.xlu0 %10438 }
 0x456   : >> { %v10441_v49 = vunpack.i.h.bf16 %v10439_v37  ;;  %v10440_v17 = vunpack.i.l.bf16 %v10439_v37 }
 0x458   : >> { %v4926_v31 = vsel %vm3551_vm2, %v12689_v33, %v10440_v17  ;;  %v4927_v0 = vsel %vm3551_vm2, %v12694_v40, %v10441_v49  ;;  %v4823_v40 = vsel %vm12789_vm12, 0.0, %v12735_v4 }
 0x459   : >> { %v10444_v25 = vpop.permute.xlu0 %10443 }
 0x45a   : >> { %v10446_v19 = vunpack.i.h.bf16 %v10444_v25  ;;  %v10445_v9 = vunpack.i.l.bf16 %v10444_v25 }
 0x45c   : >> { %v4934_v14 = vsel %vm3584_vm4, %v4925_v62, %v10446_v19  ;;  %v4933_v26 = vsel %vm3584_vm4, %v4924_v44, %v10445_v9 }
 0x45d   : >> { %v4941_v20 = vpack.c.bf16 %v4934_v14, %v4933_v26 }
 0x45f   : >> { %4951 = vst.msk [vmem:[%s12778_s12] sm:$0xff] %vm14728_vm8, %v4941_v20 }
 0x46d   : >> { %v10449_v27 = vpop.permute.xlu1 %10448 }
 0x46e   : >> { %v10451_v32 = vunpack.i.h.bf16 %v10449_v27  ;;  %v10450_v24 = vunpack.i.l.bf16 %v10449_v27 }
 0x470   : >> { %v4928_v1 = vsel %vm3551_vm2, %v4823_v40, %v10450_v24  ;;  %v4929_v15 = vsel %vm3551_vm2, %v12738_v10, %v10451_v32 }
 0x471   : >> { %v10454_v59 = vpop.permute.xlu1 %10453 }
 0x472   : >> { %v10456_v38 = vunpack.i.h.bf16 %v10454_v59  ;;  %v10455_v28 = vunpack.i.l.bf16 %v10454_v59 }
 0x474   : >> { %v4936_v41 = vsel %vm3584_vm4, %v4927_v0, %v10456_v38  ;;  %v4935_v63 = vsel %vm3584_vm4, %v4926_v31, %v10455_v28 }
 0x475   : >> { %v4942_v48 = vpack.c.bf16 %v4936_v41, %v4935_v63  ;;  %v10459_v7 = vpop.permute.xlu1 %10458 }
 0x476   : >> { %v10461_v57 = vunpack.i.h.bf16 %v10459_v7  ;;  %v10460_v42 = vunpack.i.l.bf16 %v10459_v7 }
 0x477   : >> { %4952 = vst.msk [vmem:[%s12778_s12 + $0x8] sm:$0xff] %vm14746_vm6, %v4942_v48 }
 0x478   : >> { %v10464_v33 = vpop.permute.xlu0 %10463  ;;  %v4930_v61 = vsel %vm3551_vm2, %v4799_v39, %v10460_v42  ;;  %v4931_v4 = vsel %vm3551_vm2, %v4801_v21, %v10461_v57 }
 0x479   : >> { %v10466_v12 = vunpack.i.h.bf16 %v10464_v33  ;;  %v10465_v30 = vunpack.i.l.bf16 %v10464_v33  ;;  %v10469_v16 = vpop.permute.xlu1 %10468  ;;  %3657 = sbr.rel (!%p3655_p13) target bundleno = 678 (0x2a6), region = 214 }
 0x47a   : >> { %v10471_v46 = vunpack.i.h.bf16 %v10469_v16  ;;  %v10470_v34 = vunpack.i.l.bf16 %v10469_v16 }
 0x47b   : >> { %v4938_v47 = vsel %vm3584_vm4, %v4929_v15, %v10466_v12  ;;  %v4937_v3 = vsel %vm3584_vm4, %v4928_v1, %v10465_v30 }
 0x47c   : >> { %v4943_v23 = vpack.c.bf16 %v4938_v47, %v4937_v3  ;;  %v4939_v56 = vsel %vm3584_vm4, %v4930_v61, %v10470_v34  ;;  %v4940_v11 = vsel %vm3584_vm4, %v4931_v4, %v10471_v46 }
 0x47d   : >> { %v4944_v35 = vpack.c.bf16 %v4940_v11, %v4939_v56 }
 0x47e   : >> { %4953 = vst.msk [vmem:[%s12778_s12 + $0x10] sm:$0xff] %vm14747_vm15, %v4943_v23 }
 0x47f   : >> { %4954 = vst.msk [vmem:[%s12778_s12 + $0x18] sm:$0xff] %vm14748_vm14, %v4944_v35 }
 0x480 LB: >> { %v10650_v10 = vld [vmem:[%s14491_s5 + $0x30] sm:$0xff]   ;;  %v10651_v60 = vld [vmem:[%s14491_s5] sm:$0xff]   ;;  %v10652_v6 = vld [vmem:[%s14491_s5 + $0x38] sm:$0xff]   ;;  %s12829_s24 = sshll.u32 %s10784_s13, 8  ;;  %vm14749_vm0 = vcmask 785408   ;;  %s10800_s29 = smov 32   ;;  %s10784_s13 = sphi %s12814_s13, %s4960_s13  }
 0x481   : >> { %9604 = vmatprep.subr.bf16.mxu1 %v10650_v10  ;;  %9648 = vmatprep.subr.bf16.mxu0 %v10651_v60  ;;  %v10653_v22 = vld [vmem:[%s14491_s5 + $0x8] sm:$0xff]   ;;  %s9106_s22 = sadd.s32 32, %s12829_s24  ;;  %v10654_v39 = vld [vmem:[%s14491_s5 + $0x40] sm:$0xff]   ;;  %v12843_v36 = vld [vmem:[%s14491_s5 + $0x10] sm:$0xff]   ;;  %s4963_s14 = sshra.s32 %s12829_s24, 4 }
 0x482   : >> { %9605 = vmatpush3.bf16.msra.mxu1 %v10650_v10  ;;  %9649 = vmatpush3.bf16.msra.mxu0 %v10651_v60  ;;  %s12838_s15 = sshra.s32 %s9106_s22, 4  ;;  %v10656_v50 = vld [vmem:[%s14491_s5 + $0x48] sm:$0xff]   ;;  %v12854_v21 = vld [vmem:[%s14491_s5 + $0x18] sm:$0xff]   ;;  %s8833_s25 = sshll.u32 %s4963_s14, 3  ;;  %v10658_v55 = vld [vmem:[%s14491_s5 + $0x50] sm:$0xff]  }
 0x483   : >> { %9606 = vmatprep.subr.bf16.mxu1 %v10652_v6  ;;  %9650 = vmatprep.subr.bf16.mxu0 %v10653_v22  ;;  %s8835_s26 = sshll.u32 %s12838_s15, 3  ;;  %s12865_s0 = scalar_lea.vmem [#allocation4], %s8833_s25  ;;  %v12872_v51 = vld [vmem:[%s14491_s5 + $0x20] sm:$0xff]   ;;  %vm14750_vm7 = vmmov %vm14749_vm0  ;;  %v10660_v18 = vld [vmem:[%s14491_s5 + $0x58] sm:$0xff]  }
 0x484   : >> { %s12862_s2 = scalar_lea.vmem [#allocation4], %s8835_s26  ;;  %v12884_v45 = vld [vmem:[%s14491_s5 + $0x28] sm:$0xff]   ;;  %v10662_v25 = vld [vmem:[%s14491_s5 + $0x60] sm:$0xff]   ;;  %vm14751_vm13 = vmmov %vm14749_vm0  ;;  %s9108_s30 = sadd.s32 64, %s12829_s24 }
 0x485   : >> { %v10663_v9 = vld [vmem:[%s14491_s5 + $0x68] sm:$0xff]   ;;  %vm14752_vm3 = vmmov %vm14749_vm0  ;;  %v10664_v14 = vld [vmem:[%s14491_s5 + $0x70] sm:$0xff]   ;;  %s5522_s22 = sshra.s32 %s9108_s30, 4  ;;  %s10801_s14 = smov 64  }
 0x486   : >> { %9607 = vmatpush3.bf16.msra.mxu1 %v10652_v6  ;;  %9651 = vmatpush3.bf16.msra.mxu0 %v10653_v22  ;;  %v5001_v43 = vld [vmem:[%s12862_s2] sm:$0xff]  ;;  %v5002_v54 = vld [vmem:[%s12862_s2 + $0x8] sm:$0xff]  ;;  %v5003_v44 = vld [vmem:[%s12862_s2 + $0x10] sm:$0xff]  ;;  %s8893_s24 = sshll.u32 %s5522_s22, 3  ;;  %s13431_s30 = scalar_lea.vmem [#allocation5], %s8835_s26 }
 0x487   : >> { %9608 = vmatprep.subr.bf16.mxu1 %v10654_v39  ;;  %9652 = vmatprep.subr.bf16.mxu0 %v12843_v36  ;;  %v4967_v37 = vld [vmem:[%s12865_s0] sm:$0xff]  ;;  %v4968_v19 = vld [vmem:[%s12865_s0 + $0x8] sm:$0xff]  ;;  %v4969_v62 = vld [vmem:[%s12865_s0 + $0x10] sm:$0xff]  ;;  %s12942_s1 = scalar_lea.vmem [#allocation4], %s8893_s24  ;;  %s4960_s13 = sadd.s32 1, %s10784_s13  }
 0x488   : >> { %9616 = vmatprep.mubr.msk.bf16.mxu1 %vm14749_vm0, %v5001_v43  ;;  %9660 = vmatprep.mubr.msk.bf16.mxu0 %vm14750_vm7, %v4967_v37  ;;  %vm14753_vm9 = vmmov %vm14749_vm0  ;;  %v5004_v26 = vld [vmem:[%s12862_s2 + $0x18] sm:$0xff]  ;;  %v5005_v27 = vld [vmem:[%s12862_s2 + $0x20] sm:$0xff]  ;;  %p4957_p0 = scmp.ge.s32.totalorder %s4960_s13, 4  }
 0x489   : >> { %vm14754_vm8 = vmmov %vm14749_vm0  ;;  %v4970_v20 = vld [vmem:[%s12865_s0 + $0x18] sm:$0xff]  ;;  %v4971_v58 = vld [vmem:[%s12865_s0 + $0x20] sm:$0xff]  ;;  %s13602_s15 = smov (%p4957_p0), 0  }
 0x48a   : >> { %9609 = vmatpush3.bf16.msra.mxu1 %v10654_v39  ;;  %9653 = vmatpush3.bf16.msra.mxu0 %v12843_v36  ;;  %v10665_v49 = vld [vmem:[%s14491_s5 + $0x78] sm:$0xff]   ;;  %vm14755_vm6 = vmmov %vm14749_vm0  ;;  %v10666_v17 = vld [vmem:[%s14491_s5 + $0x80] sm:$0xff]  }
 0x48b   : >> { %9610 = vmatprep.subr.bf16.mxu1 %v10656_v50  ;;  %9654 = vmatprep.subr.bf16.mxu0 %v12854_v21  ;;  %vm14756_vm15 = vmmov %vm14749_vm0  ;;  %v5006_v59 = vld [vmem:[%s12862_s2 + $0x28] sm:$0xff]  ;;  %v5007_v28 = vld [vmem:[%s12862_s2 + $0x30] sm:$0xff] }
 0x48c   : >> { %vm14757_vm14 = vmmov %vm14749_vm0  ;;  %v4972_v38 = vld [vmem:[%s12865_s0 + $0x28] sm:$0xff]  ;;  %v4973_v13 = vld [vmem:[%s12865_s0 + $0x30] sm:$0xff] }
 0x48d   : >> { %v10667_v31 = vld [vmem:[%s14491_s5 + $0x88] sm:$0xff]   ;;  %vm14758_vm7 = vmmov %vm14749_vm0  ;;  %v5008_v0 = vld [vmem:[%s12862_s2 + $0x38] sm:$0xff] }
 0x48e   : >> { %9611 = vmatpush3.bf16.msra.mxu1 %v10656_v50  ;;  %9655 = vmatpush3.bf16.msra.mxu0 %v12854_v21  ;;  %v4974_v41 = vld [vmem:[%s12865_s0 + $0x38] sm:$0xff]  ;;  %v5009_v63 = vld [vmem:[%s12862_s2 + $0x40] sm:$0xff]  ;;  %v5010_v7 = vld [vmem:[%s12862_s2 + $0x48] sm:$0xff] }
 0x48f   : >> { %9612 = vmatprep.subr.bf16.mxu1 %v10658_v55  ;;  %9656 = vmatprep.subr.bf16.mxu0 %v12872_v51  ;;  %v5526_v48 = vld [vmem:[%s12942_s1] sm:$0xff]  ;;  %v5527_v32 = vld [vmem:[%s12942_s1 + $0x8] sm:$0xff]  ;;  %v5011_v24 = vld [vmem:[%s12862_s2 + $0x50] sm:$0xff] }
 0x490   : >> { %v5528_v57 = vld [vmem:[%s12942_s1 + $0x10] sm:$0xff]  ;;  %v5012_v42 = vld [vmem:[%s12862_s2 + $0x58] sm:$0xff]  ;;  %v5013_v40 = vld [vmem:[%s12862_s2 + $0x60] sm:$0xff] }
 0x491   : >> { %v5529_v33 = vld [vmem:[%s12942_s1 + $0x18] sm:$0xff]  ;;  %v5530_v12 = vld [vmem:[%s12942_s1 + $0x20] sm:$0xff]  ;;  %v5014_v30 = vld [vmem:[%s12862_s2 + $0x68] sm:$0xff] }
 0x492   : >> { %9613 = vmatpush3.bf16.msra.mxu1 %v10658_v55  ;;  %9657 = vmatpush3.bf16.msra.mxu0 %v12872_v51  ;;  %v5531_v16 = vld [vmem:[%s12942_s1 + $0x28] sm:$0xff]  ;;  %v5015_v1 = vld [vmem:[%s12862_s2 + $0x70] sm:$0xff]  ;;  %v5016_v46 = vld [vmem:[%s12862_s2 + $0x78] sm:$0xff] }
 0x493   : >> { %9614 = vmatprep.subr.bf16.mxu1 %v10660_v18  ;;  %9658 = vmatprep.subr.bf16.mxu0 %v12884_v45  ;;  %v5532_v15 = vld [vmem:[%s12942_s1 + $0x30] sm:$0xff]  ;;  %v5533_v34 = vld [vmem:[%s12942_s1 + $0x38] sm:$0xff]  ;;  %v4975_v47 = vld [vmem:[%s12865_s0 + $0x40] sm:$0xff] }
 0x494   : >> { %v5534_v3 = vld [vmem:[%s12942_s1 + $0x40] sm:$0xff]  ;;  %v4976_v61 = vld [vmem:[%s12865_s0 + $0x48] sm:$0xff]  ;;  %v4977_v23 = vld [vmem:[%s12865_s0 + $0x50] sm:$0xff] }
 0x495   : >> { %v5535_v4 = vld [vmem:[%s12942_s1 + $0x48] sm:$0xff]  ;;  %v5536_v56 = vld [vmem:[%s12942_s1 + $0x50] sm:$0xff]  ;;  %v4978_v11 = vld [vmem:[%s12865_s0 + $0x58] sm:$0xff] }
 0x496   : >> { %9615 = vmatpush3.bf16.msra.mxu1 %v10660_v18  ;;  %9659 = vmatpush3.bf16.msra.mxu0 %v12884_v45  ;;  %v5537_v35 = vld [vmem:[%s12942_s1 + $0x58] sm:$0xff]  ;;  %v4979_v10 = vld [vmem:[%s12865_s0 + $0x60] sm:$0xff]  ;;  %v4980_v6 = vld [vmem:[%s12865_s0 + $0x68] sm:$0xff] }
 0x497   : >> { %10010 = vmatprep.subr.bf16.mxu1 %v10651_v60  ;;  %9692 = vmatprep.subr.bf16.mxu0 %v10662_v25  ;;  %v4981_v39 = vld [vmem:[%s12865_s0 + $0x70] sm:$0xff]  ;;  %v4982_v50 = vld [vmem:[%s12865_s0 + $0x78] sm:$0xff] }
 0x499   : >> { %9617 = vmatmul.mubr.msk.bf16.vlgmr.msra.gmra.mrb[0].mxu1 %vm14751_vm13, %v5002_v54  ;;  %9661 = vmatmul.mubr.msk.bf16.vlgmr.msra.gmra.mrb[0].mxu0 %vm14752_vm3, %v4968_v19  ;;  %vm14759_vm13 = vmmov %vm14749_vm0 }
 0x49a   : >> { %10016 = vmatpush3.bf16.msra.mxu1 %v10651_v60  ;;  %9693 = vmatpush3.bf16.msra.mxu0 %v10662_v25  ;;  %vm14760_vm3 = vmmov %vm14749_vm0  ;;  %v5538_v60 = vld [vmem:[%s12942_s1 + $0x60] sm:$0xff] }
 0x49b   : >> { %9620 = vmatprep.mubr.msk.bf16.mxu1 %vm14753_vm9, %v5003_v44  ;;  %9694 = vmatprep.subr.bf16.mxu0 %v10663_v9  ;;  %vm14761_vm9 = vmmov %vm14749_vm0 }
 0x49c   : >> { %9664 = vmatprep.mubr.msk.bf16.mxu0 %vm14754_vm8, %v4969_v62  ;;  %10011 = vmatprep.subr.bf16.mxu1 %v10653_v22  ;;  %vm14762_vm8 = vmmov %vm14749_vm0 }
 0x49e   : >> { %10017 = vmatpush3.bf16.msra.mxu1 %v10653_v22  ;;  %9695 = vmatpush3.bf16.msra.mxu0 %v10663_v9  ;;  %v5539_v22 = vld [vmem:[%s12942_s1 + $0x68] sm:$0xff] }
 0x49f   : >> { %10012 = vmatprep.subr.bf16.mxu1 %v12843_v36  ;;  %9696 = vmatprep.subr.bf16.mxu0 %v10664_v14 }
 0x4a1   : >> { %9621 = vmatmul.mubr.msk.bf16.gmra.mrb[4].mxu1 %vm14755_vm6, %v5004_v26  ;;  %9665 = vmatmul.mubr.msk.bf16.gmra.mrb[4].mxu0 %vm14756_vm15, %v4970_v20  ;;  %vm14763_vm6 = vmmov %vm14749_vm0 }
 0x4a2   : >> { %9624 = vmatprep.mubr.msk.bf16.mxu1 %vm14757_vm14, %v5005_v27  ;;  %9697 = vmatpush3.bf16.msra.mxu0 %v10664_v14  ;;  %vm14764_vm15 = vmmov %vm14749_vm0 }
 0x4a3   : >> { %9668 = vmatprep.mubr.msk.bf16.mxu0 %vm14749_vm0, %v4971_v58  ;;  %9698 = vmatprep.subr.bf16.mxu0 %v10665_v49  ;;  %vm14765_vm14 = vmmov %vm14749_vm0 }
 0x4a4   : >> { %10018 = vmatpush3.bf16.msra.mxu1 %v12843_v36  ;;  %v5540_v36 = vld [vmem:[%s12942_s1 + $0x70] sm:$0xff] }
 0x4a5   : >> { %10013 = vmatprep.subr.bf16.mxu1 %v12854_v21 }
 0x4a6   : >> { %9699 = vmatpush3.bf16.msra.mxu0 %v10665_v49  ;;  %v13029_v49 = vld [vmem:[%s14492_s6] ss:$0 sm:$0xff] }
 0x4a7   : >> { %9700 = vmatprep.subr.bf16.mxu0 %v10666_v17 }
 0x4a8   : >> { %10019 = vmatpush3.bf16.msra.mxu1 %v12854_v21  ;;  %v5541_v21 = vld [vmem:[%s12942_s1 + $0x78] sm:$0xff] }
 0x4a9   : >> { %9625 = vmatmul.mubr.msk.bf16.gmra.mrb[8].mxu1 %vm14758_vm7, %v5006_v59  ;;  %10014 = vmatprep.subr.bf16.mxu1 %v12872_v51  ;;  %vm14766_vm7 = vmmov %vm14749_vm0 }
 0x4aa   : >> { %9669 = vmatmul.mubr.msk.bf16.gmra.mrb[8].mxu0 %vm14759_vm13, %v4972_v38  ;;  %9628 = vmatprep.mubr.msk.bf16.mxu1 %vm14760_vm3, %v5007_v28  ;;  %vm14767_vm13 = vmmov %vm14749_vm0 }
 0x4ab   : >> { %9672 = vmatprep.mubr.msk.bf16.mxu0 %vm14761_vm9, %v4973_v13  ;;  %9701 = vmatpush3.bf16.msra.mxu0 %v10666_v17  ;;  %vm14768_vm3 = vmmov %vm14749_vm0 }
 0x4ac   : >> { %9702 = vmatprep.subr.bf16.mxu0 %v10667_v31  ;;  %10020 = vmatpush3.bf16.msra.mxu1 %v12872_v51  ;;  %vm14769_vm9 = vmmov %vm14749_vm0 }
 0x4ad   : >> { %10015 = vmatprep.subr.bf16.mxu1 %v12884_v45 }
 0x4af   : >> { %9703 = vmatpush3.bf16.msra.mxu0 %v10667_v31 }
 0x4b0   : >> { %10021 = vmatpush3.bf16.msra.mxu1 %v12884_v45 }
 0x4b1   : >> { %9629 = vmatmul.mubr.msk.bf16.gmra.mrb[12].mxu1 %vm14762_vm8, %v5008_v0  ;;  %vm14770_vm8 = vmmov %vm14749_vm0 }
 0x4b2   : >> { %9673 = vmatmul.mubr.msk.bf16.gmra.mrb[12].mxu0 %vm14763_vm6, %v4974_v41  ;;  %9632 = vmatprep.mubr.msk.bf16.mxu1 %vm14764_vm15, %v5009_v63  ;;  %vm14771_vm6 = vmmov %vm14749_vm0 }
 0x4b3   : >> { %9704 = vmatprep.mubr.msk.bf16.mxu0 %vm14765_vm14, %v5526_v48  ;;  %vm14772_vm15 = vmmov %vm14749_vm0 }
 0x4b4   : >> { %vm14773_vm14 = vmmov %vm14749_vm0 }
 0x4b9   : >> { %9633 = vmatmul.mubr.msk.bf16.gmra.mrb[16].mxu1 %vm14749_vm0, %v5010_v7 }
 0x4ba   : >> { %9705 = vmatmul.mubr.msk.bf16.vlgmr.msra.gmra.mrb[0].mxu0 %vm14766_vm7, %v5527_v32  ;;  %9636 = vmatprep.mubr.msk.bf16.mxu1 %vm14767_vm13, %v5011_v24  ;;  %vm14774_vm7 = vmmov %vm14749_vm0 }
 0x4bb   : >> { %9708 = vmatprep.mubr.msk.bf16.mxu0 %vm14768_vm3, %v5528_v57  ;;  %vm14775_vm13 = vmmov %vm14749_vm0 }
 0x4bc   : >> { %vm14776_vm3 = vmmov %vm14749_vm0 }
 0x4c1   : >> { %9637 = vmatmul.mubr.msk.bf16.gmra.mrb[20].mxu1 %vm14769_vm9, %v5012_v42  ;;  %vm14777_vm9 = vmmov %vm14749_vm0 }
 0x4c2   : >> { %9709 = vmatmul.mubr.msk.bf16.gmra.mrb[4].mxu0 %vm14770_vm8, %v5529_v33  ;;  %9640 = vmatprep.mubr.msk.bf16.mxu1 %vm14771_vm6, %v5013_v40  ;;  %vm14778_vm8 = vmmov %vm14749_vm0  ;;  %v13040_v33 = vadd.s32 88, %v10955_v2  ;;  %v13043_v40 = vadd.s32 152, %v10955_v2 }
 0x4c3   : >> { %9712 = vmatprep.mubr.msk.bf16.mxu0 %vm14772_vm15, %v5530_v12  ;;  %vm14779_vm6 = vmmov %vm14749_vm0 }
 0x4c4   : >> { %vm14780_vm15 = vmmov %vm14749_vm0 }
 0x4c9   : >> { %9641 = vmatmul.mubr.msk.bf16.gmra.mrb[24].mxu1 %vm14773_vm14, %v5014_v30  ;;  %vm14781_vm14 = vmmov %vm14749_vm0 }
 0x4ca   : >> { %9713 = vmatmul.mubr.msk.bf16.gmra.mrb[8].mxu0 %vm14749_vm0, %v5531_v16  ;;  %9644 = vmatprep.mubr.msk.bf16.mxu1 %vm14774_vm7, %v5015_v1  ;;  %vm14782_vm7 = vmmov %vm14749_vm0 }
 0x4cb   : >> { %9716 = vmatprep.mubr.msk.bf16.mxu0 %vm14775_vm13, %v5532_v15  ;;  %vm14783_vm13 = vmmov %vm14749_vm0 }
 0x4d1   : >> { %9645 = vmatmul.mubr.msk.bf16.gmra.mrb[28].mxu1 %vm14776_vm3, %v5016_v46  ;;  %vm14784_vm3 = vmmov %vm14749_vm0 }
 0x4d2   : >> { %9717 = vmatmul.mubr.msk.bf16.gmra.mrb[12].mxu0 %vm14777_vm9, %v5533_v34  ;;  %9676 = vmatprep.mubr.msk.bf16.mxu1 %vm14778_vm8, %v4975_v47  ;;  %vm14785_vm9 = vmmov %vm14749_vm0 }
 0x4d3   : >> { %9720 = vmatprep.mubr.msk.bf16.mxu0 %vm14779_vm6, %v5534_v3  ;;  %vm14786_vm8 = vmmov %vm14749_vm0 }
 0x4d4   : >> { %vm14787_vm6 = vmmov %vm14749_vm0 }
 0x4d9   : >> { %9677 = vmatmul.mubr.msk.bf16.vlgmr.msra.gmra.mrb[16].mxu1 %vm14780_vm15, %v4976_v61  ;;  %vm14788_vm15 = vmmov %vm14749_vm0 }
 0x4da   : >> { %9721 = vmatmul.mubr.msk.bf16.gmra.mrb[16].mxu0 %vm14781_vm14, %v5535_v4  ;;  %9680 = vmatprep.mubr.msk.bf16.mxu1 %vm14749_vm0, %v4977_v23  ;;  %vm14789_vm14 = vmmov %vm14749_vm0 }
 0x4db   : >> { %9724 = vmatprep.mubr.msk.bf16.mxu0 %vm14782_vm7, %v5536_v56  ;;  %vm14790_vm7 = vmmov %vm14749_vm0 }
 0x4e1   : >> { %9681 = vmatmul.mubr.msk.bf16.gmra.mrb[20].mxu1 %vm14783_vm13, %v4978_v11  ;;  %vm14791_vm13 = vmmov %vm14749_vm0 }
 0x4e2   : >> { %9725 = vmatmul.mubr.msk.bf16.gmra.mrb[20].mxu0 %vm14784_vm3, %v5537_v35  ;;  %9684 = vmatprep.mubr.msk.bf16.mxu1 %vm14785_vm9, %v4979_v10  ;;  %vm14792_vm3 = vcmask 1040384  }
 0x4e3   : >> { %9728 = vmatprep.mubr.msk.bf16.mxu0 %vm14786_vm8, %v5538_v60  ;;  %vm14793_vm9 = vmmov %vm14792_vm3 }
 0x4e4   : >> { %vm14794_vm8 = vmmov %vm14792_vm3 }
 0x4e9   : >> { %9685 = vmatmul.mubr.msk.bf16.gmra.mrb[24].mxu1 %vm14787_vm6, %v4980_v6  ;;  %vm14795_vm6 = vmmov %vm14792_vm3 }
 0x4ea   : >> { %9729 = vmatmul.mubr.msk.bf16.gmra.mrb[24].mxu0 %vm14788_vm15, %v5539_v22  ;;  %9688 = vmatprep.mubr.msk.bf16.mxu1 %vm14789_vm14, %v4981_v39  ;;  %vm14797_vm15 = vmmov %vm14792_vm3 }
 0x4eb   : >> { %9732 = vmatprep.mubr.msk.bf16.mxu0 %vm14749_vm0, %v5540_v36  ;;  %vm14800_vm0 = vmmov %vm14792_vm3 }
 0x4f1   : >> { %9689 = vmatmul.mubr.msk.bf16.gmra.mrb[28].mxu1 %vm14790_vm7, %v4982_v50  ;;  %vm14801_vm7 = vmmov %vm14800_vm0 }
 0x4f2   : >> { %9733 = vmatmul.mubr.msk.bf16.gmra.mrb[28].mxu0 %vm14791_vm13, %v5541_v21 }
 0x56c   : >> { %v9618_v55 = vpop.f32.mrb[0].mxu1 }
 0x56d   : >> { %v5148_v43 = vpop.f32.mrb[1].mxu1 }
 0x56e   : >> { %v9619_v37 = vpop.f32.mrb[2].mxu1 }
 0x56f   : >> { %v5151_v51 = vpop.f32.mrb[3].mxu1 }
 0x574   : >> { %v9622_v18 = vpop.f32.mrb[4].mxu1 }
 0x575   : >> { %v5164_v45 = vpop.f32.mrb[5].mxu1 }
 0x576   : >> { %v9623_v25 = vpop.f32.mrb[6].mxu1 }
 0x577   : >> { %v5167_v54 = vpop.f32.mrb[7].mxu1 }
 0x57c   : >> { %v13010_v19 = vpop.f32.mrb[8].mxu1 }
 0x57d   : >> { %v13012_v9 = vpop.f32.mrb[9].mxu1 }
 0x57e   : >> { %v13014_v44 = vpop.f32.mrb[10].mxu1 }
 0x57f   : >> { %v13016_v62 = vpop.f32.mrb[11].mxu1 }
 0x584   : >> { %v13018_v14 = vpop.f32.mrb[12].mxu1 }
 0x585   : >> { %v13020_v26 = vpop.f32.mrb[13].mxu1 }
 0x586   : >> { %v13022_v20 = vpop.f32.mrb[14].mxu1 }
 0x587   : >> { %v13024_v27 = vpop.f32.mrb[15].mxu1 }
 0x58d   : >> { %v9706_v58 = vpop.f32.mrb[0].mxu0 }
 0x58e   : >> { %v10022_v17 = vadd.f32 %v9706_v58, %v9618_v55  ;;  %v5673_v59 = vpop.f32.mrb[1].mxu0  ;;  %v6017_v58 = vand.u32 31, %v13040_v33 }
 0x58f   : >> { %v10023_v38 = vadd.f32 %v5673_v59, %v5148_v43  ;;  %v9707_v28 = vpop.f32.mrb[2].mxu0 }
 0x590   : >> { %v5841_v13 = vadd.f32 %v10022_v17, %v13029_v49  ;;  %v10024_v31 = vadd.f32 %v9707_v28, %v9619_v37  ;;  %v5676_v0 = vpop.f32.mrb[3].mxu0  ;;  %v6073_v28 = vand.u32 31, %v13043_v40  ;;  %vm13120_vm14 = vcmp.eq.s32.totalorder %v6017_v58, 31 }
 0x591   : >> { %v5839_v41 = vadd.f32 %v10023_v38, %v13029_v49  ;;  %v10025_v63 = vadd.f32 %v5676_v0, %v5151_v51  ;;  %v6045_v38 = vand.u32 31, %v10975_v8 }
 0x592   : >> { %v5873_v48 = vmax.f32 %v5841_v13, 0.0  ;;  %v5842_v7 = vadd.f32 %v10024_v31, %v13029_v49 }
 0x593   : >> { %v13034_v32 = vmax.f32 %v5839_v41, 0.0  ;;  %v5840_v24 = vadd.f32 %v10025_v63, %v13029_v49  ;;  %vm13168_vm13 = vcmp.eq.s32.totalorder %v6045_v38, 31 }
 0x594   : >> { %v13037_v57 = vmax.f32 %v5842_v7, 0.0  ;;  %v6517_v42 = vrot.slane %v5873_v48, 1  ;;  %v6356_v1 = vrot.slane %v5873_v48, 7 }
 0x595   : >> { %v5872_v12 = vmax.f32 %v5840_v24, 0.0  ;;  %v9710_v30 = vpop.f32.mrb[4].mxu0  ;;  %v6514_v16 = vrot.slane %v13034_v32, 1  ;;  %v14530_v15 = vrot.slane %v13034_v32, 7 }
 0x596   : >> { %v10026_v46 = vadd.f32 %v9710_v30, %v9622_v18  ;;  %v5689_v34 = vpop.f32.mrb[5].mxu0  ;;  %v10490_v47 = vpack.i.bf16 %v13037_v57, %v5873_v48  ;;  %v6519_v3 = vrot.slane %v13037_v57, 1  ;;  %v6358_v61 = vrot.slane %v13037_v57, 7 }
 0x597   : >> { %v10027_v4 = vadd.f32 %v5689_v34, %v5164_v45  ;;  %v9711_v23 = vpop.f32.mrb[6].mxu0  ;;  %v10495_v56 = vpack.i.bf16 %v5872_v12, %v13034_v32  ;;  %v6515_v11 = vrot.slane %v5872_v12, 1  ;;  %v6354_v35 = vrot.slane %v5872_v12, 7 }
 0x598   : >> { %v5845_v10 = vadd.f32 %v10026_v46, %v13029_v49  ;;  %v10028_v60 = vadd.f32 %v9711_v23, %v9623_v25  ;;  %10491 = vrot.lane.b32.xlu0 %v10490_v47, %s10800_s29  ;;  %v5692_v6 = vpop.f32.mrb[7].mxu0  ;;  %v6520_v22 = vsel %vm3166_vm1, %v6517_v42, %v6519_v3  ;;  %v13057_v39 = vsel %vm14792_vm3, %v6356_v1, %v6358_v61  ;;  %vm14804_vm3 = vmmov %vm14800_vm0 }
 0x599   : >> { %v5843_v36 = vadd.f32 %v10027_v4, %v13029_v49  ;;  %v10029_v50 = vadd.f32 %v5692_v6, %v5167_v54  ;;  %v6516_v21 = vsel %vm3166_vm1, %v6514_v16, %v6515_v11  ;;  %v6518_v55 = vsel %vm3166_vm1, %v6515_v11, %v6517_v42 }
 0x59a   : >> { %v5877_v43 = vmax.f32 %v5845_v10, 0.0  ;;  %v5846_v37 = vadd.f32 %v10028_v60, %v13029_v49  ;;  %v10500_v51 = vpack.i.bf16 %v6518_v55, %v6516_v21  ;;  %v13064_v18 = vsel %vm14793_vm9, %v6354_v35, %v6356_v1  ;;  %v14796_v55 = vld [vmem:[#allocation12_spill] sm:$0xff]  ;;  %vm14805_vm9 = vmmov %vm14800_vm0 }
 0x59b   : >> { %v5875_v45 = vmax.f32 %v5843_v36, 0.0  ;;  %v5844_v25 = vadd.f32 %v10029_v50, %v13029_v49  ;;  %v13071_v54 = vsel %vm14794_vm8, %v14530_v15, %v6354_v35  ;;  %vm14806_vm8 = vmmov %vm14800_vm0 }
 0x59c   : >> { %v13073_v17 = vmax.f32 %v5846_v37, 0.0  ;;  %10496 = vrot.lane.b32.xlu0 %v10495_v56, %s10800_s29  ;;  %v6525_v59 = vrot.slane %v5877_v43, 1  ;;  %v6364_v41 = vrot.slane %v5877_v43, 7  ;;  %v13110_v37 = vadd.s32 216, %v10955_v2 }
 0x59d   : >> { %v5876_v13 = vmax.f32 %v5844_v25, 0.0  ;;  %v9714_v31 = vpop.f32.mrb[8].mxu0  ;;  %v6521_v0 = vrot.slane %v5875_v45, 1  ;;  %v6360_v63 = vrot.slane %v5875_v45, 7 }
 0x59e   : >> { %v10030_v48 = vadd.f32 %v9714_v31, %v13010_v19  ;;  %v5705_v7 = vpop.f32.mrb[9].mxu0  ;;  %v10505_v24 = vpack.i.bf16 %v13073_v17, %v5877_v43  ;;  %v6527_v42 = vrot.slane %v13073_v17, 1  ;;  %v6366_v33 = vrot.slane %v13073_v17, 7 }
 0x59f   : >> { %v10031_v12 = vadd.f32 %v5705_v7, %v13012_v9  ;;  %v9715_v30 = vpop.f32.mrb[10].mxu0  ;;  %v10510_v16 = vpack.i.bf16 %v5876_v13, %v5875_v45  ;;  %v6523_v1 = vrot.slane %v5876_v13, 1  ;;  %v6522_v46 = vsel %vm3166_vm1, %v6519_v3, %v6521_v0 }
 0x5a0   : >> { %v5849_v34 = vadd.f32 %v10030_v48, %v13029_v49  ;;  %v10032_v47 = vadd.f32 %v9715_v30, %v13014_v44  ;;  %10501 = vrot.lane.b32.xlu0 %v10500_v51, %s10801_s14  ;;  %10506 = vrot.lane.b32.xlu1 %v10505_v24, %s10800_s29  ;;  %v5708_v19 = vpop.f32.mrb[11].mxu0  ;;  %v6645_v4 = vsel %vm12726_vm5, 0.0, %v6522_v46  ;;  %v6528_v9 = vsel %vm3166_vm1, %v6525_v59, %v6527_v42 }
 0x5a1   : >> { %v5847_v23 = vadd.f32 %v10031_v12, %v13029_v49  ;;  %v10033_v56 = vadd.f32 %v5708_v19, %v13016_v62  ;;  %v6524_v3 = vsel %vm3166_vm1, %v6521_v0, %v6523_v1  ;;  %v6526_v11 = vsel %vm3166_vm1, %v6523_v1, %v6525_v59 }
 0x5a2   : >> { %v13095_v44 = vmax.f32 %v5849_v34, 0.0  ;;  %v5850_v35 = vadd.f32 %v10032_v47, %v13029_v49  ;;  %v10520_v10 = vpack.i.bf16 %v6526_v11, %v6524_v3  ;;  %v10515_v60 = vpack.i.bf16 %v6645_v4, %v6520_v22 }
 0x5a3   : >> { %v5879_v6 = vmax.f32 %v5847_v23, 0.0  ;;  %v5848_v36 = vadd.f32 %v10033_v56, %v13029_v49  ;;  %v6362_v50 = vrot.slane %v5876_v13, 7  ;;  %v13102_v21 = vsel %vm14795_vm6, %v6364_v41, %v6366_v33  ;;  %vm14807_vm6 = vmmov %vm14800_vm0 }
 0x5a4   : >> { %v13104_v62 = vmax.f32 %v5850_v35, 0.0  ;;  %10511 = vrot.lane.b32.xlu1 %v10510_v16, %s10800_s29  ;;  %10521 = vrot.lane.b32.xlu0 %v10520_v10, %s10801_s14  ;;  %v6101_v43 = vand.u32 31, %v14796_v55  ;;  %v13115_v22 = vsel %vm14797_vm15, %v6358_v61, %v6360_v63  ;;  %v6533_v59 = vrot.slane %v13095_v44, 1 }
 0x5a5   : >> { %v13117_v51 = vmax.f32 %v5848_v36, 0.0  ;;  %v9718_v45 = vpop.f32.mrb[12].mxu0  ;;  %v6529_v25 = vrot.slane %v5879_v6, 1  ;;  %v13125_v31 = vsel %vm14800_vm0, %v6362_v50, %v6364_v41  ;;  %v13132_v7 = vsel %vm14801_vm7, %v6360_v63, %v6362_v50  ;;  %vm14812_vm7 = vmmov %vm14800_vm0 }
 0x5a6   : >> { %v10034_v0 = vadd.f32 %v9718_v45, %v13018_v14  ;;  %v5721_v48 = vpop.f32.mrb[13].mxu0  ;;  %v10525_v57 = vpack.i.bf16 %v13104_v62, %v13095_v44  ;;  %v6535_v61 = vrot.slane %v13104_v62, 1  ;;  %v6368_v11 = vrot.slane %v5879_v6, 7 }
 0x5a7   : >> { %v10035_v24 = vadd.f32 %v5721_v48, %v13020_v26  ;;  %v9719_v58 = vpop.f32.mrb[14].mxu0  ;;  %v10530_v12 = vpack.i.bf16 %v13117_v51, %v5879_v6  ;;  %v6531_v30 = vrot.slane %v13117_v51, 1  ;;  %v6530_v41 = vsel %vm3166_vm1, %v6527_v42, %v6529_v25 }
 0x5a8   : >> { %v5853_v14 = vadd.f32 %v10034_v0, %v13029_v49  ;;  %v10036_v16 = vadd.f32 %v9719_v58, %v13022_v20  ;;  %10516 = vrot.lane.b32.xlu1 %v10515_v60, %s10801_s14  ;;  %v5724_v1 = vpop.f32.mrb[15].mxu0  ;;  %v6649_v63 = vsel %vm12747_vm10, 0.0, %v6530_v41  ;;  %v6536_v46 = vsel %vm3166_vm1, %v6533_v59, %v6535_v61 }
 0x5a9   : >> { %v5851_v26 = vadd.f32 %v10035_v24, %v13029_v49  ;;  %v10037_v34 = vadd.f32 %v5724_v1, %v13024_v27  ;;  %10531 = vrot.lane.b32.xlu0 %v10530_v12, %s10800_s29  ;;  %v6532_v42 = vsel %vm3166_vm1, %v6529_v25, %v6531_v30  ;;  %v6534_v47 = vsel %vm3166_vm1, %v6531_v30, %v6533_v59 }
 0x5aa   : >> { %v13149_v19 = vmax.f32 %v5853_v14, 0.0  ;;  %v5854_v20 = vadd.f32 %v10036_v16, %v13029_v49  ;;  %v10540_v4 = vpack.i.bf16 %v6534_v47, %v6532_v42  ;;  %v10535_v23 = vpack.i.bf16 %v6649_v63, %v6528_v9 }
 0x5ab   : >> { %v13152_v56 = vmax.f32 %v5851_v26, 0.0  ;;  %v5852_v3 = vadd.f32 %v10037_v34, %v13029_v49  ;;  %v6370_v35 = vrot.slane %v13117_v51, 7  ;;  %v6372_v36 = vrot.slane %v13095_v44, 7 }
 0x5ac   : >> { %v13156_v27 = vmax.f32 %v5854_v20, 0.0  ;;  %10526 = vrot.lane.b32.xlu1 %v10525_v57, %s10800_s29  ;;  %v9678_v10 = vpop.f32.mrb[16].mxu1  ;;  %v6541_v60 = vrot.slane %v13149_v19, 1  ;;  %v6374_v50 = vrot.slane %v13104_v62, 7  ;;  %v13175_v44 = vsel %vm14804_vm3, %v6366_v33, %v6368_v11 }
 0x5ad   : >> { %v13162_v45 = vmax.f32 %v5852_v3, 0.0  ;;  %10541 = vrot.lane.b32.xlu0 %v10540_v4, %s10801_s14  ;;  %v9722_v9 = vpop.f32.mrb[16].mxu0  ;;  %v5457_v25 = vpop.f32.mrb[17].mxu1  ;;  %v6537_v6 = vrot.slane %v13152_v56, 1  ;;  %v13178_v62 = vsel %vm14805_vm9, %v6368_v11, %v6370_v35  ;;  %v6380_v38 = vrot.slane %v13149_v19, 7  ;;  %vm14816_vm9 = vmmov %vm14800_vm0 }
 0x5ae   : >> { %v10038_v59 = vadd.f32 %v9722_v9, %v9678_v10  ;;  %v5737_v0 = vpop.f32.mrb[17].mxu0  ;;  %v9679_v48 = vpop.f32.mrb[18].mxu1  ;;  %v10545_v57 = vpack.i.bf16 %v13156_v27, %v13149_v19  ;;  %v6543_v24 = vrot.slane %v13156_v27, 1  ;;  %v13204_v10 = vsel %vm14806_vm8, %v6370_v35, %v6372_v36  ;;  %vm14817_vm8 = vmmov %vm14800_vm0 }
 0x5af   : >> { %v10039_v58 = vadd.f32 %v5737_v0, %v5457_v25  ;;  %v9723_v12 = vpop.f32.mrb[18].mxu0  ;;  %v5460_v30 = vpop.f32.mrb[19].mxu1  ;;  %v10550_v17 = vpack.i.bf16 %v13162_v45, %v13152_v56  ;;  %v6539_v33 = vrot.slane %v13162_v45, 1  ;;  %v6538_v41 = vsel %vm3166_vm1, %v6535_v61, %v6537_v6 }
 0x5b0   : >> { %v5857_v14 = vadd.f32 %v10038_v59, %v13029_v49  ;;  %v10040_v16 = vadd.f32 %v9723_v12, %v9679_v48  ;;  %10536 = vrot.lane.b32.xlu1 %v10535_v23, %s10801_s14  ;;  %v5740_v1 = vpop.f32.mrb[19].mxu0  ;;  %v6653_v63 = vsel %vm13120_vm14, 0.0, %v6538_v41  ;;  %v6544_v26 = vsel %vm3166_vm1, %v6541_v60, %v6543_v24  ;;  %vm14810_vm14 = vmmov %vm14800_vm0 }
 0x5b1   : >> { %v5855_v34 = vadd.f32 %v10039_v58, %v13029_v49  ;;  %v10041_v42 = vadd.f32 %v5740_v1, %v5460_v30  ;;  %10551 = vrot.lane.b32.xlu0 %v10550_v17, %s10800_s29  ;;  %v6540_v47 = vsel %vm3166_vm1, %v6537_v6, %v6539_v33  ;;  %v6542_v61 = vsel %vm3166_vm1, %v6539_v33, %v6541_v60 }
 0x5b2   : >> { %v13197_v20 = vmax.f32 %v5857_v14, 0.0  ;;  %v5858_v4 = vadd.f32 %v10040_v16, %v13029_v49  ;;  %v10560_v23 = vpack.i.bf16 %v6542_v61, %v6540_v47  ;;  %v10555_v3 = vpack.i.bf16 %v6653_v63, %v6536_v46 }
 0x5b3   : >> { %v13200_v11 = vmax.f32 %v5855_v34, 0.0  ;;  %v5856_v13 = vadd.f32 %v10041_v42, %v13029_v49  ;;  %v13207_v9 = vsel %vm14807_vm6, %v6372_v36, %v6374_v50  ;;  %v6376_v59 = vrot.slane %v13152_v56, 7 }
 0x5b4   : >> { %v13209_v25 = vmax.f32 %v5858_v4, 0.0  ;;  %10546 = vrot.lane.b32.xlu1 %v10545_v57, %s10800_s29  ;;  %v9682_v60 = vpop.f32.mrb[20].mxu1  ;;  %v6549_v6 = vrot.slane %v13197_v20, 1  ;;  %v6378_v46 = vrot.slane %v13162_v45, 7  ;;  %vm13221_vm15 = vcmp.eq.s32.totalorder %v6073_v28, 31 }
 0x5b5   : >> { %v13215_v0 = vmax.f32 %v5856_v13, 0.0  ;;  %10561 = vrot.lane.b32.xlu0 %v10560_v23, %s10801_s14  ;;  %v9726_v35 = vpop.f32.mrb[20].mxu0  ;;  %v5473_v48 = vpop.f32.mrb[21].mxu1  ;;  %v6545_v36 = vrot.slane %v13200_v11, 1  ;;  %v6382_v57 = vrot.slane %v13156_v27, 7  ;;  %v6384_v56 = vrot.slane %v13200_v11, 7 }
 0x5b6   : >> { %v10042_v12 = vadd.f32 %v9726_v35, %v9682_v60  ;;  %v5753_v45 = vpop.f32.mrb[21].mxu0  ;;  %v9683_v30 = vpop.f32.mrb[22].mxu1  ;;  %v10565_v17 = vpack.i.bf16 %v13209_v25, %v13197_v20  ;;  %v6551_v33 = vrot.slane %v13209_v25, 1  ;;  %v13231_v41 = vsel %vm14810_vm14, %v6374_v50, %v6376_v59  ;;  %vm14821_vm14 = vmmov %vm14800_vm0 }
 0x5b7   : >> { %v10043_v40 = vadd.f32 %v5753_v45, %v5473_v48  ;;  %v9727_v28 = vpop.f32.mrb[22].mxu0  ;;  %v5476_v14 = vpop.f32.mrb[23].mxu1  ;;  %v10570_v16 = vpack.i.bf16 %v13215_v0, %v13200_v11  ;;  %v6547_v27 = vrot.slane %v13215_v0, 1  ;;  %v6546_v1 = vsel %vm3166_vm1, %v6543_v24, %v6545_v36 }
 0x5b8   : >> { %v5861_v63 = vadd.f32 %v10042_v12, %v13029_v49  ;;  %v10044_v34 = vadd.f32 %v9727_v28, %v9683_v30  ;;  %10556 = vrot.lane.b32.xlu1 %v10555_v3, %s10801_s14  ;;  %v5756_v42 = vpop.f32.mrb[23].mxu0  ;;  %v6657_v50 = vsel %vm13168_vm13, 0.0, %v6546_v1  ;;  %v6552_v47 = vsel %vm3166_vm1, %v6549_v6, %v6551_v33  ;;  %vm14813_vm13 = vmmov %vm14800_vm0 }
 0x5b9   : >> { %v5859_v61 = vadd.f32 %v10043_v40, %v13029_v49  ;;  %v10045_v4 = vadd.f32 %v5756_v42, %v5476_v14  ;;  %10571 = vrot.lane.b32.xlu0 %v10570_v16, %s10800_s29  ;;  %v6548_v23 = vsel %vm3166_vm1, %v6545_v36, %v6547_v27  ;;  %v6550_v24 = vsel %vm3166_vm1, %v6547_v27, %v6549_v6  ;;  %v14811_v36 = vld [vmem:[#allocation13_spill] sm:$0xff] }
 0x5ba   : >> { %v13246_v13 = vmax.f32 %v5861_v63, 0.0  ;;  %v5862_v60 = vadd.f32 %v10044_v34, %v13029_v49  ;;  %v10580_v3 = vpack.i.bf16 %v6550_v24, %v6548_v23  ;;  %v10575_v35 = vpack.i.bf16 %v6657_v50, %v6544_v26 }
 0x5bb   : >> { %v13249_v48 = vmax.f32 %v5859_v61, 0.0  ;;  %v5860_v51 = vadd.f32 %v10045_v4, %v13029_v49  ;;  %v6129_v12 = vand.u32 31, %v13110_v37  ;;  %v13254_v45 = vsel %vm14800_vm0, %v6376_v59, %v6378_v46 }
 0x5bc   : >> { %v13256_v30 = vmax.f32 %v5862_v60, 0.0  ;;  %10566 = vrot.lane.b32.xlu1 %v10565_v17, %s10800_s29  ;;  %v9686_v6 = vpop.f32.mrb[24].mxu1  ;;  %v13263_v26 = vsel %vm14812_vm7, %v6378_v46, %v6380_v38  ;;  %v13268_v28 = vsel %vm14813_vm13, %v6380_v38, %v6382_v57  ;;  %v6557_v16 = vrot.slane %v13246_v13, 1  ;;  %vm14822_vm7 = vmmov %vm14800_vm0 }
 0x5bd   : >> { %v13270_v37 = vmax.f32 %v5860_v51, 0.0  ;;  %10581 = vrot.lane.b32.xlu0 %v10580_v3, %s10801_s14  ;;  %v9730_v59 = vpop.f32.mrb[24].mxu0  ;;  %v5489_v14 = vpop.f32.mrb[25].mxu1  ;;  %v6553_v17 = vrot.slane %v13249_v48, 1  ;;  %vm13277_vm3 = vcmp.eq.s32.totalorder %v6101_v43, 31  ;;  %v13284_v19 = vsel %vm14816_vm9, %v6382_v57, %v6384_v56  ;;  %vm14827_vm9 = vmmov %vm14800_vm0 }
 0x5be   : >> { %v10046_v38 = vadd.f32 %v9730_v59, %v9686_v6  ;;  %v5769_v27 = vpop.f32.mrb[25].mxu0  ;;  %v9687_v1 = vpop.f32.mrb[26].mxu1  ;;  %v10585_v63 = vpack.i.bf16 %v13256_v30, %v13246_v13  ;;  %v6559_v34 = vrot.slane %v13256_v30, 1  ;;  %v6386_v42 = vrot.slane %v13215_v0, 7 }
 0x5bf   : >> { %v10047_v50 = vadd.f32 %v5769_v27, %v5489_v14  ;;  %v9731_v43 = vpop.f32.mrb[26].mxu0  ;;  %v5492_v61 = vpop.f32.mrb[27].mxu1  ;;  %v10590_v4 = vpack.i.bf16 %v13270_v37, %v13249_v48  ;;  %v6555_v23 = vrot.slane %v13270_v37, 1  ;;  %v6554_v57 = vsel %vm3166_vm1, %v6551_v33, %v6553_v17 }
 0x5c0   : >> { %v5865_v24 = vadd.f32 %v10046_v38, %v13029_v49  ;;  %v10048_v60 = vadd.f32 %v9731_v43, %v9687_v1  ;;  %10576 = vrot.lane.b32.xlu1 %v10575_v35, %s10801_s14  ;;  %v5772_v3 = vpop.f32.mrb[27].mxu0  ;;  %v6661_v51 = vsel %vm13221_vm15, 0.0, %v6554_v57  ;;  %v6560_v0 = vsel %vm3166_vm1, %v6557_v16, %v6559_v34  ;;  %vm14820_vm15 = vmmov %vm14800_vm0 }
 0x5c1   : >> { %v5863_v6 = vadd.f32 %v10047_v50, %v13029_v49  ;;  %v10049_v59 = vadd.f32 %v5772_v3, %v5492_v61  ;;  %10591 = vrot.lane.b32.xlu0 %v10590_v4, %s10800_s29  ;;  %v6556_v14 = vsel %vm3166_vm1, %v6553_v17, %v6555_v23  ;;  %v6558_v33 = vsel %vm3166_vm1, %v6555_v23, %v6557_v16 }
 0x5c2   : >> { %v13303_v27 = vmax.f32 %v5865_v24, 0.0  ;;  %v5866_v38 = vadd.f32 %v10048_v60, %v13029_v49  ;;  %v10600_v35 = vpack.i.bf16 %v6558_v33, %v6556_v14  ;;  %v10595_v1 = vpack.i.bf16 %v6661_v51, %v6552_v47 }
 0x5c3   : >> { %v13306_v43 = vmax.f32 %v5863_v6, 0.0  ;;  %v5864_v58 = vadd.f32 %v10049_v59, %v13029_v49  ;;  %v13312_v50 = vsel %vm14817_vm8, %v6384_v56, %v6386_v42  ;;  %v6388_v61 = vrot.slane %v13197_v20, 7  ;;  %vm14828_vm8 = vmmov %vm14800_vm0 }
 0x5c4   : >> { %v13315_v17 = vmax.f32 %v5866_v38, 0.0  ;;  %10586 = vrot.lane.b32.xlu1 %v10585_v63, %s10800_s29  ;;  %v9690_v16 = vpop.f32.mrb[28].mxu1  ;;  %v6565_v4 = vrot.slane %v13303_v27, 1  ;;  %v6390_v47 = vrot.slane %v13209_v25, 7  ;;  %v6392_v23 = vrot.slane %v13249_v48, 7 }
 0x5c5   : >> { %v13321_v57 = vmax.f32 %v5864_v58, 0.0  ;;  %10601 = vrot.lane.b32.xlu0 %v10600_v35, %s10801_s14  ;;  %v9734_v11 = vpop.f32.mrb[28].mxu0  ;;  %v5505_v56 = vpop.f32.mrb[29].mxu1  ;;  %v6561_v24 = vrot.slane %v13306_v43, 1  ;;  %vm13325_vm6 = vcmp.eq.s32.totalorder %v6129_v12, 31  ;;  %v13330_v63 = vsel %vm14820_vm15, %v6386_v42, %v6388_v61  ;;  %vm14830_vm15 = vmmov %vm14800_vm0 }
 0x5c6   : >> { %v6394_v60 = vrot.slane %v13270_v37, 7  ;;  %v10050_v25 = vadd.f32 %v9734_v11, %v9690_v16  ;;  %v5785_v3 = vpop.f32.mrb[29].mxu0  ;;  %v9691_v48 = vpop.f32.mrb[30].mxu1  ;;  %v10605_v51 = vpack.i.bf16 %v13315_v17, %v13303_v27  ;;  %v6567_v6 = vrot.slane %v13315_v17, 1 }
 0x5c7   : >> { %v13337_v59 = vsel %vm14821_vm14, %v6388_v61, %v6390_v47  ;;  %v10051_v12 = vadd.f32 %v5785_v3, %v5505_v56  ;;  %v9735_v14 = vpop.f32.mrb[30].mxu0  ;;  %v5508_v33 = vpop.f32.mrb[31].mxu1  ;;  %v10610_v42 = vpack.i.bf16 %v13321_v57, %v13306_v43  ;;  %v6563_v38 = vrot.slane %v13321_v57, 1  ;;  %vm14831_vm14 = vmmov %vm14800_vm0 }
 0x5c8   : >> { %v6562_v37 = vsel %vm3166_vm1, %v6559_v34, %v6561_v24  ;;  %v5869_v35 = vadd.f32 %v10050_v25, %v13029_v49  ;;  %v10052_v58 = vadd.f32 %v9735_v14, %v9691_v48  ;;  %10596 = vrot.lane.b32.xlu1 %v10595_v1, %s10801_s14  ;;  %v5788_v16 = vpop.f32.mrb[31].mxu0  ;;  %v6568_v11 = vsel %vm3166_vm1, %v6565_v4, %v6567_v6 }
 0x5c9   : >> { %v6665_v61 = vsel %vm13277_vm3, 0.0, %v6562_v37  ;;  %v5867_v56 = vadd.f32 %v10051_v12, %v13029_v49  ;;  %v10053_v3 = vadd.f32 %v5788_v16, %v5508_v33  ;;  %10611 = vrot.lane.b32.xlu0 %v10610_v42, %s10800_s29  ;;  %v6564_v15 = vsel %vm3166_vm1, %v6561_v24, %v6563_v38  ;;  %vm14826_vm3 = vmmov %vm14800_vm0 }
 0x5ca   : >> { %v6566_v34 = vsel %vm3166_vm1, %v6563_v38, %v6565_v4  ;;  %v5901_v40 = vmax.f32 %v5869_v35, 0.0  ;;  %v5870_v25 = vadd.f32 %v10052_v58, %v13029_v49  ;;  %v10615_v1 = vpack.i.bf16 %v6665_v61, %v6560_v0 }
 0x5cb   : >> { %v10620_v48 = vpack.i.bf16 %v6566_v34, %v6564_v15  ;;  %v5899_v14 = vmax.f32 %v5867_v56, 0.0  ;;  %v5868_v46 = vadd.f32 %v10053_v3, %v13029_v49  ;;  %v13355_v37 = vsel %vm14800_vm0, %v6390_v47, %v6392_v23 }
 0x5cc   : >> { %v13358_v12 = vsel %vm14822_vm7, %v6392_v23, %v6394_v60  ;;  %v5902_v33 = vmax.f32 %v5870_v25, 0.0  ;;  %10606 = vrot.lane.b32.xlu1 %v10605_v51, %s10800_s29  ;;  %v6573_v24 = vrot.slane %v5901_v40, 1  ;;  %v14823_v4 = vand.u32 31, %v14811_v36  ;;  %vm14832_vm7 = vmmov %vm14800_vm0 }
 0x5cd   : >> { %v6396_v15 = vrot.slane %v13246_v13, 7  ;;  %v5900_v0 = vmax.f32 %v5868_v46, 0.0  ;;  %10621 = vrot.lane.b32.xlu0 %v10620_v48, %s10801_s14  ;;  %v6569_v49 = vrot.slane %v5899_v14, 1  ;;  %v6398_v47 = vrot.slane %v13256_v30, 7 }
 0x5ce   : >> { %vm13363_vm13 = vcmp.eq.s32.totalorder %v14823_v4, 31  ;;  %v6400_v23 = vrot.slane %v13306_v43, 7  ;;  %v10625_v38 = vpack.i.bf16 %v5902_v33, %v5901_v40  ;;  %v6575_v35 = vrot.slane %v5902_v33, 1 }
 0x5cf   : >> { %v13372_v51 = vsel %vm14826_vm3, %v6394_v60, %v6396_v15  ;;  %v6402_v58 = vrot.slane %v13321_v57, 7  ;;  %v10630_v16 = vpack.i.bf16 %v5900_v0, %v5899_v14  ;;  %v6571_v61 = vrot.slane %v5900_v0, 1  ;;  %vm14834_vm3 = vmmov %vm14800_vm0 }
 0x5d0   : >> { %v6570_v56 = vsel %vm3166_vm1, %v6567_v6, %v6569_v49  ;;  %v13377_v13 = vsel %vm14827_vm9, %v6396_v15, %v6398_v47  ;;  %10616 = vrot.lane.b32.xlu1 %v10615_v1, %s10801_s14  ;;  %v6576_v43 = vsel %vm3166_vm1, %v6573_v24, %v6575_v35  ;;  %v6609_v3 = vsel %vm3166_vm1, %v6575_v35, 0.0  ;;  %vm14836_vm9 = vmmov %vm14800_vm0 }
 0x5d1   : >> { %v6669_v30 = vsel %vm13325_vm6, 0.0, %v6570_v56  ;;  %v13385_v60 = vsel %vm14828_vm8, %v6398_v47, %v6400_v23  ;;  %10631 = vrot.lane.b32.xlu0 %v10630_v16, %s10800_s29  ;;  %v6572_v57 = vsel %vm3166_vm1, %v6569_v49, %v6571_v61  ;;  %v6574_v6 = vsel %vm3166_vm1, %v6571_v61, %v6573_v24  ;;  %vm14829_vm6 = vmmov %vm14800_vm0 }
 0x5d2   : >> { %v10635_v34 = vpack.i.bf16 %v6669_v30, %v6568_v11  ;;  %v6673_v25 = vsel %vm13363_vm13, 0.0, %v6609_v3  ;;  %v10640_v48 = vpack.i.bf16 %v6574_v6, %v6572_v57  ;;  %v13393_v1 = vsel %vm14829_vm6, %v6400_v23, %v6402_v58  ;;  %vm14833_vm13 = vmmov %vm14800_vm0 }
 0x5d3   : >> { %v10645_v20 = vpack.i.bf16 %v6673_v25, %v6576_v43  ;;  %v6404_v46 = vrot.slane %v13303_v27, 7  ;;  %v6406_v4 = vrot.slane %v13315_v17, 7  ;;  %v6408_v15 = vrot.slane %v5899_v14, 7 }
 0x5d4   : >> { %v6410_v47 = vrot.slane %v5900_v0, 7  ;;  %10626 = vrot.lane.b32.xlu1 %v10625_v38, %s10800_s29  ;;  %v6412_v49 = vrot.slane %v5901_v40, 7  ;;  %v6414_v35 = vrot.slane %v5902_v33, 7  ;;  %v14835_v0 = vrot.slane %v13034_v32, 7 }
 0x5d5   : >> { %10641 = vrot.lane.b32.xlu0 %v10640_v48, %s10801_s14  ;;  %v13400_v11 = vsel %vm14830_vm15, %v6402_v58, %v6404_v46  ;;  %v13403_v24 = vsel %vm14831_vm14, %v6404_v46, %v6406_v4  ;;  %v13406_v42 = vsel %vm14800_vm0, %v6406_v4, %v6408_v15  ;;  %vm14837_vm8 = vcmask 785408  }
 0x5d6   : >> { %v13409_v27 = vsel %vm14832_vm7, %v6408_v15, %v6410_v47  ;;  %v13412_v17 = vsel %vm14833_vm13, %v6410_v47, %v6412_v49  ;;  %v13415_v40 = vsel %vm14834_vm3, %v6412_v49, %v6414_v35  ;;  %v6448_v23 = vsel %vm14836_vm9, 0.0, %v14835_v0  ;;  %v14838_v35 = vld [vmem:[#allocation14_spill] sm:$0xff]  ;;  %vm14841_vm15 = vmmov %vm14837_vm8 }
 0x5d7   : >> { %v6481_v56 = vsel %vm12764_vm11, 0.0, %v6448_v23  ;;  %vm14842_vm14 = vmmov %vm14837_vm8 }
 0x5d8   : >> { %10636 = vrot.lane.b32.xlu1 %v10635_v34, %s10801_s14  ;;  %vm14845_vm7 = vmmov %vm14837_vm8 }
 0x5d9   : >> { %vm14847_vm13 = vmmov %vm14845_vm7 }
 0x5da   : >> { %vm14850_vm9 = vmmov %vm14845_vm7 }
 0x5dc   : >> { %10646 = vrot.lane.b32.xlu1 %v10645_v20, %s10801_s14 }
 0x60a   : >> { %v10492_v14 = vpop.permute.xlu0 %10491 }
 0x60b   : >> { %v10494_v47 = vunpack.i.h.bf16 %v10492_v14  ;;  %v10493_v49 = vunpack.i.l.bf16 %v10492_v14 }
 0x60e   : >> { %v10497_v33 = vpop.permute.xlu0 %10496 }
 0x60f   : >> { %v10499_v38 = vunpack.i.h.bf16 %v10497_v33  ;;  %v10498_v58 = vunpack.i.l.bf16 %v10497_v33  ;;  %v5996_v33 = vand.u32 31, %v14838_v35 }
 0x611   : >> { %v6899_v3 = vsel %vm3551_vm2, %v6481_v56, %v10498_v58  ;;  %v6900_v57 = vsel %vm3551_vm2, %v13071_v54, %v10499_v38  ;;  %v6485_v54 = vsel %vm12789_vm12, 0.0, %v13115_v22  ;;  %v6901_v22 = vsel %vm3551_vm2, %v13064_v18, %v10493_v49 }
 0x612   : >> { %v10502_v16 = vpop.permute.xlu0 %10501  ;;  %v10507_v61 = vpop.permute.xlu1 %10506  ;;  %vm13449_vm6 = vcmp.eq.s32.totalorder %v5996_v33, 0 }
 0x613   : >> { %v10504_v30 = vunpack.i.h.bf16 %v10502_v16  ;;  %v10503_v43 = vunpack.i.l.bf16 %v10502_v16  ;;  %v6489_v18 = vsel %vm13449_vm6, 0.0, %v13175_v44 }
 0x615   : >> { %v6932_v6 = vsel %vm3584_vm4, %v6899_v3, %v10503_v43  ;;  %v6933_v32 = vsel %vm3584_vm4, %v6900_v57, %v10504_v30  ;;  %v5916_v3 = vadd.s32 96, %v10955_v2  ;;  %v6902_v57 = vsel %vm3551_vm2, %v13057_v39, %v10494_v47 }
 0x616   : >> { %v6964_v34 = vpack.c.bf16 %v6933_v32, %v6932_v6  ;;  %v10512_v25 = vpop.permute.xlu1 %10511  ;;  %v10522_v48 = vpop.permute.xlu0 %10521 }
 0x617   : >> { %v10514_v20 = vunpack.i.h.bf16 %v10512_v25  ;;  %v10513_v46 = vunpack.i.l.bf16 %v10512_v25  ;;  %v10524_v4 = vunpack.i.h.bf16 %v10522_v48  ;;  %v10523_v15 = vunpack.i.l.bf16 %v10522_v48 }
 0x618   : >> { %6984 = vst.msk [vmem:[%s13431_s30] sm:$0xff] %vm14837_vm8, %v6964_v34  ;;  %v6024_v39 = vand.u32 31, %v5916_v3  ;;  %vm14851_vm8 = vmmov %vm14845_vm7 }
 0x619   : >> { %v6903_v0 = vsel %vm3551_vm2, %v6485_v54, %v10513_v46  ;;  %v6904_v23 = vsel %vm3551_vm2, %v13132_v7, %v10514_v20 }
 0x61a   : >> { %v6936_v14 = vsel %vm3584_vm4, %v6903_v0, %v10523_v15  ;;  %v6937_v38 = vsel %vm3584_vm4, %v6904_v23, %v10524_v4  ;;  %v10517_v58 = vpop.permute.xlu1 %10516  ;;  %v10509_v4 = vunpack.i.h.bf16 %v10507_v61  ;;  %v10508_v15 = vunpack.i.l.bf16 %v10507_v61 }
 0x61b   : >> { %v6966_v16 = vpack.c.bf16 %v6937_v38, %v6936_v14  ;;  %v10519_v56 = vunpack.i.h.bf16 %v10517_v58  ;;  %v10518_v30 = vunpack.i.l.bf16 %v10517_v58  ;;  %v10532_v43 = vpop.permute.xlu0 %10531  ;;  %vm13471_vm0 = vcmp.eq.s32.totalorder %v6024_v39, 0 }
 0x61c   : >> { %v10534_v34 = vunpack.i.h.bf16 %v10532_v43  ;;  %v10533_v25 = vunpack.i.l.bf16 %v10532_v43  ;;  %v6905_v61 = vsel %vm3551_vm2, %v13125_v31, %v10508_v15  ;;  %v6493_v31 = vsel %vm13471_vm0, 0.0, %v13231_v41 }
 0x61d   : >> { %6986 = vst.msk [vmem:[%s13431_s30 + $0x10] sm:$0xff] %vm14841_vm15, %v6966_v16  ;;  %v6935_v6 = vsel %vm3584_vm4, %v6902_v57, %v10519_v56  ;;  %v6934_v32 = vsel %vm3584_vm4, %v6901_v22, %v10518_v30  ;;  %v6906_v16 = vsel %vm3551_vm2, %v13102_v21, %v10509_v4  ;;  %v14846_v21 = vld [vmem:[#allocation15_spill] sm:$0xff]  ;;  %vm14854_vm15 = vmmov %vm14845_vm7 }
 0x61e   : >> { %v6965_v48 = vpack.c.bf16 %v6935_v6, %v6934_v32  ;;  %v10527_v20 = vpop.permute.xlu1 %10526  ;;  %v6907_v54 = vsel %vm3551_vm2, %v6489_v18, %v10533_v25  ;;  %v6908_v35 = vsel %vm3551_vm2, %v13178_v62, %v10534_v34  ;;  %v6052_v6 = vand.u32 31, %v14846_v21 }
 0x61f   : >> { %v10542_v46 = vpop.permute.xlu0 %10541  ;;  %v10529_v32 = vunpack.i.h.bf16 %v10527_v20  ;;  %v10528_v34 = vunpack.i.l.bf16 %v10527_v20  ;;  %v5924_v20 = vadd.s32 160, %v10955_v2 }
 0x620   : >> { %6985 = vst.msk [vmem:[%s13431_s30 + $0x8] sm:$0xff] %vm14842_vm14, %v6965_v48  ;;  %v10544_v47 = vunpack.i.h.bf16 %v10542_v46  ;;  %v10543_v49 = vunpack.i.l.bf16 %v10542_v46  ;;  %vm13495_vm3 = vcmp.eq.s32.totalorder %v6052_v6, 0  ;;  %vm14856_vm14 = vmmov %vm14845_vm7 }
 0x622   : >> { %v6940_v33 = vsel %vm3584_vm4, %v6907_v54, %v10543_v49  ;;  %v6941_v0 = vsel %vm3584_vm4, %v6908_v35, %v10544_v47  ;;  %v10537_v23 = vpop.permute.xlu1 %10536  ;;  %v6909_v35 = vsel %vm3551_vm2, %v13204_v10, %v10528_v34  ;;  %v6497_v10 = vsel %vm13495_vm3, 0.0, %v13284_v19 }
 0x623   : >> { %v6968_v44 = vpack.c.bf16 %v6941_v0, %v6940_v33  ;;  %v10539_v14 = vunpack.i.h.bf16 %v10537_v23  ;;  %v10538_v38 = vunpack.i.l.bf16 %v10537_v23  ;;  %v10552_v58 = vpop.permute.xlu0 %10551  ;;  %v6910_v33 = vsel %vm3551_vm2, %v13207_v9, %v10529_v32 }
 0x624   : >> { %v10554_v43 = vunpack.i.h.bf16 %v10552_v58  ;;  %v10553_v3 = vunpack.i.l.bf16 %v10552_v58  ;;  %v6080_v9 = vand.u32 31, %v5924_v20 }
 0x625   : >> { %6988 = vst.msk [vmem:[%s13431_s30 + $0x20] sm:$0xff] %vm14845_vm7, %v6968_v44  ;;  %v6939_v62 = vsel %vm3584_vm4, %v6906_v16, %v10539_v14  ;;  %v6938_v30 = vsel %vm3584_vm4, %v6905_v61, %v10538_v38 }
 0x626   : >> { %v6967_v22 = vpack.c.bf16 %v6939_v62, %v6938_v30  ;;  %v10547_v57 = vpop.permute.xlu1 %10546  ;;  %v6911_v18 = vsel %vm3551_vm2, %v6493_v31, %v10553_v3  ;;  %v6912_v46 = vsel %vm3551_vm2, %v13254_v45, %v10554_v43  ;;  %vm13517_vm6 = vcmp.eq.s32.totalorder %v6080_v9, 0 }
 0x627   : >> { %v10562_v7 = vpop.permute.xlu0 %10561  ;;  %v10549_v16 = vunpack.i.h.bf16 %v10547_v57  ;;  %v10548_v56 = vunpack.i.l.bf16 %v10547_v57 }
 0x628   : >> { %6987 = vst.msk [vmem:[%s13431_s30 + $0x18] sm:$0xff] %vm14847_vm13, %v6967_v22  ;;  %v10564_v25 = vunpack.i.h.bf16 %v10562_v7  ;;  %v10563_v48 = vunpack.i.l.bf16 %v10562_v7  ;;  %vm14859_vm13 = vmmov %vm14845_vm7 }
 0x629   : >> { %v6913_v57 = vsel %vm3551_vm2, %v13263_v26, %v10548_v56  ;;  %v6914_v34 = vsel %vm3551_vm2, %v13268_v28, %v10549_v16  ;;  %v6501_v26 = vsel %vm13517_vm6, 0.0, %v13355_v37  ;;  %v14855_v28 = vld [vmem:[#allocation18_spill] sm:$0xff]  ;;  %vm14864_vm6 = vmmov %vm14845_vm7 }
 0x62a   : >> { %v6944_v39 = vsel %vm3584_vm4, %v6911_v18, %v10563_v48  ;;  %v6945_v4 = vsel %vm3584_vm4, %v6912_v46, %v10564_v25  ;;  %v10557_v41 = vpop.permute.xlu1 %10556 }
 0x62b   : >> { %v6970_v15 = vpack.c.bf16 %v6945_v4, %v6944_v39  ;;  %v10559_v47 = vunpack.i.h.bf16 %v10557_v41  ;;  %v10558_v49 = vunpack.i.l.bf16 %v10557_v41  ;;  %v10572_v54 = vpop.permute.xlu0 %10571 }
 0x62c   : >> { %v10574_v44 = vunpack.i.h.bf16 %v10572_v54  ;;  %v10573_v14 = vunpack.i.l.bf16 %v10572_v54 }
 0x62d   : >> { %6990 = vst.msk [vmem:[%s13431_s30 + $0x30] sm:$0xff] %vm14850_vm9, %v6970_v15  ;;  %v6943_v0 = vsel %vm3584_vm4, %v6910_v33, %v10559_v47  ;;  %v6942_v23 = vsel %vm3584_vm4, %v6909_v35, %v10558_v49  ;;  %v6108_v15 = vand.u32 31, %v14855_v28  ;;  %vm14862_vm9 = vmmov %vm14845_vm7 }
 0x62e   : >> { %v6969_v38 = vpack.c.bf16 %v6943_v0, %v6942_v23  ;;  %v10567_v58 = vpop.permute.xlu1 %10566  ;;  %v6915_v43 = vsel %vm3551_vm2, %v6497_v10, %v10573_v14  ;;  %v6916_v3 = vsel %vm3551_vm2, %v13312_v50, %v10574_v44 }
 0x62f   : >> { %v10582_v61 = vpop.permute.xlu0 %10581  ;;  %v10569_v47 = vunpack.i.h.bf16 %v10567_v58  ;;  %v10568_v49 = vunpack.i.l.bf16 %v10567_v58  ;;  %v5932_v58 = vadd.s32 224, %v10955_v2  ;;  %vm13541_vm0 = vcmp.eq.s32.totalorder %v6108_v15, 0 }
 0x630   : >> { %6989 = vst.msk [vmem:[%s13431_s30 + $0x28] sm:$0xff] %vm14851_vm8, %v6969_v38  ;;  %v10584_v62 = vunpack.i.h.bf16 %v10582_v61  ;;  %v10583_v30 = vunpack.i.l.bf16 %v10582_v61  ;;  %vm14863_vm8 = vmmov %vm14845_vm7 }
 0x631   : >> { %v6917_v10 = vsel %vm3551_vm2, %v13330_v63, %v10568_v49  ;;  %v6918_v61 = vsel %vm3551_vm2, %v13337_v59, %v10569_v47  ;;  %v6505_v63 = vsel %vm13541_vm0, 0.0, %v13385_v60  ;;  %v6136_v59 = vand.u32 31, %v5932_v58 }
 0x632   : >> { %v6948_v22 = vsel %vm3584_vm4, %v6915_v43, %v10583_v30  ;;  %v6949_v31 = vsel %vm3584_vm4, %v6916_v3, %v10584_v62  ;;  %v10577_v7 = vpop.permute.xlu1 %10576 }
 0x633   : >> { %v6972_v19 = vpack.c.bf16 %v6949_v31, %v6948_v22  ;;  %v10579_v21 = vunpack.i.h.bf16 %v10577_v7  ;;  %v10578_v6 = vunpack.i.l.bf16 %v10577_v7  ;;  %v10592_v32 = vpop.permute.xlu0 %10591  ;;  %vm13563_vm3 = vcmp.eq.s32.totalorder %v6136_v59, 0 }
 0x634   : >> { %v10594_v18 = vunpack.i.h.bf16 %v10592_v32  ;;  %v10593_v46 = vunpack.i.l.bf16 %v10592_v32 }
 0x635   : >> { %6992 = vst.msk [vmem:[%s13431_s30 + $0x40] sm:$0xff] %vm14854_vm15, %v6972_v19  ;;  %v6947_v50 = vsel %vm3584_vm4, %v6914_v34, %v10579_v21  ;;  %v6946_v48 = vsel %vm3584_vm4, %v6913_v57, %v10578_v6  ;;  %vm14865_vm15 = vmmov %vm14864_vm6 }
 0x636   : >> { %v6971_v39 = vpack.c.bf16 %v6947_v50, %v6946_v48  ;;  %v10587_v4 = vpop.permute.xlu1 %10586  ;;  %v6919_v35 = vsel %vm3551_vm2, %v6501_v26, %v10593_v46  ;;  %v6920_v33 = vsel %vm3551_vm2, %v13358_v12, %v10594_v18 }
 0x637   : >> { %v10602_v41 = vpop.permute.xlu0 %10601  ;;  %v10589_v22 = vunpack.i.h.bf16 %v10587_v4  ;;  %v10588_v31 = vunpack.i.l.bf16 %v10587_v4 }
 0x638   : >> { %6991 = vst.msk [vmem:[%s13431_s30 + $0x38] sm:$0xff] %vm14856_vm14, %v6971_v39  ;;  %v10604_v54 = vunpack.i.h.bf16 %v10602_v41  ;;  %v10603_v20 = vunpack.i.l.bf16 %v10602_v41  ;;  %vm14866_vm14 = vmmov %vm14864_vm6 }
 0x639   : >> { %v6921_v18 = vsel %vm3551_vm2, %v13372_v51, %v10588_v31  ;;  %v6922_v46 = vsel %vm3551_vm2, %v13377_v13, %v10589_v22  ;;  %v6509_v51 = vsel %vm13563_vm3, 0.0, %v13406_v42 }
 0x63a   : >> { %v6952_v45 = vsel %vm3584_vm4, %v6919_v35, %v10603_v20  ;;  %v6953_v0 = vsel %vm3584_vm4, %v6920_v33, %v10604_v54  ;;  %v10597_v37 = vpop.permute.xlu1 %10596 }
 0x63b   : >> { %v6974_v23 = vpack.c.bf16 %v6953_v0, %v6952_v45  ;;  %v10599_v44 = vunpack.i.h.bf16 %v10597_v37  ;;  %v10598_v14 = vunpack.i.l.bf16 %v10597_v37  ;;  %v10612_v38 = vpop.permute.xlu0 %10611 }
 0x63c   : >> { %v10614_v56 = vunpack.i.h.bf16 %v10612_v38  ;;  %v10613_v62 = vunpack.i.l.bf16 %v10612_v38 }
 0x63d   : >> { %6994 = vst.msk [vmem:[%s13431_s30 + $0x50] sm:$0xff] %vm14845_vm7, %v6974_v23  ;;  %v6951_v9 = vsel %vm3584_vm4, %v6918_v61, %v10599_v44  ;;  %v6950_v16 = vsel %vm3584_vm4, %v6917_v10, %v10598_v14 }
 0x63e   : >> { %v6973_v30 = vpack.c.bf16 %v6951_v9, %v6950_v16  ;;  %v10607_v43 = vpop.permute.xlu1 %10606  ;;  %v6923_v21 = vsel %vm3551_vm2, %v6505_v63, %v10613_v62  ;;  %v6924_v6 = vsel %vm3551_vm2, %v13393_v1, %v10614_v56 }
 0x63f   : >> { %v10622_v3 = vpop.permute.xlu0 %10621  ;;  %v10609_v13 = vunpack.i.h.bf16 %v10607_v43  ;;  %v10608_v49 = vunpack.i.l.bf16 %v10607_v43 }
 0x640   : >> { %6993 = vst.msk [vmem:[%s13431_s30 + $0x48] sm:$0xff] %vm14859_vm13, %v6973_v30  ;;  %v10624_v7 = vunpack.i.h.bf16 %v10622_v3  ;;  %v10623_v19 = vunpack.i.l.bf16 %v10622_v3 }
 0x641   : >> { %v6925_v14 = vsel %vm3551_vm2, %v13400_v11, %v10608_v49  ;;  %v6926_v38 = vsel %vm3551_vm2, %v13403_v24, %v10609_v13 }
 0x642   : >> { %v6956_v32 = vsel %vm3584_vm4, %v6923_v21, %v10623_v19  ;;  %v6957_v57 = vsel %vm3584_vm4, %v6924_v6, %v10624_v7  ;;  %v10617_v34 = vpop.permute.xlu1 %10616 }
 0x643   : >> { %v6976_v60 = vpack.c.bf16 %v6957_v57, %v6956_v32  ;;  %v10619_v25 = vunpack.i.h.bf16 %v10617_v34  ;;  %v10618_v50 = vunpack.i.l.bf16 %v10617_v34  ;;  %v10632_v48 = vpop.permute.xlu0 %10631 }
 0x644   : >> { %v10634_v26 = vunpack.i.h.bf16 %v10632_v48  ;;  %v10633_v41 = vunpack.i.l.bf16 %v10632_v48 }
 0x645   : >> { %6996 = vst.msk [vmem:[%s13431_s30 + $0x60] sm:$0xff] %vm14862_vm9, %v6976_v60  ;;  %v6955_v1 = vsel %vm3584_vm4, %v6922_v46, %v10619_v25  ;;  %v6954_v4 = vsel %vm3584_vm4, %v6921_v18, %v10618_v50 }
 0x646   : >> { %v6975_v28 = vpack.c.bf16 %v6955_v1, %v6954_v4  ;;  %v10627_v15 = vpop.permute.xlu1 %10626  ;;  %v6927_v35 = vsel %vm3551_vm2, %v6509_v51, %v10633_v41  ;;  %v6928_v33 = vsel %vm3551_vm2, %v13409_v27, %v10634_v26 }
 0x647   : >> { %v10642_v47 = vpop.permute.xlu0 %10641  ;;  %v10629_v58 = vunpack.i.h.bf16 %v10627_v15  ;;  %v10628_v10 = vunpack.i.l.bf16 %v10627_v15 }
 0x648   : >> { %6995 = vst.msk [vmem:[%s13431_s30 + $0x58] sm:$0xff] %vm14863_vm8, %v6975_v28  ;;  %v10644_v54 = vunpack.i.h.bf16 %v10642_v47  ;;  %v10643_v20 = vunpack.i.l.bf16 %v10642_v47 }
 0x649   : >> { %v6929_v11 = vsel %vm3551_vm2, %v13412_v17, %v10628_v10  ;;  %v6930_v24 = vsel %vm3551_vm2, %v13415_v40, %v10629_v58 }
 0x64a   : >> { %v6960_v45 = vsel %vm3584_vm4, %v6927_v35, %v10643_v20  ;;  %v6961_v0 = vsel %vm3584_vm4, %v6928_v33, %v10644_v54  ;;  %v10637_v37 = vpop.permute.xlu1 %10636 }
 0x64b   : >> { %v6978_v42 = vpack.c.bf16 %v6961_v0, %v6960_v45  ;;  %v10639_v23 = vunpack.i.h.bf16 %v10637_v37  ;;  %v10638_v44 = vunpack.i.l.bf16 %v10637_v37 }
 0x64d   : >> { %6998 = vst.msk [vmem:[%s13431_s30 + $0x70] sm:$0xff] %vm14864_vm6, %v6978_v42  ;;  %v6959_v27 = vsel %vm3584_vm4, %v6926_v38, %v10639_v23  ;;  %v6958_v61 = vsel %vm3584_vm4, %v6925_v14, %v10638_v44 }
 0x64e   : >> { %v6977_v12 = vpack.c.bf16 %v6959_v27, %v6958_v61  ;;  %v10647_v9 = vpop.permute.xlu1 %10646  ;;  %4959 = sbr.rel (!%p4957_p0) target bundleno = 1152 (0x480), region = 225 }
 0x64f   : >> { %v10649_v16 = vunpack.i.h.bf16 %v10647_v9  ;;  %v10648_v56 = vunpack.i.l.bf16 %v10647_v9 }
 0x650   : >> { %6997 = vst.msk [vmem:[%s13431_s30 + $0x68] sm:$0xff] %vm14865_vm15, %v6977_v12 }
 0x651   : >> { %v6962_v62 = vsel %vm3584_vm4, %v6929_v11, %v10648_v56  ;;  %v6963_v30 = vsel %vm3584_vm4, %v6930_v24, %v10649_v16 }
 0x652   : >> { %v6979_v43 = vpack.c.bf16 %v6963_v30, %v6962_v62 }
 0x654   : >> { %6999 = vst.msk [vmem:[%s13431_s30 + $0x78] sm:$0xff] %vm14866_vm14, %v6979_v43 }
 0x655 LB: >> { %v10668_v17 = vld [vmem:[%s14493_s7 + $0x30] sm:$0xff]   ;;  %v10669_v40 = vld [vmem:[%s14493_s7] sm:$0xff]   ;;  %v10670_v2 = vld [vmem:[%s14493_s7 + $0x38] sm:$0xff]   ;;  %s13617_s1 = sshll.u32 %s10788_s15, 8  ;;  %vm14867_vm1 = vcmask 785408   ;;  %s10788_s15 = sphi %s13602_s15, %s7005_s15  }
 0x656   : >> { %9736 = vmatprep.subr.bf16.mxu1 %v10668_v17  ;;  %9780 = vmatprep.subr.bf16.mxu0 %v10669_v40  ;;  %v10671_v8 = vld [vmem:[%s14493_s7 + $0x8] sm:$0xff]   ;;  %s9110_s29 = sadd.s32 32, %s13617_s1  ;;  %v10672_v29 = vld [vmem:[%s14493_s7 + $0x40] sm:$0xff]   ;;  %v13629_v53 = vld [vmem:[%s14493_s7 + $0x10] sm:$0xff]   ;;  %s7008_s2 = sshra.s32 %s13617_s1, 4 }
 0x657   : >> { %9737 = vmatpush3.bf16.msra.mxu1 %v10668_v17  ;;  %9781 = vmatpush3.bf16.msra.mxu0 %v10669_v40  ;;  %s7042_s26 = sshra.s32 %s9110_s29, 4  ;;  %v10674_v52 = vld [vmem:[%s14493_s7 + $0x48] sm:$0xff]   ;;  %s8932_s0 = sshll.u32 %s7008_s2, 3  ;;  %v13639_v5 = vld [vmem:[%s14493_s7 + $0x18] sm:$0xff]   ;;  %v10676_v55 = vld [vmem:[%s14493_s7 + $0x50] sm:$0xff]  }
 0x658   : >> { %9738 = vmatprep.subr.bf16.mxu1 %v10670_v2  ;;  %9782 = vmatprep.subr.bf16.mxu0 %v10671_v8  ;;  %s8934_s12 = sshll.u32 %s7042_s26, 3  ;;  %s13648_s25 = scalar_lea.vmem [#allocation5], %s8932_s0  ;;  %v13655_v3 = vld [vmem:[%s14493_s7 + $0x20] sm:$0xff]   ;;  %vm14868_vm4 = vmmov %vm14867_vm1  ;;  %v10678_v59 = vld [vmem:[%s14493_s7 + $0x58] sm:$0xff]  }
 0x659   : >> { %s13645_s22 = scalar_lea.vmem [#allocation5], %s8934_s12  ;;  %v13667_v22 = vld [vmem:[%s14493_s7 + $0x28] sm:$0xff]   ;;  %v10680_v31 = vld [vmem:[%s14493_s7 + $0x60] sm:$0xff]   ;;  %vm14869_vm5 = vmmov %vm14867_vm1  ;;  %s9112_s30 = sadd.s32 64, %s13617_s1 }
 0x65a   : >> { %v10681_v21 = vld [vmem:[%s14493_s7 + $0x68] sm:$0xff]   ;;  %vm14870_vm10 = vmmov %vm14867_vm1  ;;  %v10682_v57 = vld [vmem:[%s14493_s7 + $0x70] sm:$0xff]   ;;  %s7567_s26 = sshra.s32 %s9112_s30, 4  ;;  %s9028_s2 = sshll.u32 %s10788_s15, 6 }
 0x65b   : >> { %9739 = vmatpush3.bf16.msra.mxu1 %v10670_v2  ;;  %9783 = vmatpush3.bf16.msra.mxu0 %v10671_v8  ;;  %v7046_v36 = vld [vmem:[%s13645_s22] sm:$0xff]  ;;  %v7047_v7 = vld [vmem:[%s13645_s22 + $0x8] sm:$0xff]  ;;  %v7048_v6 = vld [vmem:[%s13645_s22 + $0x10] sm:$0xff]  ;;  %s8992_s1 = sshll.u32 %s7567_s26, 3  ;;  %s13823_s0 = scalar_lea.vmem [#allocation7], %s9028_s2 }
 0x65c   : >> { %9740 = vmatprep.subr.bf16.mxu1 %v10672_v29  ;;  %9784 = vmatprep.subr.bf16.mxu0 %v13629_v53  ;;  %v7012_v63 = vld [vmem:[%s13648_s25] sm:$0xff]  ;;  %v7013_v19 = vld [vmem:[%s13648_s25 + $0x8] sm:$0xff]  ;;  %v7014_v32 = vld [vmem:[%s13648_s25 + $0x10] sm:$0xff]  ;;  %s13725_s12 = scalar_lea.vmem [#allocation5], %s8992_s1  ;;  %s7005_s15 = sadd.s32 1, %s10788_s15  }
 0x65d   : >> { %9748 = vmatprep.mubr.msk.bf16.mxu1 %vm14867_vm1, %v7046_v36  ;;  %9792 = vmatprep.mubr.msk.bf16.mxu0 %vm14868_vm4, %v7012_v63  ;;  %vm14871_vm11 = vmmov %vm14867_vm1  ;;  %v7049_v34 = vld [vmem:[%s13645_s22 + $0x18] sm:$0xff]  ;;  %v7050_v25 = vld [vmem:[%s13645_s22 + $0x20] sm:$0xff]  ;;  %p7002_p1 = scmp.ge.s32.totalorder %s7005_s15, 4  }
 0x65e   : >> { %vm14872_vm12 = vmmov %vm14867_vm1  ;;  %v7015_v60 = vld [vmem:[%s13648_s25 + $0x18] sm:$0xff]  ;;  %v7016_v50 = vld [vmem:[%s13648_s25 + $0x20] sm:$0xff]  ;;  %s8494_s14 = sshll.u32 (%p7002_p1), %s10947_s16, 4  ;;  %s14915_s24 = sand.u32 (%p7002_p1), 1, %s10760_s18   ;;  %s14443_s14 = int_to_ptr.vmem [resolvable:$true] %s8494_s14 }
 0x65f   : >> { %9741 = vmatpush3.bf16.msra.mxu1 %v10672_v29  ;;  %9785 = vmatpush3.bf16.msra.mxu0 %v13629_v53  ;;  %v10683_v48 = vld [vmem:[%s14493_s7 + $0x78] sm:$0xff]   ;;  %vm14873_vm0 = vmmov %vm14867_vm1  ;;  %v10684_v18 = vld [vmem:[%s14493_s7 + $0x80] sm:$0xff]   ;;  %s8482_s13 = scalar_lea.sflag (%p7002_p1), [#allocation9], %s14915_s24  ;;  %s10686_s15 = scalar_lea.vmem (%p7002_p1), %s14443_s14, 16 }
 0x660   : >> { %9742 = vmatprep.subr.bf16.mxu1 %v10674_v52  ;;  %9786 = vmatprep.subr.bf16.mxu0 %v13639_v5  ;;  %vm14874_vm7 = vmmov %vm14873_vm0  ;;  %v7051_v46 = vld [vmem:[%s13645_s22 + $0x28] sm:$0xff]  ;;  %v7052_v1 = vld [vmem:[%s13645_s22 + $0x30] sm:$0xff]  ;;  %p10687_p2 = scmp.ne.s32.totalorder (%p7002_p1), %s14443_s14, %s10686_s15 }
 0x661   : >> { %vm14875_vm13 = vmmov %vm14873_vm0  ;;  %v7017_v39 = vld [vmem:[%s13648_s25 + $0x28] sm:$0xff]  ;;  %v7018_v4 = vld [vmem:[%s13648_s25 + $0x30] sm:$0xff] }
 0x662   : >> { %vm14876_vm3 = vmmov %vm14873_vm0  ;;  %v10685_v26 = vld [vmem:[%s14493_s7 + $0x88] sm:$0xff]   ;;  %v7053_v41 = vld [vmem:[%s13645_s22 + $0x38] sm:$0xff]  ;;  %p10688_p3 = pnand (%p7002_p1), %p10687_p2, %p10901_p5 }
 0x663   : >> { %9743 = vmatpush3.bf16.msra.mxu1 %v10674_v52  ;;  %9787 = vmatpush3.bf16.msra.mxu0 %v13639_v5  ;;  %vm14877_vm9 = vmmov %vm14873_vm0  ;;  %v7019_v28 = vld [vmem:[%s13648_s25 + $0x38] sm:$0xff]  ;;  %v7054_v15 = vld [vmem:[%s13645_s22 + $0x40] sm:$0xff] }
 0x664   : >> { %9744 = vmatprep.subr.bf16.mxu1 %v10676_v55  ;;  %9788 = vmatprep.subr.bf16.mxu0 %v13655_v3  ;;  %vm14878_vm8 = vmmov %vm14873_vm0  ;;  %v7571_v51 = vld [vmem:[%s13725_s12] sm:$0xff]  ;;  %v7055_v47 = vld [vmem:[%s13645_s22 + $0x48] sm:$0xff]  ;;  %p10689_p4 = pneg (%p7002_p1), %p10688_p3 }
 0x665   : >> { %vm14879_vm6 = vmmov %vm14873_vm0  ;;  %v7572_v13 = vld [vmem:[%s13725_s12 + $0x8] sm:$0xff]  ;;  %v7056_v49 = vld [vmem:[%s13645_s22 + $0x50] sm:$0xff] }
 0x666   : >> { %vm14880_vm15 = vmmov %vm14873_vm0  ;;  %v7573_v54 = vld [vmem:[%s13725_s12 + $0x10] sm:$0xff]  ;;  %v7057_v20 = vld [vmem:[%s13645_s22 + $0x58] sm:$0xff] }
 0x667   : >> { %9745 = vmatpush3.bf16.msra.mxu1 %v10676_v55  ;;  %9789 = vmatpush3.bf16.msra.mxu0 %v13655_v3  ;;  %vm14881_vm14 = vmmov %vm14873_vm0  ;;  %v7574_v35 = vld [vmem:[%s13725_s12 + $0x18] sm:$0xff]  ;;  %v7058_v33 = vld [vmem:[%s13645_s22 + $0x60] sm:$0xff] }
 0x668   : >> { %9746 = vmatprep.subr.bf16.mxu1 %v10678_v59  ;;  %9790 = vmatprep.subr.bf16.mxu0 %v13667_v22  ;;  %vm14882_vm1 = vmmov %vm14873_vm0  ;;  %v7575_v45 = vld [vmem:[%s13725_s12 + $0x20] sm:$0xff]  ;;  %v7059_v0 = vld [vmem:[%s13645_s22 + $0x68] sm:$0xff] }
 0x669   : >> { %vm14883_vm4 = vmmov %vm14873_vm0  ;;  %v7576_v37 = vld [vmem:[%s13725_s12 + $0x28] sm:$0xff]  ;;  %v7060_v42 = vld [vmem:[%s13645_s22 + $0x70] sm:$0xff] }
 0x66a   : >> { %v7577_v23 = vld [vmem:[%s13725_s12 + $0x30] sm:$0xff]  ;;  %v7061_v44 = vld [vmem:[%s13645_s22 + $0x78] sm:$0xff]  ;;  %v7020_v38 = vld [vmem:[%s13648_s25 + $0x40] sm:$0xff] }
 0x66b   : >> { %9747 = vmatpush3.bf16.msra.mxu1 %v10678_v59  ;;  %9791 = vmatpush3.bf16.msra.mxu0 %v13667_v22  ;;  %v7578_v14 = vld [vmem:[%s13725_s12 + $0x38] sm:$0xff]  ;;  %v7579_v58 = vld [vmem:[%s13725_s12 + $0x40] sm:$0xff]  ;;  %v7021_v10 = vld [vmem:[%s13648_s25 + $0x48] sm:$0xff] }
 0x66c   : >> { %10086 = vmatprep.subr.bf16.mxu1 %v10669_v40  ;;  %9824 = vmatprep.subr.bf16.mxu0 %v10680_v31  ;;  %v7580_v27 = vld [vmem:[%s13725_s12 + $0x48] sm:$0xff]  ;;  %v7022_v61 = vld [vmem:[%s13648_s25 + $0x50] sm:$0xff]  ;;  %v7023_v9 = vld [vmem:[%s13648_s25 + $0x58] sm:$0xff] }
 0x66d   : >> { %v7581_v12 = vld [vmem:[%s13725_s12 + $0x50] sm:$0xff]  ;;  %v7582_v16 = vld [vmem:[%s13725_s12 + $0x58] sm:$0xff]  ;;  %v7024_v56 = vld [vmem:[%s13648_s25 + $0x60] sm:$0xff] }
 0x66e   : >> { %9749 = vmatmul.mubr.msk.bf16.vlgmr.msra.gmra.mrb[0].mxu1 %vm14869_vm5, %v7047_v7  ;;  %9793 = vmatmul.mubr.msk.bf16.vlgmr.msra.gmra.mrb[0].mxu0 %vm14870_vm10, %v7013_v19  ;;  %vm14884_vm5 = vmmov %vm14873_vm0  ;;  %v7583_v11 = vld [vmem:[%s13725_s12 + $0x60] sm:$0xff]  ;;  %v7025_v24 = vld [vmem:[%s13648_s25 + $0x68] sm:$0xff] }
 0x66f   : >> { %10092 = vmatpush3.bf16.msra.mxu1 %v10669_v40  ;;  %9825 = vmatpush3.bf16.msra.mxu0 %v10680_v31  ;;  %vm14885_vm10 = vmmov %vm14873_vm0  ;;  %v7584_v62 = vld [vmem:[%s13725_s12 + $0x68] sm:$0xff]  ;;  %v7026_v30 = vld [vmem:[%s13648_s25 + $0x70] sm:$0xff] }
 0x670   : >> { %9752 = vmatprep.mubr.msk.bf16.mxu1 %vm14871_vm11, %v7048_v6  ;;  %9826 = vmatprep.subr.bf16.mxu0 %v10681_v21  ;;  %vm14886_vm11 = vmmov %vm14873_vm0  ;;  %v7585_v43 = vld [vmem:[%s13725_s12 + $0x70] sm:$0xff]  ;;  %v7027_v17 = vld [vmem:[%s13648_s25 + $0x78] sm:$0xff] }
 0x671   : >> { %9796 = vmatprep.mubr.msk.bf16.mxu0 %vm14872_vm12, %v7014_v32  ;;  %10087 = vmatprep.subr.bf16.mxu1 %v10671_v8  ;;  %vm14887_vm12 = vmmov %vm14873_vm0  ;;  %v7586_v40 = vld [vmem:[%s13725_s12 + $0x78] sm:$0xff] }
 0x673   : >> { %10093 = vmatpush3.bf16.msra.mxu1 %v10671_v8  ;;  %9827 = vmatpush3.bf16.msra.mxu0 %v10681_v21 }
 0x674   : >> { %10088 = vmatprep.subr.bf16.mxu1 %v13629_v53  ;;  %9828 = vmatprep.subr.bf16.mxu0 %v10682_v57 }
 0x676   : >> { %9753 = vmatmul.mubr.msk.bf16.gmra.mrb[4].mxu1 %vm14873_vm0, %v7049_v34  ;;  %9797 = vmatmul.mubr.msk.bf16.gmra.mrb[4].mxu0 %vm14874_vm7, %v7015_v60  ;;  %vm14888_vm7 = vmmov %vm14873_vm0 }
 0x677   : >> { %9756 = vmatprep.mubr.msk.bf16.mxu1 %vm14875_vm13, %v7050_v25  ;;  %9829 = vmatpush3.bf16.msra.mxu0 %v10682_v57  ;;  %vm14889_vm13 = vmmov %vm14873_vm0 }
 0x678   : >> { %9800 = vmatprep.mubr.msk.bf16.mxu0 %vm14876_vm3, %v7016_v50  ;;  %9830 = vmatprep.subr.bf16.mxu0 %v10683_v48  ;;  %vm14890_vm3 = vmmov %vm14873_vm0 }
 0x679   : >> { %10094 = vmatpush3.bf16.msra.mxu1 %v13629_v53 }
 0x67a   : >> { %10089 = vmatprep.subr.bf16.mxu1 %v13639_v5 }
 0x67b   : >> { %9831 = vmatpush3.bf16.msra.mxu0 %v10683_v48 }
 0x67c   : >> { %9832 = vmatprep.subr.bf16.mxu0 %v10684_v18 }
 0x67d   : >> { %10095 = vmatpush3.bf16.msra.mxu1 %v13639_v5 }
 0x67e   : >> { %9757 = vmatmul.mubr.msk.bf16.gmra.mrb[8].mxu1 %vm14877_vm9, %v7051_v46  ;;  %10090 = vmatprep.subr.bf16.mxu1 %v13655_v3  ;;  %vm14891_vm9 = vmmov %vm14873_vm0 }
 0x67f   : >> { %9801 = vmatmul.mubr.msk.bf16.gmra.mrb[8].mxu0 %vm14878_vm8, %v7017_v39  ;;  %9760 = vmatprep.mubr.msk.bf16.mxu1 %vm14879_vm6, %v7052_v1  ;;  %vm14892_vm8 = vmmov %vm14873_vm0 }
 0x680   : >> { %9804 = vmatprep.mubr.msk.bf16.mxu0 %vm14880_vm15, %v7018_v4  ;;  %9833 = vmatpush3.bf16.msra.mxu0 %v10684_v18  ;;  %vm14893_vm6 = vmmov %vm14873_vm0  ;;  %v13800_v18 = vld [vmem:[%s14494_s8] ss:$0 sm:$0xff] }
 0x681   : >> { %9834 = vmatprep.subr.bf16.mxu0 %v10685_v26  ;;  %10096 = vmatpush3.bf16.msra.mxu1 %v13655_v3  ;;  %vm14894_vm15 = vmmov %vm14873_vm0 }
 0x682   : >> { %10091 = vmatprep.subr.bf16.mxu1 %v13667_v22 }
 0x684   : >> { %9835 = vmatpush3.bf16.msra.mxu0 %v10685_v26 }
 0x685   : >> { %10097 = vmatpush3.bf16.msra.mxu1 %v13667_v22 }
 0x686   : >> { %9761 = vmatmul.mubr.msk.bf16.gmra.mrb[12].mxu1 %vm14881_vm14, %v7053_v41  ;;  %vm14895_vm14 = vmmov %vm14873_vm0 }
 0x687   : >> { %9805 = vmatmul.mubr.msk.bf16.gmra.mrb[12].mxu0 %vm14882_vm1, %v7019_v28  ;;  %9764 = vmatprep.mubr.msk.bf16.mxu1 %vm14883_vm4, %v7054_v15  ;;  %vm14896_vm1 = vmmov %vm14873_vm0 }
 0x688   : >> { %9836 = vmatprep.mubr.msk.bf16.mxu0 %vm14884_vm5, %v7571_v51  ;;  %vm14897_vm4 = vmmov %vm14873_vm0 }
 0x689   : >> { %vm14898_vm5 = vmmov %vm14873_vm0 }
 0x68e   : >> { %9765 = vmatmul.mubr.msk.bf16.gmra.mrb[16].mxu1 %vm14885_vm10, %v7055_v47  ;;  %vm14899_vm10 = vmmov %vm14873_vm0 }
 0x68f   : >> { %9837 = vmatmul.mubr.msk.bf16.vlgmr.msra.gmra.mrb[0].mxu0 %vm14886_vm11, %v7572_v13  ;;  %9768 = vmatprep.mubr.msk.bf16.mxu1 %vm14887_vm12, %v7056_v49  ;;  %vm14900_vm11 = vmmov %vm14873_vm0 }
 0x690   : >> { %9840 = vmatprep.mubr.msk.bf16.mxu0 %vm14873_vm0, %v7573_v54  ;;  %vm14901_vm12 = vmmov %vm14873_vm0 }
 0x696   : >> { %9769 = vmatmul.mubr.msk.bf16.gmra.mrb[20].mxu1 %vm14888_vm7, %v7057_v20  ;;  %vm14902_vm7 = vmmov %vm14873_vm0 }
 0x697   : >> { %9841 = vmatmul.mubr.msk.bf16.gmra.mrb[4].mxu0 %vm14889_vm13, %v7574_v35  ;;  %9772 = vmatprep.mubr.msk.bf16.mxu1 %vm14890_vm3, %v7058_v33  ;;  %vm14903_vm13 = vmmov %vm14873_vm0 }
 0x698   : >> { %9844 = vmatprep.mubr.msk.bf16.mxu0 %vm14891_vm9, %v7575_v45  ;;  %vm14904_vm3 = vmmov %vm14873_vm0 }
 0x699   : >> { %vm14905_vm9 = vmmov %vm14873_vm0 }
 0x69e   : >> { %9773 = vmatmul.mubr.msk.bf16.gmra.mrb[24].mxu1 %vm14892_vm8, %v7059_v0  ;;  %vm14906_vm8 = vmmov %vm14873_vm0 }
 0x69f   : >> { %9845 = vmatmul.mubr.msk.bf16.gmra.mrb[8].mxu0 %vm14893_vm6, %v7576_v37  ;;  %9776 = vmatprep.mubr.msk.bf16.mxu1 %vm14894_vm15, %v7060_v42  ;;  %vm14907_vm6 = vmmov %vm14873_vm0 }
 0x6a0   : >> { %9848 = vmatprep.mubr.msk.bf16.mxu0 %vm14895_vm14, %v7577_v23  ;;  %vm14908_vm15 = vmmov %vm14873_vm0 }
 0x6a1   : >> { %vm14909_vm14 = vmmov %vm14873_vm0 }
 0x6a6   : >> { %9777 = vmatmul.mubr.msk.bf16.gmra.mrb[28].mxu1 %vm14896_vm1, %v7061_v44  ;;  %vm14910_vm1 = vmmov %vm14873_vm0 }
 0x6a7   : >> { %9849 = vmatmul.mubr.msk.bf16.gmra.mrb[12].mxu0 %vm14897_vm4, %v7578_v14  ;;  %9808 = vmatprep.mubr.msk.bf16.mxu1 %vm14898_vm5, %v7020_v38  ;;  %vm14911_vm4 = vmmov %vm14873_vm0 }
 0x6a8   : >> { %9852 = vmatprep.mubr.msk.bf16.mxu0 %vm14899_vm10, %v7579_v58  ;;  %vm14912_vm5 = vmmov %vm14873_vm0  ;;  %vm8473_vm10 = vcmask (%p7002_p1), 7168  }
 0x6ae   : >> { %9809 = vmatmul.mubr.msk.bf16.vlgmr.msra.gmra.mrb[16].mxu1 %vm14900_vm11, %v7021_v10  ;;  %vm8475_vm11 = vcmask (%p7002_p1), 15360  }
 0x6af   : >> { %9853 = vmatmul.mubr.msk.bf16.gmra.mrb[16].mxu0 %vm14901_vm12, %v7580_v27  ;;  %9812 = vmatprep.mubr.msk.bf16.mxu1 %vm14873_vm0, %v7022_v61  ;;  %vm8479_vm12 = vcmask (%p7002_p1), 16384  }
 0x6b0   : >> { %9856 = vmatprep.mubr.msk.bf16.mxu0 %vm14902_vm7, %v7581_v12 }
 0x6b6   : >> { %9813 = vmatmul.mubr.msk.bf16.gmra.mrb[20].mxu1 %vm14903_vm13, %v7023_v9 }
 0x6b7   : >> { %9857 = vmatmul.mubr.msk.bf16.gmra.mrb[20].mxu0 %vm14904_vm3, %v7582_v16  ;;  %9816 = vmatprep.mubr.msk.bf16.mxu1 %vm14905_vm9, %v7024_v56 }
 0x6b8   : >> { %9860 = vmatprep.mubr.msk.bf16.mxu0 %vm14906_vm8, %v7583_v11 }
 0x6be   : >> { %9817 = vmatmul.mubr.msk.bf16.gmra.mrb[24].mxu1 %vm14907_vm6, %v7025_v24 }
 0x6bf   : >> { %9861 = vmatmul.mubr.msk.bf16.gmra.mrb[24].mxu0 %vm14908_vm15, %v7584_v62  ;;  %9820 = vmatprep.mubr.msk.bf16.mxu1 %vm14909_vm14, %v7026_v30 }
 0x6c0   : >> { %9864 = vmatprep.mubr.msk.bf16.mxu0 %vm14910_vm1, %v7585_v43 }
 0x6c6   : >> { %9821 = vmatmul.mubr.msk.bf16.gmra.mrb[28].mxu1 %vm14911_vm4, %v7027_v17 }
 0x6c7   : >> { %9865 = vmatmul.mubr.msk.bf16.gmra.mrb[28].mxu0 %vm14912_vm5, %v7586_v40 }
 0x741   : >> { %v9750_v2 = vpop.f32.mrb[0].mxu1 }
 0x742   : >> { %v7193_v8 = vpop.f32.mrb[1].mxu1 }
 0x743   : >> { %v9751_v29 = vpop.f32.mrb[2].mxu1 }
 0x744   : >> { %v7196_v53 = vpop.f32.mrb[3].mxu1 }
 0x749   : >> { %v9754_v52 = vpop.f32.mrb[4].mxu1 }
 0x74a   : >> { %v7209_v5 = vpop.f32.mrb[5].mxu1 }
 0x74b   : >> { %v9755_v55 = vpop.f32.mrb[6].mxu1 }
 0x74c   : >> { %v7212_v36 = vpop.f32.mrb[7].mxu1 }
 0x751   : >> { %v9758_v63 = vpop.f32.mrb[8].mxu1 }
 0x752   : >> { %v7225_v3 = vpop.f32.mrb[9].mxu1 }
 0x753   : >> { %v9759_v59 = vpop.f32.mrb[10].mxu1 }
 0x754   : >> { %v7228_v22 = vpop.f32.mrb[11].mxu1 }
 0x759   : >> { %v9762_v31 = vpop.f32.mrb[12].mxu1 }
 0x75a   : >> { %v7241_v7 = vpop.f32.mrb[13].mxu1 }
 0x75b   : >> { %v13793_v19 = vpop.f32.mrb[14].mxu1 }
 0x75c   : >> { %v13795_v21 = vpop.f32.mrb[15].mxu1 }
 0x762   : >> { %v9838_v6 = vpop.f32.mrb[0].mxu0 }
 0x763   : >> { %v10098_v32 = vadd.f32 %v9838_v6, %v9750_v2  ;;  %v7718_v57 = vpop.f32.mrb[1].mxu0 }
 0x764   : >> { %v10099_v34 = vadd.f32 %v7718_v57, %v7193_v8  ;;  %v9839_v60 = vpop.f32.mrb[2].mxu0 }
 0x765   : >> { %v10100_v25 = vadd.f32 %v9839_v60, %v9751_v29  ;;  %v7721_v50 = vpop.f32.mrb[3].mxu0  ;;  %v7886_v39 = vadd.f32 %v10098_v32, %v13800_v18 }
 0x766   : >> { %v10101_v48 = vadd.f32 %v7721_v50, %v7196_v53  ;;  %v7884_v26 = vadd.f32 %v10099_v34, %v13800_v18 }
 0x767   : >> { %v7887_v15 = vadd.f32 %v10100_v25, %v13800_v18  ;;  %v7918_v35 = vmax.f32 %v7886_v39, 0.0 }
 0x768   : >> { %v7885_v49 = vadd.f32 %v10101_v48, %v13800_v18  ;;  %v7916_v0 = vmax.f32 %v7884_v26, 0.0 }
 0x769   : >> { %v7919_v23 = vmax.f32 %v7887_v15, 0.0 }
 0x76a   : >> { %v9842_v46 = vpop.f32.mrb[4].mxu0  ;;  %v7917_v38 = vmax.f32 %v7885_v49, 0.0 }
 0x76b   : >> { %v10102_v1 = vadd.f32 %v9842_v46, %v9754_v52  ;;  %v7734_v4 = vpop.f32.mrb[5].mxu0 }
 0x76c   : >> { %v10103_v41 = vadd.f32 %v7734_v4, %v7209_v5  ;;  %v9843_v28 = vpop.f32.mrb[6].mxu0 }
 0x76d   : >> { %v7890_v51 = vadd.f32 %v10102_v1, %v13800_v18  ;;  %v10104_v47 = vadd.f32 %v9843_v28, %v9755_v55  ;;  %v7737_v13 = vpop.f32.mrb[7].mxu0 }
 0x76e   : >> { %v7888_v54 = vadd.f32 %v10103_v41, %v13800_v18  ;;  %v10105_v20 = vadd.f32 %v7737_v13, %v7212_v36 }
 0x76f   : >> { %v7922_v33 = vmax.f32 %v7890_v51, 0.0  ;;  %v7891_v45 = vadd.f32 %v10104_v47, %v13800_v18 }
 0x770   : >> { %v7920_v37 = vmax.f32 %v7888_v54, 0.0  ;;  %v7889_v42 = vadd.f32 %v10105_v20, %v13800_v18 }
 0x771   : >> { %v7950_v44 = vmax.f32 %v7918_v35, %v7922_v33  ;;  %v7923_v14 = vmax.f32 %v7891_v45, 0.0 }
 0x772   : >> { %v7948_v58 = vmax.f32 %v7916_v0, %v7920_v37  ;;  %v7921_v10 = vmax.f32 %v7889_v42, 0.0  ;;  %v9846_v27 = vpop.f32.mrb[8].mxu0 }
 0x773   : >> { %7967 = vst.msk [vmem:[#allocation6 + $0x10] sm:$0xff] %vm3551_vm2, %v7950_v44  ;;  %v7951_v61 = vmax.f32 %v7919_v23, %v7923_v14  ;;  %v10106_v12 = vadd.f32 %v9846_v27, %v9758_v63  ;;  %v7750_v9 = vpop.f32.mrb[9].mxu0 }
 0x774   : >> { %7965 = vst.msk [vmem:[#allocation6] sm:$0xff] %vm3551_vm2, %v7948_v58  ;;  %v7949_v16 = vmax.f32 %v7917_v38, %v7921_v10  ;;  %v10107_v56 = vadd.f32 %v7750_v9, %v7225_v3  ;;  %v9847_v11 = vpop.f32.mrb[10].mxu0 }
 0x775   : >> { %7968 = vst.msk [vmem:[#allocation6 + $0x18] sm:$0xff] %vm3551_vm2, %v7951_v61  ;;  %v10108_v24 = vadd.f32 %v9847_v11, %v9759_v59  ;;  %v7753_v62 = vpop.f32.mrb[11].mxu0  ;;  %v7894_v17 = vadd.f32 %v10106_v12, %v13800_v18 }
 0x776   : >> { %7966 = vst.msk [vmem:[#allocation6 + $0x8] sm:$0xff] %vm3551_vm2, %v7949_v16  ;;  %v10109_v30 = vadd.f32 %v7753_v62, %v7228_v22  ;;  %v7892_v53 = vadd.f32 %v10107_v56, %v13800_v18 }
 0x777   : >> { %v7895_v3 = vadd.f32 %v10108_v24, %v13800_v18 }
 0x779   : >> { %v7927_v46 = vmax.f32 %v7895_v3, 0.0 }
 0x77a   : >> { %v9850_v43 = vpop.f32.mrb[12].mxu0 }
 0x77b   : >> { %v10110_v40 = vadd.f32 %v9850_v43, %v9762_v31  ;;  %v7766_v2 = vpop.f32.mrb[13].mxu0  ;;  %v7893_v31 = vadd.f32 %v10109_v30, %v13800_v18 }
 0x77c   : >> { %v7983_v8 = vld [vmem:[#allocation6 + $0x10] ss:$2 sm:$0xff]  ;;  %v7999_v29 = vld [vmem:[#allocation6 + $0x11] ss:$2 sm:$0xff]  ;;  %v10111_v52 = vadd.f32 %v7766_v2, %v7241_v7  ;;  %v9851_v5 = vpop.f32.mrb[14].mxu0  ;;  %v7926_v7 = vmax.f32 %v7894_v17, 0.0 }
 0x77d   : >> { %v8013_v55 = vmax.f32 %v7983_v8, %v7999_v29  ;;  %v7981_v36 = vld [vmem:[#allocation6] ss:$2 sm:$0xff]  ;;  %v7997_v63 = vld [vmem:[#allocation6 + $0x1] ss:$2 sm:$0xff]  ;;  %v7898_v59 = vadd.f32 %v10110_v40, %v13800_v18  ;;  %v10112_v22 = vadd.f32 %v9851_v5, %v13793_v19  ;;  %v7769_v6 = vpop.f32.mrb[15].mxu0  ;;  %v7924_v19 = vmax.f32 %v7892_v53, 0.0 }
 0x77e   : >> { %v8012_v32 = vmax.f32 %v7981_v36, %v7997_v63  ;;  %v7896_v57 = vadd.f32 %v10111_v52, %v13800_v18  ;;  %v10113_v34 = vadd.f32 %v7769_v6, %v13795_v21  ;;  %v7925_v4 = vmax.f32 %v7893_v31, 0.0 }
 0x77f   : >> { %8023 = vst.msk [vmem:[%s13823_s0 + $0x8] sm:$0xff] %vm3551_vm2, %v8013_v55  ;;  %v7930_v60 = vmax.f32 %v7898_v59, 0.0  ;;  %v7899_v25 = vadd.f32 %v10112_v22, %v13800_v18 }
 0x780   : >> { %8022 = vst.msk [vmem:[%s13823_s0] sm:$0xff] %vm3551_vm2, %v8012_v32  ;;  %v7928_v50 = vmax.f32 %v7896_v57, 0.0  ;;  %v7897_v48 = vadd.f32 %v10113_v34, %v13800_v18 }
 0x781   : >> { %v7954_v39 = vmax.f32 %v7926_v7, %v7930_v60  ;;  %v7931_v1 = vmax.f32 %v7899_v25, 0.0  ;;  %v9810_v21 = vpop.f32.mrb[16].mxu1 }
 0x782   : >> { %v7952_v26 = vmax.f32 %v7924_v19, %v7928_v50  ;;  %v7929_v41 = vmax.f32 %v7897_v48, 0.0  ;;  %v9854_v28 = vpop.f32.mrb[16].mxu0  ;;  %v7502_v15 = vpop.f32.mrb[17].mxu1 }
 0x783   : >> { %7971 = vst.msk [vmem:[#allocation6 + $0x30] sm:$0xff] %vm3551_vm2, %v7954_v39  ;;  %v7955_v51 = vmax.f32 %v7927_v46, %v7931_v1  ;;  %v10114_v47 = vadd.f32 %v9854_v28, %v9810_v21  ;;  %v7782_v13 = vpop.f32.mrb[17].mxu0  ;;  %v9811_v49 = vpop.f32.mrb[18].mxu1 }
 0x784   : >> { %7969 = vst.msk [vmem:[#allocation6 + $0x20] sm:$0xff] %vm3551_vm2, %v7952_v26  ;;  %v7953_v54 = vmax.f32 %v7925_v4, %v7929_v41  ;;  %v10115_v20 = vadd.f32 %v7782_v13, %v7502_v15  ;;  %v9855_v35 = vpop.f32.mrb[18].mxu0  ;;  %v7505_v33 = vpop.f32.mrb[19].mxu1 }
 0x785   : >> { %7972 = vst.msk [vmem:[#allocation6 + $0x38] sm:$0xff] %vm3551_vm2, %v7955_v51  ;;  %v10116_v45 = vadd.f32 %v9855_v35, %v9811_v49  ;;  %v7785_v0 = vpop.f32.mrb[19].mxu0  ;;  %v7902_v14 = vadd.f32 %v10114_v47, %v13800_v18 }
 0x786   : >> { %7970 = vst.msk [vmem:[#allocation6 + $0x28] sm:$0xff] %vm3551_vm2, %v7953_v54  ;;  %v10117_v37 = vadd.f32 %v7785_v0, %v7505_v33  ;;  %v7900_v12 = vadd.f32 %v10115_v20, %v13800_v18 }
 0x787   : >> { %v7903_v30 = vadd.f32 %v10116_v45, %v13800_v18  ;;  %v7934_v52 = vmax.f32 %v7902_v14, 0.0 }
 0x788   : >> { %v7901_v8 = vadd.f32 %v10117_v37, %v13800_v18  ;;  %v7932_v36 = vmax.f32 %v7900_v12, 0.0 }
 0x789   : >> { %v9814_v42 = vpop.f32.mrb[20].mxu1  ;;  %v7935_v59 = vmax.f32 %v7903_v30, 0.0 }
 0x78a   : >> { %v9858_v23 = vpop.f32.mrb[20].mxu0  ;;  %v7518_v44 = vpop.f32.mrb[21].mxu1  ;;  %v7933_v31 = vmax.f32 %v7901_v8, 0.0 }
 0x78b   : >> { %v10118_v38 = vadd.f32 %v9858_v23, %v9814_v42  ;;  %v7798_v58 = vpop.f32.mrb[21].mxu0  ;;  %v9815_v10 = vpop.f32.mrb[22].mxu1 }
 0x78c   : >> { %v7987_v27 = vld [vmem:[#allocation6 + $0x30] ss:$2 sm:$0xff]  ;;  %v8003_v61 = vld [vmem:[#allocation6 + $0x31] ss:$2 sm:$0xff]  ;;  %v10119_v9 = vadd.f32 %v7798_v58, %v7518_v44  ;;  %v9859_v16 = vpop.f32.mrb[22].mxu0  ;;  %v7521_v56 = vpop.f32.mrb[23].mxu1 }
 0x78d   : >> { %v8015_v11 = vmax.f32 %v7987_v27, %v8003_v61  ;;  %v7985_v24 = vld [vmem:[#allocation6 + $0x20] ss:$2 sm:$0xff]  ;;  %v8001_v62 = vld [vmem:[#allocation6 + $0x21] ss:$2 sm:$0xff]  ;;  %v7906_v43 = vadd.f32 %v10118_v38, %v13800_v18  ;;  %v10120_v17 = vadd.f32 %v9859_v16, %v9815_v10  ;;  %v7801_v40 = vpop.f32.mrb[23].mxu0 }
 0x78e   : >> { %v8014_v2 = vmax.f32 %v7985_v24, %v8001_v62  ;;  %v7904_v29 = vadd.f32 %v10119_v9, %v13800_v18  ;;  %v10121_v53 = vadd.f32 %v7801_v40, %v7521_v56 }
 0x78f   : >> { %8025 = vst.msk [vmem:[%s13823_s0 + $0x18] sm:$0xff] %vm3551_vm2, %v8015_v11  ;;  %v7938_v5 = vmax.f32 %v7906_v43, 0.0  ;;  %v7907_v55 = vadd.f32 %v10120_v17, %v13800_v18 }
 0x790   : >> { %8024 = vst.msk [vmem:[%s13823_s0 + $0x10] sm:$0xff] %vm3551_vm2, %v8014_v2  ;;  %v7936_v63 = vmax.f32 %v7904_v29, 0.0  ;;  %v7905_v3 = vadd.f32 %v10121_v53, %v13800_v18 }
 0x791   : >> { %v7958_v22 = vmax.f32 %v7934_v52, %v7938_v5  ;;  %v7939_v6 = vmax.f32 %v7907_v55, 0.0  ;;  %v9818_v32 = vpop.f32.mrb[24].mxu1 }
 0x792   : >> { %v7956_v57 = vmax.f32 %v7932_v36, %v7936_v63  ;;  %v7937_v34 = vmax.f32 %v7905_v3, 0.0  ;;  %v9862_v7 = vpop.f32.mrb[24].mxu0  ;;  %v7534_v60 = vpop.f32.mrb[25].mxu1 }
 0x793   : >> { %7975 = vst.msk [vmem:[#allocation6 + $0x50] sm:$0xff] %vm3551_vm2, %v7958_v22  ;;  %v7959_v25 = vmax.f32 %v7935_v59, %v7939_v6  ;;  %v10122_v19 = vadd.f32 %v9862_v7, %v9818_v32  ;;  %v7814_v50 = vpop.f32.mrb[25].mxu0  ;;  %v9819_v48 = vpop.f32.mrb[26].mxu1  ;;  %v8065_v7 = vld [vmem:[%s14495_s9 + $0x18] sm:$0xff] (%p7002_p1) }
 0x794   : >> { %7973 = vst.msk [vmem:[#allocation6 + $0x40] sm:$0xff] %vm3551_vm2, %v7956_v57  ;;  %v7957_v46 = vmax.f32 %v7933_v31, %v7937_v34  ;;  %v10123_v39 = vadd.f32 %v7814_v50, %v7534_v60  ;;  %v9863_v1 = vpop.f32.mrb[26].mxu0  ;;  %v7537_v21 = vpop.f32.mrb[27].mxu1  ;;  %v8062_v31 = vld [vmem:[%s14495_s9] sm:$0xff] (%p7002_p1)  ;;  %v8063_v57 = vld [vmem:[%s14495_s9 + $0x8] sm:$0xff] (%p7002_p1)  ;;  %v8064_v34 = vld [vmem:[%s14495_s9 + $0x10] sm:$0xff] (%p7002_p1) }
 0x795   : >> { %7976 = vst.msk [vmem:[#allocation6 + $0x58] sm:$0xff] %vm3551_vm2, %v7959_v25  ;;  %v10124_v4 = vadd.f32 %v9863_v1, %v9819_v48  ;;  %v7817_v26 = vpop.f32.mrb[27].mxu0  ;;  %v7910_v47 = vadd.f32 %v10122_v19, %v13800_v18  ;;  %v8066_v48 = vld [vmem:[%s14495_s9 + $0x20] sm:$0xff] (%p7002_p1) }
 0x796   : >> { %7974 = vst.msk [vmem:[#allocation6 + $0x48] sm:$0xff] %vm3551_vm2, %v7957_v46  ;;  %v10125_v41 = vadd.f32 %v7817_v26, %v7537_v21  ;;  %v7908_v33 = vadd.f32 %v10123_v39, %v13800_v18  ;;  %v8067_v26 = vld [vmem:[%s14495_s9 + $0x28] sm:$0xff] (%p7002_p1) }
 0x797   : >> { %v7911_v14 = vadd.f32 %v10124_v4, %v13800_v18  ;;  %v7942_v16 = vmax.f32 %v7910_v47, 0.0 }
 0x798   : >> { %v7909_v61 = vadd.f32 %v10125_v41, %v13800_v18  ;;  %v7940_v24 = vmax.f32 %v7908_v33, 0.0  ;;  %v8068_v41 = vld [vmem:[%s14495_s9 + $0x30] sm:$0xff] (%p7002_p1) }
 0x799   : >> { %v9822_v28 = vpop.f32.mrb[28].mxu1  ;;  %v7943_v43 = vmax.f32 %v7911_v14, 0.0 }
 0x79a   : >> { %v9866_v15 = vpop.f32.mrb[28].mxu0  ;;  %v7550_v51 = vpop.f32.mrb[29].mxu1  ;;  %v7941_v2 = vmax.f32 %v7909_v61, 0.0  ;;  %v8072_v61 = vld [vmem:[%s14495_s9 + $0x50] sm:$0xff] (%p7002_p1) }
 0x79b   : >> { %v10126_v13 = vadd.f32 %v9866_v15, %v9822_v28  ;;  %v7830_v49 = vpop.f32.mrb[29].mxu0  ;;  %v9823_v54 = vpop.f32.mrb[30].mxu1 }
 0x79c   : >> { %v7991_v20 = vld [vmem:[#allocation6 + $0x50] ss:$2 sm:$0xff]  ;;  %v8007_v35 = vld [vmem:[#allocation6 + $0x51] ss:$2 sm:$0xff]  ;;  %v10127_v45 = vadd.f32 %v7830_v49, %v7550_v51  ;;  %v9867_v0 = vpop.f32.mrb[30].mxu0  ;;  %v7553_v37 = vpop.f32.mrb[31].mxu1 }
 0x79d   : >> { %v8017_v42 = vmax.f32 %v7991_v20, %v8007_v35  ;;  %v7989_v23 = vld [vmem:[#allocation6 + $0x40] ss:$2 sm:$0xff]  ;;  %v8005_v44 = vld [vmem:[#allocation6 + $0x41] ss:$2 sm:$0xff]  ;;  %v7914_v38 = vadd.f32 %v10126_v13, %v13800_v18  ;;  %v10128_v58 = vadd.f32 %v9867_v0, %v9823_v54  ;;  %v7833_v10 = vpop.f32.mrb[31].mxu0  ;;  %v8069_v13 = vld [vmem:[%s14495_s9 + $0x38] sm:$0xff] (%p7002_p1) }
 0x79e   : >> { %v8016_v27 = vmax.f32 %v7989_v23, %v8005_v44  ;;  %v7912_v12 = vadd.f32 %v10127_v45, %v13800_v18  ;;  %v10129_v9 = vadd.f32 %v7833_v10, %v7553_v37  ;;  %v8070_v45 = vld [vmem:[%s14495_s9 + $0x40] sm:$0xff] (%p7002_p1)  ;;  %v8071_v44 = vld [vmem:[%s14495_s9 + $0x48] sm:$0xff] (%p7002_p1) }
 0x79f   : >> { %8027 = vst.msk [vmem:[%s13823_s0 + $0x28] sm:$0xff] %vm3551_vm2, %v8017_v42  ;;  %v7946_v56 = vmax.f32 %v7914_v38, 0.0  ;;  %v7915_v11 = vadd.f32 %v10128_v58, %v13800_v18 }
 0x7a0   : >> { %8026 = vst.msk [vmem:[%s13823_s0 + $0x20] sm:$0xff] %vm3551_vm2, %v8016_v27  ;;  %v7944_v62 = vmax.f32 %v7912_v12, 0.0  ;;  %v7913_v30 = vadd.f32 %v10129_v9, %v13800_v18 }
 0x7a1   : >> { %v7962_v17 = vmax.f32 %v7942_v16, %v7946_v56  ;;  %v7947_v40 = vmax.f32 %v7915_v11, 0.0  ;;  %v8073_v11 = vld [vmem:[%s14495_s9 + $0x58] sm:$0xff] (%p7002_p1) }
 0x7a2   : >> { %v7960_v8 = vmax.f32 %v7940_v24, %v7944_v62  ;;  %v7945_v29 = vmax.f32 %v7913_v30, 0.0 }
 0x7a3   : >> { %7979 = vst.msk [vmem:[#allocation6 + $0x70] sm:$0xff] %vm3551_vm2, %v7962_v17  ;;  %v7963_v53 = vmax.f32 %v7943_v43, %v7947_v40  ;;  %v8074_v17 = vld [vmem:[%s14495_s9 + $0x60] sm:$0xff] (%p7002_p1) }
 0x7a4   : >> { %7977 = vst.msk [vmem:[#allocation6 + $0x60] sm:$0xff] %vm3551_vm2, %v7960_v8  ;;  %v7961_v52 = vmax.f32 %v7941_v2, %v7945_v29 }
 0x7a5   : >> { %7980 = vst.msk [vmem:[#allocation6 + $0x78] sm:$0xff] %vm3551_vm2, %v7963_v53  ;;  %v8075_v53 = vld [vmem:[%s14495_s9 + $0x68] sm:$0xff] (%p7002_p1) }
 0x7a6   : >> { %7978 = vst.msk [vmem:[#allocation6 + $0x68] sm:$0xff] %vm3551_vm2, %v7961_v52 }
 0x7aa   : > { %7004 = sbr.rel (!%p7002_p1) target bundleno = 1621 (0x655), region = 236 }
 0x7ac   : >> { %v7995_v5 = vld [vmem:[#allocation6 + $0x70] ss:$2 sm:$0xff]  ;;  %v8011_v18 = vld [vmem:[#allocation6 + $0x71] ss:$2 sm:$0xff] }
 0x7ad   : >> { %v8019_v55 = vmax.f32 %v7995_v5, %v8011_v18  ;;  %v7993_v36 = vld [vmem:[#allocation6 + $0x60] ss:$2 sm:$0xff]  ;;  %v8009_v63 = vld [vmem:[#allocation6 + $0x61] ss:$2 sm:$0xff] }
 0x7ae   : >> { %v8018_v3 = vmax.f32 %v7993_v36, %v8009_v63  ;;  %v8076_v36 = vld [vmem:[%s14495_s9 + $0x70] sm:$0xff] (%p7002_p1) }
 0x7af   : >> { %8029 = vst.msk [vmem:[%s13823_s0 + $0x38] sm:$0xff] %vm3551_vm2, %v8019_v55 }
 0x7b0   : >> { %8028 = vst.msk [vmem:[%s13823_s0 + $0x30] sm:$0xff] %vm3551_vm2, %v8018_v3  ;;  %s9093_s0 = sshll.u32 (%p7002_p1), %s10884_s21, 4  ;;  %s10802_s21 = smov (%p7002_p1), [#allocation8]  }
 0x7b1   : > { %s14441_s26 = scalar_lea.hbm %s14497_s11, %s9093_s0  ;;  %s10690_s1 = sshll.u32 %s10802_s21, 4  ;;  %s10691_s1 = int_to_ptr.vmem [resolvable:$false] %s10690_s1 }
 0x7b2   : > { %s10692_s12 = scalar_lea.vmem %s10691_s1, 32  ;;  %p10693_p7 = scmp.lt.s32.totalorder %s14443_s14, %s10691_s1 }
 0x7b3   : > { %p10694_p8 = scmp.lt.s32.totalorder %s10692_s12, %s10686_s15 }
 0x7b5   : > { %p10695_p9 = por %p10694_p8, %p10693_p7 }
 0x7b7   : > { %v13874_v59 = vld [vmem:[#allocation7] sm:$0xff]  ;;  %v13876_v22 = vld [vmem:[#allocation7 + $0x8] sm:$0xff]  ;;  %v13878_v6 = vld [vmem:[#allocation7 + $0x10] sm:$0xff]  ;;  %p10696_p10 = pnand %p10695_p9, %p10689_p4 }
 0x7b8   : > { %v13880_v32 = vld [vmem:[#allocation7 + $0x18] sm:$0xff]  ;;  %v8094_v60 = vmul.f32 %v8062_v31, %v13874_v59  ;;  %v8095_v25 = vmul.f32 %v8063_v57, %v13876_v22  ;;  %v8096_v19 = vmul.f32 %v8064_v34, %v13878_v6  ;;  %v13897_v50 = vld [vmem:[#allocation7 + $0x20] sm:$0xff]  ;;  %v13903_v39 = vld [vmem:[#allocation7 + $0x28] sm:$0xff] }
 0x7b9   : > { %v8097_v1 = vmul.f32 %v8065_v7, %v13880_v32  ;;  %v13907_v4 = vld [vmem:[#allocation7 + $0x30] sm:$0xff]  ;;  %v8098_v15 = vmul.f32 %v8066_v48, %v13897_v50  ;;  %v13917_v47 = vld [vmem:[#allocation7 + $0x38] sm:$0xff]  ;;  %v8099_v54 = vmul.f32 %v8067_v26, %v13903_v39  ;;  %v13925_v33 = vld [vmem:[#allocation7 + $0x40] sm:$0xff] }
 0x7ba   : > { %v8127_v46 = vsel %vm3551_vm2, %v8094_v60, 0.0  ;;  %v8128_v21 = vsel %vm3551_vm2, %v8095_v25, 0.0  ;;  %v8130_v51 = vsel %vm3551_vm2, %v8096_v19, 0.0  ;;  %v8100_v20 = vmul.f32 %v8068_v41, %v13907_v4  ;;  %v13932_v23 = vld [vmem:[#allocation7 + $0x48] sm:$0xff]  ;;  %v13940_v27 = vld [vmem:[#allocation7 + $0x50] sm:$0xff]  ;;  %v13947_v56 = vld [vmem:[#allocation7 + $0x58] sm:$0xff] }
 0x7bb   : > { %v8129_v28 = vadd.f32 %v8128_v21, %v8127_v46  ;;  %v8132_v35 = vsel %vm3551_vm2, %v8097_v1, 0.0  ;;  %v8101_v37 = vmul.f32 %v8069_v13, %v13917_v47  ;;  %v8134_v42 = vsel %vm3551_vm2, %v8098_v15, 0.0  ;;  %v13954_v43 = vld [vmem:[#allocation7 + $0x60] sm:$0xff]  ;;  %v13961_v29 = vld [vmem:[#allocation7 + $0x68] sm:$0xff]  ;;  %v13968_v55 = vld [vmem:[#allocation7 + $0x70] sm:$0xff] }
 0x7bc   : > { %v8102_v38 = vmul.f32 %v8070_v45, %v13925_v33  ;;  %v8136_v58 = vsel %vm3551_vm2, %v8099_v54, 0.0  ;;  %v8138_v10 = vsel %vm3551_vm2, %v8100_v20, 0.0  ;;  %v8103_v9 = vmul.f32 %v8071_v44, %v13932_v23  ;;  %v9029_v57 = vld [vmem:[%s14495_s9 + $0x100] sm:$0xff]  ;;  %v9030_v34 = vld [vmem:[%s14495_s9 + $0x108] sm:$0xff]  ;;  %v9031_v7 = vld [vmem:[%s14495_s9 + $0x110] sm:$0xff] }
 0x7bd   : > { %v8131_v49 = vadd.f32 %v8130_v51, %v8129_v28  ;;  %v8140_v16 = vsel %vm3551_vm2, %v8101_v37, 0.0  ;;  %v8104_v62 = vmul.f32 %v8072_v61, %v13940_v27  ;;  %v8105_v2 = vmul.f32 %v8073_v11, %v13947_v56  ;;  %v13984_v60 = vld [vmem:[#allocation7 + $0x78] sm:$0xff]  ;;  %v13994_v21 = vld [vmem:[#allocation7 + $0x80] sm:$0xff]  ;;  %v14007_v20 = vld [vmem:[#allocation7 + $0x88] sm:$0xff] }
 0x7be   : > { %v8142_v30 = vsel %vm3551_vm2, %v8102_v38, 0.0  ;;  %v8144_v8 = vsel %vm3551_vm2, %v8103_v9, 0.0  ;;  %v8106_v5 = vmul.f32 %v8074_v17, %v13954_v43  ;;  %v8107_v3 = vmul.f32 %v8075_v53, %v13961_v29  ;;  %v8077_v25 = vld [vmem:[%s14495_s9 + $0x78] sm:$0xff]  ;;  %v8078_v26 = vld [vmem:[%s14495_s9 + $0x80] sm:$0xff]  ;;  %v9034_v44 = vld [vmem:[%s14495_s9 + $0x128] sm:$0xff] }
 0x7bf   : > { %v8133_v0 = vadd.f32 %v8132_v35, %v8131_v49  ;;  %v8146_v18 = vsel %vm3551_vm2, %v8104_v62, 0.0  ;;  %v8148_v31 = vsel %vm3551_vm2, %v8105_v2, 0.0  ;;  %v8108_v48 = vmul.f32 %v8076_v36, %v13968_v55  ;;  %v9032_v1 = vld [vmem:[%s14495_s9 + $0x118] sm:$0xff]  ;;  %v9033_v28 = vld [vmem:[%s14495_s9 + $0x120] sm:$0xff]  ;;  %v8079_v35 = vld [vmem:[%s14495_s9 + $0x88] sm:$0xff] }
 0x7c0   : > { %v8150_v46 = vsel %vm3551_vm2, %v8106_v5, 0.0  ;;  %v8232_v15 = vmul.f32 %v9029_v57, %v13874_v59  ;;  %v8233_v51 = vmul.f32 %v9030_v34, %v13876_v22  ;;  %v8234_v13 = vmul.f32 %v9031_v7, %v13878_v6  ;;  %v14019_v38 = vld [vmem:[#allocation7 + $0x90] sm:$0xff]  ;;  %v8081_v17 = vld [vmem:[%s14495_s9 + $0x98] sm:$0xff]  ;;  %v14044_v36 = vld [vmem:[#allocation7 + $0xa0] sm:$0xff] }
 0x7c1   : > { %v8135_v14 = vadd.f32 %v8134_v42, %v8133_v0  ;;  %v8109_v49 = vmul.f32 %v8077_v25, %v13984_v60  ;;  %v8152_v54 = vsel %vm3551_vm2, %v8107_v3, 0.0  ;;  %v8235_v0 = vmul.f32 %v9032_v1, %v13880_v32  ;;  %v9036_v5 = vld [vmem:[%s14495_s9 + $0x138] sm:$0xff]  ;;  %v14051_v34 = vld [vmem:[#allocation7 + $0xa8] sm:$0xff]  ;;  %v14053_v7 = vld [vmem:[#allocation7 + $0xb0] sm:$0xff] }
 0x7c2   : > { %v8110_v37 = vmul.f32 %v8078_v26, %v13994_v21  ;;  %v8154_v42 = vsel %vm3551_vm2, %v8108_v48, 0.0  ;;  %v8264_v61 = vsel %vm3551_vm2, %v8232_v15, 0.0  ;;  %v8267_v9 = vsel %vm3551_vm2, %v8234_v13, 0.0  ;;  %v9037_v48 = vld [vmem:[%s14495_s9 + $0x140] sm:$0xff]  ;;  %v14060_v1 = vld [vmem:[#allocation7 + $0xb8] sm:$0xff]  ;;  %v14069_v13 = vld [vmem:[#allocation7 + $0xc8] sm:$0xff] }
 0x7c3   : > { %v8137_v12 = vadd.f32 %v8136_v58, %v8135_v14  ;;  %v8236_v14 = vmul.f32 %v9033_v28, %v13897_v50  ;;  %v8080_v58 = vld [vmem:[%s14495_s9 + $0x90] sm:$0xff]  ;;  %v8156_v11 = vsel %vm3551_vm2, %v8109_v49, 0.0  ;;  %v8237_v2 = vmul.f32 %v9034_v44, %v13903_v39  ;;  %v14062_v26 = vld [vmem:[#allocation7 + $0xc0] sm:$0xff] }
 0x7c4   : > { %v8112_v53 = vmul.f32 %v8080_v58, %v14019_v38  ;;  %v8239_v15 = vmul.f32 %v9036_v5, %v13917_v47  ;;  %v8084_v49 = vld [vmem:[%s14495_s9 + $0xb0] sm:$0xff]  ;;  %v8086_v44 = vld [vmem:[%s14495_s9 + $0xc0] sm:$0xff]  ;;  %v8240_v58 = vmul.f32 %v9037_v48, %v13925_v33  ;;  %v14110_v5 = vld [vmem:[#allocation7 + $0xe8] sm:$0xff] }
 0x7c5   : > { %v8139_v24 = vadd.f32 %v8138_v10, %v8137_v12  ;;  %v8265_v12 = vsel %vm3551_vm2, %v8233_v51, 0.0  ;;  %v8271_v57 = vsel %vm3551_vm2, %v8236_v14, 0.0  ;;  %v8273_v51 = vsel %vm3551_vm2, %v8237_v2, 0.0  ;;  %v8091_v48 = vld [vmem:[%s14495_s9 + $0xe8] sm:$0xff] }
 0x7c6   : > { %v8266_v62 = vadd.f32 %v8265_v12, %v8264_v61  ;;  %v14089_v61 = vld [vmem:[#allocation7 + $0xd8] sm:$0xff]  ;;  %v8087_v12 = vld [vmem:[%s14495_s9 + $0xc8] sm:$0xff]  ;;  %v8116_v2 = vmul.f32 %v8084_v49, %v14053_v7 }
 0x7c7   : > { %v8141_v40 = vadd.f32 %v8140_v16, %v8139_v24  ;;  %v8111_v16 = vmul.f32 %v8079_v35, %v14007_v20  ;;  %v9035_v24 = vld [vmem:[%s14495_s9 + $0x130] sm:$0xff]  ;;  %v8162_v35 = vsel %vm3551_vm2, %v8112_v53, 0.0  ;;  %v14132_v49 = vld [vmem:[#allocation7 + $0xf8] sm:$0xff] }
 0x7c8   : > { %14913 = vst [vmem:[#allocation16_spill] sm:$0xff] %v14132_v49 }
 0x7c9   : > { %v8143_v52 = vadd.f32 %v8142_v30, %v8141_v40  ;;  %v14032_v30 = vld [vmem:[#allocation7 + $0x98] sm:$0xff] }
 0x7ca   : > { %v8113_v25 = vmul.f32 %v8081_v17, %v14032_v30  ;;  %v8088_v17 = vld [vmem:[%s14495_s9 + $0xd0] sm:$0xff] }
 0x7cb   : > { %v8145_v63 = vadd.f32 %v8144_v8, %v8143_v52  ;;  %v8269_v8 = vsel %vm3551_vm2, %v8235_v0, 0.0  ;;  %v8158_v52 = vsel %vm3551_vm2, %v8110_v37, 0.0  ;;  %v14079_v37 = vld [vmem:[#allocation7 + $0xd0] sm:$0xff] }
 0x7cd   : > { %v8147_v19 = vadd.f32 %v8146_v18, %v8145_v63  ;;  %v8268_v18 = vadd.f32 %v8267_v9, %v8266_v62  ;;  %v8082_v63 = vld [vmem:[%s14495_s9 + $0xa0] sm:$0xff] }
 0x7ce   : > { %v14099_v62 = vld [vmem:[#allocation7 + $0xe0] sm:$0xff] }
 0x7cf   : > { %v8149_v41 = vadd.f32 %v8148_v31, %v8147_v19  ;;  %v8238_v31 = vmul.f32 %v9035_v24, %v13907_v4  ;;  %v8160_v19 = vsel %vm3551_vm2, %v8111_v16, 0.0  ;;  %v8164_v16 = vsel %vm3551_vm2, %v8113_v25, 0.0 }
 0x7d1   : > { %v8151_v45 = vadd.f32 %v8150_v46, %v8149_v41  ;;  %v8270_v46 = vadd.f32 %v8269_v8, %v8268_v18  ;;  %v8083_v41 = vld [vmem:[%s14495_s9 + $0xa8] sm:$0xff]  ;;  %v8090_v18 = vld [vmem:[%s14495_s9 + $0xe0] sm:$0xff] }
 0x7d2   : > { %v8115_v9 = vmul.f32 %v8083_v41, %v14051_v34  ;;  %v8119_v41 = vmul.f32 %v8087_v12, %v14069_v13 }
 0x7d3   : > { %v8153_v10 = vadd.f32 %v8152_v54, %v8151_v45  ;;  %v8114_v54 = vmul.f32 %v8082_v63, %v14044_v36  ;;  %v9038_v45 = vld [vmem:[%s14495_s9 + $0x148] sm:$0xff]  ;;  %v8272_v0 = vadd.f32 %v8271_v57, %v8270_v46  ;;  %v9040_v57 = vld [vmem:[%s14495_s9 + $0x158] sm:$0xff]  ;;  %v8092_v46 = vld [vmem:[%s14495_s9 + $0xf0] sm:$0xff] }
 0x7d4   : > { %v8241_v53 = vmul.f32 %v9038_v45, %v13932_v23 }
 0x7d5   : > { %v8155_v40 = vadd.f32 %v8154_v42, %v8153_v10  ;;  %v8085_v42 = vld [vmem:[%s14495_s9 + $0xb8] sm:$0xff]  ;;  %v8275_v10 = vsel %vm3551_vm2, %v8238_v31, 0.0  ;;  %v8274_v24 = vadd.f32 %v8273_v51, %v8272_v0  ;;  %v8166_v31 = vsel %vm3551_vm2, %v8114_v54, 0.0 }
 0x7d6   : > { %v8117_v63 = vmul.f32 %v8085_v42, %v14060_v1  ;;  %v8279_v51 = vsel %vm3551_vm2, %v8240_v58, 0.0  ;;  %v8093_v54 = vld [vmem:[%s14495_s9 + $0xf8] sm:$0xff]  ;;  %v8168_v0 = vsel %vm3551_vm2, %v8115_v9, 0.0  ;;  %v9041_v42 = vld [vmem:[%s14495_s9 + $0x160] sm:$0xff]  ;;  %v8281_v12 = vsel %vm3551_vm2, %v8241_v53, 0.0  ;;  %v9062_v9 = vld [vmem:[%s14495_s9 + $0x208] sm:$0xff] }
 0x7d7   : > { %v8157_v3 = vadd.f32 %v8156_v11, %v8155_v40  ;;  %v9039_v11 = vld [vmem:[%s14495_s9 + $0x150] sm:$0xff]  ;;  %v8089_v40 = vld [vmem:[%s14495_s9 + $0xd8] sm:$0xff]  ;;  %v8276_v25 = vadd.f32 %v8275_v10, %v8274_v24  ;;  %v8243_v10 = vmul.f32 %v9040_v57, %v13947_v56 }
 0x7d8   : > { %v8121_v45 = vmul.f32 %v8089_v40, %v14089_v61  ;;  %v9042_v40 = vld [vmem:[%s14495_s9 + $0x168] sm:$0xff]  ;;  %v9063_v53 = vld [vmem:[%s14495_s9 + $0x210] sm:$0xff] }
 0x7d9   : > { %v8159_v28 = vadd.f32 %v8158_v52, %v8157_v3  ;;  %v8277_v52 = vsel %vm3551_vm2, %v8239_v15, 0.0  ;;  %v8118_v3 = vmul.f32 %v8086_v44, %v14062_v26  ;;  %v8242_v15 = vmul.f32 %v9039_v11, %v13940_v27 }
 0x7da   : > { %v8278_v44 = vadd.f32 %v8277_v52, %v8276_v25  ;;  %v14155_v11 = vmul.f32 %v8091_v48, %v14110_v5  ;;  %v14168_v52 = vmul.f32 %v8093_v54, %v14132_v49  ;;  %v8172_v25 = vsel %vm3551_vm2, %v8117_v63, 0.0  ;;  %v9043_v48 = vld [vmem:[%s14495_s9 + $0x170] sm:$0xff]  ;;  %v9065_v63 = vld [vmem:[%s14495_s9 + $0x220] sm:$0xff] }
 0x7db   : > { %v8161_v14 = vadd.f32 %v8160_v19, %v8159_v28  ;;  %v14121_v19 = vld [vmem:[#allocation7 + $0xf0] sm:$0xff]  ;;  %v8283_v57 = vsel %vm3551_vm2, %v8242_v15, 0.0  ;;  %v8370_v54 = vmul.f32 %v9062_v9, %v13876_v22  ;;  %v8176_v49 = vsel %vm3551_vm2, %v8119_v41, 0.0 }
 0x7dc   : > { %v14158_v24 = vmul.f32 %v8092_v46, %v14121_v19  ;;  %v9044_v46 = vld [vmem:[%s14495_s9 + $0x178] sm:$0xff]  ;;  %v8246_v22 = vmul.f32 %v9043_v48, %v13968_v55  ;;  %v8373_v41 = vmul.f32 %v9065_v63, %v13897_v50  ;;  %v9046_v50 = vld [vmem:[%s14495_s9 + $0x188] sm:$0xff] }
 0x7dd   : > { %v8163_v8 = vadd.f32 %v8162_v35, %v8161_v14  ;;  %v8120_v35 = vmul.f32 %v8088_v17, %v14079_v37  ;;  %v14144_v14 = vmul.f32 %v8090_v18, %v14099_v62  ;;  %v8170_v17 = vsel %vm3551_vm2, %v8116_v2, 0.0  ;;  %v9064_v2 = vld [vmem:[%s14495_s9 + $0x218] sm:$0xff] }
 0x7de   : > { %v8247_v9 = vmul.f32 %v9044_v46, %v13984_v60 }
 0x7df   : > { %v8165_v28 = vadd.f32 %v8164_v16, %v8163_v8  ;;  %v9061_v16 = vld [vmem:[%s14495_s9 + $0x200] sm:$0xff]  ;;  %v8280_v8 = vadd.f32 %v8279_v51, %v8278_v44  ;;  %v8371_v44 = vmul.f32 %v9063_v53, %v13878_v6 }
 0x7e0   : > { %v8369_v51 = vmul.f32 %v9061_v16, %v13874_v59  ;;  %v8372_v59 = vmul.f32 %v9064_v2, %v13880_v32  ;;  %v9045_v6 = vld [vmem:[%s14495_s9 + $0x180] sm:$0xff]  ;;  %v8178_v2 = vsel %vm3551_vm2, %v8120_v35, 0.0  ;;  %v8180_v35 = vsel %vm3551_vm2, %v8121_v45, 0.0 }
 0x7e1   : > { %v8167_v58 = vadd.f32 %v8166_v31, %v8165_v28  ;;  %v8244_v31 = vmul.f32 %v9041_v42, %v13954_v43  ;;  %v8282_v28 = vadd.f32 %v8281_v12, %v8280_v8  ;;  %v8285_v42 = vsel %vm3551_vm2, %v8243_v10, 0.0 }
 0x7e2   : > { %v8401_v32 = vsel %vm3551_vm2, %v8369_v51, 0.0  ;;  %v8406_v46 = vsel %vm3551_vm2, %v8372_v59, 0.0  ;;  %v8248_v51 = vmul.f32 %v9045_v6, %v13994_v21  ;;  %v9069_v59 = vld [vmem:[%s14495_s9 + $0x240] sm:$0xff]  ;;  %v8182_v45 = vsel %vm3551_vm2, %v14144_v14, 0.0 }
 0x7e3   : > { %v8169_v18 = vadd.f32 %v8168_v0, %v8167_v58  ;;  %v8245_v0 = vmul.f32 %v9042_v40, %v13961_v29  ;;  %v8174_v58 = vsel %vm3551_vm2, %v8118_v3, 0.0  ;;  %v8284_v12 = vadd.f32 %v8283_v57, %v8282_v28 }
 0x7e4   : > { %v8287_v10 = vsel %vm3551_vm2, %v8244_v31, 0.0  ;;  %v8402_v40 = vsel %vm3551_vm2, %v8370_v54, 0.0  ;;  %v8404_v57 = vsel %vm3551_vm2, %v8371_v44, 0.0  ;;  %v8291_v54 = vsel %vm3551_vm2, %v8246_v22, 0.0  ;;  %v9048_v22 = vld [vmem:[%s14495_s9 + $0x198] sm:$0xff] }
 0x7e5   : > { %v8171_v15 = vadd.f32 %v8170_v17, %v8169_v18  ;;  %v9066_v17 = vld [vmem:[%s14495_s9 + $0x228] sm:$0xff]  ;;  %v8286_v3 = vadd.f32 %v8285_v42, %v8284_v12  ;;  %v8289_v53 = vsel %vm3551_vm2, %v8245_v0, 0.0  ;;  %v9067_v18 = vld [vmem:[%s14495_s9 + $0x230] sm:$0xff]  ;;  %v8403_v31 = vadd.f32 %v8402_v40, %v8401_v32  ;;  %v9049_v40 = vld [vmem:[%s14495_s9 + $0x1a0] sm:$0xff] }
 0x7e6   : > { %v8374_v48 = vmul.f32 %v9066_v17, %v13903_v39  ;;  %v9047_v42 = vld [vmem:[%s14495_s9 + $0x190] sm:$0xff]  ;;  %v8375_v39 = vmul.f32 %v9067_v18, %v13907_v4  ;;  %v8293_v12 = vsel %vm3551_vm2, %v8247_v9, 0.0  ;;  %v8184_v14 = vsel %vm3551_vm2, %v14155_v11, 0.0 }
 0x7e7   : > { %v8173_v16 = vadd.f32 %v8172_v25, %v8171_v15  ;;  %v8288_v25 = vadd.f32 %v8287_v10, %v8286_v3  ;;  %v9068_v15 = vld [vmem:[%s14495_s9 + $0x238] sm:$0xff]  ;;  %v8405_v0 = vadd.f32 %v8404_v57, %v8403_v31  ;;  %v8250_v9 = vmul.f32 %v9047_v42, %v14019_v38 }
 0x7e8   : > { %v8376_v10 = vmul.f32 %v9068_v15, %v13917_v47  ;;  %v8410_v17 = vsel %vm3551_vm2, %v8374_v48, 0.0  ;;  %v8295_v3 = vsel %vm3551_vm2, %v8248_v51, 0.0  ;;  %v8251_v31 = vmul.f32 %v9048_v22, %v14032_v30  ;;  %v9072_v15 = vld [vmem:[%s14495_s9 + $0x258] sm:$0xff] }
 0x7e9   : > { %v8175_v8 = vadd.f32 %v8174_v58, %v8173_v16  ;;  %v8290_v63 = vadd.f32 %v8289_v53, %v8288_v25  ;;  %v8249_v58 = vmul.f32 %v9046_v50, %v14007_v20  ;;  %v8407_v16 = vadd.f32 %v8406_v46, %v8405_v0  ;;  %v9050_v25 = vld [vmem:[%s14495_s9 + $0x1a8] sm:$0xff] }
 0x7ea   : > { %v8412_v53 = vsel %vm3551_vm2, %v8375_v39, 0.0  ;;  %v8186_v11 = vsel %vm3551_vm2, %v14158_v24, 0.0  ;;  %v8414_v46 = vsel %vm3551_vm2, %v8376_v10, 0.0  ;;  %v8252_v51 = vmul.f32 %v9049_v40, %v14044_v36  ;;  %v9074_v10 = vld [vmem:[%s14495_s9 + $0x268] sm:$0xff]  ;;  %v9075_v40 = vld [vmem:[%s14495_s9 + $0x270] sm:$0xff] }
 0x7eb   : > { %v8177_v28 = vadd.f32 %v8176_v49, %v8175_v8  ;;  %v8408_v49 = vsel %vm3551_vm2, %v8373_v41, 0.0  ;;  %v8292_v4 = vadd.f32 %v8291_v54, %v8290_v63  ;;  %v9070_v41 = vld [vmem:[%s14495_s9 + $0x248] sm:$0xff]  ;;  %v8377_v8 = vmul.f32 %v9069_v59, %v13925_v33 }
 0x7ec   : > { %v8409_v32 = vadd.f32 %v8408_v49, %v8407_v16  ;;  %v8297_v57 = vsel %vm3551_vm2, %v8249_v58, 0.0  ;;  %v8378_v48 = vmul.f32 %v9070_v41, %v13932_v23  ;;  %v8299_v54 = vsel %vm3551_vm2, %v8250_v9, 0.0  ;;  %v9073_v58 = vld [vmem:[%s14495_s9 + $0x260] sm:$0xff] }
 0x7ed   : > { %v8179_v44 = vadd.f32 %v8178_v2, %v8177_v28  ;;  %v8294_v47 = vadd.f32 %v8293_v12, %v8292_v4  ;;  %v9071_v2 = vld [vmem:[%s14495_s9 + $0x250] sm:$0xff]  ;;  %v8188_v24 = vsel %vm3551_vm2, %v14168_v52, 0.0  ;;  %v8416_v63 = vsel %vm3551_vm2, %v8377_v8, 0.0  ;;  %v9052_v52 = vld [vmem:[%s14495_s9 + $0x1b8] sm:$0xff]  ;;  %v9054_v8 = vld [vmem:[%s14495_s9 + $0x1c8] sm:$0xff] }
 0x7ee   : > { %v8411_v50 = vadd.f32 %v8410_v17, %v8409_v32  ;;  %v8379_v42 = vmul.f32 %v9071_v2, %v13940_v27  ;;  %v8253_v49 = vmul.f32 %v9050_v25, %v14051_v34  ;;  %v8380_v16 = vmul.f32 %v9072_v15, %v13947_v56  ;;  %v9055_v25 = vld [vmem:[%s14495_s9 + $0x1d0] sm:$0xff] }
 0x7ef   : > { %v8181_v6 = vadd.f32 %v8180_v35, %v8179_v44  ;;  %v8296_v33 = vadd.f32 %v8295_v3, %v8294_v47  ;;  %v9051_v35 = vld [vmem:[%s14495_s9 + $0x1b0] sm:$0xff]  ;;  %v8301_v44 = vsel %vm3551_vm2, %v8251_v31, 0.0  ;;  %v8418_v27 = vsel %vm3551_vm2, %v8378_v48, 0.0 }
 0x7f0   : > { %v8413_v0 = vadd.f32 %v8412_v53, %v8411_v50  ;;  %v8254_v22 = vmul.f32 %v9051_v35, %v14053_v7  ;;  %v8303_v4 = vsel %vm3551_vm2, %v8252_v51, 0.0  ;;  %v8381_v3 = vmul.f32 %v9073_v58, %v13954_v43  ;;  %v9076_v50 = vld [vmem:[%s14495_s9 + $0x278] sm:$0xff] }
 0x7f1   : > { %v8183_v18 = vadd.f32 %v8182_v45, %v8181_v6  ;;  %v8298_v23 = vadd.f32 %v8297_v57, %v8296_v33  ;;  %v9053_v6 = vld [vmem:[%s14495_s9 + $0x1c0] sm:$0xff]  ;;  %v8420_v56 = vsel %vm3551_vm2, %v8379_v42, 0.0  ;;  %v8255_v32 = vmul.f32 %v9052_v52, %v14060_v1 }
 0x7f2   : > { %v8415_v12 = vadd.f32 %v8414_v46, %v8413_v0  ;;  %v8422_v43 = vsel %vm3551_vm2, %v8380_v16, 0.0  ;;  %v8256_v57 = vmul.f32 %v9053_v6, %v14062_v26  ;;  %v8307_v2 = vsel %vm3551_vm2, %v8254_v22, 0.0  ;;  %v9056_v0 = vld [vmem:[%s14495_s9 + $0x1d8] sm:$0xff]  ;;  %v9058_v22 = vld [vmem:[%s14495_s9 + $0x1e8] sm:$0xff] }
 0x7f3   : > { %v8185_v28 = vadd.f32 %v8184_v14, %v8183_v18  ;;  %v8300_v59 = vadd.f32 %v8299_v54, %v8298_v23  ;;  %v8305_v14 = vsel %vm3551_vm2, %v8253_v49, 0.0  ;;  %v8382_v18 = vmul.f32 %v9074_v10, %v13961_v29  ;;  %v9077_v54 = vld [vmem:[%s14495_s9 + $0x280] sm:$0xff] }
 0x7f4   : > { %v8417_v17 = vadd.f32 %v8416_v63, %v8415_v12  ;;  %v8383_v48 = vmul.f32 %v9075_v40, %v13968_v55  ;;  %v8424_v29 = vsel %vm3551_vm2, %v8381_v3, 0.0  ;;  %v8309_v51 = vsel %vm3551_vm2, %v8255_v32, 0.0  ;;  %v9080_v3 = vld [vmem:[%s14495_s9 + $0x298] sm:$0xff] }
 0x7f5   : > { %v8187_v39 = vadd.f32 %v8186_v11, %v8185_v28  ;;  %v8302_v9 = vadd.f32 %v8301_v44, %v8300_v59  ;;  %v8257_v28 = vmul.f32 %v9054_v8, %v14069_v13  ;;  %v8384_v35 = vmul.f32 %v9076_v50, %v13984_v60  ;;  %v9057_v44 = vld [vmem:[%s14495_s9 + $0x1e0] sm:$0xff] }
 0x7f6   : > { %v8419_v47 = vadd.f32 %v8418_v27, %v8417_v17  ;;  %v8426_v55 = vsel %vm3551_vm2, %v8382_v18, 0.0  ;;  %v8258_v42 = vmul.f32 %v9055_v25, %v14079_v37  ;;  %v8311_v63 = vsel %vm3551_vm2, %v8256_v57, 0.0  ;;  %v9079_v27 = vld [vmem:[%s14495_s9 + $0x290] sm:$0xff] }
 0x7f7   : > { %v8189_v45 = vadd.f32 %v8188_v24, %v8187_v39  ;;  %v8304_v53 = vadd.f32 %v8303_v4, %v8302_v9  ;;  %v9078_v39 = vld [vmem:[%s14495_s9 + $0x288] sm:$0xff]  ;;  %v8385_v12 = vmul.f32 %v9077_v54, %v13994_v21  ;;  %v8428_v60 = vsel %vm3551_vm2, %v8383_v48, 0.0 }
 0x7f8   : > { %v8421_v11 = vadd.f32 %v8420_v56, %v8419_v47  ;;  %v8259_v59 = vmul.f32 %v9056_v0, %v14089_v61  ;;  %v8313_v16 = vsel %vm3551_vm2, %v8257_v28, 0.0  ;;  %v8386_v10 = vmul.f32 %v9078_v39, %v14007_v20 }
 0x7f9   : > { %v8190_v41 = vrot.slane %v8189_v45, 4  ;;  %v8306_v33 = vadd.f32 %v8305_v14, %v8304_v53  ;;  %v8430_v21 = vsel %vm3551_vm2, %v8384_v35, 0.0  ;;  %v8260_v6 = vmul.f32 %v9057_v44, %v14099_v62  ;;  %v9081_v53 = vld [vmem:[%s14495_s9 + $0x2a0] sm:$0xff] }
 0x7fa   : > { %v8423_v15 = vadd.f32 %v8422_v43, %v8421_v11  ;;  %v8315_v9 = vsel %vm3551_vm2, %v8258_v42, 0.0  ;;  %v8387_v14 = vmul.f32 %v9079_v27, %v14019_v38  ;;  %v8432_v20 = vsel %vm3551_vm2, %v8385_v12, 0.0  ;;  %v9060_v43 = vld [vmem:[%s14495_s9 + $0x1f8] sm:$0xff]  ;;  %v9082_v11 = vld [vmem:[%s14495_s9 + $0x2a8] sm:$0xff]  ;;  %v9087_v27 = vld [vmem:[%s14495_s9 + $0x2d0] sm:$0xff] }
 0x7fb   : > { %v8191_v31 = vadd.f32 %v8190_v41, %v8189_v45  ;;  %v8308_v24 = vadd.f32 %v8307_v2, %v8306_v33  ;;  %v9059_v41 = vld [vmem:[%s14495_s9 + $0x1f0] sm:$0xff]  ;;  %v8261_v47 = vmul.f32 %v9058_v22, %v14110_v5  ;;  %v8317_v8 = vsel %vm3551_vm2, %v8259_v59, 0.0 }
 0x7fc   : > { %v8425_v49 = vadd.f32 %v8424_v29, %v8423_v15  ;;  %v8388_v38 = vmul.f32 %v9080_v3, %v14032_v30  ;;  %v8434_v57 = vsel %vm3551_vm2, %v8386_v10, 0.0  ;;  %v8262_v2 = vmul.f32 %v9059_v41, %v14121_v19  ;;  %v9088_v10 = vld [vmem:[%s14495_s9 + $0x2d8] sm:$0xff] }
 0x7fd   : > { %v8192_v46 = vrot.slane %v8191_v31, 2  ;;  %v8310_v58 = vadd.f32 %v8309_v51, %v8308_v24  ;;  %v8319_v50 = vsel %vm3551_vm2, %v8260_v6, 0.0  ;;  %v8389_v48 = vmul.f32 %v9081_v53, %v14044_v36  ;;  %v9083_v51 = vld [vmem:[%s14495_s9 + $0x2b0] sm:$0xff]  ;;  %v9084_v36 = vld [vmem:[%s14495_s9 + $0x2b8] sm:$0xff] }
 0x7fe   : > { %v8427_v45 = vadd.f32 %v8426_v55, %v8425_v49  ;;  %v8436_v29 = vsel %vm3551_vm2, %v8387_v14, 0.0  ;;  %v8321_v30 = vsel %vm3551_vm2, %v8261_v47, 0.0  ;;  %v8390_v0 = vmul.f32 %v9082_v11, %v14051_v34  ;;  %v9085_v34 = vld [vmem:[%s14495_s9 + $0x2c0] sm:$0xff]  ;;  %v9091_v47 = vld [vmem:[%s14495_s9 + $0x2f0] sm:$0xff] }
 0x7ff   : > { %v8193_v23 = vadd.f32 %v8192_v46, %v8191_v31  ;;  %v8312_v4 = vadd.f32 %v8311_v63, %v8310_v58  ;;  %v14914_v46 = vld [vmem:[#allocation16_spill] sm:$0xff]  ;;  %v8438_v24 = vsel %vm3551_vm2, %v8388_v38, 0.0  ;;  %v8323_v35 = vsel %vm3551_vm2, %v8262_v2, 0.0 }
 0x800   : > { %v8429_v56 = vadd.f32 %v8428_v60, %v8427_v45  ;;  %v8263_v28 = vmul.f32 %v9060_v43, %v14914_v46  ;;  %v8391_v42 = vmul.f32 %v9083_v51, %v14053_v7  ;;  %v8440_v63 = vsel %vm3551_vm2, %v8389_v48, 0.0  ;;  %v9086_v60 = vld [vmem:[%s14495_s9 + $0x2c8] sm:$0xff]  ;;  %v9092_v43 = vld [vmem:[%s14495_s9 + $0x2f8] sm:$0xff] }
 0x801   : > { %v8194_v52 = vrot.slane %v8193_v23, 1  ;;  %v8314_v32 = vadd.f32 %v8313_v16, %v8312_v4  ;;  %v8392_v58 = vmul.f32 %v9084_v36, %v14060_v1  ;;  %v8442_v12 = vsel %vm3551_vm2, %v8390_v0, 0.0 }
 0x802   : > { %v8431_v18 = vadd.f32 %v8430_v21, %v8429_v56  ;;  %v8325_v39 = vsel %vm3551_vm2, %v8263_v28, 0.0  ;;  %v8393_v59 = vmul.f32 %v9085_v34, %v14062_v26  ;;  %v8444_v16 = vsel %vm3551_vm2, %v8391_v42, 0.0 }
 0x803   : > { %v8195_v17 = vadd.f32 %v8194_v52, %v8193_v23  ;;  %v8316_v31 = vadd.f32 %v8315_v9, %v8314_v32  ;;  %v8394_v1 = vmul.f32 %v9086_v60, %v14069_v13  ;;  %v8446_v4 = vsel %vm3551_vm2, %v8392_v58, 0.0  ;;  %v9089_v9 = vld [vmem:[%s14495_s9 + $0x2e0] sm:$0xff]  ;;  %v9090_v32 = vld [vmem:[%s14495_s9 + $0x2e8] sm:$0xff] }
 0x804   : > { %v8433_v25 = vadd.f32 %v8432_v20, %v8431_v18  ;;  %v8395_v26 = vmul.f32 %v9087_v27, %v14079_v37  ;;  %v8448_v6 = vsel %vm3551_vm2, %v8393_v59, 0.0  ;;  %v8396_v13 = vmul.f32 %v9088_v10, %v14089_v61 }
 0x805   : > { %v8196_v40 = vsel %vm3551_vm2, %v8195_v17, 0.0  ;;  %v8318_v33 = vadd.f32 %v8317_v8, %v8316_v31  ;;  %v8450_v41 = vsel %vm3551_vm2, %v8394_v1, 0.0  ;;  %v8397_v37 = vmul.f32 %v9089_v9, %v14099_v62 }
 0x806   : > { %8197 = vadd.xlane.f32.xlu0 %v8196_v40  ;;  %v8435_v54 = vadd.f32 %v8434_v57, %v8433_v25  ;;  %v8452_v40 = vsel %vm3551_vm2, %v8395_v26, 0.0  ;;  %v8398_v61 = vmul.f32 %v9090_v32, %v14110_v5  ;;  %v8454_v18 = vsel %vm3551_vm2, %v8396_v13, 0.0 }
 0x807   : > { %v8320_v15 = vadd.f32 %v8319_v50, %v8318_v33  ;;  %v8399_v62 = vmul.f32 %v9091_v47, %v14121_v19  ;;  %v8456_v57 = vsel %vm3551_vm2, %v8397_v37, 0.0  ;;  %v8400_v11 = vmul.f32 %v9092_v43, %v14914_v46 }
 0x808   : > { %v8437_v55 = vadd.f32 %v8436_v29, %v8435_v54  ;;  %v8458_v25 = vsel %vm3551_vm2, %v8398_v61, 0.0 }
 0x809   : > { %v8322_v23 = vadd.f32 %v8321_v30, %v8320_v15  ;;  %v8460_v33 = vsel %vm3551_vm2, %v8399_v62, 0.0  ;;  %v8462_v29 = vsel %vm3551_vm2, %v8400_v11, 0.0 }
 0x80a   : > { %v8439_v49 = vadd.f32 %v8438_v24, %v8437_v55 }
 0x80b   : > { %v8324_v44 = vadd.f32 %v8323_v35, %v8322_v23  ;;  %v8477_v23 = vld [vmem:[%s14496_s10] sm:$0x1] }
 0x80c   : > { %v8441_v52 = vadd.f32 %v8440_v63, %v8439_v49 }
 0x80d   : > { %v8326_v7 = vadd.f32 %v8325_v39, %v8324_v44 }
 0x80e   : > { %v8443_v45 = vadd.f32 %v8442_v12, %v8441_v52 }
 0x80f   : > { %v8327_v22 = vrot.slane %v8326_v7, 4 }
 0x810   : > { %v8445_v21 = vadd.f32 %v8444_v16, %v8443_v45 }
 0x811   : > { %v8328_v17 = vadd.f32 %v8327_v22, %v8326_v7 }
 0x812   : > { %v8447_v3 = vadd.f32 %v8446_v4, %v8445_v21 }
 0x813   : > { %v8329_v56 = vrot.slane %v8328_v17, 2 }
 0x814   : > { %v8449_v14 = vadd.f32 %v8448_v6, %v8447_v3 }
 0x815   : > { %v8330_v20 = vadd.f32 %v8329_v56, %v8328_v17 }
 0x816   : > { %v8451_v8 = vadd.f32 %v8450_v41, %v8449_v14 }
 0x817   : > { %v8331_v53 = vrot.slane %v8330_v20, 1 }
 0x818   : > { %v8453_v31 = vadd.f32 %v8452_v40, %v8451_v8 }
 0x819   : > { %v8332_v38 = vadd.f32 %v8331_v53, %v8330_v20 }
 0x81a   : > { %v8455_v2 = vadd.f32 %v8454_v18, %v8453_v31 }
 0x81b   : > { %v8333_v50 = vsel %vm3551_vm2, %v8332_v38, 0.0 }
 0x81c   : > { %8334 = vadd.xlane.f32.xlu0 %v8333_v50  ;;  %v8457_v5 = vadd.f32 %v8456_v57, %v8455_v2 }
 0x81e   : > { %v8459_v48 = vadd.f32 %v8458_v25, %v8457_v5 }
 0x820   : > { %v8461_v28 = vadd.f32 %v8460_v33, %v8459_v48 }
 0x822   : > { %v8463_v30 = vadd.f32 %v8462_v29, %v8461_v28 }
 0x824   : > { %v8464_v19 = vrot.slane %v8463_v30, 4 }
 0x826   : > { %v8465_v51 = vadd.f32 %v8464_v19, %v8463_v30 }
 0x828   : > { %v8466_v54 = vrot.slane %v8465_v51, 2 }
 0x82a   : > { %v8467_v15 = vadd.f32 %v8466_v54, %v8465_v51 }
 0x82c   : > { %v8468_v0 = vrot.slane %v8467_v15, 1 }
 0x82e   : > { %v8469_v24 = vadd.f32 %v8468_v0, %v8467_v15 }
 0x830   : > { %v8470_v46 = vsel %vm3551_vm2, %v8469_v24, 0.0 }
 0x831   : > { %8471 = vadd.xlane.f32.xlu1 %v8470_v46 }
 0x893   : > { %v8198_v35 = vpop.xlane.xlu0 %8197 }
 0x8a9   : > { %v8335_v36 = vpop.xlane.xlu0 %8334 }
 0x8aa   : > { %v8474_v55 = vsel %vm8473_vm10, %v8198_v35, %v8335_v36 }
 0x8be   : > { %v8472_v42 = vpop.xlane.xlu1 %8471 }
 0x8bf   : > { %v8476_v63 = vsel %vm8475_vm11, %v8474_v55, %v8472_v42 }
 0x8c0   : > { %v8478_v39 = vadd.f32 %v8477_v23, %v8476_v63 }
 0x8c2   : > { %8480 = vst.msk [vmem:[%s10947_s16] sm:$0x1] %vm8479_vm12, %v8478_v39 }
 0x8c3   : > { %10699 = shalt.err (!%p10696_p10)
}
 0x8c4   : > { %s10700_s16 = scalar_lea.hbm %s14441_s26, 16  ;;  %s10704_s2 = scalar_lea.hbm %s14497_s11, 32 }
 0x8c5   : > { %p10701_p11 = scmp.ne.s32.totalorder %s14441_s26, %s10700_s16  ;;  %p10705_p0 = scmp.lt.u32.totalorder %s14441_s26, %s14497_s11 }
 0x8c6   : > { %p10706_p1 = scmp.lt.u32.totalorder %s10704_s2, %s10700_s16  ;;  %p10708_p3 = scmp.lt.u32.totalorder %s10700_s16, %s14441_s26 }
 0x8c7   : > { %p10702_p12 = pnand %p10701_p11, %p10901_p5 }
 0x8c8   : > { %p10707_p2 = por %p10706_p1, %p10705_p0 }
 0x8c9   : > { %p10703_p13 = pneg %p10702_p12 }
 0x8ca   : > { %p10709_p4 = por %p10708_p3, %p10707_p2 }
 0x8cc   : > { %p10710_p7 = pnand %p10709_p4, %p10703_p13 }
 0x8ce   : > { %10713 = shalt.err (!%p10710_p7)
}
 0x8cf   : > { %10162 = dma.vmem_to_hbm [thread:$0]  (%p10901_p5), %s14443_s14, 16, %s14441_s26, %s8482_s13  }
 0x8d0 PF: > { %p10168_p8 = scmp.ge.s32.totalorder %s10768_s20, 2  ;;  %s8506_s30 = sand.u32 1, %s10756_s17  }
 0x8d1   : > { %s8507_s24 = scalar_lea.sflag [#allocation9], %s8506_s30 }
 0x8d2   : > { %p10165_p9 = pnand %p10168_p8, %p10905_p6 }
 0x8d4   : > { %10751 = dma.done.wait (!%p10165_p9), %s8507_s24, 16  }
 0x8d5   : > { %10753 = vsyncadd (!%p10165_p9), %s8507_s24, 4294967280  ;;  %s14916_s15 = sld [smem:[#allocation11_spill]]  ;;  %p21_p10 = scmp.ge.s32.totalorder %s10888_s23, 4  }
 0x8d6   : > { %s14917_s17 = smov %s10760_s18  ;;  %s14918_s18 = smov %s10764_s19 }
 0x8d7   : > { %s14920_s20 = smov %s10888_s23  ;;  %23 = sbr.rel (!%p21_p10) target bundleno = 7 (0x7), region = 247 }
 0x8db   : > { %s14919_s19 = smov %s14916_s15 }
 0x8de   :  { %8511 = vsyncpa [#allocation9], 1 }
 0x8df   :  { %8513 = vsyncpa [#allocation9 + $0x1], 1 }

</bundles_post_ra>
